<compile_context>
chip_gen: v6e
topology: v6e:2x2x1
jax: 0.10.0
libtpu: 0.0.40
codegen_flags: <defaults>
</compile_context>

<pallas_src>
import math

import numpy as np
import jax
import jax.numpy as jnp
from jax.experimental import pallas as pl
from jax.experimental.pallas import tpu as pltpu


# ----------------------------------------------------------------------------
# Fused localization network + fc_loc (one batch element per grid step).
# ----------------------------------------------------------------------------
def _loc_fc_kernel(p1_ref, w1_ref, b1_ref, g2_ref, w2_ref, b2_ref,
                   fw1_ref, fb1_ref, fw2_ref, fb2_ref, fw3_ref, fb3_ref,
                   theta_ref):
    """Refs (per batch element):
      p1_ref : (1, 4, CK1, NP1)      conv1 im2col grouped by 2x2 pool-window pos
      w1_ref : (C1out, CK1)          b1_ref: (C1out, 1)
      g2_ref : (K2*K2, NP1, 4*NSP2)  0/1 gather matrices building conv2's im2col
      w2_ref : (C2out, K2*K2*C1out)  b2_ref: (C2out, 1)
      fw1_ref: (C2out*NSP2, NFC1)    fb1_ref: (1, NFC1)
      fw2_ref: (NFC1, NFC2)          fb2_ref: (1, NFC2)
      fw3_ref: (NFC2, 6)             fb3_ref: (1, 6)
      theta_ref: (1, 1, 6) output
    """
    n_grp = p1_ref.shape[1]                    # 4 pool-window positions
    kk2 = g2_ref.shape[0]                      # conv2 taps (5*5)
    n_sp2 = g2_ref.shape[2] // n_grp           # conv2 pooled spatial size (16)
    c2out = w2_ref.shape[0]                    # conv2 out channels (10)

    # conv1: one matmul per pool-window group, maxpool over groups, +bias, relu.
    y = jnp.dot(w1_ref[...], p1_ref[0, 0], preferred_element_type=jnp.float32)
    for g in range(1, n_grp):
        y = jnp.maximum(
            y, jnp.dot(w1_ref[...], p1_ref[0, g], preferred_element_type=jnp.float32))
    h1 = jnp.maximum(y + b1_ref[...], 0.0)                       # (C1out, NP1)

    # conv2: in-kernel im2col via gather matmuls (rows ordered (k2, c1)), one conv
    # matmul, 2x2 maxpool over lane groups, relu.
    p2 = jnp.concatenate(
        [jnp.dot(h1, g2_ref[k], preferred_element_type=jnp.float32)
         for k in range(kk2)], axis=0)                           # (K2*K2*C1out, 4*NSP2)
    y2 = jnp.dot(w2_ref[...], p2, preferred_element_type=jnp.float32) + b2_ref[...]
    m = y2[:, 0:n_sp2]
    for g in range(1, n_grp):
        m = jnp.maximum(m, y2[:, g * n_sp2:(g + 1) * n_sp2])
    h2 = jnp.maximum(m, 0.0)                                     # (C2out, NSP2)

    # fc_loc: Linear -> ReLU -> Linear -> ReLU -> Linear.  The NCHW flatten
    # (feat index = d*NSP2 + pix) is folded into fc1 as C2out row-sliced matmuls.
    a1 = fb1_ref[...]
    for d in range(c2out):
        a1 = a1 + jnp.dot(h2[d:d + 1, :], fw1_ref[d * n_sp2:(d + 1) * n_sp2, :],
                          preferred_element_type=jnp.float32)
    a1 = jnp.maximum(a1, 0.0)                                    # (1, NFC1)
    a2 = jnp.dot(a1, fw2_ref[...], preferred_element_type=jnp.float32) + fb2_ref[...]
    a2 = jnp.maximum(a2, 0.0)                                    # (1, NFC2)
    theta_ref[0] = (jnp.dot(a2, fw3_ref[...], preferred_element_type=jnp.float32)
                    + fb3_ref[...])                              # (1, 6)


def _im2col_pool_grouped(x, K):
    """Single-pass im2col for a valid KxK conv feeding a 2x2/stride-2 maxpool.
    Returns (B, 4, K*K*C, OH2*OW2); group g = wy*2+wx holds conv outputs at
    positions (2i+wy, 2j+wx); rows ordered (kh, kw, c).  One relayout (the stack);
    all following reshapes are free."""
    B, C, H, W = x.shape
    OH, OW = H - K + 1, W - K + 1
    OH2, OW2 = OH // 2, OW // 2
    pieces = []
    for wy in range(2):
        for wx in range(2):
            for kh in range(K):
                for kw in range(K):
                    pieces.append(
                        x[:, :,
                          kh + wy:kh + wy + 2 * OH2:2,
                          kw + wx:kw + wx + 2 * OW2:2])          # (B, C, OH2, OW2)
    p = jnp.stack(pieces, axis=1)                                # (B, 4*K*K, C, OH2, OW2)
    return p.reshape(B, 4, K * K * C, OH2 * OW2)


def localization_theta(x, p):
    B, C = x.shape[0], x.shape[1]
    k1 = int(round(math.sqrt(p["conv1_w"].shape[1] // C)))       # conv1 kernel size
    p1 = _im2col_pool_grouped(x.astype(jnp.float32), k1)         # (B, 4, CK1, NP1)

    def full2d(a):
        return pl.BlockSpec(a.shape, lambda b: (0, 0))

    theta = pl.pallas_call(
        _loc_fc_kernel,
        out_shape=jax.ShapeDtypeStruct((B, 1, 6), jnp.float32),
        grid=(B,),
        in_specs=[
            pl.BlockSpec((1,) + p1.shape[1:], lambda b: (b, 0, 0, 0)),
            full2d(p["conv1_w"]), full2d(p["conv1_b"]),
            pl.BlockSpec(p["g2"].shape, lambda b: (0, 0, 0)),
            full2d(p["conv2_w"]), full2d(p["conv2_b"]),
            full2d(p["fc1_w"]), full2d(p["fc1_b"]),
            full2d(p["fc2_w"]), full2d(p["fc2_b"]),
            full2d(p["fc3_w"]), full2d(p["fc3_b"]),
        ],
        out_specs=pl.BlockSpec((1, 1, 6), lambda b: (b, 0, 0)),
        compiler_params=pltpu.CompilerParams(dimension_semantics=("parallel",)),
    )(p1, p["conv1_w"], p["conv1_b"], p["g2"], p["conv2_w"], p["conv2_b"],
      p["fc1_w"], p["fc1_b"], p["fc2_w"], p["fc2_b"], p["fc3_w"], p["fc3_b"])
    return theta.reshape(B, 6)


# ----------------------------------------------------------------------------
# affine_grid + grid_sample (bilinear, padding_mode='border', align_corners=False)
# Separable bilinear: stage 1 (MXU) column interp, stage 2 (VPU/XLU) row interp.
# ----------------------------------------------------------------------------
def _grid_sample_kernel(theta_ref, base_ref, x_ref, o_ref):
    C = o_ref.shape[1]
    HW = o_ref.shape[2]
    W = x_ref.shape[2]
    H = x_ref.shape[1] // C
    b = pl.program_id(0)
    t00 = theta_ref[b, 0]; t01 = theta_ref[b, 1]; t02 = theta_ref[b, 2]
    t10 = theta_ref[b, 3]; t11 = theta_ref[b, 4]; t12 = theta_ref[b, 5]

    xg = base_ref[0:1, :]                       # (1, HW) normalized output x coords
    yg = base_ref[1:2, :]                       # (1, HW) normalized output y coords
    gx = t00 * xg + t01 * yg + t02
    gy = t10 * xg + t11 * yg + t12

    # unnormalize (align_corners=False) + 'border' padding (clamp)
    ix = jnp.clip(((gx + 1.0) * W - 1.0) * 0.5, 0.0, W - 1.0)
    iy = jnp.clip(((gy + 1.0) * H - 1.0) * 0.5, 0.0, H - 1.0)
    x0f = jnp.floor(ix); y0f = jnp.floor(iy)
    fx = ix - x0f; fy = iy - y0f
    x0 = x0f.astype(jnp.int32); y0 = y0f.astype(jnp.int32)
    x1 = jnp.minimum(x0 + 1, W - 1); y1 = jnp.minimum(y0 + 1, H - 1)

    wi = jax.lax.broadcasted_iota(jnp.int32, (W, HW), 0)
    cx = ((wi == x0).astype(jnp.float32) * (1.0 - fx)
          + (wi == x1).astype(jnp.float32) * fx)                 # (W, HW)
    hi = jax.lax.broadcasted_iota(jnp.int32, (H, HW), 0)
    ry = ((hi == y0).astype(jnp.float32) * (1.0 - fy)
          + (hi == y1).astype(jnp.float32) * fy)                 # (H, HW)

    u = jnp.dot(x_ref[0], cx, preferred_element_type=jnp.float32)   # (C*H, HW)
    o_ref[0] = (u.reshape(C, H, HW) * ry[None, :, :]).sum(axis=1)    # (C, HW), lane-dense


def stn_affine(x, theta):
    """x: (B, C, H, W), theta: (B, 6) -> (warped x, theta.reshape(B, 2, 3))."""
    B, C, H, W = x.shape
    HW = H * W
    theta1 = theta.reshape(B, 2, 3)
    x_rows = x.astype(jnp.float32).reshape(B, C * H, W)

    # theta-independent base grid (align_corners=False), a trace-time constant.
    idx = np.arange(HW)
    colf = (idx % W).astype(np.float32)
    rowf = (idx // W).astype(np.float32)
    base = jnp.asarray(np.stack([(2.0 * colf + 1.0) / W - 1.0,
                                 (2.0 * rowf + 1.0) / H - 1.0], axis=0))   # (2, HW)

    out = pl.pallas_call(
        _grid_sample_kernel,
        out_shape=jax.ShapeDtypeStruct((B, C, HW), jnp.float32),
        grid=(B,),
        in_specs=[
            pl.BlockSpec(memory_space=pltpu.MemorySpace.SMEM),   # theta (B, 6)
            pl.BlockSpec((2, HW), lambda b: (0, 0)),
            pl.BlockSpec((1, C * H, W), lambda b: (b, 0, 0)),
        ],
        out_specs=pl.BlockSpec((1, C, HW), lambda b: (b, 0, 0)),
        compiler_params=pltpu.CompilerParams(dimension_semantics=("parallel",)),
    )(theta.astype(jnp.float32), base, x_rows)
    return out.reshape(B, C, H, W), theta1


# ----------------------------------------------------------------------------
# Parameter packing (done ONCE, outside the jit-hot path).
# ----------------------------------------------------------------------------
def _make_conv2_gather(h1h, h1w, k, ph, pw):
    """0/1 matrices G[k2, src_pix, col] building conv2's im2col (columns grouped by
    2x2 pool-window position) from the pooled conv1 activation laid out (C1out, h1h*h1w)."""
    g = np.zeros((k * k, h1h * h1w, 4 * ph * pw), np.float32)
    for kh in range(k):
        for kw in range(k):
            kk = kh * k + kw
            for wy in range(2):
                for wx in range(2):
                    grp = wy * 2 + wx
                    for i in range(ph):
                        for j in range(pw):
                            src = (2 * i + wy + kh) * h1w + (2 * j + wx + kw)
                            col = grp * (ph * pw) + i * pw + j
                            g[kk, src, col] = 1.0
    return jnp.asarray(g)


def pack_params(raw, patch_size):
    H, W = patch_size
    h1h, h1w = (H - 7 + 1) // 2, (W - 7 + 1) // 2          # conv1 pooled spatial
    ph, pw = (h1h - 5 + 1) // 2, (h1w - 5 + 1) // 2        # conv2 pooled spatial
    f32 = jnp.float32
    c1o = raw["conv1_w"].shape[0]
    c2o = raw["conv2_w"].shape[0]
    return dict(
        # conv weights packed so columns match patch rows ordered (kh, kw, cin)
        conv1_w=jnp.transpose(raw["conv1_w"], (0, 2, 3, 1)).reshape(c1o, -1).astype(f32),
        conv1_b=raw["conv1_b"].reshape(-1, 1).astype(f32),
        conv2_w=jnp.transpose(raw["conv2_w"], (0, 2, 3, 1)).reshape(c2o, -1).astype(f32),
        conv2_b=raw["conv2_b"].reshape(-1, 1).astype(f32),
        g2=_make_conv2_gather(h1h, h1w, 5, ph, pw),
        fc1_w=raw["fc1_w"].T.astype(f32),
        fc1_b=raw["fc1_b"].reshape(1, -1).astype(f32),
        fc2_w=raw["fc2_w"].T.astype(f32),
        fc2_b=raw["fc2_b"].reshape(1, -1).astype(f32),
        fc3_w=raw["fc3_w"].T.astype(f32),
        fc3_b=raw["fc3_b"].reshape(1, -1).astype(f32),
    )


# ----------------------------------------------------------------------------
# Full forward pass of `net` (mode='affine', padding='border')
# ----------------------------------------------------------------------------
def stn_forward(x, p):
    theta = localization_theta(x, p)        # fused localization + fc_loc
    out, theta1 = stn_affine(x, theta)      # affine_grid + grid_sample
    return out, theta1


if __name__ == "__main__":
    B, C, H, W = 2, 2, 32, 32               # patch_size = (32, 32), channel_dim = 2
    key = jax.random.PRNGKey(0)
    k_in, k1, k2, k3, k4, k5, k6, k7, k8 = jax.random.split(key, 9)
    x = jax.random.normal(k_in, (B, C, H, W), dtype=jnp.float32)

    def uinit(k, shape, fan_in):
        bound = 1.0 / math.sqrt(fan_in)
        return jax.random.uniform(k, shape, jnp.float32, -bound, bound)

    feat_dim = 10 * (H // 4 - 4) * (W // 4 - 4)   # 10 * 4 * 4 = 160
    raw_params = dict(
        conv1_w=uinit(k1, (8, C, 7, 7), C * 49),
        conv1_b=uinit(k2, (8,), C * 49),
        conv2_w=uinit(k3, (10, 8, 5, 5), 8 * 25),
        conv2_b=uinit(k4, (10,), 8 * 25),
        fc1_w=uinit(k5, (1024, feat_dim), feat_dim),   # PyTorch Linear layout (out, in)
        fc1_b=uinit(k6, (1024,), feat_dim),
        fc2_w=uinit(k7, (32, 1024), 1024),
        fc2_b=uinit(k8, (32,), 1024),
        fc3_w=jnp.zeros((6, 32), jnp.float32),         # fc_loc[4].weight.zero_()
        fc3_b=jnp.array([1, 0, 0, 0, 1, 0], jnp.float32),
    )
    params = pack_params(raw_params, (H, W))           # one-time pre-pack, outside jit

    out, theta1 = jax.jit(stn_forward)(x, params)
    jax.block_until_ready((out, theta1))

    # With the zeroed last FC weight and identity bias, theta is the identity affine
    # and grid_sample (align_corners=False) must reproduce the input.
    ident = jnp.tile(jnp.array([[1.0, 0.0, 0.0], [0.0, 1.0, 0.0]], jnp.float32), (B, 1, 1))
    assert jnp.allclose(theta1, ident, atol=1e-5)
    assert jnp.allclose(out, x, atol=1e-3)
    print("KERNEL_OK")
</pallas_src>

<mosaic_0001>
module attributes {stable_mosaic.version = 11 : i64} {
  func.func @_loc_fc_kernel(%arg0: i32, %arg1: memref<1x4x98x169xf32, #tpu.memory_space<vmem>>, %arg2: memref<8x98xf32, #tpu.memory_space<vmem>>, %arg3: memref<8x1xf32, #tpu.memory_space<vmem>>, %arg4: memref<25x169x64xf32, #tpu.memory_space<vmem>>, %arg5: memref<10x200xf32, #tpu.memory_space<vmem>>, %arg6: memref<10x1xf32, #tpu.memory_space<vmem>>, %arg7: memref<160x1024xf32, #tpu.memory_space<vmem>>, %arg8: memref<1x1024xf32, #tpu.memory_space<vmem>>, %arg9: memref<1024x32xf32, #tpu.memory_space<vmem>>, %arg10: memref<1x32xf32, #tpu.memory_space<vmem>>, %arg11: memref<32x6xf32, #tpu.memory_space<vmem>>, %arg12: memref<1x6xf32, #tpu.memory_space<vmem>>, %arg13: memref<1x1x6xf32, #tpu.memory_space<vmem>>) attributes {dimension_semantics = [#tpu.dimension_semantics<parallel>], iteration_bounds = array<i64: 2>, scalar_prefetch = 0 : i64, scratch_operands = 0 : i64, tpu.core_type = #tpu.core_type<tc>, window_params = [{transform_indices = @transform_0, window_bounds = array<i64: 1, 4, 98, 169>}, {pipeline_mode = #tpu.pipeline_mode<synchronous>, transform_indices = @transform_1, window_bounds = array<i64: 8, 98>}, {pipeline_mode = #tpu.pipeline_mode<synchronous>, transform_indices = @transform_2, window_bounds = array<i64: 8, 1>}, {pipeline_mode = #tpu.pipeline_mode<synchronous>, transform_indices = @transform_3, window_bounds = array<i64: 25, 169, 64>}, {pipeline_mode = #tpu.pipeline_mode<synchronous>, transform_indices = @transform_4, window_bounds = array<i64: 10, 200>}, {pipeline_mode = #tpu.pipeline_mode<synchronous>, transform_indices = @transform_5, window_bounds = array<i64: 10, 1>}, {pipeline_mode = #tpu.pipeline_mode<synchronous>, transform_indices = @transform_6, window_bounds = array<i64: 160, 1024>}, {pipeline_mode = #tpu.pipeline_mode<synchronous>, transform_indices = @transform_7, window_bounds = array<i64: 1, 1024>}, {pipeline_mode = #tpu.pipeline_mode<synchronous>, transform_indices = @transform_8, window_bounds = array<i64: 1024, 32>}, {pipeline_mode = #tpu.pipeline_mode<synchronous>, transform_indices = @transform_9, window_bounds = array<i64: 1, 32>}, {pipeline_mode = #tpu.pipeline_mode<synchronous>, transform_indices = @transform_10, window_bounds = array<i64: 32, 6>}, {pipeline_mode = #tpu.pipeline_mode<synchronous>, transform_indices = @transform_11, window_bounds = array<i64: 1, 6>}, {transform_indices = @transform_12, window_bounds = array<i64: 1, 1, 6>}]} {
    %c0 = arith.constant 0 : index
    %c0_0 = arith.constant 0 : index
    %0 = vector.load %arg2[%c0, %c0_0] : memref<8x98xf32, #tpu.memory_space<vmem>>, vector<8x98xf32>
    %c0_1 = arith.constant 0 : index
    %c0_2 = arith.constant 0 : index
    %c0_3 = arith.constant 0 : index
    %c0_4 = arith.constant 0 : index
    %1 = vector.load %arg1[%c0_1, %c0_2, %c0_3, %c0_4] : memref<1x4x98x169xf32, #tpu.memory_space<vmem>>, vector<1x1x98x169xf32>
    %2 = vector.shape_cast %1 : vector<1x1x98x169xf32> to vector<98x169xf32>
    %cst = arith.constant dense<0.000000e+00> : vector<8x169xf32>
    %3 = tpu.matmul %0, %2, %cst {dimension_numbers = #tpu.dot_dimension_numbers<[1], [0], [0], [1], [0, 0, 1, 1], [], []>} : vector<8x98xf32>, vector<98x169xf32>, vector<8x169xf32> -> vector<8x169xf32>
    %c0_5 = arith.constant 0 : index
    %c0_6 = arith.constant 0 : index
    %4 = vector.load %arg2[%c0_5, %c0_6] : memref<8x98xf32, #tpu.memory_space<vmem>>, vector<8x98xf32>
    %c0_7 = arith.constant 0 : index
    %c1 = arith.constant 1 : index
    %c0_8 = arith.constant 0 : index
    %c0_9 = arith.constant 0 : index
    %5 = vector.load %arg1[%c0_7, %c1, %c0_8, %c0_9] : memref<1x4x98x169xf32, #tpu.memory_space<vmem>>, vector<1x1x98x169xf32>
    %6 = vector.shape_cast %5 : vector<1x1x98x169xf32> to vector<98x169xf32>
    %cst_10 = arith.constant dense<0.000000e+00> : vector<8x169xf32>
    %7 = tpu.matmul %4, %6, %cst_10 {dimension_numbers = #tpu.dot_dimension_numbers<[1], [0], [0], [1], [0, 0, 1, 1], [], []>} : vector<8x98xf32>, vector<98x169xf32>, vector<8x169xf32> -> vector<8x169xf32>
    %8 = arith.maximumf %3, %7 : vector<8x169xf32>
    %c0_11 = arith.constant 0 : index
    %c0_12 = arith.constant 0 : index
    %9 = vector.load %arg2[%c0_11, %c0_12] : memref<8x98xf32, #tpu.memory_space<vmem>>, vector<8x98xf32>
    %c0_13 = arith.constant 0 : index
    %c2 = arith.constant 2 : index
    %c0_14 = arith.constant 0 : index
    %c0_15 = arith.constant 0 : index
    %10 = vector.load %arg1[%c0_13, %c2, %c0_14, %c0_15] : memref<1x4x98x169xf32, #tpu.memory_space<vmem>>, vector<1x1x98x169xf32>
    %11 = vector.shape_cast %10 : vector<1x1x98x169xf32> to vector<98x169xf32>
    %cst_16 = arith.constant dense<0.000000e+00> : vector<8x169xf32>
    %12 = tpu.matmul %9, %11, %cst_16 {dimension_numbers = #tpu.dot_dimension_numbers<[1], [0], [0], [1], [0, 0, 1, 1], [], []>} : vector<8x98xf32>, vector<98x169xf32>, vector<8x169xf32> -> vector<8x169xf32>
    %13 = arith.maximumf %8, %12 : vector<8x169xf32>
    %c0_17 = arith.constant 0 : index
    %c0_18 = arith.constant 0 : index
    %14 = vector.load %arg2[%c0_17, %c0_18] : memref<8x98xf32, #tpu.memory_space<vmem>>, vector<8x98xf32>
    %c0_19 = arith.constant 0 : index
    %c3 = arith.constant 3 : index
    %c0_20 = arith.constant 0 : index
    %c0_21 = arith.constant 0 : index
    %15 = vector.load %arg1[%c0_19, %c3, %c0_20, %c0_21] : memref<1x4x98x169xf32, #tpu.memory_space<vmem>>, vector<1x1x98x169xf32>
    %16 = vector.shape_cast %15 : vector<1x1x98x169xf32> to vector<98x169xf32>
    %cst_22 = arith.constant dense<0.000000e+00> : vector<8x169xf32>
    %17 = tpu.matmul %14, %16, %cst_22 {dimension_numbers = #tpu.dot_dimension_numbers<[1], [0], [0], [1], [0, 0, 1, 1], [], []>} : vector<8x98xf32>, vector<98x169xf32>, vector<8x169xf32> -> vector<8x169xf32>
    %18 = arith.maximumf %13, %17 : vector<8x169xf32>
    %c0_23 = arith.constant 0 : index
    %c0_24 = arith.constant 0 : index
    %19 = vector.load %arg3[%c0_23, %c0_24] : memref<8x1xf32, #tpu.memory_space<vmem>>, vector<8x1xf32>
    %20 = vector.broadcast %19 : vector<8x1xf32> to vector<8x169xf32>
    %21 = arith.addf %18, %20 : vector<8x169xf32>
    %cst_25 = arith.constant 0.000000e+00 : f32
    %22 = vector.broadcast %cst_25 : f32 to vector<8x169xf32>
    %23 = arith.maximumf %21, %22 : vector<8x169xf32>
    %c0_26 = arith.constant 0 : index
    %c0_27 = arith.constant 0 : index
    %c0_28 = arith.constant 0 : index
    %24 = vector.load %arg4[%c0_26, %c0_27, %c0_28] : memref<25x169x64xf32, #tpu.memory_space<vmem>>, vector<1x169x64xf32>
    %25 = vector.shape_cast %24 : vector<1x169x64xf32> to vector<169x64xf32>
    %cst_29 = arith.constant dense<0.000000e+00> : vector<8x64xf32>
    %26 = tpu.matmul %23, %25, %cst_29 {dimension_numbers = #tpu.dot_dimension_numbers<[1], [0], [0], [1], [0, 0, 1, 1], [], []>} : vector<8x169xf32>, vector<169x64xf32>, vector<8x64xf32> -> vector<8x64xf32>
    %c1_30 = arith.constant 1 : index
    %c0_31 = arith.constant 0 : index
    %c0_32 = arith.constant 0 : index
    %27 = vector.load %arg4[%c1_30, %c0_31, %c0_32] : memref<25x169x64xf32, #tpu.memory_space<vmem>>, vector<1x169x64xf32>
    %28 = vector.shape_cast %27 : vector<1x169x64xf32> to vector<169x64xf32>
    %cst_33 = arith.constant dense<0.000000e+00> : vector<8x64xf32>
    %29 = tpu.matmul %23, %28, %cst_33 {dimension_numbers = #tpu.dot_dimension_numbers<[1], [0], [0], [1], [0, 0, 1, 1], [], []>} : vector<8x169xf32>, vector<169x64xf32>, vector<8x64xf32> -> vector<8x64xf32>
    %c2_34 = arith.constant 2 : index
    %c0_35 = arith.constant 0 : index
    %c0_36 = arith.constant 0 : index
    %30 = vector.load %arg4[%c2_34, %c0_35, %c0_36] : memref<25x169x64xf32, #tpu.memory_space<vmem>>, vector<1x169x64xf32>
    %31 = vector.shape_cast %30 : vector<1x169x64xf32> to vector<169x64xf32>
    %cst_37 = arith.constant dense<0.000000e+00> : vector<8x64xf32>
    %32 = tpu.matmul %23, %31, %cst_37 {dimension_numbers = #tpu.dot_dimension_numbers<[1], [0], [0], [1], [0, 0, 1, 1], [], []>} : vector<8x169xf32>, vector<169x64xf32>, vector<8x64xf32> -> vector<8x64xf32>
    %c3_38 = arith.constant 3 : index
    %c0_39 = arith.constant 0 : index
    %c0_40 = arith.constant 0 : index
    %33 = vector.load %arg4[%c3_38, %c0_39, %c0_40] : memref<25x169x64xf32, #tpu.memory_space<vmem>>, vector<1x169x64xf32>
    %34 = vector.shape_cast %33 : vector<1x169x64xf32> to vector<169x64xf32>
    %cst_41 = arith.constant dense<0.000000e+00> : vector<8x64xf32>
    %35 = tpu.matmul %23, %34, %cst_41 {dimension_numbers = #tpu.dot_dimension_numbers<[1], [0], [0], [1], [0, 0, 1, 1], [], []>} : vector<8x169xf32>, vector<169x64xf32>, vector<8x64xf32> -> vector<8x64xf32>
    %c4 = arith.constant 4 : index
    %c0_42 = arith.constant 0 : index
    %c0_43 = arith.constant 0 : index
    %36 = vector.load %arg4[%c4, %c0_42, %c0_43] : memref<25x169x64xf32, #tpu.memory_space<vmem>>, vector<1x169x64xf32>
    %37 = vector.shape_cast %36 : vector<1x169x64xf32> to vector<169x64xf32>
    %cst_44 = arith.constant dense<0.000000e+00> : vector<8x64xf32>
    %38 = tpu.matmul %23, %37, %cst_44 {dimension_numbers = #tpu.dot_dimension_numbers<[1], [0], [0], [1], [0, 0, 1, 1], [], []>} : vector<8x169xf32>, vector<169x64xf32>, vector<8x64xf32> -> vector<8x64xf32>
    %c5 = arith.constant 5 : index
    %c0_45 = arith.constant 0 : index
    %c0_46 = arith.constant 0 : index
    %39 = vector.load %arg4[%c5, %c0_45, %c0_46] : memref<25x169x64xf32, #tpu.memory_space<vmem>>, vector<1x169x64xf32>
    %40 = vector.shape_cast %39 : vector<1x169x64xf32> to vector<169x64xf32>
    %cst_47 = arith.constant dense<0.000000e+00> : vector<8x64xf32>
    %41 = tpu.matmul %23, %40, %cst_47 {dimension_numbers = #tpu.dot_dimension_numbers<[1], [0], [0], [1], [0, 0, 1, 1], [], []>} : vector<8x169xf32>, vector<169x64xf32>, vector<8x64xf32> -> vector<8x64xf32>
    %c6 = arith.constant 6 : index
    %c0_48 = arith.constant 0 : index
    %c0_49 = arith.constant 0 : index
    %42 = vector.load %arg4[%c6, %c0_48, %c0_49] : memref<25x169x64xf32, #tpu.memory_space<vmem>>, vector<1x169x64xf32>
    %43 = vector.shape_cast %42 : vector<1x169x64xf32> to vector<169x64xf32>
    %cst_50 = arith.constant dense<0.000000e+00> : vector<8x64xf32>
    %44 = tpu.matmul %23, %43, %cst_50 {dimension_numbers = #tpu.dot_dimension_numbers<[1], [0], [0], [1], [0, 0, 1, 1], [], []>} : vector<8x169xf32>, vector<169x64xf32>, vector<8x64xf32> -> vector<8x64xf32>
    %c7 = arith.constant 7 : index
    %c0_51 = arith.constant 0 : index
    %c0_52 = arith.constant 0 : index
    %45 = vector.load %arg4[%c7, %c0_51, %c0_52] : memref<25x169x64xf32, #tpu.memory_space<vmem>>, vector<1x169x64xf32>
    %46 = vector.shape_cast %45 : vector<1x169x64xf32> to vector<169x64xf32>
    %cst_53 = arith.constant dense<0.000000e+00> : vector<8x64xf32>
    %47 = tpu.matmul %23, %46, %cst_53 {dimension_numbers = #tpu.dot_dimension_numbers<[1], [0], [0], [1], [0, 0, 1, 1], [], []>} : vector<8x169xf32>, vector<169x64xf32>, vector<8x64xf32> -> vector<8x64xf32>
    %c8 = arith.constant 8 : index
    %c0_54 = arith.constant 0 : index
    %c0_55 = arith.constant 0 : index
    %48 = vector.load %arg4[%c8, %c0_54, %c0_55] : memref<25x169x64xf32, #tpu.memory_space<vmem>>, vector<1x169x64xf32>
    %49 = vector.shape_cast %48 : vector<1x169x64xf32> to vector<169x64xf32>
    %cst_56 = arith.constant dense<0.000000e+00> : vector<8x64xf32>
    %50 = tpu.matmul %23, %49, %cst_56 {dimension_numbers = #tpu.dot_dimension_numbers<[1], [0], [0], [1], [0, 0, 1, 1], [], []>} : vector<8x169xf32>, vector<169x64xf32>, vector<8x64xf32> -> vector<8x64xf32>
    %c9 = arith.constant 9 : index
    %c0_57 = arith.constant 0 : index
    %c0_58 = arith.constant 0 : index
    %51 = vector.load %arg4[%c9, %c0_57, %c0_58] : memref<25x169x64xf32, #tpu.memory_space<vmem>>, vector<1x169x64xf32>
    %52 = vector.shape_cast %51 : vector<1x169x64xf32> to vector<169x64xf32>
    %cst_59 = arith.constant dense<0.000000e+00> : vector<8x64xf32>
    %53 = tpu.matmul %23, %52, %cst_59 {dimension_numbers = #tpu.dot_dimension_numbers<[1], [0], [0], [1], [0, 0, 1, 1], [], []>} : vector<8x169xf32>, vector<169x64xf32>, vector<8x64xf32> -> vector<8x64xf32>
    %c10 = arith.constant 10 : index
    %c0_60 = arith.constant 0 : index
    %c0_61 = arith.constant 0 : index
    %54 = vector.load %arg4[%c10, %c0_60, %c0_61] : memref<25x169x64xf32, #tpu.memory_space<vmem>>, vector<1x169x64xf32>
    %55 = vector.shape_cast %54 : vector<1x169x64xf32> to vector<169x64xf32>
    %cst_62 = arith.constant dense<0.000000e+00> : vector<8x64xf32>
    %56 = tpu.matmul %23, %55, %cst_62 {dimension_numbers = #tpu.dot_dimension_numbers<[1], [0], [0], [1], [0, 0, 1, 1], [], []>} : vector<8x169xf32>, vector<169x64xf32>, vector<8x64xf32> -> vector<8x64xf32>
    %c11 = arith.constant 11 : index
    %c0_63 = arith.constant 0 : index
    %c0_64 = arith.constant 0 : index
    %57 = vector.load %arg4[%c11, %c0_63, %c0_64] : memref<25x169x64xf32, #tpu.memory_space<vmem>>, vector<1x169x64xf32>
    %58 = vector.shape_cast %57 : vector<1x169x64xf32> to vector<169x64xf32>
    %cst_65 = arith.constant dense<0.000000e+00> : vector<8x64xf32>
    %59 = tpu.matmul %23, %58, %cst_65 {dimension_numbers = #tpu.dot_dimension_numbers<[1], [0], [0], [1], [0, 0, 1, 1], [], []>} : vector<8x169xf32>, vector<169x64xf32>, vector<8x64xf32> -> vector<8x64xf32>
    %c12 = arith.constant 12 : index
    %c0_66 = arith.constant 0 : index
    %c0_67 = arith.constant 0 : index
    %60 = vector.load %arg4[%c12, %c0_66, %c0_67] : memref<25x169x64xf32, #tpu.memory_space<vmem>>, vector<1x169x64xf32>
    %61 = vector.shape_cast %60 : vector<1x169x64xf32> to vector<169x64xf32>
    %cst_68 = arith.constant dense<0.000000e+00> : vector<8x64xf32>
    %62 = tpu.matmul %23, %61, %cst_68 {dimension_numbers = #tpu.dot_dimension_numbers<[1], [0], [0], [1], [0, 0, 1, 1], [], []>} : vector<8x169xf32>, vector<169x64xf32>, vector<8x64xf32> -> vector<8x64xf32>
    %c13 = arith.constant 13 : index
    %c0_69 = arith.constant 0 : index
    %c0_70 = arith.constant 0 : index
    %63 = vector.load %arg4[%c13, %c0_69, %c0_70] : memref<25x169x64xf32, #tpu.memory_space<vmem>>, vector<1x169x64xf32>
    %64 = vector.shape_cast %63 : vector<1x169x64xf32> to vector<169x64xf32>
    %cst_71 = arith.constant dense<0.000000e+00> : vector<8x64xf32>
    %65 = tpu.matmul %23, %64, %cst_71 {dimension_numbers = #tpu.dot_dimension_numbers<[1], [0], [0], [1], [0, 0, 1, 1], [], []>} : vector<8x169xf32>, vector<169x64xf32>, vector<8x64xf32> -> vector<8x64xf32>
    %c14 = arith.constant 14 : index
    %c0_72 = arith.constant 0 : index
    %c0_73 = arith.constant 0 : index
    %66 = vector.load %arg4[%c14, %c0_72, %c0_73] : memref<25x169x64xf32, #tpu.memory_space<vmem>>, vector<1x169x64xf32>
    %67 = vector.shape_cast %66 : vector<1x169x64xf32> to vector<169x64xf32>
    %cst_74 = arith.constant dense<0.000000e+00> : vector<8x64xf32>
    %68 = tpu.matmul %23, %67, %cst_74 {dimension_numbers = #tpu.dot_dimension_numbers<[1], [0], [0], [1], [0, 0, 1, 1], [], []>} : vector<8x169xf32>, vector<169x64xf32>, vector<8x64xf32> -> vector<8x64xf32>
    %c15 = arith.constant 15 : index
    %c0_75 = arith.constant 0 : index
    %c0_76 = arith.constant 0 : index
    %69 = vector.load %arg4[%c15, %c0_75, %c0_76] : memref<25x169x64xf32, #tpu.memory_space<vmem>>, vector<1x169x64xf32>
    %70 = vector.shape_cast %69 : vector<1x169x64xf32> to vector<169x64xf32>
    %cst_77 = arith.constant dense<0.000000e+00> : vector<8x64xf32>
    %71 = tpu.matmul %23, %70, %cst_77 {dimension_numbers = #tpu.dot_dimension_numbers<[1], [0], [0], [1], [0, 0, 1, 1], [], []>} : vector<8x169xf32>, vector<169x64xf32>, vector<8x64xf32> -> vector<8x64xf32>
    %c16 = arith.constant 16 : index
    %c0_78 = arith.constant 0 : index
    %c0_79 = arith.constant 0 : index
    %72 = vector.load %arg4[%c16, %c0_78, %c0_79] : memref<25x169x64xf32, #tpu.memory_space<vmem>>, vector<1x169x64xf32>
    %73 = vector.shape_cast %72 : vector<1x169x64xf32> to vector<169x64xf32>
    %cst_80 = arith.constant dense<0.000000e+00> : vector<8x64xf32>
    %74 = tpu.matmul %23, %73, %cst_80 {dimension_numbers = #tpu.dot_dimension_numbers<[1], [0], [0], [1], [0, 0, 1, 1], [], []>} : vector<8x169xf32>, vector<169x64xf32>, vector<8x64xf32> -> vector<8x64xf32>
    %c17 = arith.constant 17 : index
    %c0_81 = arith.constant 0 : index
    %c0_82 = arith.constant 0 : index
    %75 = vector.load %arg4[%c17, %c0_81, %c0_82] : memref<25x169x64xf32, #tpu.memory_space<vmem>>, vector<1x169x64xf32>
    %76 = vector.shape_cast %75 : vector<1x169x64xf32> to vector<169x64xf32>
    %cst_83 = arith.constant dense<0.000000e+00> : vector<8x64xf32>
    %77 = tpu.matmul %23, %76, %cst_83 {dimension_numbers = #tpu.dot_dimension_numbers<[1], [0], [0], [1], [0, 0, 1, 1], [], []>} : vector<8x169xf32>, vector<169x64xf32>, vector<8x64xf32> -> vector<8x64xf32>
    %c18 = arith.constant 18 : index
    %c0_84 = arith.constant 0 : index
    %c0_85 = arith.constant 0 : index
    %78 = vector.load %arg4[%c18, %c0_84, %c0_85] : memref<25x169x64xf32, #tpu.memory_space<vmem>>, vector<1x169x64xf32>
    %79 = vector.shape_cast %78 : vector<1x169x64xf32> to vector<169x64xf32>
    %cst_86 = arith.constant dense<0.000000e+00> : vector<8x64xf32>
    %80 = tpu.matmul %23, %79, %cst_86 {dimension_numbers = #tpu.dot_dimension_numbers<[1], [0], [0], [1], [0, 0, 1, 1], [], []>} : vector<8x169xf32>, vector<169x64xf32>, vector<8x64xf32> -> vector<8x64xf32>
    %c19 = arith.constant 19 : index
    %c0_87 = arith.constant 0 : index
    %c0_88 = arith.constant 0 : index
    %81 = vector.load %arg4[%c19, %c0_87, %c0_88] : memref<25x169x64xf32, #tpu.memory_space<vmem>>, vector<1x169x64xf32>
    %82 = vector.shape_cast %81 : vector<1x169x64xf32> to vector<169x64xf32>
    %cst_89 = arith.constant dense<0.000000e+00> : vector<8x64xf32>
    %83 = tpu.matmul %23, %82, %cst_89 {dimension_numbers = #tpu.dot_dimension_numbers<[1], [0], [0], [1], [0, 0, 1, 1], [], []>} : vector<8x169xf32>, vector<169x64xf32>, vector<8x64xf32> -> vector<8x64xf32>
    %c20 = arith.constant 20 : index
    %c0_90 = arith.constant 0 : index
    %c0_91 = arith.constant 0 : index
    %84 = vector.load %arg4[%c20, %c0_90, %c0_91] : memref<25x169x64xf32, #tpu.memory_space<vmem>>, vector<1x169x64xf32>
    %85 = vector.shape_cast %84 : vector<1x169x64xf32> to vector<169x64xf32>
    %cst_92 = arith.constant dense<0.000000e+00> : vector<8x64xf32>
    %86 = tpu.matmul %23, %85, %cst_92 {dimension_numbers = #tpu.dot_dimension_numbers<[1], [0], [0], [1], [0, 0, 1, 1], [], []>} : vector<8x169xf32>, vector<169x64xf32>, vector<8x64xf32> -> vector<8x64xf32>
    %c21 = arith.constant 21 : index
    %c0_93 = arith.constant 0 : index
    %c0_94 = arith.constant 0 : index
    %87 = vector.load %arg4[%c21, %c0_93, %c0_94] : memref<25x169x64xf32, #tpu.memory_space<vmem>>, vector<1x169x64xf32>
    %88 = vector.shape_cast %87 : vector<1x169x64xf32> to vector<169x64xf32>
    %cst_95 = arith.constant dense<0.000000e+00> : vector<8x64xf32>
    %89 = tpu.matmul %23, %88, %cst_95 {dimension_numbers = #tpu.dot_dimension_numbers<[1], [0], [0], [1], [0, 0, 1, 1], [], []>} : vector<8x169xf32>, vector<169x64xf32>, vector<8x64xf32> -> vector<8x64xf32>
    %c22 = arith.constant 22 : index
    %c0_96 = arith.constant 0 : index
    %c0_97 = arith.constant 0 : index
    %90 = vector.load %arg4[%c22, %c0_96, %c0_97] : memref<25x169x64xf32, #tpu.memory_space<vmem>>, vector<1x169x64xf32>
    %91 = vector.shape_cast %90 : vector<1x169x64xf32> to vector<169x64xf32>
    %cst_98 = arith.constant dense<0.000000e+00> : vector<8x64xf32>
    %92 = tpu.matmul %23, %91, %cst_98 {dimension_numbers = #tpu.dot_dimension_numbers<[1], [0], [0], [1], [0, 0, 1, 1], [], []>} : vector<8x169xf32>, vector<169x64xf32>, vector<8x64xf32> -> vector<8x64xf32>
    %c23 = arith.constant 23 : index
    %c0_99 = arith.constant 0 : index
    %c0_100 = arith.constant 0 : index
    %93 = vector.load %arg4[%c23, %c0_99, %c0_100] : memref<25x169x64xf32, #tpu.memory_space<vmem>>, vector<1x169x64xf32>
    %94 = vector.shape_cast %93 : vector<1x169x64xf32> to vector<169x64xf32>
    %cst_101 = arith.constant dense<0.000000e+00> : vector<8x64xf32>
    %95 = tpu.matmul %23, %94, %cst_101 {dimension_numbers = #tpu.dot_dimension_numbers<[1], [0], [0], [1], [0, 0, 1, 1], [], []>} : vector<8x169xf32>, vector<169x64xf32>, vector<8x64xf32> -> vector<8x64xf32>
    %c24 = arith.constant 24 : index
    %c0_102 = arith.constant 0 : index
    %c0_103 = arith.constant 0 : index
    %96 = vector.load %arg4[%c24, %c0_102, %c0_103] : memref<25x169x64xf32, #tpu.memory_space<vmem>>, vector<1x169x64xf32>
    %97 = vector.shape_cast %96 : vector<1x169x64xf32> to vector<169x64xf32>
    %cst_104 = arith.constant dense<0.000000e+00> : vector<8x64xf32>
    %98 = tpu.matmul %23, %97, %cst_104 {dimension_numbers = #tpu.dot_dimension_numbers<[1], [0], [0], [1], [0, 0, 1, 1], [], []>} : vector<8x169xf32>, vector<169x64xf32>, vector<8x64xf32> -> vector<8x64xf32>
    %99 = tpu.concatenate %26, %29, %32, %35, %38, %41, %44, %47, %50, %53, %56, %59, %62, %65, %68, %71 in 0 : vector<8x64xf32>, vector<8x64xf32>, vector<8x64xf32>, vector<8x64xf32>, vector<8x64xf32>, vector<8x64xf32>, vector<8x64xf32>, vector<8x64xf32>, vector<8x64xf32>, vector<8x64xf32>, vector<8x64xf32>, vector<8x64xf32>, vector<8x64xf32>, vector<8x64xf32>, vector<8x64xf32>, vector<8x64xf32> -> vector<128x64xf32>
    %100 = tpu.concatenate %74, %77, %80, %83, %86, %89, %92, %95, %98 in 0 : vector<8x64xf32>, vector<8x64xf32>, vector<8x64xf32>, vector<8x64xf32>, vector<8x64xf32>, vector<8x64xf32>, vector<8x64xf32>, vector<8x64xf32>, vector<8x64xf32> -> vector<72x64xf32>
    %101 = tpu.concatenate %99, %100 in 0 : vector<128x64xf32>, vector<72x64xf32> -> vector<200x64xf32>
    %c0_105 = arith.constant 0 : index
    %c0_106 = arith.constant 0 : index
    %102 = vector.load %arg5[%c0_105, %c0_106] : memref<10x200xf32, #tpu.memory_space<vmem>>, vector<10x200xf32>
    %cst_107 = arith.constant dense<0.000000e+00> : vector<10x64xf32>
    %103 = tpu.matmul %102, %101, %cst_107 {dimension_numbers = #tpu.dot_dimension_numbers<[1], [0], [0], [1], [0, 0, 1, 1], [], []>} : vector<10x200xf32>, vector<200x64xf32>, vector<10x64xf32> -> vector<10x64xf32>
    %c0_108 = arith.constant 0 : index
    %c0_109 = arith.constant 0 : index
    %104 = vector.load %arg6[%c0_108, %c0_109] : memref<10x1xf32, #tpu.memory_space<vmem>>, vector<10x1xf32>
    %105 = vector.broadcast %104 : vector<10x1xf32> to vector<10x64xf32>
    %106 = arith.addf %103, %105 : vector<10x64xf32>
    %107 = vector.extract_strided_slice %106 {offsets = [0, 0], sizes = [10, 16], strides = [1, 1]} : vector<10x64xf32> to vector<10x16xf32>
    %108 = vector.extract_strided_slice %106 {offsets = [0, 16], sizes = [10, 16], strides = [1, 1]} : vector<10x64xf32> to vector<10x16xf32>
    %109 = arith.maximumf %107, %108 : vector<10x16xf32>
    %110 = vector.extract_strided_slice %106 {offsets = [0, 32], sizes = [10, 16], strides = [1, 1]} : vector<10x64xf32> to vector<10x16xf32>
    %111 = arith.maximumf %109, %110 : vector<10x16xf32>
    %112 = vector.extract_strided_slice %106 {offsets = [0, 48], sizes = [10, 16], strides = [1, 1]} : vector<10x64xf32> to vector<10x16xf32>
    %113 = arith.maximumf %111, %112 : vector<10x16xf32>
    %cst_110 = arith.constant 0.000000e+00 : f32
    %114 = vector.broadcast %cst_110 : f32 to vector<10x16xf32>
    %115 = arith.maximumf %113, %114 : vector<10x16xf32>
    %c0_111 = arith.constant 0 : index
    %c0_112 = arith.constant 0 : index
    %116 = vector.load %arg8[%c0_111, %c0_112] : memref<1x1024xf32, #tpu.memory_space<vmem>>, vector<1x1024xf32>
    %117 = vector.extract_strided_slice %115 {offsets = [0, 0], sizes = [1, 16], strides = [1, 1]} : vector<10x16xf32> to vector<1x16xf32>
    %c0_113 = arith.constant 0 : index
    %c0_114 = arith.constant 0 : index
    %118 = vector.load %arg7[%c0_113, %c0_114] : memref<160x1024xf32, #tpu.memory_space<vmem>>, vector<16x1024xf32>
    %cst_115 = arith.constant dense<0.000000e+00> : vector<1x1024xf32>
    %119 = tpu.matmul %117, %118, %cst_115 {dimension_numbers = #tpu.dot_dimension_numbers<[1], [0], [0], [1], [0, 0, 1, 1], [], []>} : vector<1x16xf32>, vector<16x1024xf32>, vector<1x1024xf32> -> vector<1x1024xf32>
    %120 = arith.addf %116, %119 : vector<1x1024xf32>
    %121 = vector.extract_strided_slice %115 {offsets = [1, 0], sizes = [1, 16], strides = [1, 1]} : vector<10x16xf32> to vector<1x16xf32>
    %c16_116 = arith.constant 16 : index
    %c0_117 = arith.constant 0 : index
    %122 = vector.load %arg7[%c16_116, %c0_117] : memref<160x1024xf32, #tpu.memory_space<vmem>>, vector<16x1024xf32>
    %cst_118 = arith.constant dense<0.000000e+00> : vector<1x1024xf32>
    %123 = tpu.matmul %121, %122, %cst_118 {dimension_numbers = #tpu.dot_dimension_numbers<[1], [0], [0], [1], [0, 0, 1, 1], [], []>} : vector<1x16xf32>, vector<16x1024xf32>, vector<1x1024xf32> -> vector<1x1024xf32>
    %124 = arith.addf %120, %123 : vector<1x1024xf32>
    %125 = vector.extract_strided_slice %115 {offsets = [2, 0], sizes = [1, 16], strides = [1, 1]} : vector<10x16xf32> to vector<1x16xf32>
    %c32 = arith.constant 32 : index
    %c0_119 = arith.constant 0 : index
    %126 = vector.load %arg7[%c32, %c0_119] : memref<160x1024xf32, #tpu.memory_space<vmem>>, vector<16x1024xf32>
    %cst_120 = arith.constant dense<0.000000e+00> : vector<1x1024xf32>
    %127 = tpu.matmul %125, %126, %cst_120 {dimension_numbers = #tpu.dot_dimension_numbers<[1], [0], [0], [1], [0, 0, 1, 1], [], []>} : vector<1x16xf32>, vector<16x1024xf32>, vector<1x1024xf32> -> vector<1x1024xf32>
    %128 = arith.addf %124, %127 : vector<1x1024xf32>
    %129 = vector.extract_strided_slice %115 {offsets = [3, 0], sizes = [1, 16], strides = [1, 1]} : vector<10x16xf32> to vector<1x16xf32>
    %c48 = arith.constant 48 : index
    %c0_121 = arith.constant 0 : index
    %130 = vector.load %arg7[%c48, %c0_121] : memref<160x1024xf32, #tpu.memory_space<vmem>>, vector<16x1024xf32>
    %cst_122 = arith.constant dense<0.000000e+00> : vector<1x1024xf32>
    %131 = tpu.matmul %129, %130, %cst_122 {dimension_numbers = #tpu.dot_dimension_numbers<[1], [0], [0], [1], [0, 0, 1, 1], [], []>} : vector<1x16xf32>, vector<16x1024xf32>, vector<1x1024xf32> -> vector<1x1024xf32>
    %132 = arith.addf %128, %131 : vector<1x1024xf32>
    %133 = vector.extract_strided_slice %115 {offsets = [4, 0], sizes = [1, 16], strides = [1, 1]} : vector<10x16xf32> to vector<1x16xf32>
    %c64 = arith.constant 64 : index
    %c0_123 = arith.constant 0 : index
    %134 = vector.load %arg7[%c64, %c0_123] : memref<160x1024xf32, #tpu.memory_space<vmem>>, vector<16x1024xf32>
    %cst_124 = arith.constant dense<0.000000e+00> : vector<1x1024xf32>
    %135 = tpu.matmul %133, %134, %cst_124 {dimension_numbers = #tpu.dot_dimension_numbers<[1], [0], [0], [1], [0, 0, 1, 1], [], []>} : vector<1x16xf32>, vector<16x1024xf32>, vector<1x1024xf32> -> vector<1x1024xf32>
    %136 = arith.addf %132, %135 : vector<1x1024xf32>
    %137 = vector.extract_strided_slice %115 {offsets = [5, 0], sizes = [1, 16], strides = [1, 1]} : vector<10x16xf32> to vector<1x16xf32>
    %c80 = arith.constant 80 : index
    %c0_125 = arith.constant 0 : index
    %138 = vector.load %arg7[%c80, %c0_125] : memref<160x1024xf32, #tpu.memory_space<vmem>>, vector<16x1024xf32>
    %cst_126 = arith.constant dense<0.000000e+00> : vector<1x1024xf32>
    %139 = tpu.matmul %137, %138, %cst_126 {dimension_numbers = #tpu.dot_dimension_numbers<[1], [0], [0], [1], [0, 0, 1, 1], [], []>} : vector<1x16xf32>, vector<16x1024xf32>, vector<1x1024xf32> -> vector<1x1024xf32>
    %140 = arith.addf %136, %139 : vector<1x1024xf32>
    %141 = vector.extract_strided_slice %115 {offsets = [6, 0], sizes = [1, 16], strides = [1, 1]} : vector<10x16xf32> to vector<1x16xf32>
    %c96 = arith.constant 96 : index
    %c0_127 = arith.constant 0 : index
    %142 = vector.load %arg7[%c96, %c0_127] : memref<160x1024xf32, #tpu.memory_space<vmem>>, vector<16x1024xf32>
    %cst_128 = arith.constant dense<0.000000e+00> : vector<1x1024xf32>
    %143 = tpu.matmul %141, %142, %cst_128 {dimension_numbers = #tpu.dot_dimension_numbers<[1], [0], [0], [1], [0, 0, 1, 1], [], []>} : vector<1x16xf32>, vector<16x1024xf32>, vector<1x1024xf32> -> vector<1x1024xf32>
    %144 = arith.addf %140, %143 : vector<1x1024xf32>
    %145 = vector.extract_strided_slice %115 {offsets = [7, 0], sizes = [1, 16], strides = [1, 1]} : vector<10x16xf32> to vector<1x16xf32>
    %c112 = arith.constant 112 : index
    %c0_129 = arith.constant 0 : index
    %146 = vector.load %arg7[%c112, %c0_129] : memref<160x1024xf32, #tpu.memory_space<vmem>>, vector<16x1024xf32>
    %cst_130 = arith.constant dense<0.000000e+00> : vector<1x1024xf32>
    %147 = tpu.matmul %145, %146, %cst_130 {dimension_numbers = #tpu.dot_dimension_numbers<[1], [0], [0], [1], [0, 0, 1, 1], [], []>} : vector<1x16xf32>, vector<16x1024xf32>, vector<1x1024xf32> -> vector<1x1024xf32>
    %148 = arith.addf %144, %147 : vector<1x1024xf32>
    %149 = vector.extract_strided_slice %115 {offsets = [8, 0], sizes = [1, 16], strides = [1, 1]} : vector<10x16xf32> to vector<1x16xf32>
    %c128 = arith.constant 128 : index
    %c0_131 = arith.constant 0 : index
    %150 = vector.load %arg7[%c128, %c0_131] : memref<160x1024xf32, #tpu.memory_space<vmem>>, vector<16x1024xf32>
    %cst_132 = arith.constant dense<0.000000e+00> : vector<1x1024xf32>
    %151 = tpu.matmul %149, %150, %cst_132 {dimension_numbers = #tpu.dot_dimension_numbers<[1], [0], [0], [1], [0, 0, 1, 1], [], []>} : vector<1x16xf32>, vector<16x1024xf32>, vector<1x1024xf32> -> vector<1x1024xf32>
    %152 = arith.addf %148, %151 : vector<1x1024xf32>
    %153 = vector.extract_strided_slice %115 {offsets = [9, 0], sizes = [1, 16], strides = [1, 1]} : vector<10x16xf32> to vector<1x16xf32>
    %c144 = arith.constant 144 : index
    %c0_133 = arith.constant 0 : index
    %154 = vector.load %arg7[%c144, %c0_133] : memref<160x1024xf32, #tpu.memory_space<vmem>>, vector<16x1024xf32>
    %cst_134 = arith.constant dense<0.000000e+00> : vector<1x1024xf32>
    %155 = tpu.matmul %153, %154, %cst_134 {dimension_numbers = #tpu.dot_dimension_numbers<[1], [0], [0], [1], [0, 0, 1, 1], [], []>} : vector<1x16xf32>, vector<16x1024xf32>, vector<1x1024xf32> -> vector<1x1024xf32>
    %156 = arith.addf %152, %155 : vector<1x1024xf32>
    %cst_135 = arith.constant 0.000000e+00 : f32
    %157 = vector.broadcast %cst_135 : f32 to vector<1x1024xf32>
    %158 = arith.maximumf %156, %157 : vector<1x1024xf32>
    %c0_136 = arith.constant 0 : index
    %c0_137 = arith.constant 0 : index
    %159 = vector.load %arg9[%c0_136, %c0_137] : memref<1024x32xf32, #tpu.memory_space<vmem>>, vector<1024x32xf32>
    %cst_138 = arith.constant dense<0.000000e+00> : vector<1x32xf32>
    %160 = tpu.matmul %158, %159, %cst_138 {dimension_numbers = #tpu.dot_dimension_numbers<[1], [0], [0], [1], [0, 0, 1, 1], [], []>} : vector<1x1024xf32>, vector<1024x32xf32>, vector<1x32xf32> -> vector<1x32xf32>
    %c0_139 = arith.constant 0 : index
    %c0_140 = arith.constant 0 : index
    %161 = vector.load %arg10[%c0_139, %c0_140] : memref<1x32xf32, #tpu.memory_space<vmem>>, vector<1x32xf32>
    %162 = arith.addf %160, %161 : vector<1x32xf32>
    %cst_141 = arith.constant 0.000000e+00 : f32
    %163 = vector.broadcast %cst_141 : f32 to vector<1x32xf32>
    %164 = arith.maximumf %162, %163 : vector<1x32xf32>
    %c0_142 = arith.constant 0 : index
    %c0_143 = arith.constant 0 : index
    %165 = vector.load %arg11[%c0_142, %c0_143] : memref<32x6xf32, #tpu.memory_space<vmem>>, vector<32x6xf32>
    %cst_144 = arith.constant dense<0.000000e+00> : vector<1x6xf32>
    %166 = tpu.matmul %164, %165, %cst_144 {dimension_numbers = #tpu.dot_dimension_numbers<[1], [0], [0], [1], [0, 0, 1, 1], [], []>} : vector<1x32xf32>, vector<32x6xf32>, vector<1x6xf32> -> vector<1x6xf32>
    %c0_145 = arith.constant 0 : index
    %c0_146 = arith.constant 0 : index
    %167 = vector.load %arg12[%c0_145, %c0_146] : memref<1x6xf32, #tpu.memory_space<vmem>>, vector<1x6xf32>
    %168 = arith.addf %166, %167 : vector<1x6xf32>
    %c0_147 = arith.constant 0 : index
    %c0_148 = arith.constant 0 : index
    %c0_149 = arith.constant 0 : index
    %169 = vector.load %arg13[%c0_147, %c0_148, %c0_149] : memref<1x1x6xf32, #tpu.memory_space<vmem>>, vector<1x1x6xf32>
    %170 = vector.shape_cast %169 : vector<1x1x6xf32> to vector<1x6xf32>
    %171 = vector.shape_cast %168 : vector<1x6xf32> to vector<1x1x6xf32>
    tpu.vector_store %arg13[%c0_147, %c0_148, %c0_149], %171 {strides = array<i32>} : memref<1x1x6xf32, #tpu.memory_space<vmem>>, vector<1x1x6xf32>,
    return
  }
  func.func @transform_0(%arg0: i32) -> (i32, i32, i32, i32) {
    %c0_i32 = arith.constant 0 : i32
    %c0_i32_0 = arith.constant 0 : i32
    %c0_i32_1 = arith.constant 0 : i32
    %c0_i32_2 = arith.constant 0 : i32
    return %arg0, %c0_i32, %c0_i32_0, %c0_i32_1 : i32, i32, i32, i32
  }
  func.func @transform_1(%arg0: i32) -> (i32, i32) {
    %c0_i32 = arith.constant 0 : i32
    %c0_i32_0 = arith.constant 0 : i32
    %c0_i32_1 = arith.constant 0 : i32
    return %c0_i32, %c0_i32_0 : i32, i32
  }
  func.func @transform_2(%arg0: i32) -> (i32, i32) {
    %c0_i32 = arith.constant 0 : i32
    %c0_i32_0 = arith.constant 0 : i32
    %c0_i32_1 = arith.constant 0 : i32
    return %c0_i32, %c0_i32_0 : i32, i32
  }
  func.func @transform_3(%arg0: i32) -> (i32, i32, i32) {
    %c0_i32 = arith.constant 0 : i32
    %c0_i32_0 = arith.constant 0 : i32
    %c0_i32_1 = arith.constant 0 : i32
    %c0_i32_2 = arith.constant 0 : i32
    return %c0_i32, %c0_i32_0, %c0_i32_1 : i32, i32, i32
  }
  func.func @transform_4(%arg0: i32) -> (i32, i32) {
    %c0_i32 = arith.constant 0 : i32
    %c0_i32_0 = arith.constant 0 : i32
    %c0_i32_1 = arith.constant 0 : i32
    return %c0_i32, %c0_i32_0 : i32, i32
  }
  func.func @transform_5(%arg0: i32) -> (i32, i32) {
    %c0_i32 = arith.constant 0 : i32
    %c0_i32_0 = arith.constant 0 : i32
    %c0_i32_1 = arith.constant 0 : i32
    return %c0_i32, %c0_i32_0 : i32, i32
  }
  func.func @transform_6(%arg0: i32) -> (i32, i32) {
    %c0_i32 = arith.constant 0 : i32
    %c0_i32_0 = arith.constant 0 : i32
    %c0_i32_1 = arith.constant 0 : i32
    return %c0_i32, %c0_i32_0 : i32, i32
  }
  func.func @transform_7(%arg0: i32) -> (i32, i32) {
    %c0_i32 = arith.constant 0 : i32
    %c0_i32_0 = arith.constant 0 : i32
    %c0_i32_1 = arith.constant 0 : i32
    return %c0_i32, %c0_i32_0 : i32, i32
  }
  func.func @transform_8(%arg0: i32) -> (i32, i32) {
    %c0_i32 = arith.constant 0 : i32
    %c0_i32_0 = arith.constant 0 : i32
    %c0_i32_1 = arith.constant 0 : i32
    return %c0_i32, %c0_i32_0 : i32, i32
  }
  func.func @transform_9(%arg0: i32) -> (i32, i32) {
    %c0_i32 = arith.constant 0 : i32
    %c0_i32_0 = arith.constant 0 : i32
    %c0_i32_1 = arith.constant 0 : i32
    return %c0_i32, %c0_i32_0 : i32, i32
  }
  func.func @transform_10(%arg0: i32) -> (i32, i32) {
    %c0_i32 = arith.constant 0 : i32
    %c0_i32_0 = arith.constant 0 : i32
    %c0_i32_1 = arith.constant 0 : i32
    return %c0_i32, %c0_i32_0 : i32, i32
  }
  func.func @transform_11(%arg0: i32) -> (i32, i32) {
    %c0_i32 = arith.constant 0 : i32
    %c0_i32_0 = arith.constant 0 : i32
    %c0_i32_1 = arith.constant 0 : i32
    return %c0_i32, %c0_i32_0 : i32, i32
  }
  func.func @transform_12(%arg0: i32) -> (i32, i32, i32) {
    %c0_i32 = arith.constant 0 : i32
    %c0_i32_0 = arith.constant 0 : i32
    %c0_i32_1 = arith.constant 0 : i32
    return %arg0, %c0_i32, %c0_i32_0 : i32, i32, i32
  }
}

module attributes {stable_mosaic.version = 11 : i64} {
  func.func @_grid_sample_kernel(%arg0: i32, %arg1: memref<2x6xf32, #tpu.memory_space<smem>>, %arg2: memref<2x1024xf32, #tpu.memory_space<vmem>>, %arg3: memref<1x64x32xf32, #tpu.memory_space<vmem>>, %arg4: memref<1x2x1024xf32, #tpu.memory_space<vmem>>) attributes {dimension_semantics = [#tpu.dimension_semantics<parallel>], iteration_bounds = array<i64: 2>, scalar_prefetch = 0 : i64, scratch_operands = 0 : i64, tpu.core_type = #tpu.core_type<tc>, window_params = [{transform_indices = @transform_0, window_bounds = array<i64: 2, 6>}, {pipeline_mode = #tpu.pipeline_mode<synchronous>, transform_indices = @transform_1, window_bounds = array<i64: 2, 1024>}, {transform_indices = @transform_2, window_bounds = array<i64: 1, 64, 32>}, {transform_indices = @transform_3, window_bounds = array<i64: 1, 2, 1024>}]} {
    %0 = arith.index_cast %arg0 : i32 to index
    %c0 = arith.constant 0 : index
    %1 = memref.load %arg1[%0, %c0] : memref<2x6xf32, #tpu.memory_space<smem>>
    %2 = arith.index_cast %arg0 : i32 to index
    %c1 = arith.constant 1 : index
    %3 = memref.load %arg1[%2, %c1] : memref<2x6xf32, #tpu.memory_space<smem>>
    %4 = arith.index_cast %arg0 : i32 to index
    %c2 = arith.constant 2 : index
    %5 = memref.load %arg1[%4, %c2] : memref<2x6xf32, #tpu.memory_space<smem>>
    %6 = arith.index_cast %arg0 : i32 to index
    %c3 = arith.constant 3 : index
    %7 = memref.load %arg1[%6, %c3] : memref<2x6xf32, #tpu.memory_space<smem>>
    %8 = arith.index_cast %arg0 : i32 to index
    %c4 = arith.constant 4 : index
    %9 = memref.load %arg1[%8, %c4] : memref<2x6xf32, #tpu.memory_space<smem>>
    %10 = arith.index_cast %arg0 : i32 to index
    %c5 = arith.constant 5 : index
    %11 = memref.load %arg1[%10, %c5] : memref<2x6xf32, #tpu.memory_space<smem>>
    %c0_0 = arith.constant 0 : index
    %c0_1 = arith.constant 0 : index
    %12 = vector.load %arg2[%c0_0, %c0_1] : memref<2x1024xf32, #tpu.memory_space<vmem>>, vector<1x1024xf32>
    %c1_2 = arith.constant 1 : index
    %c0_3 = arith.constant 0 : index
    %13 = vector.load %arg2[%c1_2, %c0_3] : memref<2x1024xf32, #tpu.memory_space<vmem>>, vector<1x1024xf32>
    %14 = vector.broadcast %1 : f32 to vector<1x1024xf32>
    %15 = arith.mulf %14, %12 : vector<1x1024xf32>
    %16 = vector.broadcast %3 : f32 to vector<1x1024xf32>
    %17 = arith.mulf %16, %13 : vector<1x1024xf32>
    %18 = arith.addf %15, %17 : vector<1x1024xf32>
    %19 = vector.broadcast %5 : f32 to vector<1x1024xf32>
    %20 = arith.addf %18, %19 : vector<1x1024xf32>
    %21 = vector.broadcast %7 : f32 to vector<1x1024xf32>
    %22 = arith.mulf %21, %12 : vector<1x1024xf32>
    %23 = vector.broadcast %9 : f32 to vector<1x1024xf32>
    %24 = arith.mulf %23, %13 : vector<1x1024xf32>
    %25 = arith.addf %22, %24 : vector<1x1024xf32>
    %26 = vector.broadcast %11 : f32 to vector<1x1024xf32>
    %27 = arith.addf %25, %26 : vector<1x1024xf32>
    %cst = arith.constant 1.000000e+00 : f32
    %28 = vector.broadcast %cst : f32 to vector<1x1024xf32>
    %29 = arith.addf %20, %28 : vector<1x1024xf32>
    %cst_4 = arith.constant 3.200000e+01 : f32
    %30 = vector.broadcast %cst_4 : f32 to vector<1x1024xf32>
    %31 = arith.mulf %29, %30 : vector<1x1024xf32>
    %cst_5 = arith.constant 1.000000e+00 : f32
    %32 = vector.broadcast %cst_5 : f32 to vector<1x1024xf32>
    %33 = arith.subf %31, %32 : vector<1x1024xf32>
    %cst_6 = arith.constant 5.000000e-01 : f32
    %34 = vector.broadcast %cst_6 : f32 to vector<1x1024xf32>
    %35 = arith.mulf %33, %34 : vector<1x1024xf32>
    %cst_7 = arith.constant 0.000000e+00 : f32
    %cst_8 = arith.constant 3.100000e+01 : f32
    %36 = vector.broadcast %cst_7 : f32 to vector<1x1024xf32>
    %37 = arith.maximumf %36, %35 : vector<1x1024xf32>
    %38 = vector.broadcast %cst_8 : f32 to vector<1x1024xf32>
    %39 = arith.minimumf %38, %37 : vector<1x1024xf32>
    %cst_9 = arith.constant 1.000000e+00 : f32
    %40 = vector.broadcast %cst_9 : f32 to vector<1x1024xf32>
    %41 = arith.addf %27, %40 : vector<1x1024xf32>
    %cst_10 = arith.constant 3.200000e+01 : f32
    %42 = vector.broadcast %cst_10 : f32 to vector<1x1024xf32>
    %43 = arith.mulf %41, %42 : vector<1x1024xf32>
    %cst_11 = arith.constant 1.000000e+00 : f32
    %44 = vector.broadcast %cst_11 : f32 to vector<1x1024xf32>
    %45 = arith.subf %43, %44 : vector<1x1024xf32>
    %cst_12 = arith.constant 5.000000e-01 : f32
    %46 = vector.broadcast %cst_12 : f32 to vector<1x1024xf32>
    %47 = arith.mulf %45, %46 : vector<1x1024xf32>
    %cst_13 = arith.constant 0.000000e+00 : f32
    %cst_14 = arith.constant 3.100000e+01 : f32
    %48 = vector.broadcast %cst_13 : f32 to vector<1x1024xf32>
    %49 = arith.maximumf %48, %47 : vector<1x1024xf32>
    %50 = vector.broadcast %cst_14 : f32 to vector<1x1024xf32>
    %51 = arith.minimumf %50, %49 : vector<1x1024xf32>
    %52 = math.floor %39 : vector<1x1024xf32>
    %53 = math.floor %51 : vector<1x1024xf32>
    %54 = arith.subf %39, %52 : vector<1x1024xf32>
    %55 = arith.subf %51, %53 : vector<1x1024xf32>
    %56 = arith.fptosi %52 : vector<1x1024xf32> to vector<1x1024xi32>
    %57 = arith.fptosi %53 : vector<1x1024xf32> to vector<1x1024xi32>
    %c1_i32 = arith.constant 1 : i32
    %58 = vector.broadcast %c1_i32 : i32 to vector<1x1024xi32>
    %59 = arith.addi %56, %58 : vector<1x1024xi32>
    %c31_i32 = arith.constant 31 : i32
    %60 = vector.broadcast %c31_i32 : i32 to vector<1x1024xi32>
    %61 = arith.minsi %59, %60 : vector<1x1024xi32>
    %c1_i32_15 = arith.constant 1 : i32
    %62 = vector.broadcast %c1_i32_15 : i32 to vector<1x1024xi32>
    %63 = arith.addi %57, %62 : vector<1x1024xi32>
    %c31_i32_16 = arith.constant 31 : i32
    %64 = vector.broadcast %c31_i32_16 : i32 to vector<1x1024xi32>
    %65 = arith.minsi %63, %64 : vector<1x1024xi32>
    %66 = tpu.iota {dimensions = array<i32: 0>} : vector<32x1024xi32>
    %67 = vector.broadcast %56 : vector<1x1024xi32> to vector<32x1024xi32>
    %68 = arith.cmpi eq, %66, %67 : vector<32x1024xi32>
    %69 = arith.extui %68 : vector<32x1024xi1> to vector<32x1024xi32>
    %70 = arith.sitofp %69 : vector<32x1024xi32> to vector<32x1024xf32>
    %cst_17 = arith.constant 1.000000e+00 : f32
    %71 = vector.broadcast %cst_17 : f32 to vector<1x1024xf32>
    %72 = arith.subf %71, %54 : vector<1x1024xf32>
    %73 = vector.broadcast %72 : vector<1x1024xf32> to vector<32x1024xf32>
    %74 = arith.mulf %70, %73 : vector<32x1024xf32>
    %75 = vector.broadcast %61 : vector<1x1024xi32> to vector<32x1024xi32>
    %76 = arith.cmpi eq, %66, %75 : vector<32x1024xi32>
    %77 = arith.extui %76 : vector<32x1024xi1> to vector<32x1024xi32>
    %78 = arith.sitofp %77 : vector<32x1024xi32> to vector<32x1024xf32>
    %79 = vector.broadcast %54 : vector<1x1024xf32> to vector<32x1024xf32>
    %80 = arith.mulf %78, %79 : vector<32x1024xf32>
    %81 = arith.addf %74, %80 : vector<32x1024xf32>
    %82 = tpu.iota {dimensions = array<i32: 0>} : vector<32x1024xi32>
    %83 = vector.broadcast %57 : vector<1x1024xi32> to vector<32x1024xi32>
    %84 = arith.cmpi eq, %82, %83 : vector<32x1024xi32>
    %85 = arith.extui %84 : vector<32x1024xi1> to vector<32x1024xi32>
    %86 = arith.sitofp %85 : vector<32x1024xi32> to vector<32x1024xf32>
    %cst_18 = arith.constant 1.000000e+00 : f32
    %87 = vector.broadcast %cst_18 : f32 to vector<1x1024xf32>
    %88 = arith.subf %87, %55 : vector<1x1024xf32>
    %89 = vector.broadcast %88 : vector<1x1024xf32> to vector<32x1024xf32>
    %90 = arith.mulf %86, %89 : vector<32x1024xf32>
    %91 = vector.broadcast %65 : vector<1x1024xi32> to vector<32x1024xi32>
    %92 = arith.cmpi eq, %82, %91 : vector<32x1024xi32>
    %93 = arith.extui %92 : vector<32x1024xi1> to vector<32x1024xi32>
    %94 = arith.sitofp %93 : vector<32x1024xi32> to vector<32x1024xf32>
    %95 = vector.broadcast %55 : vector<1x1024xf32> to vector<32x1024xf32>
    %96 = arith.mulf %94, %95 : vector<32x1024xf32>
    %97 = arith.addf %90, %96 : vector<32x1024xf32>
    %c0_19 = arith.constant 0 : index
    %c0_20 = arith.constant 0 : index
    %c0_21 = arith.constant 0 : index
    %98 = vector.load %arg3[%c0_19, %c0_20, %c0_21] : memref<1x64x32xf32, #tpu.memory_space<vmem>>, vector<1x64x32xf32>
    %99 = vector.shape_cast %98 : vector<1x64x32xf32> to vector<64x32xf32>
    %cst_22 = arith.constant dense<0.000000e+00> : vector<64x1024xf32>
    %100 = tpu.matmul %99, %81, %cst_22 {dimension_numbers = #tpu.dot_dimension_numbers<[1], [0], [0], [1], [0, 0, 1, 1], [], []>} : vector<64x32xf32>, vector<32x1024xf32>, vector<64x1024xf32> -> vector<64x1024xf32>
    %101 = vector.shape_cast %100 : vector<64x1024xf32> to vector<2x32x1024xf32>
    %102 = vector.shape_cast %97 : vector<32x1024xf32> to vector<1x32x1024xf32>
    %103 = vector.broadcast %102 : vector<1x32x1024xf32> to vector<2x32x1024xf32>
    %104 = arith.mulf %101, %103 : vector<2x32x1024xf32>
    %cst_23 = arith.constant dense<0.000000e+00> : vector<2x1024xf32>
    %105 = vector.multi_reduction <add>, %104, %cst_23 [1] : vector<2x32x1024xf32> to vector<2x1024xf32>
    %c0_24 = arith.constant 0 : index
    %c0_25 = arith.constant 0 : index
    %c0_26 = arith.constant 0 : index
    %106 = vector.load %arg4[%c0_24, %c0_25, %c0_26] : memref<1x2x1024xf32, #tpu.memory_space<vmem>>, vector<1x2x1024xf32>
    %107 = vector.shape_cast %106 : vector<1x2x1024xf32> to vector<2x1024xf32>
    %108 = vector.shape_cast %105 : vector<2x1024xf32> to vector<1x2x1024xf32>
    tpu.vector_store %arg4[%c0_24, %c0_25, %c0_26], %108 {strides = array<i32>} : memref<1x2x1024xf32, #tpu.memory_space<vmem>>, vector<1x2x1024xf32>,
    return
  }
  func.func @transform_0(%arg0: i32) -> (i32, i32) {
    %c0_i32 = arith.constant 0 : i32
    %c0_i32_0 = arith.constant 0 : i32
    %c0_i32_1 = arith.constant 0 : i32
    return %c0_i32, %c0_i32_0 : i32, i32
  }
  func.func @transform_1(%arg0: i32) -> (i32, i32) {
    %c0_i32 = arith.constant 0 : i32
    %c0_i32_0 = arith.constant 0 : i32
    %c0_i32_1 = arith.constant 0 : i32
    return %c0_i32, %c0_i32_0 : i32, i32
  }
  func.func @transform_2(%arg0: i32) -> (i32, i32, i32) {
    %c0_i32 = arith.constant 0 : i32
    %c0_i32_0 = arith.constant 0 : i32
    %c0_i32_1 = arith.constant 0 : i32
    return %arg0, %c0_i32, %c0_i32_0 : i32, i32, i32
  }
  func.func @transform_3(%arg0: i32) -> (i32, i32, i32) {
    %c0_i32 = arith.constant 0 : i32
    %c0_i32_0 = arith.constant 0 : i32
    %c0_i32_1 = arith.constant 0 : i32
    return %arg0, %c0_i32, %c0_i32_0 : i32, i32, i32
  }
}

</mosaic_0001>

<bundles_post_ra>
// kernel: stn_forward.3
= control target key start
LH: loop header
LB: loop body
LE: loop exit
PB: predicated region body
PF: predicated region fallthrough
CT: control target
= control target key end

     0   :  { %8 = vsyncpa [#allocation3], 0  ;;  %s2235_s12 = smov 0   ;;  %s3416_s0 = inlined_call_operand.vmem [shape: f32[2,6], index: 0, kind: input, shape index: {}]   ;;  %s3417_s1 = inlined_call_operand.vmem [shape: f32[2,1024], index: 1, kind: input, shape index: {}]   ;;  %s3418_s2 = inlined_call_operand.vmem [shape: f32[2,64,32], index: 2, kind: input, shape index: {}]   ;;  %s3419_s3 = inlined_call_operand.vmem [shape: f32[2,2,1024], index: 3, kind: output, shape index: {}]  }
   0x1 LB: > { %s2241_s13 = sadd.s32 4294967295, %s2210_s12   ;;  %p1983_p0 = scmp.ge.s32.totalorder %s2210_s12, 1  ;;  %s2210_s12 = sphi %s2235_s12, %s14_s12  }
   0x2   : > { %p113_p1 = scmp.lt.s32.totalorder %s2210_s12, 3  ;;  %s126_s16 = sshll.u32 %s3416_s0, 4  ;;  %s127_s16 = int_to_ptr.vmem [resolvable:$true] %s126_s16 }
   0x3   : > { %p2172_p3 = scmp.eq.s32.totalorder %s2241_s13, 0  ;;  %s2185_s18 = scalar_lea.vmem %s127_s16, 32 }
   0x4   : > { %p2248_p2 = pnand %p1983_p0, %p113_p1  ;;  %p2186_p6 = scmp.ne.s32.totalorder %s127_s16, %s2185_s18 }
   0x5   : > { %p2193_p10 = scmp.lt.s32.totalorder %s127_s16, %s127_s16  ;;  %p2194_p11 = scmp.lt.s32.totalorder %s2185_s18, %s2185_s18 }
   0x6   : > { %p2168_p4 = pneg %p2248_p2 }
   0x7   : > { %p2195_p12 = por %p2194_p11, %p2193_p10 }
   0x8   : > { %p2169_p5 = pnand %p2172_p3, %p2168_p4 }
   0xa   : > { %p2187_p7 = pneg %p2169_p5 }
   0xc   : > { %p2188_p8 = pnand %p2187_p7, %p2186_p6 }
   0xe   : > { %p2189_p9 = pneg %p2188_p8 }
  0x10   : > { %p2196_p13 = pnand %p2195_p12, %p2189_p9 }
  0x12   : > { %2199 = shalt.err (!%p2196_p13)
}
  0x13   : > { %s2212_s19 = smov [#allocation2]   ;;  %150 = sbr.rel (%p2248_p2) target bundleno = 382 (0x17e), region = 32 }
  0x14   : > { %2171 = dma.vmem_to_smem (!%p2169_p5), %s127_s16, 32, %s2212_s19, [#allocation3]  }
  0x18   : > { %2205 = dma.done.wait (%p2172_p3), [#allocation3], 32  }
  0x19   : > { %2207 = vsyncadd (%p2172_p3), [#allocation3], 4294967264 }
  0x1a   : > { %156 = sfence }
  0x1b   : > { %s1992_s20 = sshll.u32 %s2241_s13, 7  ;;  %v3422_v0 = vmov 0.0   ;;  %v197_v1 = vld [vmem:[%s3417_s1] ss:$2 sm:$0xff]  ;;  %v1993_v2 = vld [vmem:[%s3417_s1 + $0x1] ss:$2 sm:$0xff]  ;;  %v238_v20 = vlaneseq }
  0x1c   : > { %s186_s21 = sld [smem:[#allocation2 + %s1992_s20]]  ;;  %s187_s22 = sadd.s32 1, %s1992_s20  ;;  %1210 = vmatprep.mubr.f32.mxu0 %v3422_v0  ;;  %1323 = vmatprep.mubr.f32.mxu1 %v3422_v0 }
  0x1d   : > { %s188_s23 = sld [smem:[#allocation2 + %s187_s22]]  ;;  %s189_s24 = sadd.s32 2, %s1992_s20  ;;  %v2274_v23 = vshrl.u32 %v238_v20, 7 }
  0x1e   : > { %s190_s25 = sld [smem:[#allocation2 + %s189_s24]]  ;;  %s191_s26 = sadd.s32 3, %s1992_s20 }
  0x1f   : > { %s192_s27 = sld [smem:[#allocation2 + %s191_s26]]  ;;  %s193_s28 = sadd.s32 4, %s1992_s20  ;;  %v2277_v26 = vadd.s32 24, %v2274_v23  ;;  %v2280_v27 = vsub.s32 1, %v2274_v23  ;;  %v2283_v28 = vsub.s32 3, %v2274_v23  ;;  %v2286_v29 = vsub.s32 0, %v2274_v23 }
  0x20   : > { %s194_s29 = sld [smem:[#allocation2 + %s193_s28]]  ;;  %s195_s7 = sadd.s32 5, %s1992_s20  ;;  %v2289_v30 = vsub.s32 2, %v2274_v23  ;;  %v2294_v33 = vadd.s32 16, %v2274_v23  ;;  %v2297_v34 = vadd.s32 8, %v2274_v23  ;;  %v2300_v35 = vsub.s32 5, %v2274_v23 }
  0x21   : > { %s196_s8 = sld [smem:[#allocation2 + %s195_s7]]  ;;  %v2303_v36 = vsub.s32 7, %v2274_v23  ;;  %v2306_v37 = vsub.s32 4, %v2274_v23  ;;  %v2309_v38 = vsub.s32 6, %v2274_v23  ;;  %p175_p0 = scmp.lt.s32.totalorder %s2241_s13, 1 }
  0x22   : > { %v200_v3 = vstv %s186_s21 }
  0x23   : > { %v201_v4 = vmul.f32 %v200_v3, %v197_v1  ;;  %v202_v5 = vstv %s188_s23  ;;  %s3459_s13 = smov (!%p175_p0, %s2241_s13), 1 }
  0x24   : > { %v203_v6 = vmul.f32 %v1993_v2, %v202_v5  ;;  %v205_v7 = vstv %s190_s25  ;;  %s2158_s9 = sshll.u32 %s3459_s13, 6  ;;  %s2159_s15 = sshll.u32 %s3459_s13, 4 }
  0x25   : > { %v207_v8 = vstv %s192_s27  ;;  %s2519_s14 = scalar_lea.vmem %s3418_s2, %s2158_s9  ;;  %s3385_s17 = scalar_lea.vmem %s3419_s3, %s2159_s15 }
  0x26   : > { %v204_v9 = vadd.f32 %v203_v6, %v201_v4  ;;  %v208_v10 = vmul.f32 %v207_v8, %v197_v1  ;;  %v209_v11 = vstv %s194_s29 }
  0x27   : > { %v210_v12 = vmul.f32 %v1993_v2, %v209_v11  ;;  %v212_v15 = vstv %s196_s8 }
  0x28   : > { %v206_v13 = vadd.f32 %v205_v7, %v204_v9 }
  0x29   : > { %v211_v14 = vadd.f32 %v210_v12, %v208_v10 }
  0x2a   : > { %v214_v16 = vadd.f32 1.0, %v206_v13 }
  0x2b   : > { %v2272_v17 = vadd.f32 %v212_v15, %v211_v14 }
  0x2c   : > { %v215_v18 = vmul.f32 32.0, %v214_v16 }
  0x2e   : > { %v1994_v19 = vadd.f32 -1.0, %v215_v18 }
  0x30   : > { %v217_v21 = vmul.f32 0.5, %v1994_v19 }
  0x32   : > { %v218_v22 = vmax.f32 %v217_v21, 0.0 }
  0x34   : > { %v219_v24 = vmin.f32 %v218_v22, 31.0 }
  0x36   : > { %v226_v25 = vfloor.f32 %v219_v24 }
  0x38   : > { %v2291_v31 = vsub.f32 %v219_v24, %v226_v25  ;;  %v2160_v32 = vtrunc.f32 %v226_v25 }
  0x3a   : > { %v2311_v39 = vcvt.f32.s32 %v2160_v32  ;;  %v2314_v40 = vsub.f32 1.0, %v2291_v31  ;;  %v2318_v41 = vrot.slane %v2291_v31, %v2280_v27  ;;  %v2322_v42 = vrot.slane %v2291_v31, %v2283_v28 }
  0x3b   : > { %v2326_v43 = vrot.slane %v2291_v31, %v2286_v29  ;;  %v2330_v44 = vrot.slane %v2291_v31, %v2289_v30  ;;  %v2334_v45 = vrot.slane %v2291_v31, %v2300_v35  ;;  %v2338_v46 = vrot.slane %v2291_v31, %v2303_v36 }
  0x3c   : > { %v232_v47 = vadd.s32 1, %v2311_v39  ;;  %v2343_v48 = vrot.slane %v2311_v39, %v2280_v27  ;;  %v2347_v49 = vrot.slane %v2314_v40, %v2280_v27  ;;  %v2351_v50 = vrot.slane %v2311_v39, %v2283_v28 }
  0x3d   : > { %v2355_v51 = vrot.slane %v2314_v40, %v2283_v28  ;;  %v2359_v52 = vrot.slane %v2311_v39, %v2286_v29  ;;  %v2363_v53 = vrot.slane %v2314_v40, %v2286_v29  ;;  %v2367_v54 = vrot.slane %v2311_v39, %v2289_v30 }
  0x3e   : > { %vm233_vm0 = vcmp.lt.s32.totalorder %v232_v47, 31  ;;  %vm300_vm1 = vcmp.eq.s32.totalorder %v2277_v26, %v2343_v48  ;;  %vm302_vm2 = vcmp.eq.s32.totalorder %v2277_v26, %v2351_v50  ;;  %v2375_v55 = vrot.slane %v2314_v40, %v2289_v30 }
  0x3f   : > { %v2377_v56 = vsel %vm233_vm0, %v232_v47, 31  ;;  %v2021_v57 = vsel %vm300_vm1, 1.0, %v3422_v0  ;;  %v2023_v58 = vsel %vm302_vm2, 1.0, %v3422_v0  ;;  %vm299_vm3 = vcmp.eq.s32.totalorder %v2277_v26, %v2359_v52 }
  0x40   : > { %v438_v59 = vmul.f32 %v2021_v57, %v2347_v49  ;;  %v2386_v60 = vrot.slane %v2377_v56, %v2280_v27  ;;  %v440_v61 = vmul.f32 %v2023_v58, %v2355_v51  ;;  %v2391_v62 = vrot.slane %v2377_v56, %v2283_v28 }
  0x41   : > { %v2020_v63 = vsel %vm299_vm3, 1.0, %v3422_v0  ;;  %v2396_v1 = vrot.slane %v2377_v56, %v2286_v29  ;;  %vm301_vm4 = vcmp.eq.s32.totalorder %v2277_v26, %v2367_v54  ;;  %v2402_v2 = vrot.slane %v2377_v56, %v2289_v30 }
  0x42   : > { %vm502_vm5 = vcmp.eq.s32.totalorder %v2277_v26, %v2386_v60  ;;  %vm504_vm6 = vcmp.eq.s32.totalorder %v2277_v26, %v2391_v62  ;;  %v437_v3 = vmul.f32 %v2020_v63, %v2363_v53  ;;  %v2022_v4 = vsel %vm301_vm4, 1.0, %v3422_v0 }
  0x43   : > { %v2053_v5 = vsel %vm502_vm5, 1.0, %v3422_v0  ;;  %v2055_v6 = vsel %vm504_vm6, 1.0, %v3422_v0  ;;  %vm501_vm7 = vcmp.eq.s32.totalorder %v2277_v26, %v2396_v1  ;;  %v439_v7 = vmul.f32 %v2022_v4, %v2375_v55 }
  0x44   : > { %v639_v8 = vmul.f32 %v2053_v5, %v2318_v41  ;;  %v641_v9 = vmul.f32 %v2055_v6, %v2322_v42  ;;  %v2052_v10 = vsel %vm501_vm7, 1.0, %v3422_v0  ;;  %vm503_vm8 = vcmp.eq.s32.totalorder %v2277_v26, %v2402_v2 }
  0x45   : > { %v638_v11 = vmul.f32 %v2052_v10, %v2326_v43  ;;  %v2054_v12 = vsel %vm503_vm8, 1.0, %v3422_v0  ;;  %vm292_vm9 = vcmp.eq.s32.totalorder %v2294_v33, %v2343_v48  ;;  %vm494_vm10 = vcmp.eq.s32.totalorder %v2294_v33, %v2386_v60 }
  0x46   : > { %v671_v13 = vadd.f32 %v639_v8, %v438_v59  ;;  %v673_v14 = vadd.f32 %v641_v9, %v440_v61  ;;  %v640_v15 = vmul.f32 %v2054_v12, %v2330_v44  ;;  %v2013_v16 = vsel %vm292_vm9, 1.0, %v3422_v0 }
  0x47   : > { %v670_v18 = vadd.f32 %v638_v11, %v437_v3  ;;  %v430_v19 = vmul.f32 %v2013_v16, %v2347_v49  ;;  %v2045_v20 = vsel %vm494_vm10, 1.0, %v3422_v0  ;;  %vm294_vm11 = vcmp.eq.s32.totalorder %v2294_v33, %v2351_v50 }
  0x48   : > { %1170 = vmatprep.subr.mxu0 %v671_v13  ;;  %1283 = vmatprep.subr.mxu1 %v673_v14  ;;  %v672_v21 = vadd.f32 %v640_v15, %v439_v7  ;;  %v631_v22 = vmul.f32 %v2045_v20, %v2318_v41  ;;  %v2015_v24 = vsel %vm294_vm11, 1.0, %v3422_v0  ;;  %vm496_vm12 = vcmp.eq.s32.totalorder %v2294_v33, %v2391_v62 }
  0x49   : > { %1171 = vmatpush1.msra.mxu0 %v670_v18  ;;  %v432_v25 = vmul.f32 %v2015_v24, %v2355_v51  ;;  %v2047_v32 = vsel %vm496_vm12, 1.0, %v3422_v0  ;;  %vm291_vm13 = vcmp.eq.s32.totalorder %v2294_v33, %v2359_v52  ;;  %vm493_vm14 = vcmp.eq.s32.totalorder %v2294_v33, %v2396_v1 }
  0x4a   : > { %1284 = vmatpush1.msra.mxu1 %v672_v21  ;;  %v663_v47 = vadd.f32 %v631_v22, %v430_v19  ;;  %v633_v57 = vmul.f32 %v2047_v32, %v2322_v42  ;;  %v2012_v58 = vsel %vm291_vm13, 1.0, %v3422_v0  ;;  %v2044_v59 = vsel %vm493_vm14, 1.0, %v3422_v0 }
  0x4b   : > { %v429_v61 = vmul.f32 %v2012_v58, %v2363_v53  ;;  %v630_v63 = vmul.f32 %v2044_v59, %v2326_v43  ;;  %vm293_vm15 = vcmp.eq.s32.totalorder %v2294_v33, %v2367_v54  ;;  %vm495_vm0 = vcmp.eq.s32.totalorder %v2294_v33, %v2402_v2 }
  0x4c   : > { %1172 = vmatprep.subr.mxu0 %v663_v47  ;;  %v665_v3 = vadd.f32 %v633_v57, %v432_v25  ;;  %v2014_v4 = vsel %vm293_vm15, 1.0, %v3422_v0  ;;  %v2046_v5 = vsel %vm495_vm0, 1.0, %v3422_v0  ;;  %vm284_vm1 = vcmp.eq.s32.totalorder %v2297_v34, %v2343_v48 }
  0x4d   : > { %v662_v6 = vadd.f32 %v630_v63, %v429_v61  ;;  %v431_v7 = vmul.f32 %v2014_v4, %v2375_v55  ;;  %v632_v8 = vmul.f32 %v2046_v5, %v2330_v44  ;;  %v2005_v9 = vsel %vm284_vm1, 1.0, %v3422_v0 }
  0x4e   : > { %1285 = vmatprep.subr.mxu1 %v665_v3  ;;  %v422_v10 = vmul.f32 %v2005_v9, %v2347_v49  ;;  %vm486_vm2 = vcmp.eq.s32.totalorder %v2297_v34, %v2386_v60  ;;  %vm286_vm3 = vcmp.eq.s32.totalorder %v2297_v34, %v2351_v50  ;;  %vm488_vm4 = vcmp.eq.s32.totalorder %v2297_v34, %v2391_v62 }
  0x4f   : > { %1173 = vmatpush1.msra.mxu0 %v662_v6  ;;  %v664_v11 = vadd.f32 %v632_v8, %v431_v7  ;;  %v2037_v12 = vsel %vm486_vm2, 1.0, %v3422_v0  ;;  %v2007_v13 = vsel %vm286_vm3, 1.0, %v3422_v0  ;;  %v2039_v14 = vsel %vm488_vm4, 1.0, %v3422_v0 }
  0x50   : > { %v623_v15 = vmul.f32 %v2037_v12, %v2318_v41  ;;  %v424_v16 = vmul.f32 %v2007_v13, %v2355_v51  ;;  %v625_v18 = vmul.f32 %v2039_v14, %v2322_v42  ;;  %vm283_vm5 = vcmp.eq.s32.totalorder %v2297_v34, %v2359_v52 }
  0x51   : > { %1286 = vmatpush1.msra.mxu1 %v664_v11  ;;  %v2004_v19 = vsel %vm283_vm5, 1.0, %v3422_v0  ;;  %vm485_vm6 = vcmp.eq.s32.totalorder %v2297_v34, %v2396_v1  ;;  %vm285_vm7 = vcmp.eq.s32.totalorder %v2297_v34, %v2367_v54  ;;  %vm487_vm8 = vcmp.eq.s32.totalorder %v2297_v34, %v2402_v2 }
  0x52   : > { %v655_v20 = vadd.f32 %v623_v15, %v422_v10  ;;  %v657_v21 = vadd.f32 %v625_v18, %v424_v16  ;;  %v421_v22 = vmul.f32 %v2004_v19, %v2363_v53  ;;  %v2036_v24 = vsel %vm485_vm6, 1.0, %v3422_v0  ;;  %v2536_v10 = vld [vmem:[%s2519_s14] sm:$0xff] }
  0x53   : > { %v622_v25 = vmul.f32 %v2036_v24, %v2326_v43  ;;  %v2006_v32 = vsel %vm285_vm7, 1.0, %v3422_v0  ;;  %v2038_v47 = vsel %vm487_vm8, 1.0, %v3422_v0  ;;  %vm276_vm9 = vcmp.eq.s32.totalorder %v2274_v23, %v2343_v48 }
  0x54   : > { %vm1121_vm10 = vcmask 261120   ;;  %1174 = vmatprep.subr.mxu0 %v655_v20  ;;  %1287 = vmatprep.subr.mxu1 %v657_v21  ;;  %v423_v57 = vmul.f32 %v2006_v32, %v2375_v55  ;;  %v624_v58 = vmul.f32 %v2038_v47, %v2330_v44  ;;  %v1997_v59 = vsel %vm276_vm9, 1.0, %v3422_v0  ;;  %v2584_v20 = vld [vmem:[%s2519_s14 + $0x8] sm:$0xff] }
  0x55   : > { %vm478_vm11 = vcmp.eq.s32.totalorder %v2274_v23, %v2386_v60  ;;  %v654_v61 = vadd.f32 %v622_v25, %v421_v22  ;;  %v414_v63 = vmul.f32 %v1997_v59, %v2347_v49  ;;  %vm278_vm12 = vcmp.eq.s32.totalorder %v2274_v23, %v2351_v50 }
  0x56   : > { %v2029_v3 = vsel %vm478_vm11, 1.0, %v3422_v0  ;;  %v656_v48 = vadd.f32 %v624_v58, %v423_v57  ;;  %v1999_v5 = vsel %vm278_vm12, 1.0, %v3422_v0  ;;  %vm480_vm13 = vcmp.eq.s32.totalorder %v2274_v23, %v2391_v62 }
  0x57   : > { %v615_v4 = vmul.f32 %v2029_v3, %v2318_v41  ;;  %1175 = vmatpush1.msra.mxu0 %v654_v61  ;;  %v416_v60 = vmul.f32 %v1999_v5, %v2355_v51  ;;  %v2031_v6 = vsel %vm480_vm13, 1.0, %v3422_v0  ;;  %vm275_vm14 = vcmp.eq.s32.totalorder %v2274_v23, %v2359_v52 }
  0x58   : > { %vm477_vm15 = vcmp.eq.s32.totalorder %v2274_v23, %v2396_v1  ;;  %1288 = vmatpush1.msra.mxu1 %v656_v48  ;;  %v617_v41 = vmul.f32 %v2031_v6, %v2322_v42  ;;  %v1996_v50 = vsel %vm275_vm14, 1.0, %v3422_v0  ;;  %vm277_vm0 = vcmp.eq.s32.totalorder %v2274_v23, %v2367_v54 }
  0x59   : > { %v647_v49 = vadd.f32 %v615_v4, %v414_v63  ;;  %v2028_v7 = vsel %vm477_vm15, 1.0, %v3422_v0  ;;  %v413_v51 = vmul.f32 %v1996_v50, %v2363_v53  ;;  %vm479_vm1 = vcmp.eq.s32.totalorder %v2274_v23, %v2402_v2 }
  0x5a   : > { %v614_v52 = vmul.f32 %v2028_v7, %v2326_v43  ;;  %v649_v42 = vadd.f32 %v617_v41, %v416_v60  ;;  %v1998_v62 = vsel %vm277_vm0, 1.0, %v3422_v0  ;;  %v2030_v1 = vsel %vm479_vm1, 1.0, %v3422_v0 }
  0x5b   : > { %1176 = vmatprep.subr.mxu0 %v647_v49  ;;  %v2531_v8 = vrot.slane %v2311_v39, %v2300_v35  ;;  %v415_v53 = vmul.f32 %v1998_v62, %v2375_v55  ;;  %v616_v43 = vmul.f32 %v2030_v1, %v2330_v44  ;;  %v2540_v54 = vrot.slane %v2314_v40, %v2300_v35 }
  0x5c   : > { %v646_v9 = vadd.f32 %v614_v52, %v413_v51  ;;  %1289 = vmatprep.subr.mxu1 %v649_v42  ;;  %v2546_v2 = vrot.slane %v2377_v56, %v2300_v35  ;;  %v2550_v11 = vrot.slane %v2311_v39, %v2303_v36  ;;  %v2554_v44 = vrot.slane %v2314_v40, %v2303_v36 }
  0x5d   : > { %vm304_vm2 = vcmp.eq.s32.totalorder %v2277_v26, %v2531_v8  ;;  %v648_v55 = vadd.f32 %v616_v43, %v415_v53  ;;  %v2559_v13 = vrot.slane %v2377_v56, %v2303_v36  ;;  %v2563_v14 = vrot.slane %v2311_v39, %v2306_v37 }
  0x5e   : > { %1177 = vmatpush1.msra.mxu0 %v646_v9  ;;  %v2025_v12 = vsel %vm304_vm2, 1.0, %v3422_v0  ;;  %vm506_vm3 = vcmp.eq.s32.totalorder %v2277_v26, %v2546_v2  ;;  %vm306_vm4 = vcmp.eq.s32.totalorder %v2277_v26, %v2550_v11  ;;  %v2574_v16 = vrot.slane %v2314_v40, %v2306_v37  ;;  %v2661_v9 = vld [vmem:[%s2519_s14 + $0x18] sm:$0xff] }
  0x5f   : > { %2124 = vmatmul.mubr.msk.f32.vlgmr.msra.gmra.mxu0 %vm1121_vm10, %v2536_v10  ;;  %v442_v15 = vmul.f32 %v2025_v12, %v2540_v54  ;;  %1290 = vmatpush1.msra.mxu1 %v648_v55  ;;  %v2057_v18 = vsel %vm506_vm3, 1.0, %v3422_v0  ;;  %v2027_v19 = vsel %vm306_vm4, 1.0, %v3422_v0  ;;  %vm508_vm5 = vcmp.eq.s32.totalorder %v2277_v26, %v2559_v13 }
  0x60   : > { %vm303_vm6 = vcmp.eq.s32.totalorder %v2277_v26, %v2563_v14  ;;  %1216 = vmatprep.mubr.f32.mxu0 %v3422_v0  ;;  %2132 = vmatmul.mubr.msk.f32.vlgmr.msra.gmra.mxu1 %vm1121_vm10, %v2536_v10  ;;  %v643_v21 = vmul.f32 %v2057_v18, %v2334_v45  ;;  %v444_v22 = vmul.f32 %v2027_v19, %v2554_v44  ;;  %v2059_v24 = vsel %vm508_vm5, 1.0, %v3422_v0 }
  0x61   : > { %v2024_v25 = vsel %vm303_vm6, 1.0, %v3422_v0  ;;  %v645_v32 = vmul.f32 %v2059_v24, %v2338_v46  ;;  %v2596_v57 = vrot.slane %v2377_v56, %v2306_v37  ;;  %v2600_v58 = vrot.slane %v2291_v31, %v2306_v37  ;;  %1329 = vmatprep.mubr.f32.mxu1 %v3422_v0 }
  0x62   : > { %v441_v47 = vmul.f32 %v2024_v25, %v2574_v16  ;;  %v675_v59 = vadd.f32 %v643_v21, %v442_v15  ;;  %v2605_v61 = vrot.slane %v2311_v39, %v2309_v38  ;;  %v2609_v63 = vrot.slane %v2314_v40, %v2309_v38  ;;  %v2625_v39 = vld [vmem:[%s2519_s14 + $0x10] sm:$0xff] }
  0x63   : > { %v2613_v3 = vrot.slane %v2377_v56, %v2309_v38  ;;  %2125 = vmatmul.mubr.msk.f32.gmra.mxu0 %vm1121_vm10, %v2584_v20  ;;  %v677_v48 = vadd.f32 %v645_v32, %v444_v22  ;;  %vm505_vm7 = vcmp.eq.s32.totalorder %v2277_v26, %v2596_v57  ;;  %v2621_v4 = vrot.slane %v2291_v31, %v2309_v38  ;;  %v2690_v32 = vld [vmem:[%s2519_s14 + $0x20] sm:$0xff] }
  0x64   : > { %1222 = vmatprep.mubr.f32.mxu0 %v3422_v0  ;;  %vm296_vm8 = vcmp.eq.s32.totalorder %v2294_v33, %v2531_v8  ;;  %1396 = vmatprep.subr.mxu0 %v675_v59  ;;  %v2056_v40 = vsel %vm505_vm7, 1.0, %v3422_v0  ;;  %vm305_vm9 = vcmp.eq.s32.totalorder %v2277_v26, %v2605_v61  ;;  %vm498_vm12 = vcmp.eq.s32.totalorder %v2294_v33, %v2546_v2 }
  0x65   : > { %vm507_vm11 = vcmp.eq.s32.totalorder %v2277_v26, %v2613_v3  ;;  %2133 = vmatmul.mubr.msk.f32.gmra.mxu1 %vm1121_vm10, %v2584_v20  ;;  %v2017_v31 = vsel %vm296_vm8, 1.0, %v3422_v0  ;;  %1509 = vmatprep.subr.mxu1 %v677_v48  ;;  %v642_v56 = vmul.f32 %v2056_v40, %v2600_v58  ;;  %v2026_v5 = vsel %vm305_vm9, 1.0, %v3422_v0 }
  0x66   : > { %v2058_v60 = vsel %vm507_vm11, 1.0, %v3422_v0  ;;  %1335 = vmatprep.mubr.f32.mxu1 %v3422_v0  ;;  %v434_v6 = vmul.f32 %v2017_v31, %v2540_v54  ;;  %v443_v49 = vmul.f32 %v2026_v5, %v2609_v63  ;;  %vm298_vm13 = vcmp.eq.s32.totalorder %v2294_v33, %v2550_v11 }
  0x67   : > { %v644_v41 = vmul.f32 %v2058_v60, %v2621_v4  ;;  %2126 = vmatmul.mubr.msk.f32.gmra.mxu0 %vm1121_vm10, %v2625_v39  ;;  %v674_v50 = vadd.f32 %v642_v56, %v441_v47  ;;  %v2049_v7 = vsel %vm498_vm12, 1.0, %v3422_v0  ;;  %v2019_v51 = vsel %vm298_vm13, 1.0, %v3422_v0 }
  0x68   : > { %vm500_vm14 = vcmp.eq.s32.totalorder %v2294_v33, %v2559_v13  ;;  %1228 = vmatprep.mubr.f32.mxu0 %v3422_v0  ;;  %v635_v42 = vmul.f32 %v2049_v7, %v2334_v45  ;;  %v436_v62 = vmul.f32 %v2019_v51, %v2554_v44  ;;  %vm295_vm15 = vcmp.eq.s32.totalorder %v2294_v33, %v2563_v14  ;;  %v2721_v51 = vld [vmem:[%s2519_s14 + $0x28] sm:$0xff] }
  0x69   : > { %v676_v52 = vadd.f32 %v644_v41, %v443_v49  ;;  %2134 = vmatmul.mubr.msk.f32.gmra.mxu1 %vm1121_vm10, %v2625_v39  ;;  %v2051_v1 = vsel %vm500_vm14, 1.0, %v3422_v0  ;;  %1397 = vmatpush1.msra.mxu0 %v674_v50  ;;  %vm497_vm0 = vcmp.eq.s32.totalorder %v2294_v33, %v2596_v57  ;;  %vm297_vm1 = vcmp.eq.s32.totalorder %v2294_v33, %v2605_v61 }
  0x6a   : > { %v637_v53 = vmul.f32 %v2051_v1, %v2338_v46  ;;  %v667_v43 = vadd.f32 %v635_v42, %v434_v6  ;;  %v2016_v55 = vsel %vm295_vm15, 1.0, %v3422_v0  ;;  %v2048_v12 = vsel %vm497_vm0, 1.0, %v3422_v0  ;;  %1341 = vmatprep.mubr.f32.mxu1 %v3422_v0 }
  0x6b   : > { %1510 = vmatpush1.msra.mxu1 %v676_v52  ;;  %v2018_v15 = vsel %vm297_vm1, 1.0, %v3422_v0  ;;  %v433_v19 = vmul.f32 %v2016_v55, %v2574_v16  ;;  %v634_v21 = vmul.f32 %v2048_v12, %v2600_v58  ;;  %2127 = vmatmul.mubr.msk.f32.gmra.mxu0 %vm1121_vm10, %v2661_v9  ;;  %vm499_vm2 = vcmp.eq.s32.totalorder %v2294_v33, %v2613_v3 }
  0x6c   : > { %v669_v18 = vadd.f32 %v637_v53, %v436_v62  ;;  %v435_v22 = vmul.f32 %v2018_v15, %v2609_v63  ;;  %1398 = vmatprep.subr.mxu0 %v667_v43  ;;  %vm288_vm3 = vcmp.eq.s32.totalorder %v2297_v34, %v2531_v8  ;;  %vm490_vm4 = vcmp.eq.s32.totalorder %v2297_v34, %v2546_v2 }
  0x6d   : > { %2135 = vmatmul.mubr.msk.f32.gmra.mxu1 %vm1121_vm10, %v2661_v9  ;;  %v666_v24 = vadd.f32 %v634_v21, %v433_v19  ;;  %v2050_v25 = vsel %vm499_vm2, 1.0, %v3422_v0  ;;  %1234 = vmatprep.mubr.f32.mxu0 %v3422_v0  ;;  %v2009_v47 = vsel %vm288_vm3, 1.0, %v3422_v0  ;;  %v2041_v59 = vsel %vm490_vm4, 1.0, %v3422_v0 }
  0x6e   : > { %1511 = vmatprep.subr.mxu1 %v669_v18  ;;  %v636_v48 = vmul.f32 %v2050_v25, %v2621_v4  ;;  %1347 = vmatprep.mubr.f32.mxu1 %v3422_v0  ;;  %v426_v40 = vmul.f32 %v2009_v47, %v2540_v54  ;;  %v627_v31 = vmul.f32 %v2041_v59, %v2334_v45  ;;  %v2742_v18 = vld [vmem:[%s2519_s14 + $0x30] sm:$0xff]  ;;  %v1120_v47 = vld [vmem:[%s2519_s14 + $0x38] sm:$0xff] }
  0x6f   : > { %vm290_vm5 = vcmp.eq.s32.totalorder %v2297_v34, %v2550_v11  ;;  %1399 = vmatpush1.msra.mxu0 %v666_v24  ;;  %vm492_vm6 = vcmp.eq.s32.totalorder %v2297_v34, %v2559_v13  ;;  %vm287_vm7 = vcmp.eq.s32.totalorder %v2297_v34, %v2563_v14  ;;  %vm489_vm8 = vcmp.eq.s32.totalorder %v2297_v34, %v2596_v57 }
  0x70   : > { %v2011_v56 = vsel %vm290_vm5, 1.0, %v3422_v0  ;;  %v668_v5 = vadd.f32 %v636_v48, %v435_v22  ;;  %2128 = vmatmul.mubr.msk.f32.gmra.mxu0 %vm1121_vm10, %v2690_v32  ;;  %v659_v60 = vadd.f32 %v627_v31, %v426_v40  ;;  %v2043_v49 = vsel %vm492_vm6, 1.0, %v3422_v0 }
  0x71   : > { %2136 = vmatmul.mubr.msk.f32.gmra.mxu1 %vm1121_vm10, %v2690_v32  ;;  %v428_v6 = vmul.f32 %v2011_v56, %v2554_v44  ;;  %v629_v41 = vmul.f32 %v2043_v49, %v2338_v46  ;;  %v2008_v50 = vsel %vm287_vm7, 1.0, %v3422_v0  ;;  %v2040_v7 = vsel %vm489_vm8, 1.0, %v3422_v0  ;;  %1240 = vmatprep.mubr.f32.mxu0 %v3422_v0 }
  0x72   : > { %vm289_vm9 = vcmp.eq.s32.totalorder %v2297_v34, %v2605_v61  ;;  %1353 = vmatprep.mubr.f32.mxu1 %v3422_v0  ;;  %1512 = vmatpush1.msra.mxu1 %v668_v5  ;;  %v425_v52 = vmul.f32 %v2008_v50, %v2574_v16  ;;  %v626_v42 = vmul.f32 %v2040_v7, %v2600_v58 }
  0x73   : > { %1400 = vmatprep.subr.mxu0 %v659_v60  ;;  %v2010_v62 = vsel %vm289_vm9, 1.0, %v3422_v0  ;;  %vm491_vm11 = vcmp.eq.s32.totalorder %v2297_v34, %v2613_v3  ;;  %v661_v1 = vadd.f32 %v629_v41, %v428_v6  ;;  %vm280_vm12 = vcmp.eq.s32.totalorder %v2274_v23, %v2531_v8 }
  0x74   : > { %v427_v53 = vmul.f32 %v2010_v62, %v2609_v63  ;;  %v2042_v43 = vsel %vm491_vm11, 1.0, %v3422_v0  ;;  %v658_v55 = vadd.f32 %v626_v42, %v425_v52  ;;  %2129 = vmatmul.mubr.msk.f32.gmra.mxu0 %vm1121_vm10, %v2721_v51  ;;  %v2001_v15 = vsel %vm280_vm12, 1.0, %v3422_v0 }
  0x75   : > { %v628_v12 = vmul.f32 %v2042_v43, %v2621_v4  ;;  %2137 = vmatmul.mubr.msk.f32.gmra.mxu1 %vm1121_vm10, %v2721_v51  ;;  %vm482_vm13 = vcmp.eq.s32.totalorder %v2274_v23, %v2546_v2  ;;  %1513 = vmatprep.subr.mxu1 %v661_v1  ;;  %v418_v8 = vmul.f32 %v2001_v15, %v2540_v54 }
  0x76   : > { %1246 = vmatprep.mubr.f32.mxu0 %v3422_v0  ;;  %v2033_v19 = vsel %vm482_vm13, 1.0, %v3422_v0  ;;  %vm282_vm14 = vcmp.eq.s32.totalorder %v2274_v23, %v2550_v11  ;;  %vm484_vm15 = vcmp.eq.s32.totalorder %v2274_v23, %v2559_v13  ;;  %1401 = vmatpush1.msra.mxu0 %v658_v55  ;;  %vm279_vm0 = vcmp.eq.s32.totalorder %v2274_v23, %v2563_v14 }
  0x77   : > { %v660_v21 = vadd.f32 %v628_v12, %v427_v53  ;;  %1359 = vmatprep.mubr.f32.mxu1 %v3422_v0  ;;  %v619_v2 = vmul.f32 %v2033_v19, %v2334_v45  ;;  %v2003_v22 = vsel %vm282_vm14, 1.0, %v3422_v0  ;;  %v2035_v24 = vsel %vm484_vm15, 1.0, %v3422_v0 }
  0x78   : > { %v420_v54 = vmul.f32 %v2003_v22, %v2554_v44  ;;  %v621_v25 = vmul.f32 %v2035_v24, %v2338_v46  ;;  %vm481_vm1 = vcmp.eq.s32.totalorder %v2274_v23, %v2596_v57  ;;  %2130 = vmatmul.mubr.msk.f32.gmra.mxu0 %vm1121_vm10, %v2742_v18  ;;  %v2000_v11 = vsel %vm279_vm0, 1.0, %v3422_v0 }
  0x79   : > { %1514 = vmatpush1.msra.mxu1 %v660_v21  ;;  %v651_v45 = vadd.f32 %v619_v2, %v418_v8  ;;  %v2032_v13 = vsel %vm481_vm1, 1.0, %v3422_v0  ;;  %vm281_vm2 = vcmp.eq.s32.totalorder %v2274_v23, %v2605_v61  ;;  %v417_v44 = vmul.f32 %v2000_v11, %v2574_v16  ;;  %1252 = vmatprep.mubr.f32.mxu0 %v3422_v0 }
  0x7a   : > { %2138 = vmatmul.mubr.msk.f32.gmra.mxu1 %vm1121_vm10, %v2742_v18  ;;  %v653_v46 = vadd.f32 %v621_v25, %v420_v54  ;;  %v618_v14 = vmul.f32 %v2032_v13, %v2600_v58  ;;  %v2002_v57 = vsel %vm281_vm2, 1.0, %v3422_v0  ;;  %vm483_vm3 = vcmp.eq.s32.totalorder %v2274_v23, %v2613_v3 }
  0x7b   : > { %1402 = vmatprep.subr.mxu0 %v651_v45  ;;  %v419_v59 = vmul.f32 %v2002_v57, %v2609_v63  ;;  %1365 = vmatprep.mubr.f32.mxu1 %v3422_v0  ;;  %v2034_v48 = vsel %vm483_vm3, 1.0, %v3422_v0 }
  0x7c   : > { %1515 = vmatprep.subr.mxu1 %v653_v46  ;;  %v650_v61 = vadd.f32 %v618_v14, %v417_v44  ;;  %v620_v16 = vmul.f32 %v2034_v48, %v2621_v4  ;;  %2131 = vmatmul.mubr.msk.f32.gmra.mxu0 %vm1121_vm10, %v1120_v47 }
  0x7d   : > { %1436 = vmatprep.mubr.f32.mxu0 %v3422_v0 }
  0x7e   : > { %1403 = vmatpush1.msra.mxu0 %v650_v61  ;;  %2139 = vmatmul.mubr.msk.f32.gmra.mxu1 %vm1121_vm10, %v1120_v47  ;;  %v652_v58 = vadd.f32 %v620_v16, %v419_v59 }
  0x7f   : > { %1549 = vmatprep.mubr.f32.mxu1 %v3422_v0 }
  0x80   : > { %1516 = vmatpush1.msra.mxu1 %v652_v58  ;;  %2140 = vmatmul.mubr.msk.f32.vlgmr.msra.gmra.mxu0 %vm1121_vm10, %v2536_v10 }
  0x81   : > { %1442 = vmatprep.mubr.f32.mxu0 %v3422_v0 }
  0x82   : > { %2148 = vmatmul.mubr.msk.f32.vlgmr.msra.gmra.mxu1 %vm1121_vm10, %v2536_v10  ;;  %v220_v10 = vadd.f32 1.0, %v2272_v17 }
  0x83   : > { %1555 = vmatprep.mubr.f32.mxu1 %v3422_v0 }
  0x84   : > { %2141 = vmatmul.mubr.msk.f32.gmra.mxu0 %vm1121_vm10, %v2584_v20 }
  0x85   : > { %1448 = vmatprep.mubr.f32.mxu0 %v3422_v0 }
  0x86   : > { %2149 = vmatmul.mubr.msk.f32.gmra.mxu1 %vm1121_vm10, %v2584_v20  ;;  %v221_v20 = vmul.f32 32.0, %v220_v10 }
  0x87   : > { %1561 = vmatprep.mubr.f32.mxu1 %v3422_v0 }
  0x88   : > { %2142 = vmatmul.mubr.msk.f32.gmra.mxu0 %vm1121_vm10, %v2625_v39  ;;  %v1995_v63 = vadd.f32 -1.0, %v221_v20 }
  0x89   : > { %1454 = vmatprep.mubr.f32.mxu0 %v3422_v0 }
  0x8a   : > { %2150 = vmatmul.mubr.msk.f32.gmra.mxu1 %vm1121_vm10, %v2625_v39  ;;  %v223_v3 = vmul.f32 0.5, %v1995_v63 }
  0x8b   : > { %1567 = vmatprep.mubr.f32.mxu1 %v3422_v0 }
  0x8c   : > { %2143 = vmatmul.mubr.msk.f32.gmra.mxu0 %vm1121_vm10, %v2661_v9  ;;  %v224_v4 = vmax.f32 %v223_v3, 0.0 }
  0x8d   : > { %1460 = vmatprep.mubr.f32.mxu0 %v3422_v0 }
  0x8e   : > { %2151 = vmatmul.mubr.msk.f32.gmra.mxu1 %vm1121_vm10, %v2661_v9  ;;  %v225_v39 = vmin.f32 %v224_v4, 31.0 }
  0x8f   : > { %1573 = vmatprep.mubr.f32.mxu1 %v3422_v0 }
  0x90   : > { %2144 = vmatmul.mubr.msk.f32.gmra.mxu0 %vm1121_vm10, %v2690_v32  ;;  %v227_v9 = vfloor.f32 %v225_v39 }
  0x91   : > { %1466 = vmatprep.mubr.f32.mxu0 %v3422_v0 }
  0x92   : > { %2152 = vmatmul.mubr.msk.f32.gmra.mxu1 %vm1121_vm10, %v2690_v32  ;;  %v2162_v32 = vtrunc.f32 %v227_v9  ;;  %v2831_v56 = vsub.f32 %v225_v39, %v227_v9 }
  0x93   : > { %1579 = vmatprep.mubr.f32.mxu1 %v3422_v0 }
  0x94   : > { %2145 = vmatmul.mubr.msk.f32.gmra.mxu0 %vm1121_vm10, %v2721_v51  ;;  %v2828_v40 = vcvt.f32.s32 %v2162_v32  ;;  %v2852_v41 = vsub.f32 1.0, %v2831_v56  ;;  %v2909_v8 = vrot.slane %v2831_v56, %v2280_v27  ;;  %v2929_v54 = vrot.slane %v2831_v56, %v2283_v28 }
  0x95   : > { %1472 = vmatprep.mubr.f32.mxu0 %v3422_v0 }
  0x96   : > { %2153 = vmatmul.mubr.msk.f32.gmra.mxu1 %vm1121_vm10, %v2721_v51  ;;  %v235_v31 = vadd.s32 1, %v2828_v40  ;;  %v2837_v60 = vrot.slane %v2828_v40, %v2286_v29  ;;  %v2845_v6 = vrot.slane %v2828_v40, %v2289_v30  ;;  %v2856_v50 = vrot.slane %v2828_v40, %v2280_v27 }
  0x97   : > { %1585 = vmatprep.mubr.f32.mxu1 %v3422_v0  ;;  %v2868_v51 = vrot.slane %v2831_v56, %v2286_v29  ;;  %v2876_v52 = vrot.slane %v2852_v41, %v2286_v29  ;;  %v2882_v42 = vrot.slane %v2828_v40, %v2283_v28  ;;  %v2891_v53 = vrot.slane %v2852_v41, %v2289_v30 }
  0x98   : > { %2146 = vmatmul.mubr.msk.f32.gmra.mxu0 %vm1121_vm10, %v2742_v18  ;;  %vm236_vm4 = vcmp.lt.s32.totalorder %v235_v31, 31  ;;  %vm712_vm6 = vcmp.eq.s32.totalorder %v2274_v23, %v2845_v6  ;;  %vm711_vm8 = vcmp.eq.s32.totalorder %v2274_v23, %v2856_v50  ;;  %v2904_v15 = vrot.slane %v2852_v41, %v2280_v27 }
  0x99   : > { %1478 = vmatprep.mubr.f32.mxu0 %v3422_v0  ;;  %v2833_v5 = vsel %vm236_vm4, %v235_v31, 31  ;;  %v2062_v55 = vsel %vm712_vm6, 1.0, %v3422_v0  ;;  %vm713_vm11 = vcmp.eq.s32.totalorder %v2274_v23, %v2882_v42  ;;  %vm718_vm13 = vcmp.eq.s32.totalorder %v2297_v34, %v2837_v60 }
  0x9a   : > { %2154 = vmatmul.mubr.msk.f32.gmra.mxu1 %vm1121_vm10, %v2742_v18  ;;  %v2841_v17 = vrot.slane %v2833_v5, %v2286_v29  ;;  %v2849_v49 = vrot.slane %v2833_v5, %v2289_v30  ;;  %v2860_v7 = vrot.slane %v2833_v5, %v2280_v27  ;;  %v2886_v62 = vrot.slane %v2833_v5, %v2283_v28 }
  0x9b   : > { %1591 = vmatprep.mubr.f32.mxu1 %v3422_v0  ;;  %v2895_v29 = vrot.slane %v2831_v56, %v2289_v30  ;;  %v2061_v18 = vsel %vm711_vm8, 1.0, %v3422_v0  ;;  %v850_v2 = vmul.f32 %v2062_v55, %v2891_v53  ;;  %v2925_v24 = vrot.slane %v2852_v41, %v2283_v28 }
  0x9c   : > { %2147 = vmatmul.mubr.msk.f32.gmra.mxu0 %vm1121_vm10, %v1120_v47  ;;  %vm912_vm5 = vcmp.eq.s32.totalorder %v2274_v23, %v2841_v17  ;;  %vm914_vm7 = vcmp.eq.s32.totalorder %v2274_v23, %v2849_v49  ;;  %vm913_vm9 = vcmp.eq.s32.totalorder %v2274_v23, %v2860_v7  ;;  %vm915_vm12 = vcmp.eq.s32.totalorder %v2274_v23, %v2886_v62 }
  0x9d   : > { %v2092_v43 = vsel %vm912_vm5, 1.0, %v3422_v0  ;;  %v2094_v12 = vsel %vm914_vm7, 1.0, %v3422_v0  ;;  %v2093_v19 = vsel %vm913_vm9, 1.0, %v3422_v0  ;;  %v849_v27 = vmul.f32 %v2061_v18, %v2904_v15 }
  0x9e   : > { %2155 = vmatmul.mubr.msk.f32.gmra.mxu1 %vm1121_vm10, %v1120_v47  ;;  %vm710_vm10 = vcmp.eq.s32.totalorder %v2274_v23, %v2837_v60  ;;  %v1049_v21 = vmul.f32 %v2092_v43, %v2868_v51  ;;  %v1051_v22 = vmul.f32 %v2094_v12, %v2895_v29  ;;  %vm920_vm14 = vcmp.eq.s32.totalorder %v2297_v34, %v2841_v17 }
  0x9f   : > { %v2060_v1 = vsel %vm710_vm10, 1.0, %v3422_v0  ;;  %v1050_v25 = vmul.f32 %v2093_v19, %v2909_v8  ;;  %v2063_v45 = vsel %vm713_vm11, 1.0, %v3422_v0  ;;  %v2095_v11 = vsel %vm915_vm12, 1.0, %v3422_v0 }
  0xa0   : > { %v848_v30 = vmul.f32 %v2060_v1, %v2876_v52  ;;  %vm720_vm15 = vcmp.eq.s32.totalorder %v2297_v34, %v2845_v6  ;;  %v2068_v13 = vsel %vm718_vm13, 1.0, %v3422_v0  ;;  %vm922_vm0 = vcmp.eq.s32.totalorder %v2297_v34, %v2849_v49 }
  0xa1   : > { %vm719_vm1 = vcmp.eq.s32.totalorder %v2297_v34, %v2856_v50  ;;  %vm921_vm2 = vcmp.eq.s32.totalorder %v2297_v34, %v2860_v7  ;;  %v2100_v28 = vsel %vm920_vm14, 1.0, %v3422_v0  ;;  %vm721_vm3 = vcmp.eq.s32.totalorder %v2297_v34, %v2882_v42 }
  0xa2   : > { %vm923_vm4 = vcmp.eq.s32.totalorder %v2297_v34, %v2886_v62  ;;  %vm726_vm10 = vcmp.eq.s32.totalorder %v2294_v33, %v2837_v60  ;;  %v851_v46 = vmul.f32 %v2063_v45, %v2925_v24  ;;  %v1052_v44 = vmul.f32 %v2095_v11, %v2929_v54 }
  0xa3   : > { %v2070_v14 = vsel %vm720_vm15, 1.0, %v3422_v0  ;;  %vm928_vm5 = vcmp.eq.s32.totalorder %v2294_v33, %v2841_v17  ;;  %v856_v57 = vmul.f32 %v2068_v13, %v2876_v52  ;;  %v2102_v47 = vsel %vm922_vm0, 1.0, %v3422_v0 }
  0xa4   : > { %v2069_v59 = vsel %vm719_vm1, 1.0, %v3422_v0  ;;  %v2101_v61 = vsel %vm921_vm2, 1.0, %v3422_v0  ;;  %v1057_v48 = vmul.f32 %v2100_v28, %v2868_v51  ;;  %v2071_v16 = vsel %vm721_vm3, 1.0, %v3422_v0 }
  0xa5   : > { %v2103_v58 = vsel %vm923_vm4, 1.0, %v3422_v0  ;;  %v2076_v10 = vsel %vm726_vm10, 1.0, %v3422_v0  ;;  %v858_v20 = vmul.f32 %v2070_v14, %v2891_v53  ;;  %v2108_v63 = vsel %vm928_vm5, 1.0, %v3422_v0 }
  0xa6   : > { %vm728_vm6 = vcmp.eq.s32.totalorder %v2294_v33, %v2845_v6  ;;  %vm930_vm7 = vcmp.eq.s32.totalorder %v2294_v33, %v2849_v49  ;;  %v1059_v3 = vmul.f32 %v2102_v47, %v2895_v29  ;;  %v857_v4 = vmul.f32 %v2069_v59, %v2904_v15 }
  0xa7   : > { %v1058_v39 = vmul.f32 %v2101_v61, %v2909_v8  ;;  %vm727_vm8 = vcmp.eq.s32.totalorder %v2294_v33, %v2856_v50  ;;  %v859_v9 = vmul.f32 %v2071_v16, %v2925_v24  ;;  %v1060_v32 = vmul.f32 %v2103_v58, %v2929_v54 }
  0xa8   : > { %v864_v31 = vmul.f32 %v2076_v10, %v2876_v52  ;;  %v1065_v1 = vmul.f32 %v2108_v63, %v2868_v51  ;;  %v2078_v43 = vsel %vm728_vm6, 1.0, %v3422_v0  ;;  %v2110_v55 = vsel %vm930_vm7, 1.0, %v3422_v0 }
  0xa9   : > { %vm929_vm9 = vcmp.eq.s32.totalorder %v2294_v33, %v2860_v7  ;;  %v2984_v12 = vadd.f32 %v1049_v21, %v848_v30  ;;  %v2986_v18 = vadd.f32 %v1051_v22, %v850_v2  ;;  %v2988_v19 = vadd.f32 %v1050_v25, %v849_v27 }
  0xaa   : > { %v2077_v45 = vsel %vm727_vm8, 1.0, %v3422_v0  ;;  %v2991_v11 = vadd.f32 %v1052_v44, %v851_v46  ;;  %v2993_v13 = vadd.f32 %v1057_v48, %v856_v57  ;;  %v2995_v28 = vadd.f32 %v1059_v3, %v858_v20 }
  0xab   : > { %v2997_v14 = vadd.f32 %v1058_v39, %v857_v4  ;;  %v866_v47 = vmul.f32 %v2078_v43, %v2891_v53  ;;  %v1067_v59 = vmul.f32 %v2110_v55, %v2895_v29  ;;  %v2109_v30 = vsel %vm929_vm9, 1.0, %v3422_v0 }
  0xac   : > { %vm729_vm11 = vcmp.eq.s32.totalorder %v2294_v33, %v2882_v42  ;;  %v3004_v21 = vadd.f32 %v1060_v32, %v859_v9  ;;  %v3006_v2 = vadd.f32 %v1065_v1, %v864_v31  ;;  %v865_v22 = vmul.f32 %v2077_v45, %v2904_v15 }
  0xad   : > { %vm931_vm12 = vcmp.eq.s32.totalorder %v2294_v33, %v2886_v62  ;;  %vm734_vm13 = vcmp.eq.s32.totalorder %v2277_v26, %v2837_v60  ;;  %vm936_vm14 = vcmp.eq.s32.totalorder %v2277_v26, %v2841_v17  ;;  %vm736_vm15 = vcmp.eq.s32.totalorder %v2277_v26, %v2845_v6 }
  0xae   : > { %vm938_vm0 = vcmp.eq.s32.totalorder %v2277_v26, %v2849_v49  ;;  %v1066_v27 = vmul.f32 %v2109_v30, %v2909_v8  ;;  %v2079_v25 = vsel %vm729_vm11, 1.0, %v3422_v0  ;;  %vm735_vm1 = vcmp.eq.s32.totalorder %v2277_v26, %v2856_v50 }
  0xaf   : > { %vm937_vm2 = vcmp.eq.s32.totalorder %v2277_v26, %v2860_v7  ;;  %v3025_v60 = vadd.f32 %v1067_v59, %v866_v47  ;;  %v2111_v17 = vsel %vm931_vm12, 1.0, %v3422_v0  ;;  %vm737_vm3 = vcmp.eq.s32.totalorder %v2277_v26, %v2882_v42 }
  0xb0   : > { %vm939_vm4 = vcmp.eq.s32.totalorder %v2277_v26, %v2886_v62  ;;  %v2084_v6 = vsel %vm734_vm13, 1.0, %v3422_v0  ;;  %v2116_v49 = vsel %vm936_vm14, 1.0, %v3422_v0  ;;  %v2086_v46 = vsel %vm736_vm15, 1.0, %v3422_v0 }
  0xb1   : > { %v2118_v50 = vsel %vm938_vm0, 1.0, %v3422_v0  ;;  %v867_v7 = vmul.f32 %v2079_v25, %v2925_v24  ;;  %v2085_v44 = vsel %vm735_vm1, 1.0, %v3422_v0  ;;  %v2117_v57 = vsel %vm937_vm2, 1.0, %v3422_v0 }
  0xb2   : > { %v3041_v42 = vrot.slane %v2828_v40, %v2306_v37  ;;  %v1068_v62 = vmul.f32 %v2111_v17, %v2929_v54  ;;  %v2087_v61 = vsel %vm737_vm3, 1.0, %v3422_v0  ;;  %v2119_v48 = vsel %vm939_vm4, 1.0, %v3422_v0 }
  0xb3   : > { %v872_v16 = vmul.f32 %v2084_v6, %v2876_v52  ;;  %v1073_v58 = vmul.f32 %v2116_v49, %v2868_v51  ;;  %v874_v10 = vmul.f32 %v2086_v46, %v2891_v53  ;;  %v1075_v20 = vmul.f32 %v2118_v50, %v2895_v29 }
  0xb4   : > { %v3050_v63 = vadd.f32 %v1066_v27, %v865_v22  ;;  %v873_v3 = vmul.f32 %v2085_v44, %v2904_v15  ;;  %v1074_v4 = vmul.f32 %v2117_v57, %v2909_v8  ;;  %v3056_v39 = vrot.slane %v2833_v5, %v2306_v37 }
  0xb5   : > { %v2214_v9 = vmov 1983009808   ;;  %v875_v52 = vmul.f32 %v2087_v61, %v2925_v24  ;;  %v1076_v51 = vmul.f32 %v2119_v48, %v2929_v54  ;;  %vm714_vm10 = vcmp.eq.s32.totalorder %v2274_v23, %v3041_v42 }
  0xb6   : > { %3435 = vst [vmem:[#allocation5_spill] sm:$0xff] %v3056_v39  ;;  %v1825_v32 = vunpack.c.l.s4 %v2214_v9  ;;  %v3064_v53 = vrot.slane %v2828_v40, %v2309_v38  ;;  %v3068_v29 = vrot.slane %v2833_v5, %v2309_v38  ;;  %v3072_v15 = vrot.slane %v2828_v40, %v2300_v35 }
  0xb7   : > { %v3076_v8 = vrot.slane %v2833_v5, %v2300_v35  ;;  %v3078_v24 = vadd.f32 %v1068_v62, %v867_v7  ;;  %v3080_v54 = vadd.f32 %v1073_v58, %v872_v16  ;;  %v3082_v31 = vadd.f32 %v1075_v20, %v874_v10 }
  0xb8   : > { %3436 = vst [vmem:[#allocation6_spill] sm:$0xff] %v3064_v53  ;;  %3437 = vst [vmem:[#allocation7_spill] sm:$0xff] %v3068_v29  ;;  %v3086_v1 = vrot.slane %v2852_v41, %v2306_v37  ;;  %v2064_v43 = vsel %vm714_vm10, 1.0, %v3422_v0  ;;  %vm916_vm5 = vcmp.eq.s32.totalorder %v2274_v23, %v3056_v39  ;;  %v3093_v55 = vrot.slane %v2828_v40, %v2303_v36 }
  0xb9   : > { %3438 = vst [vmem:[#allocation8_spill] sm:$0xff] %v3072_v15  ;;  %3439 = vst [vmem:[#allocation9_spill] sm:$0xff] %v3076_v8  ;;  %v3097_v45 = vrot.slane %v2833_v5, %v2303_v36  ;;  %v3099_v47 = vadd.f32 %v1074_v4, %v873_v3  ;;  %v1826_v59 = vunpack.c.0.s8 %v1825_v32  ;;  %v3101_v30 = vadd.f32 %v1076_v51, %v875_v52 }
  0xba   : > { %v3105_v22 = vrot.slane %v2831_v56, %v2306_v37  ;;  %vm716_vm6 = vcmp.eq.s32.totalorder %v2274_v23, %v3064_v53  ;;  %vm918_vm7 = vcmp.eq.s32.totalorder %v2274_v23, %v3068_v29  ;;  %vm715_vm8 = vcmp.eq.s32.totalorder %v2274_v23, %v3072_v15 }
  0xbb   : > { %3440 = vst [vmem:[#allocation10_spill] sm:$0xff] %v3099_v47  ;;  %3441 = vst [vmem:[#allocation11_spill] sm:$0xff] %v3101_v30  ;;  %vm917_vm9 = vcmp.eq.s32.totalorder %v2274_v23, %v3076_v8  ;;  %v3116_v40 = vmul.f32 %v2064_v43, %v3086_v1  ;;  %v2096_v5 = vsel %vm916_vm5, 1.0, %v3422_v0  ;;  %v3121_v37 = vrot.slane %v2852_v41, %v2309_v38 }
  0xbc   : > { %v3125_v27 = vrot.slane %v2831_v56, %v2309_v38  ;;  %v3129_v25 = vrot.slane %v2852_v41, %v2300_v35  ;;  %v3133_v17 = vrot.slane %v2831_v56, %v2300_v35  ;;  %vm717_vm11 = vcmp.eq.s32.totalorder %v2274_v23, %v3093_v55 }
  0xbd   : > { %vm919_vm12 = vcmp.eq.s32.totalorder %v2274_v23, %v3097_v45  ;;  %v2066_v6 = vsel %vm716_vm6, 1.0, %v3422_v0  ;;  %v2098_v49 = vsel %vm918_vm7, 1.0, %v3422_v0  ;;  %v2065_v38 = vsel %vm715_vm8, 1.0, %v3422_v0 }
  0xbe   : > { %v2097_v46 = vsel %vm917_vm9, 1.0, %v3422_v0  ;;  %v1053_v50 = vmul.f32 %v2096_v5, %v3105_v22  ;;  %v3146_v35 = vrot.slane %v2852_v41, %v2303_v36  ;;  %v3150_v7 = vrot.slane %v2831_v56, %v2303_v36 }
  0xbf   : > { %vm722_vm13 = vcmp.eq.s32.totalorder %v2297_v34, %v3041_v42  ;;  %v3155_v44 = vsub.s32 %v1826_v59, %v2274_v23  ;;  %v2067_v57 = vsel %vm717_vm11, 1.0, %v3422_v0  ;;  %v2099_v62 = vsel %vm919_vm12, 1.0, %v3422_v0 }
  0xc0   : > { %vm924_vm14 = vcmp.eq.s32.totalorder %v2297_v34, %v3056_v39  ;;  %v854_v41 = vmul.f32 %v2066_v6, %v3121_v37  ;;  %v1055_v61 = vmul.f32 %v2098_v49, %v3125_v27  ;;  %v853_v36 = vmul.f32 %v2065_v38, %v3129_v25 }
  0xc1   : > { %3442 = vst [vmem:[#allocation12_spill] sm:$0xff] %v3155_v44  ;;  %v1054_v56 = vmul.f32 %v2097_v46, %v3133_v17  ;;  %v2072_v48 = vsel %vm722_vm13, 1.0, %v3422_v0  ;;  %vm724_vm15 = vcmp.eq.s32.totalorder %v2297_v34, %v3064_v53  ;;  %vm926_vm0 = vcmp.eq.s32.totalorder %v2297_v34, %v3068_v29 }
  0xc2   : > { %vm723_vm1 = vcmp.eq.s32.totalorder %v2297_v34, %v3072_v15  ;;  %v855_v23 = vmul.f32 %v2067_v57, %v3146_v35  ;;  %v1056_v16 = vmul.f32 %v2099_v62, %v3150_v7  ;;  %v2104_v58 = vsel %vm924_vm14, 1.0, %v3422_v0 }
  0xc3   : > { %vm925_vm2 = vcmp.eq.s32.totalorder %v2297_v34, %v3076_v8  ;;  %vm725_vm3 = vcmp.eq.s32.totalorder %v2297_v34, %v3093_v55  ;;  %vm927_vm4 = vcmp.eq.s32.totalorder %v2297_v34, %v3097_v45  ;;  %vm730_vm10 = vcmp.eq.s32.totalorder %v2294_v33, %v3041_v42 }
  0xc4   : > { %vm932_vm5 = vcmp.eq.s32.totalorder %v2294_v33, %v3056_v39  ;;  %v2074_v10 = vsel %vm724_vm15, 1.0, %v3422_v0  ;;  %v2106_v20 = vsel %vm926_vm0, 1.0, %v3422_v0  ;;  %v2073_v3 = vsel %vm723_vm1, 1.0, %v3422_v0 }
  0xc5   : > { %vm732_vm6 = vcmp.eq.s32.totalorder %v2294_v33, %v3064_v53  ;;  %v860_v9 = vmul.f32 %v2072_v48, %v3086_v1  ;;  %v1061_v34 = vmul.f32 %v2104_v58, %v3105_v22  ;;  %v2105_v32 = vsel %vm925_vm2, 1.0, %v3422_v0 }
  0xc6   : > { %vm934_vm7 = vcmp.eq.s32.totalorder %v2294_v33, %v3068_v29  ;;  %v2075_v52 = vsel %vm725_vm3, 1.0, %v3422_v0  ;;  %v2107_v51 = vsel %vm927_vm4, 1.0, %v3422_v0  ;;  %v2080_v43 = vsel %vm730_vm10, 1.0, %v3422_v0 }
  0xc7   : > { %v2112_v59 = vsel %vm932_vm5, 1.0, %v3422_v0  ;;  %v862_v49 = vmul.f32 %v2074_v10, %v3121_v37  ;;  %v1063_v38 = vmul.f32 %v2106_v20, %v3125_v27  ;;  %v861_v46 = vmul.f32 %v2073_v3, %v3129_v25 }
  0xc8   : > { %v2082_v57 = vsel %vm732_vm6, 1.0, %v3422_v0  ;;  %v1062_v62 = vmul.f32 %v2105_v32, %v3133_v17  ;;  %v2114_v48 = vsel %vm934_vm7, 1.0, %v3422_v0  ;;  %vm731_vm8 = vcmp.eq.s32.totalorder %v2294_v33, %v3072_v15 }
  0xc9   : > { %vm933_vm9 = vcmp.eq.s32.totalorder %v2294_v33, %v3076_v8  ;;  %v863_v10 = vmul.f32 %v2075_v52, %v3146_v35  ;;  %v1064_v20 = vmul.f32 %v2107_v51, %v3150_v7  ;;  %v868_v3 = vmul.f32 %v2080_v43, %v3086_v1 }
  0xca   : > { %v1069_v29 = vmul.f32 %v2112_v59, %v3105_v22  ;;  %v3214_v32 = vadd.f32 %v1053_v50, %v3116_v40  ;;  %v3216_v0 = vadd.f32 %v1055_v61, %v854_v41  ;;  %v3218_v53 = vadd.f32 %v1054_v56, %v853_v36 }
  0xcb   : > { %v870_v15 = vmul.f32 %v2082_v57, %v3121_v37  ;;  %v1071_v39 = vmul.f32 %v2114_v48, %v3125_v27  ;;  %v3443_v52 = vmov 0.0   ;;  %vm733_vm11 = vcmp.eq.s32.totalorder %v2294_v33, %v3093_v55 }
  0xcc   : > { %v2081_v47 = vsel %vm731_vm8, 1.0, %v3443_v52  ;;  %v2113_v51 = vsel %vm933_vm9, 1.0, %v3443_v52  ;;  %v3226_v43 = vadd.f32 %v1056_v16, %v855_v23  ;;  %v3228_v40 = vadd.f32 %v1061_v34, %v860_v9 }
  0xcd   : > { %v3230_v50 = vadd.f32 %v1063_v38, %v862_v49  ;;  %v3232_v41 = vadd.f32 %v1062_v62, %v861_v46  ;;  %v3235_v59 = vadd.f32 %v1064_v20, %v863_v10  ;;  %v3237_v57 = vadd.f32 %v1069_v29, %v868_v3 }
  0xce   : > { %vm935_vm12 = vcmp.eq.s32.totalorder %v2294_v33, %v3097_v45  ;;  %v869_v16 = vmul.f32 %v2081_v47, %v3129_v25  ;;  %v1070_v9 = vmul.f32 %v2113_v51, %v3133_v17  ;;  %v2083_v34 = vsel %vm733_vm11, 1.0, %v3443_v52 }
  0xcf   : > { %3444 = vst [vmem:[#allocation13_spill] sm:$0xff] %v3235_v59  ;;  %3445 = vst [vmem:[#allocation14_spill] sm:$0xff] %v3237_v57  ;;  %v3248_v62 = vadd.f32 %v1071_v39, %v870_v15  ;;  %v2115_v48 = vsel %vm935_vm12, 1.0, %v3443_v52  ;;  %vm738_vm13 = vcmp.eq.s32.totalorder %v2277_v26, %v3041_v42  ;;  %v871_v51 = vmul.f32 %v2083_v34, %v3146_v35  ;;  %v3448_v34 = vld [vmem:[#allocation5_spill] sm:$0xff] }
  0xd0   : > { %vm940_vm14 = vcmp.eq.s32.totalorder %v2277_v26, %v3448_v34  ;;  %vm741_vm3 = vcmp.eq.s32.totalorder %v2277_v26, %v3093_v55  ;;  %vm943_vm4 = vcmp.eq.s32.totalorder %v2277_v26, %v3097_v45  ;;  %vm1895_vm10 = vcmask 1041409  }
  0xd1   : > { %3446 = vst [vmem:[#allocation15_spill] sm:$0xff] %v3248_v62  ;;  %vm1897_vm5 = vcmask 1043459   ;;  %vm1899_vm6 = vcmask 1045509   ;;  %vm1901_vm7 = vcmask 1047559  }
 0x11f   : > { %v1212_v4 = vpop.f32.mrf.mxu0 }
 0x120   : > { %v1325_v5 = vpop.f32.mrf.mxu1  ;;  %v1598_v49 = vmul.f32 %v1212_v4, %v2984_v12 }
 0x121   : > { %v1214_v6 = vpop.f32.mrf.mxu0  ;;  %v1600_v33 = vmul.f32 %v1325_v5, %v2986_v18 }
 0x122   : > { %v1327_v58 = vpop.f32.mrf.mxu1  ;;  %v1599_v10 = vmul.f32 %v1214_v6, %v2988_v19 }
 0x123   : > { %v1218_v44 = vpop.f32.mrf.mxu0  ;;  %v1601_v39 = vmul.f32 %v1327_v58, %v2991_v11  ;;  %v2088_v58 = vsel %vm738_vm13, 1.0, %v3443_v52 }
 0x124   : > { %v1606_v61 = vmul.f32 %v1218_v44, %v2993_v13 }
 0x125   : > { %v1331_v8 = vpop.f32.mrf.mxu1  ;;  %v1220_v30 = vpop.f32.mrf.mxu0 }
 0x126   : > { %v1608_v23 = vmul.f32 %v1331_v8, %v2995_v28  ;;  %v1607_v44 = vmul.f32 %v1220_v30, %v2997_v14  ;;  %v1662_v20 = vadd.f32 %v1606_v61, %v1598_v49  ;;  %v1072_v61 = vmul.f32 %v2115_v48, %v3150_v7  ;;  %v3450_v48 = vld [vmem:[#allocation6_spill] sm:$0xff] }
 0x127   : > { %v1333_v36 = vpop.f32.mrf.mxu1  ;;  %v1224_v56 = vpop.f32.mrf.mxu0  ;;  %vm740_vm15 = vcmp.eq.s32.totalorder %v2277_v26, %v3450_v48 }
 0x128   : > { %v1614_v38 = vmul.f32 %v1224_v56, %v3006_v2  ;;  %v1609_v8 = vmul.f32 %v1333_v36, %v3004_v21  ;;  %v1680_v15 = vadd.f32 %v1608_v23, %v1600_v33  ;;  %v1671_v36 = vadd.f32 %v1607_v44, %v1599_v10  ;;  %v3449_v10 = vld [vmem:[#allocation11_spill] sm:$0xff] }
 0x129   : > { %v1337_v46 = vpop.f32.mrf.mxu1  ;;  %v1226_v29 = vpop.f32.mrf.mxu0  ;;  %v3289_v48 = vadd.f32 %v1072_v61, %v871_v51 }
 0x12a   : > { %v1616_v47 = vmul.f32 %v1337_v46, %v3025_v60  ;;  %v1615_v4 = vmul.f32 %v1226_v29, %v3050_v63  ;;  %v1663_v56 = vadd.f32 %v1662_v20, %v1614_v38  ;;  %v1689_v49 = vadd.f32 %v1609_v8, %v1601_v39 }
 0x12b   : > { %v1339_v30 = vpop.f32.mrf.mxu1  ;;  %v1230_v3 = vpop.f32.mrf.mxu0 }
 0x12c   : > { %v1617_v5 = vmul.f32 %v1339_v30, %v3078_v24  ;;  %v1622_v46 = vmul.f32 %v1230_v3, %v3080_v54  ;;  %v1681_v29 = vadd.f32 %v1680_v15, %v1616_v47  ;;  %v1672_v23 = vadd.f32 %v1671_v36, %v1615_v4  ;;  %v3447_v30 = vld [vmem:[#allocation10_spill] sm:$0xff]  ;;  %v3451_v3 = vld [vmem:[#allocation7_spill] sm:$0xff]  ;;  %v3452_v4 = vld [vmem:[#allocation8_spill] sm:$0xff] }
 0x12d   : > { %v1343_v6 = vpop.f32.mrf.mxu1  ;;  %v1232_v42 = vpop.f32.mrf.mxu0  ;;  %vm942_vm0 = vcmp.eq.s32.totalorder %v2277_v26, %v3451_v3  ;;  %vm739_vm1 = vcmp.eq.s32.totalorder %v2277_v26, %v3452_v4 }
 0x12e   : > { %v1624_v62 = vmul.f32 %v1343_v6, %v3082_v31  ;;  %v1664_v33 = vadd.f32 %v1663_v56, %v1622_v46  ;;  %v1623_v57 = vmul.f32 %v1232_v42, %v3447_v30  ;;  %v1690_v44 = vadd.f32 %v1689_v49, %v1617_v5 }
 0x12f   : > { %v1345_v59 = vpop.f32.mrf.mxu1  ;;  %v3275_v46 = vadd.f32 %v1070_v9, %v869_v16  ;;  %v2090_v49 = vsel %vm740_vm15, 1.0, %v3443_v52  ;;  %v2122_v16 = vsel %vm942_vm0, 1.0, %v3443_v52 }
 0x130   : > { %v1682_v38 = vadd.f32 %v1681_v29, %v1624_v62  ;;  %v1625_v20 = vmul.f32 %v1345_v59, %v3449_v10  ;;  %v1665_v8 = vrot.slane %v1664_v33, 4  ;;  %v1673_v47 = vadd.f32 %v1672_v23, %v1623_v57  ;;  %v1236_v39 = vpop.f32.mrf.mxu0  ;;  %v3453_v29 = vld [vmem:[#allocation9_spill] sm:$0xff] }
 0x131   : > { %v1349_v15 = vpop.f32.mrf.mxu1  ;;  %v3278_v62 = vmul.f32 %v2088_v58, %v3086_v1  ;;  %v2120_v57 = vsel %vm940_vm14, 1.0, %v3443_v52  ;;  %vm941_vm2 = vcmp.eq.s32.totalorder %v2277_v26, %v3453_v29  ;;  %v2089_v1 = vsel %vm739_vm1, 1.0, %v3443_v52 }
 0x132   : > { %v1683_v36 = vrot.slane %v1682_v38, 4  ;;  %v1691_v56 = vadd.f32 %v1690_v44, %v1625_v20  ;;  %v1674_v59 = vrot.slane %v1673_v47, 4  ;;  %v1238_v5 = vpop.f32.mrf.mxu0  ;;  %v1666_v42 = vadd.f32 %v1665_v8, %v1664_v33 }
 0x133   : > { %v1351_v6 = vpop.f32.mrf.mxu1  ;;  %v3294_v3 = vmul.f32 %v2120_v57, %v3105_v22  ;;  %v2121_v33 = vsel %vm941_vm2, 1.0, %v3443_v52  ;;  %v3303_v51 = vmul.f32 %v2122_v16, %v3125_v27  ;;  %v3306_v55 = vmul.f32 %v2089_v1, %v3129_v25 }
 0x134   : > { %v1692_v23 = vrot.slane %v1691_v56, 4  ;;  %v1684_v9 = vadd.f32 %v1683_v36, %v1682_v38  ;;  %v1675_v58 = vadd.f32 %v1674_v59, %v1673_v47  ;;  %v1242_v44 = vpop.f32.mrf.mxu0  ;;  %v3300_v47 = vmul.f32 %v2090_v49, %v3121_v37 }
 0x135   : > { %v1355_v20 = vpop.f32.mrf.mxu1  ;;  %v1667_v61 = vrot.slane %v1666_v42, 2  ;;  %v1638_v36 = vmul.f32 %v1242_v44, %v2993_v13  ;;  %v3312_v57 = vmul.f32 %v2121_v33, %v3133_v17  ;;  %v2123_v37 = vsel %vm943_vm4, 1.0, %v3443_v52 }
 0x136   : > { %v1693_v34 = vadd.f32 %v1692_v23, %v1691_v56  ;;  %v1676_v8 = vrot.slane %v1675_v58, 2  ;;  %v1244_v4 = vpop.f32.mrf.mxu0  ;;  %v2091_v56 = vsel %vm741_vm3, 1.0, %v3443_v52  ;;  %v1685_v59 = vrot.slane %v1684_v9, 2 }
 0x137   : > { %v1357_v38 = vpop.f32.mrf.mxu1  ;;  %v1640_v26 = vmul.f32 %v1355_v20, %v2995_v28  ;;  %v1630_v49 = vmul.f32 %v1236_v39, %v2984_v12  ;;  %v1639_v25 = vmul.f32 %v1244_v4, %v2997_v14  ;;  %v1632_v16 = vmul.f32 %v1349_v15, %v2986_v18 }
 0x138   : > { %v1694_v22 = vrot.slane %v1693_v34, 2  ;;  %v1248_v45 = vpop.f32.mrf.mxu0  ;;  %v1677_v27 = vadd.f32 %v1676_v8, %v1675_v58  ;;  %v1631_v1 = vmul.f32 %v1238_v5, %v2988_v19  ;;  %v1641_v28 = vmul.f32 %v1357_v38, %v3004_v21 }
 0x139   : > { %v1646_v29 = vmul.f32 %v1248_v45, %v3006_v2  ;;  %v1668_v17 = vadd.f32 %v1667_v61, %v1666_v42  ;;  %v1633_v20 = vmul.f32 %v1351_v6, %v2991_v11  ;;  %v1734_v52 = vadd.f32 %v1638_v36, %v1630_v49 }
 0x13a   : > { %v1361_v23 = vpop.f32.mrf.mxu1  ;;  %v1695_v13 = vadd.f32 %v1694_v22, %v1693_v34  ;;  %v1250_v44 = vpop.f32.mrf.mxu0  ;;  %v1686_v39 = vadd.f32 %v1685_v59, %v1684_v9  ;;  %v1752_v14 = vadd.f32 %v1640_v26, %v1632_v16  ;;  %v1678_v18 = vrot.slane %v1677_v27, 1 }
 0x13b   : > { %v1648_v58 = vmul.f32 %v1361_v23, %v3025_v60  ;;  %v1647_v2 = vmul.f32 %v1250_v44, %v3050_v63  ;;  %v1743_v15 = vadd.f32 %v1639_v25, %v1631_v1  ;;  %v1735_v19 = vadd.f32 %v1734_v52, %v1646_v29 }
 0x13c   : > { %v1363_v12 = vpop.f32.mrf.mxu1  ;;  %v1254_v33 = vpop.f32.mrf.mxu0  ;;  %v1696_v42 = vrot.slane %v1695_v13, 1  ;;  %v1761_v8 = vadd.f32 %v1641_v28, %v1633_v20  ;;  %v1669_v4 = vrot.slane %v1668_v17, 1  ;;  %v879_v25 = vmul.f32 %v2091_v56, %v3146_v35 }
 0x13d   : > { %v1649_v34 = vmul.f32 %v1363_v12, %v3078_v24  ;;  %v1654_v21 = vmul.f32 %v1254_v33, %v3080_v54  ;;  %v1753_v11 = vadd.f32 %v1752_v14, %v1648_v58  ;;  %v1744_v9 = vadd.f32 %v1743_v15, %v1647_v2 }
 0x13e   : > { %v1367_v5 = vpop.f32.mrf.mxu1  ;;  %v1256_v60 = vpop.f32.mrf.mxu0  ;;  %v1687_v24 = vrot.slane %v1686_v39, 1  ;;  %v3331_v29 = vadd.f32 %v1678_v18, %v1677_v27  ;;  %v3333_v23 = vadd.f32 %v1696_v42, %v1695_v13  ;;  %v3341_v52 = vadd.f32 %v3303_v51, %v3300_v47 }
 0x13f   : > { %v1656_v6 = vmul.f32 %v1367_v5, %v3082_v31  ;;  %v1736_v38 = vadd.f32 %v1735_v19, %v1654_v21  ;;  %v1655_v63 = vmul.f32 %v1256_v60, %v3447_v30  ;;  %v1762_v22 = vadd.f32 %v1761_v8, %v1649_v34 }
 0x140   : > { %v1369_v61 = vpop.f32.mrf.mxu1  ;;  %v1438_v26 = vpop.f32.mrf.mxu0  ;;  %v1080_v31 = vmul.f32 %v2123_v37, %v3150_v7  ;;  %v3343_v35 = vadd.f32 %v1669_v4, %v1668_v17  ;;  %v3345_v7 = vadd.f32 %v1687_v24, %v1686_v39  ;;  %v3349_v14 = vadd.f32 %v3312_v57, %v3306_v55 }
 0x141   : > { %v1754_v36 = vadd.f32 %v1753_v11, %v1656_v6  ;;  %v1657_v59 = vmul.f32 %v1369_v61, %v3449_v10  ;;  %v1737_v54 = vrot.slane %v1736_v38, 4  ;;  %v1745_v45 = vadd.f32 %v1744_v9, %v1655_v63  ;;  %v3454_v63 = vld [vmem:[#allocation13_spill] sm:$0xff] }
 0x142   : > { %v1551_v49 = vpop.f32.mrf.mxu1  ;;  %v1440_v1 = vpop.f32.mrf.mxu0  ;;  %v3337_v10 = vadd.f32 %v3294_v3, %v3278_v62  ;;  %v3351_v62 = vadd.f32 %v1080_v31, %v879_v25  ;;  %v1822_v3 = vcombine.low %v3343_v35, %v3331_v29  ;;  %v1823_v47 = vcombine.low %v3345_v7, %v3333_v23  ;;  %v3456_v31 = vld [vmem:[#allocation15_spill] sm:$0xff] }
 0x143   : > { %v1755_v16 = vrot.slane %v1754_v36, 4  ;;  %v1763_v30 = vadd.f32 %v1762_v22, %v1657_v59  ;;  %v1738_v28 = vadd.f32 %v1737_v54, %v1736_v38  ;;  %v1746_v44 = vrot.slane %v1745_v45, 4  ;;  %v3455_v59 = vld [vmem:[#allocation14_spill] sm:$0xff] }
 0x144   : > { %v1553_v20 = vpop.f32.mrf.mxu1  ;;  %v1444_v27 = vpop.f32.mrf.mxu0  ;;  %v1602_v33 = vmul.f32 %v1438_v26, %v3214_v32  ;;  %v1604_v19 = vmul.f32 %v1551_v49, %v3216_v0  ;;  %v1603_v11 = vmul.f32 %v1440_v1, %v3218_v53 }
 0x145   : > { %v1756_v56 = vadd.f32 %v1755_v16, %v1754_v36  ;;  %v1764_v37 = vrot.slane %v1763_v30, 4  ;;  %v1739_v13 = vrot.slane %v1738_v28, 2  ;;  %v1747_v58 = vadd.f32 %v1746_v44, %v1745_v45 }
 0x146   : > { %v1557_v12 = vpop.f32.mrf.mxu1  ;;  %v1446_v39 = vpop.f32.mrf.mxu0  ;;  %v1610_v18 = vmul.f32 %v1444_v27, %v3228_v40  ;;  %v1605_v38 = vmul.f32 %v1553_v20, %v3226_v43 }
 0x147   : > { %v1757_v51 = vrot.slane %v1756_v56, 2  ;;  %v1765_v17 = vadd.f32 %v1764_v37, %v1763_v30  ;;  %v1740_v2 = vadd.f32 %v1739_v13, %v1738_v28  ;;  %v1748_v34 = vrot.slane %v1747_v58, 2 }
 0x148   : > { %v1559_v15 = vpop.f32.mrf.mxu1  ;;  %v1612_v21 = vmul.f32 %v1557_v12, %v3230_v50  ;;  %v1450_v5 = vpop.f32.mrf.mxu0  ;;  %v1611_v6 = vmul.f32 %v1446_v39, %v3232_v41  ;;  %v1698_v36 = vadd.f32 %v1610_v18, %v1602_v33 }
 0x149   : > { %v1758_v55 = vadd.f32 %v1757_v51, %v1756_v56  ;;  %v1766_v57 = vrot.slane %v1765_v17, 2  ;;  %v1741_v42 = vrot.slane %v1740_v2, 1  ;;  %v1749_v8 = vadd.f32 %v1748_v34, %v1747_v58 }
 0x14a   : > { %v1563_v60 = vpop.f32.mrf.mxu1  ;;  %v1613_v61 = vmul.f32 %v1559_v15, %v3454_v63  ;;  %v1452_v24 = vpop.f32.mrf.mxu0  ;;  %v1618_v26 = vmul.f32 %v1450_v5, %v3455_v59  ;;  %v1716_v25 = vadd.f32 %v1612_v21, %v1604_v19  ;;  %v1707_v28 = vadd.f32 %v1611_v6, %v1603_v11  ;;  %v3457_v15 = vld [vmem:[#allocation12_spill] sm:$0xff] }
 0x14b   : > { %v1759_v4 = vrot.slane %v1758_v55, 1  ;;  %v1767_v9 = vadd.f32 %v1766_v57, %v1765_v17  ;;  %v1750_v22 = vrot.slane %v1749_v8, 1  ;;  %v1619_v54 = vmul.f32 %v1452_v24, %v3275_v46 }
 0x14c   : > { %v1565_v45 = vpop.f32.mrf.mxu1  ;;  %v1620_v29 = vmul.f32 %v1563_v60, %v3456_v31  ;;  %v1456_v16 = vpop.f32.mrf.mxu0  ;;  %v1742_v30 = vadd.f32 %v1741_v42, %v1740_v2  ;;  %v1725_v56 = vadd.f32 %v1613_v61, %v1605_v38  ;;  %v1699_v58 = vadd.f32 %v1698_v36, %v1618_v26 }
 0x14d   : > { %v1768_v49 = vrot.slane %v1767_v9, 1  ;;  %v1621_v23 = vmul.f32 %v1565_v45, %v3289_v48  ;;  %v1751_v1 = vadd.f32 %v1750_v22, %v1749_v8  ;;  %v1626_v44 = vmul.f32 %v1456_v16, %v3337_v10 }
 0x14e   : > { %v1569_v20 = vpop.f32.mrf.mxu1  ;;  %v1760_v35 = vadd.f32 %v1759_v4, %v1758_v55  ;;  %v1458_v27 = vpop.f32.mrf.mxu0  ;;  %v1708_v12 = vadd.f32 %v1707_v28, %v1619_v54  ;;  %v1717_v34 = vadd.f32 %v1716_v25, %v1620_v29  ;;  %v1830_v57 = vrot.slane %v1822_v3, %v3457_v15 }
 0x14f   : > { %v1769_v7 = vadd.f32 %v1768_v49, %v1767_v9  ;;  %v1628_v37 = vmul.f32 %v1569_v20, %v3341_v52  ;;  %v1856_v13 = vcombine.low %v1742_v30, %v1751_v1  ;;  %v1627_v51 = vmul.f32 %v1458_v27, %v3349_v14 }
 0x150   : > { %v1571_v17 = vpop.f32.mrf.mxu1  ;;  %v1726_v2 = vadd.f32 %v1725_v56, %v1621_v23  ;;  %v1462_v18 = vpop.f32.mrf.mxu0  ;;  %v1700_v19 = vadd.f32 %v1699_v58, %v1626_v44  ;;  %v1837_v42 = vrot.slane %v1823_v47, %v3457_v15 }
 0x151   : > { %v1857_v39 = vcombine.low %v1760_v35, %v1769_v7  ;;  %v1629_v33 = vmul.f32 %v1571_v17, %v3351_v62  ;;  %v1864_v55 = vrot.slane %v1856_v13, %v3457_v15  ;;  %v1709_v21 = vadd.f32 %v1708_v12, %v1627_v51 }
 0x152   : > { %v1575_v5 = vpop.f32.mrf.mxu1  ;;  %v1718_v11 = vadd.f32 %v1717_v34, %v1628_v37  ;;  %v1464_v60 = vpop.f32.mrf.mxu0  ;;  %v1701_v3 = vrot.slane %v1700_v19, 4  ;;  %v1838_v36 = vcombine.low %v1830_v57, %v1837_v42  ;;  %v1634_v49 = vmul.f32 %v1462_v18, %v3214_v32 }
 0x153   : > { %v1871_v8 = vrot.slane %v1857_v39, %v3457_v15  ;;  %v1727_v6 = vadd.f32 %v1726_v2, %v1629_v33  ;;  %v1710_v4 = vrot.slane %v1709_v21, 4  ;;  %v1636_v32 = vmul.f32 %v1575_v5, %v3216_v0 }
 0x154   : > { %v1577_v9 = vpop.f32.mrf.mxu1  ;;  %v1468_v24 = vpop.f32.mrf.mxu0  ;;  %v1719_v54 = vrot.slane %v1718_v11, 4  ;;  %v1702_v44 = vadd.f32 %v1701_v3, %v1700_v19 }
 0x155   : > { %v1872_v38 = vcombine.low %v1864_v55, %v1871_v8  ;;  %v1728_v61 = vrot.slane %v1727_v6, 4  ;;  %v1711_v47 = vadd.f32 %v1710_v4, %v1709_v21  ;;  %v1642_v16 = vmul.f32 %v1468_v24, %v3228_v40 }
 0x156   : > { %v1581_v22 = vpop.f32.mrf.mxu1  ;;  %v1470_v45 = vpop.f32.mrf.mxu0  ;;  %v1720_v40 = vadd.f32 %v1719_v54, %v1718_v11  ;;  %v1637_v58 = vmul.f32 %v1577_v9, %v3226_v43  ;;  %v1703_v21 = vrot.slane %v1702_v44, 2 }
 0x157   : > { %v1894_v26 = vrot.slane %v1872_v38, 7  ;;  %v1729_v23 = vadd.f32 %v1728_v61, %v1727_v6  ;;  %v1644_v30 = vmul.f32 %v1581_v22, %v3230_v50  ;;  %v1643_v20 = vmul.f32 %v1470_v45, %v3232_v41 }
 0x158   : > { %v1583_v25 = vpop.f32.mrf.mxu1  ;;  %v1474_v1 = vpop.f32.mrf.mxu0  ;;  %v1635_v50 = vmul.f32 %v1464_v60, %v3218_v53  ;;  %v1712_v13 = vrot.slane %v1711_v47, 2  ;;  %v1770_v41 = vadd.f32 %v1642_v16, %v1634_v49  ;;  %v1721_v5 = vrot.slane %v1720_v40, 2 }
 0x159   : > { %v1896_v29 = vsel %vm1895_vm10, %v1894_v26, %v1838_v36  ;;  %v1645_v56 = vmul.f32 %v1583_v25, %v3454_v63  ;;  %v1650_v12 = vmul.f32 %v1474_v1, %v3455_v59  ;;  %v1730_v0 = vrot.slane %v1729_v23, 2 }
 0x15a   : > { %v1898_v28 = vsel %vm1897_vm5, %v1894_v26, %v1896_v29  ;;  %v1587_v35 = vpop.f32.mrf.mxu1  ;;  %v1476_v37 = vpop.f32.mrf.mxu0  ;;  %v1788_v17 = vadd.f32 %v1644_v30, %v1636_v32  ;;  %v1779_v2 = vadd.f32 %v1643_v20, %v1635_v50  ;;  %v1704_v24 = vadd.f32 %v1703_v21, %v1702_v44 }
 0x15b   : > { %v1900_v7 = vsel %vm1899_vm6, %v1894_v26, %v1898_v28  ;;  %v1652_v39 = vmul.f32 %v1587_v35, %v3456_v31  ;;  %v1797_v53 = vadd.f32 %v1645_v56, %v1637_v58  ;;  %v1651_v63 = vmul.f32 %v1476_v37, %v3275_v46 }
 0x15c   : > { %v1902_v27 = vsel %vm1901_vm7, %v1894_v26, %v1900_v7  ;;  %v1589_v51 = vpop.f32.mrf.mxu1  ;;  %v1480_v34 = vpop.f32.mrf.mxu0  ;;  %v1771_v57 = vadd.f32 %v1770_v41, %v1650_v12  ;;  %v1731_v9 = vadd.f32 %v1730_v0, %v1729_v23  ;;  %v1722_v3 = vadd.f32 %v1721_v5, %v1720_v40 }
 0x15d   : > { %1912 = vst [vmem:[%s3385_s17] sm:$0xff] %v1902_v27  ;;  %v1653_v33 = vmul.f32 %v1589_v51, %v3289_v48  ;;  %v1789_v55 = vadd.f32 %v1788_v17, %v1652_v39  ;;  %v1658_v43 = vmul.f32 %v1480_v34, %v3337_v10  ;;  %v1780_v42 = vadd.f32 %v1779_v2, %v1651_v63 }
 0x15e   : > { %v1593_v18 = vpop.f32.mrf.mxu1  ;;  %v1482_v19 = vpop.f32.mrf.mxu0  ;;  %v1713_v48 = vadd.f32 %v1712_v13, %v1711_v47  ;;  %v1732_v45 = vrot.slane %v1731_v9, 1  ;;  %v1705_v16 = vrot.slane %v1704_v24, 1  ;;  %v1723_v47 = vrot.slane %v1722_v3, 1 }
 0x15f   : > { %v1660_v59 = vmul.f32 %v1593_v18, %v3341_v52  ;;  %v1659_v31 = vmul.f32 %v1482_v19, %v3349_v14  ;;  %v1798_v11 = vadd.f32 %v1797_v53, %v1653_v33  ;;  %v1772_v6 = vadd.f32 %v1771_v57, %v1658_v43 }
 0x160   : > { %v1595_v8 = vpop.f32.mrf.mxu1  ;;  %v1714_v54 = vrot.slane %v1713_v48, 1  ;;  %v1733_v44 = vadd.f32 %v1732_v45, %v1731_v9  ;;  %v1706_v50 = vadd.f32 %v1705_v16, %v1704_v24  ;;  %v1724_v56 = vadd.f32 %v1723_v47, %v1722_v3 }
 0x161   : > { %v1790_v60 = vadd.f32 %v1789_v55, %v1660_v59  ;;  %v1661_v46 = vmul.f32 %v1595_v8, %v3351_v62  ;;  %v1781_v4 = vadd.f32 %v1780_v42, %v1659_v31  ;;  %v1773_v38 = vrot.slane %v1772_v6, 4 }
 0x162   : > { %v1715_v28 = vadd.f32 %v1714_v54, %v1713_v48  ;;  %v1840_v12 = vcombine.low %v1724_v56, %v1733_v44 }
 0x163   : > { %v1791_v61 = vrot.slane %v1790_v60, 4  ;;  %v1799_v10 = vadd.f32 %v1798_v11, %v1661_v46  ;;  %v1782_v52 = vrot.slane %v1781_v4, 4  ;;  %v1774_v22 = vadd.f32 %v1773_v38, %v1772_v6 }
 0x164   : > { %v1839_v58 = vcombine.low %v1706_v50, %v1715_v28  ;;  %v1854_v2 = vrot.slane %v1840_v12, %v3457_v15 }
 0x165   : > { %v1792_v36 = vadd.f32 %v1791_v61, %v1790_v60  ;;  %v1800_v26 = vrot.slane %v1799_v10, 4  ;;  %v1783_v14 = vadd.f32 %v1782_v52, %v1781_v4  ;;  %v1775_v49 = vrot.slane %v1774_v22, 2 }
 0x166   : > { %v1847_v34 = vrot.slane %v1839_v58, %v3457_v15 }
 0x167   : > { %v1793_v25 = vrot.slane %v1792_v36, 2  ;;  %v1801_v29 = vadd.f32 %v1800_v26, %v1799_v10  ;;  %v1784_v62 = vrot.slane %v1783_v14, 2  ;;  %v1776_v30 = vadd.f32 %v1775_v49, %v1774_v22 }
 0x168   : > { %v1855_v33 = vcombine.low %v1847_v34, %v1854_v2 }
 0x169   : > { %v1794_v23 = vadd.f32 %v1793_v25, %v1792_v36  ;;  %v1802_v1 = vrot.slane %v1801_v29, 2  ;;  %v1785_v32 = vadd.f32 %v1784_v62, %v1783_v14  ;;  %v1777_v20 = vrot.slane %v1776_v30, 1 }
 0x16b   : > { %v1795_v35 = vrot.slane %v1794_v23, 1  ;;  %v1803_v7 = vadd.f32 %v1802_v1, %v1801_v29  ;;  %v1786_v40 = vrot.slane %v1785_v32, 1  ;;  %v1778_v27 = vadd.f32 %v1777_v20, %v1776_v30 }
 0x16d   : > { %v1804_v37 = vrot.slane %v1803_v7, 1  ;;  %v1787_v13 = vadd.f32 %v1786_v40, %v1785_v32  ;;  %v1796_v51 = vadd.f32 %v1795_v35, %v1794_v23 }
 0x16f   : > { %v1805_v0 = vadd.f32 %v1804_v37, %v1803_v7  ;;  %v1873_v41 = vcombine.low %v1778_v27, %v1787_v13 }
 0x171   : > { %v1874_v17 = vcombine.low %v1796_v51, %v1805_v0  ;;  %v1881_v39 = vrot.slane %v1873_v41, %v3457_v15 }
 0x173   : > { %v1888_v53 = vrot.slane %v1874_v17, %v3457_v15 }
 0x175   : > { %v1889_v63 = vcombine.low %v1881_v39, %v1888_v53 }
 0x177   : > { %v1905_v18 = vrot.slane %v1889_v63, 7 }
 0x179   : > { %v1906_v57 = vsel %vm1895_vm10, %v1905_v18, %v1855_v33 }
 0x17a   : > { %v1907_v55 = vsel %vm1897_vm5, %v1905_v18, %v1906_v57 }
 0x17b   : > { %v1908_v43 = vsel %vm1899_vm6, %v1905_v18, %v1907_v55 }
 0x17c   : > { %v1909_v59 = vsel %vm1901_vm7, %v1905_v18, %v1908_v43 }
 0x17d   : > { %1913 = vst [vmem:[%s3385_s17 + $0x8] sm:$0xff] %v1909_v59 }
 0x17e PF: > { %s14_s12 = sadd.s32 1, %s2210_s12  }
 0x17f   : > { %p11_p1 = scmp.ge.s32.totalorder %s14_s12, 4  }
 0x181   :  { %13 = sbr.rel (!%p11_p1) target bundleno = 1 (0x1), region = 68 }
 0x186   :  { %1935 = vsyncpa [#allocation3], 1 }
 0x187   :  { %1937 = vsyncpa [#allocation3 + $0x1], 1 }

// kernel: stn_forward.2
= control target key start
LH: loop header
LB: loop body
LE: loop exit
PB: predicated region body
PF: predicated region fallthrough
CT: control target
= control target key end

     0   :  { %s8552_s21 = smov 0   ;;  %s12350_s0 = inlined_call_operand.vmem [shape: f32[2,4,98,169], index: 0, kind: input, shape index: {}]   ;;  %s12351_s1 = inlined_call_operand.vmem [shape: f32[8,98], index: 1, kind: input, shape index: {}]   ;;  %s12352_s2 = inlined_call_operand.vmem [shape: f32[8,1], index: 2, kind: input, shape index: {}]   ;;  %s12353_s3 = inlined_call_operand.vmem [shape: f32[25,169,64], index: 3, kind: input, shape index: {}]   ;;  %s12354_s4 = inlined_call_operand.vmem [shape: f32[10,200], index: 4, kind: input, shape index: {}]   ;;  %s12355_s5 = inlined_call_operand.vmem [shape: f32[10,1], index: 5, kind: input, shape index: {}]   ;;  %s12356_s6 = inlined_call_operand.vmem [shape: f32[160,1024], index: 6, kind: input, shape index: {}]   ;;  %s12357_s7 = inlined_call_operand.vmem [shape: f32[1,1024], index: 7, kind: input, shape index: {}]   ;;  %s12358_s8 = inlined_call_operand.vmem [shape: f32[1024,32], index: 8, kind: input, shape index: {}]   ;;  %s12359_s9 = inlined_call_operand.vmem [shape: f32[1,32], index: 9, kind: input, shape index: {}]   ;;  %s12360_s10 = inlined_call_operand.vmem [shape: f32[32,6], index: 10, kind: input, shape index: {}]   ;;  %s12361_s11 = inlined_call_operand.vmem [shape: f32[1,6], index: 11, kind: input, shape index: {}]   ;;  %s12362_s12 = inlined_call_operand.vmem [shape: f32[2,1,6], index: 12, kind: output, shape index: {}]  }
   0x1 LB: > { %s7579_s22 = sadd.s32 4294967295, %s8478_s21   ;;  %p7583_p0 = scmp.ge.s32.totalorder %s8478_s21, 1  ;;  %s8478_s21 = sphi %s8552_s21, %s22_s21  }
   0x2   : > { %p362_p1 = scmp.lt.s32.totalorder %s8478_s21, 3 }
   0x4   : > { %p363_p2 = pnand %p7583_p0, %p362_p1 }
   0x5   : > { %p402_p3 = scmp.lt.s32.totalorder (!%p363_p2), %s7579_s22, 1  ;;  %s8482_s27 = smov (!%p363_p2), 96  }
   0x6   : > { %366 = sbr.rel (%p363_p2) target bundleno = 2109 (0x83d), region = 68  ;;  %s8483_s28 = smov (!%p363_p2), 112  }
   0x7   : > { %s8484_s29 = smov (!%p363_p2), 80  }
   0xb   : > { %v8480_v0 = vmov 0.0   ;;  %v837_v1 = vld [vmem:[%s12352_s2] sm:$0xff]  ;;  %s12364_s22 = smov (!%p402_p3, %s7579_s22), 1  ;;  %v8481_v2 = vmov 0   ;;  %vm441_vm0 = vcmask 1041408   ;;  %vm437_vm1 = vcmask 801792  }
   0xc   : > { %512 = vmatprep.mubr.f32.mxu0 %v8480_v0  ;;  %616 = vmatprep.mubr.f32.mxu1 %v8480_v0  ;;  %s8454_s25 = smul.u32 832, %s12364_s22  ;;  %v3255_v3 = vld [vmem:[%s12355_s5] sm:$0xff]  ;;  %vm873_vm2 = vcmask 1040384   ;;  %vm869_vm3 = vcmask 334848   ;;  %vm3267_vm4 = vcmask 588800   ;;  %vm3394_vm5 = vcmask 130048   ;;  %s409_s26 = scalar_lea.vmem %s12362_s12, %s12364_s22 }
   0xd   : > { %8470 = vset.pattern.permute.xlu0 %v8481_v2  ;;  %8471 = vset.pattern.permute.xlu1 %v8481_v2  ;;  %v8635_v56 = vld [vmem:[%s12351_s1] sm:$0xff]  ;;  %vm8486_vm6 = vmmov 0   ;;  %vm7456_vm7 = vcmask 261120   ;;  %vm7530_vm8 = vcmask 40960  }
   0xe   : > { %840 = vperm.xlu0 %8470, %v837_v1   ;;  %s8574_s30 = scalar_lea.vmem %s12350_s0, %s8454_s25 }
   0xf   : > { %v436_v4 = vld [vmem:[%s8574_s30 + $0xc8] sm:$0x3]  ;;  %v7613_v5 = vld [vmem:[%s8574_s30 + $0x198] sm:$0x3]  ;;  %v435_v6 = vld [vmem:[%s8574_s30 + $0xc0] sm:$0x3] }
  0x10   : > { %7585 = vmatprep.subr.msk.mxu0 %vm441_vm0, %v436_v4  ;;  %7614 = vmatprep.subr.msk.mxu1 %vm441_vm0, %v7613_v5  ;;  %v7612_v7 = vld [vmem:[%s8574_s30 + $0x190] sm:$0x3]  ;;  %v434_v8 = vld [vmem:[%s8574_s30 + $0xb8] sm:$0xff]  ;;  %v7611_v9 = vld [vmem:[%s8574_s30 + $0x188] sm:$0xff] }
  0x11   : > { %7586 = vmatpush1.msk.msra.mxu0 %vm441_vm0, %v435_v6  ;;  %7615 = vmatpush1.msk.msra.mxu1 %vm441_vm0, %v7612_v7  ;;  %v433_v10 = vld [vmem:[%s8574_s30 + $0xb0] sm:$0xff]  ;;  %v7610_v11 = vld [vmem:[%s8574_s30 + $0x180] sm:$0xff]  ;;  %v432_v12 = vld [vmem:[%s8574_s30 + $0xa8] sm:$0xff] }
  0x12   : > { %3259 = vperm.xlu0 %8470, %v3255_v3   ;;  %456 = vmatprep.subr.mxu0 %v434_v8  ;;  %v7609_v13 = vld [vmem:[%s8574_s30 + $0x178] sm:$0xff]  ;;  %v431_v14 = vld [vmem:[%s8574_s30 + $0xa0] sm:$0xff]  ;;  %v7608_v15 = vld [vmem:[%s8574_s30 + $0x170] sm:$0xff] }
  0x13   : > { %560 = vmatprep.subr.mxu1 %v7611_v9  ;;  %457 = vmatpush1.msra.mxu0 %v433_v10  ;;  %v430_v16 = vld [vmem:[%s8574_s30 + $0x98] sm:$0xff]  ;;  %v7607_v17 = vld [vmem:[%s8574_s30 + $0x168] sm:$0xff]  ;;  %v429_v18 = vld [vmem:[%s8574_s30 + $0x90] sm:$0xff] }
  0x14   : > { %561 = vmatpush1.msra.mxu1 %v7610_v11  ;;  %458 = vmatprep.subr.mxu0 %v432_v12  ;;  %v7606_v19 = vld [vmem:[%s8574_s30 + $0x160] sm:$0xff]  ;;  %v428_v20 = vld [vmem:[%s8574_s30 + $0x88] sm:$0xff]  ;;  %v7605_v21 = vld [vmem:[%s8574_s30 + $0x158] sm:$0xff] }
  0x15   : > { %562 = vmatprep.subr.mxu1 %v7609_v13  ;;  %459 = vmatpush1.msra.mxu0 %v431_v14  ;;  %v427_v22 = vld [vmem:[%s8574_s30 + $0x80] sm:$0xff]  ;;  %v7604_v23 = vld [vmem:[%s8574_s30 + $0x150] sm:$0xff]  ;;  %v426_v24 = vld [vmem:[%s8574_s30 + $0x78] sm:$0xff] }
  0x16   : > { %563 = vmatpush1.msra.mxu1 %v7608_v15  ;;  %460 = vmatprep.subr.mxu0 %v430_v16  ;;  %v7603_v25 = vld [vmem:[%s8574_s30 + $0x148] sm:$0xff]  ;;  %v425_v26 = vld [vmem:[%s8574_s30 + $0x70] sm:$0xff]  ;;  %v7602_v27 = vld [vmem:[%s8574_s30 + $0x140] sm:$0xff] }
  0x17   : > { %564 = vmatprep.subr.mxu1 %v7607_v17  ;;  %461 = vmatpush1.msra.mxu0 %v429_v18  ;;  %v424_v28 = vld [vmem:[%s8574_s30 + $0x68] sm:$0xff]  ;;  %v7601_v29 = vld [vmem:[%s8574_s30 + $0x138] sm:$0xff]  ;;  %v423_v30 = vld [vmem:[%s8574_s30 + $0x60] sm:$0xff] }
  0x18   : > { %565 = vmatpush1.msra.mxu1 %v7606_v19  ;;  %462 = vmatprep.subr.mxu0 %v428_v20  ;;  %v7600_v31 = vld [vmem:[%s8574_s30 + $0x130] sm:$0xff]  ;;  %v422_v32 = vld [vmem:[%s8574_s30 + $0x58] sm:$0xff]  ;;  %v7599_v33 = vld [vmem:[%s8574_s30 + $0x128] sm:$0xff] }
  0x19   : > { %566 = vmatprep.subr.mxu1 %v7605_v21  ;;  %463 = vmatpush1.msra.mxu0 %v427_v22  ;;  %v421_v34 = vld [vmem:[%s8574_s30 + $0x50] sm:$0xff]  ;;  %v7598_v35 = vld [vmem:[%s8574_s30 + $0x120] sm:$0xff]  ;;  %v420_v36 = vld [vmem:[%s8574_s30 + $0x48] sm:$0xff] }
  0x1a   : > { %567 = vmatpush1.msra.mxu1 %v7604_v23  ;;  %464 = vmatprep.subr.mxu0 %v426_v24  ;;  %v7597_v37 = vld [vmem:[%s8574_s30 + $0x118] sm:$0xff]  ;;  %v419_v38 = vld [vmem:[%s8574_s30 + $0x40] sm:$0xff]  ;;  %v7596_v39 = vld [vmem:[%s8574_s30 + $0x110] sm:$0xff] }
  0x1b   : > { %568 = vmatprep.subr.mxu1 %v7603_v25  ;;  %465 = vmatpush1.msra.mxu0 %v425_v26  ;;  %v418_v40 = vld [vmem:[%s8574_s30 + $0x38] sm:$0xff]  ;;  %v7595_v41 = vld [vmem:[%s8574_s30 + $0x108] sm:$0xff]  ;;  %v417_v42 = vld [vmem:[%s8574_s30 + $0x30] sm:$0xff] }
  0x1c   : > { %569 = vmatpush1.msra.mxu1 %v7602_v27  ;;  %466 = vmatprep.subr.mxu0 %v424_v28  ;;  %v7594_v43 = vld [vmem:[%s8574_s30 + $0x100] sm:$0xff]  ;;  %v416_v44 = vld [vmem:[%s8574_s30 + $0x28] sm:$0xff]  ;;  %v7593_v45 = vld [vmem:[%s8574_s30 + $0xf8] sm:$0xff] }
  0x1d   : > { %570 = vmatprep.subr.mxu1 %v7601_v29  ;;  %467 = vmatpush1.msra.mxu0 %v423_v30  ;;  %v415_v46 = vld [vmem:[%s8574_s30 + $0x20] sm:$0xff]  ;;  %v7592_v47 = vld [vmem:[%s8574_s30 + $0xf0] sm:$0xff]  ;;  %v414_v48 = vld [vmem:[%s8574_s30 + $0x18] sm:$0xff] }
  0x1e   : > { %571 = vmatpush1.msra.mxu1 %v7600_v31  ;;  %468 = vmatprep.subr.mxu0 %v422_v32  ;;  %v7591_v49 = vld [vmem:[%s8574_s30 + $0xe8] sm:$0xff]  ;;  %v413_v50 = vld [vmem:[%s8574_s30 + $0x10] sm:$0xff]  ;;  %v7590_v51 = vld [vmem:[%s8574_s30 + $0xe0] sm:$0xff] }
  0x1f   : > { %572 = vmatprep.subr.mxu1 %v7599_v33  ;;  %469 = vmatpush1.msra.mxu0 %v421_v34  ;;  %v412_v52 = vld [vmem:[%s8574_s30 + $0x8] sm:$0xff]  ;;  %v7589_v53 = vld [vmem:[%s8574_s30 + $0xd8] sm:$0xff]  ;;  %v411_v54 = vld [vmem:[%s8574_s30] sm:$0xff] }
  0x20   : > { %573 = vmatpush1.msra.mxu1 %v7598_v35  ;;  %470 = vmatprep.subr.mxu0 %v420_v36  ;;  %v7588_v55 = vld [vmem:[%s8574_s30 + $0xd0] sm:$0xff]  ;;  %v7642_v57 = vld [vmem:[%s8574_s30 + $0x268] sm:$0x3]  ;;  %v7671_v58 = vld [vmem:[%s8574_s30 + $0x338] sm:$0x3] }
  0x21   : > { %574 = vmatprep.subr.mxu1 %v7597_v37  ;;  %471 = vmatpush1.msra.mxu0 %v419_v38  ;;  %v7641_v59 = vld [vmem:[%s8574_s30 + $0x260] sm:$0x3]  ;;  %v7670_v60 = vld [vmem:[%s8574_s30 + $0x330] sm:$0x3]  ;;  %v7640_v61 = vld [vmem:[%s8574_s30 + $0x258] sm:$0xff] }
  0x22   : > { %575 = vmatpush1.msra.mxu1 %v7596_v39  ;;  %472 = vmatprep.subr.mxu0 %v418_v40  ;;  %v7669_v62 = vld [vmem:[%s8574_s30 + $0x328] sm:$0xff]  ;;  %v7639_v63 = vld [vmem:[%s8574_s30 + $0x250] sm:$0xff]  ;;  %v7668_v1 = vld [vmem:[%s8574_s30 + $0x320] sm:$0xff] }
  0x23   : > { %576 = vmatprep.subr.mxu1 %v7595_v41  ;;  %473 = vmatpush1.msra.mxu0 %v417_v42  ;;  %v7638_v2 = vld [vmem:[%s8574_s30 + $0x248] sm:$0xff]  ;;  %v7667_v3 = vld [vmem:[%s8574_s30 + $0x318] sm:$0xff]  ;;  %v7637_v4 = vld [vmem:[%s8574_s30 + $0x240] sm:$0xff] }
  0x24   : > { %577 = vmatpush1.msra.mxu1 %v7594_v43  ;;  %474 = vmatprep.subr.mxu0 %v416_v44  ;;  %v7666_v5 = vld [vmem:[%s8574_s30 + $0x310] sm:$0xff]  ;;  %v7636_v6 = vld [vmem:[%s8574_s30 + $0x238] sm:$0xff]  ;;  %v7665_v7 = vld [vmem:[%s8574_s30 + $0x308] sm:$0xff] }
  0x25   : > { %578 = vmatprep.subr.mxu1 %v7593_v45  ;;  %475 = vmatpush1.msra.mxu0 %v415_v46  ;;  %v7635_v8 = vld [vmem:[%s8574_s30 + $0x230] sm:$0xff]  ;;  %v7664_v9 = vld [vmem:[%s8574_s30 + $0x300] sm:$0xff]  ;;  %v7634_v10 = vld [vmem:[%s8574_s30 + $0x228] sm:$0xff] }
  0x26   : > { %579 = vmatpush1.msra.mxu1 %v7592_v47  ;;  %476 = vmatprep.subr.mxu0 %v414_v48  ;;  %v7663_v11 = vld [vmem:[%s8574_s30 + $0x2f8] sm:$0xff]  ;;  %v7633_v12 = vld [vmem:[%s8574_s30 + $0x220] sm:$0xff]  ;;  %v7662_v13 = vld [vmem:[%s8574_s30 + $0x2f0] sm:$0xff] }
  0x27   : > { %580 = vmatprep.subr.mxu1 %v7591_v49  ;;  %477 = vmatpush1.msra.mxu0 %v413_v50  ;;  %v7632_v14 = vld [vmem:[%s8574_s30 + $0x218] sm:$0xff]  ;;  %v7661_v15 = vld [vmem:[%s8574_s30 + $0x2e8] sm:$0xff]  ;;  %v7631_v16 = vld [vmem:[%s8574_s30 + $0x210] sm:$0xff] }
  0x28   : > { %581 = vmatpush1.msra.mxu1 %v7590_v51  ;;  %478 = vmatprep.subr.mxu0 %v412_v52  ;;  %v7660_v17 = vld [vmem:[%s8574_s30 + $0x2e0] sm:$0xff]  ;;  %v7630_v18 = vld [vmem:[%s8574_s30 + $0x208] sm:$0xff]  ;;  %v7659_v19 = vld [vmem:[%s8574_s30 + $0x2d8] sm:$0xff] }
  0x29   : > { %582 = vmatprep.subr.mxu1 %v7589_v53  ;;  %479 = vmatpush1.msra.mxu0 %v411_v54  ;;  %v7629_v20 = vld [vmem:[%s8574_s30 + $0x200] sm:$0xff]  ;;  %v7658_v21 = vld [vmem:[%s8574_s30 + $0x2d0] sm:$0xff]  ;;  %v7628_v22 = vld [vmem:[%s8574_s30 + $0x1f8] sm:$0xff] }
  0x2a   : > { %583 = vmatpush1.msra.mxu1 %v7588_v55  ;;  %7587 = vmatmul.mubr.msk.f32.vlgmr.msra.gmra.mxu0 %vm437_vm1, %v8635_v56  ;;  %v7657_v23 = vld [vmem:[%s8574_s30 + $0x2c8] sm:$0xff]  ;;  %v7627_v24 = vld [vmem:[%s8574_s30 + $0x1f0] sm:$0xff]  ;;  %v7656_v25 = vld [vmem:[%s8574_s30 + $0x2c0] sm:$0xff] }
  0x2b   : > { %7616 = vmatmul.mubr.msk.f32.vlgmr.msra.gmra.mxu1 %vm437_vm1, %v8635_v56  ;;  %7643 = vmatprep.subr.msk.mxu0 %vm441_vm0, %v7642_v57  ;;  %v7626_v26 = vld [vmem:[%s8574_s30 + $0x1e8] sm:$0xff]  ;;  %v7655_v27 = vld [vmem:[%s8574_s30 + $0x2b8] sm:$0xff]  ;;  %v7625_v28 = vld [vmem:[%s8574_s30 + $0x1e0] sm:$0xff] }
  0x2c   : > { %7672 = vmatprep.subr.msk.mxu1 %vm441_vm0, %v7671_v58  ;;  %7644 = vmatpush1.msk.msra.mxu0 %vm441_vm0, %v7641_v59  ;;  %v7654_v29 = vld [vmem:[%s8574_s30 + $0x2b0] sm:$0xff]  ;;  %v7624_v30 = vld [vmem:[%s8574_s30 + $0x1d8] sm:$0xff]  ;;  %v7653_v31 = vld [vmem:[%s8574_s30 + $0x2a8] sm:$0xff] }
  0x2d   : > { %7673 = vmatpush1.msk.msra.mxu1 %vm441_vm0, %v7670_v60  ;;  %666 = vmatprep.subr.mxu0 %v7640_v61  ;;  %v7623_v32 = vld [vmem:[%s8574_s30 + $0x1d0] sm:$0xff]  ;;  %v7652_v33 = vld [vmem:[%s8574_s30 + $0x2a0] sm:$0xff]  ;;  %v7622_v34 = vld [vmem:[%s8574_s30 + $0x1c8] sm:$0xff] }
  0x2e   : > { %772 = vmatprep.subr.mxu1 %v7669_v62  ;;  %667 = vmatpush1.msra.mxu0 %v7639_v63  ;;  %v7651_v35 = vld [vmem:[%s8574_s30 + $0x298] sm:$0xff]  ;;  %v7621_v36 = vld [vmem:[%s8574_s30 + $0x1c0] sm:$0xff]  ;;  %v7650_v37 = vld [vmem:[%s8574_s30 + $0x290] sm:$0xff] }
  0x2f   : > { %773 = vmatpush1.msra.mxu1 %v7668_v1  ;;  %668 = vmatprep.subr.mxu0 %v7638_v2  ;;  %v7620_v38 = vld [vmem:[%s8574_s30 + $0x1b8] sm:$0xff]  ;;  %v7649_v39 = vld [vmem:[%s8574_s30 + $0x288] sm:$0xff]  ;;  %v7619_v40 = vld [vmem:[%s8574_s30 + $0x1b0] sm:$0xff] }
  0x30   : > { %774 = vmatprep.subr.mxu1 %v7667_v3  ;;  %669 = vmatpush1.msra.mxu0 %v7637_v4  ;;  %v7648_v41 = vld [vmem:[%s8574_s30 + $0x280] sm:$0xff]  ;;  %v7618_v42 = vld [vmem:[%s8574_s30 + $0x1a8] sm:$0xff]  ;;  %v7647_v43 = vld [vmem:[%s8574_s30 + $0x278] sm:$0xff] }
  0x31   : > { %775 = vmatpush1.msra.mxu1 %v7666_v5  ;;  %670 = vmatprep.subr.mxu0 %v7636_v6  ;;  %v7617_v44 = vld [vmem:[%s8574_s30 + $0x1a0] sm:$0xff]  ;;  %v7646_v45 = vld [vmem:[%s8574_s30 + $0x270] sm:$0xff]  ;;  %v862_v46 = vld [vmem:[%s12353_s3 + $0x78] sm:$0xff] }
  0x32   : > { %776 = vmatprep.subr.mxu1 %v7665_v7  ;;  %671 = vmatpush1.msra.mxu0 %v7635_v8  ;;  %v7692_v47 = vld [vmem:[%s12353_s3 + $0x128] sm:$0xff]  ;;  %v861_v48 = vld [vmem:[%s12353_s3 + $0x70] sm:$0xff]  ;;  %v7691_v49 = vld [vmem:[%s12353_s3 + $0x120] sm:$0xff] }
  0x33   : > { %777 = vmatpush1.msra.mxu1 %v7664_v9  ;;  %672 = vmatprep.subr.mxu0 %v7634_v10  ;;  %v860_v50 = vld [vmem:[%s12353_s3 + $0x68] sm:$0xff]  ;;  %v7690_v51 = vld [vmem:[%s12353_s3 + $0x118] sm:$0xff]  ;;  %v859_v52 = vld [vmem:[%s12353_s3 + $0x60] sm:$0xff] }
  0x34   : > { %778 = vmatprep.subr.mxu1 %v7663_v11  ;;  %673 = vmatpush1.msra.mxu0 %v7633_v12  ;;  %v7689_v53 = vld [vmem:[%s12353_s3 + $0x110] sm:$0xff]  ;;  %v858_v54 = vld [vmem:[%s12353_s3 + $0x58] sm:$0xff]  ;;  %v7688_v55 = vld [vmem:[%s12353_s3 + $0x108] sm:$0xff] }
  0x35   : > { %779 = vmatpush1.msra.mxu1 %v7662_v13  ;;  %674 = vmatprep.subr.mxu0 %v7632_v14  ;;  %v7687_v57 = vld [vmem:[%s12353_s3 + $0x100] sm:$0xff]  ;;  %v856_v58 = vld [vmem:[%s12353_s3 + $0x48] sm:$0xff]  ;;  %v7686_v59 = vld [vmem:[%s12353_s3 + $0xf8] sm:$0xff] }
  0x36   : > { %780 = vmatprep.subr.mxu1 %v7661_v15  ;;  %675 = vmatpush1.msra.mxu0 %v7631_v16  ;;  %v855_v60 = vld [vmem:[%s12353_s3 + $0x40] sm:$0xff]  ;;  %v7685_v61 = vld [vmem:[%s12353_s3 + $0xf0] sm:$0xff]  ;;  %v854_v62 = vld [vmem:[%s12353_s3 + $0x38] sm:$0xff] }
  0x37   : > { %781 = vmatpush1.msra.mxu1 %v7660_v17  ;;  %676 = vmatprep.subr.mxu0 %v7630_v18  ;;  %v7684_v63 = vld [vmem:[%s12353_s3 + $0xe8] sm:$0xff]  ;;  %v853_v1 = vld [vmem:[%s12353_s3 + $0x30] sm:$0xff]  ;;  %v7683_v2 = vld [vmem:[%s12353_s3 + $0xe0] sm:$0xff] }
  0x38   : > { %782 = vmatprep.subr.mxu1 %v7659_v19  ;;  %677 = vmatpush1.msra.mxu0 %v7629_v20  ;;  %v852_v3 = vld [vmem:[%s12353_s3 + $0x28] sm:$0xff]  ;;  %v7682_v4 = vld [vmem:[%s12353_s3 + $0xd8] sm:$0xff]  ;;  %v851_v5 = vld [vmem:[%s12353_s3 + $0x20] sm:$0xff] }
  0x39   : > { %783 = vmatpush1.msra.mxu1 %v7658_v21  ;;  %678 = vmatprep.subr.mxu0 %v7628_v22  ;;  %v7681_v6 = vld [vmem:[%s12353_s3 + $0xd0] sm:$0xff]  ;;  %v850_v7 = vld [vmem:[%s12353_s3 + $0x18] sm:$0xff]  ;;  %v7680_v8 = vld [vmem:[%s12353_s3 + $0xc8] sm:$0xff] }
  0x3a   : > { %784 = vmatprep.subr.mxu1 %v7657_v23  ;;  %679 = vmatpush1.msra.mxu0 %v7627_v24  ;;  %v849_v9 = vld [vmem:[%s12353_s3 + $0x10] sm:$0xff]  ;;  %v7679_v10 = vld [vmem:[%s12353_s3 + $0xc0] sm:$0xff]  ;;  %v848_v11 = vld [vmem:[%s12353_s3 + $0x8] sm:$0xff] }
  0x3b   : > { %785 = vmatpush1.msra.mxu1 %v7656_v25  ;;  %680 = vmatprep.subr.mxu0 %v7626_v26  ;;  %v7678_v12 = vld [vmem:[%s12353_s3 + $0xb8] sm:$0xff]  ;;  %v847_v13 = vld [vmem:[%s12353_s3] sm:$0xff]  ;;  %v7677_v14 = vld [vmem:[%s12353_s3 + $0xb0] sm:$0xff] }
  0x3c   : > { %786 = vmatprep.subr.mxu1 %v7655_v27  ;;  %681 = vmatpush1.msra.mxu0 %v7625_v28  ;;  %v868_v15 = vld [vmem:[%s12353_s3 + $0xa8] sm:$0x1]  ;;  %v7698_v16 = vld [vmem:[%s12353_s3 + $0x158] sm:$0x1]  ;;  %v867_v17 = vld [vmem:[%s12353_s3 + $0xa0] sm:$0xff] }
  0x3d   : > { %787 = vmatpush1.msra.mxu1 %v7654_v29  ;;  %682 = vmatprep.subr.mxu0 %v7624_v30  ;;  %v7697_v18 = vld [vmem:[%s12353_s3 + $0x150] sm:$0xff]  ;;  %v866_v19 = vld [vmem:[%s12353_s3 + $0x98] sm:$0xff]  ;;  %v7696_v20 = vld [vmem:[%s12353_s3 + $0x148] sm:$0xff] }
  0x3e   : > { %788 = vmatprep.subr.mxu1 %v7653_v31  ;;  %683 = vmatpush1.msra.mxu0 %v7623_v32  ;;  %v865_v21 = vld [vmem:[%s12353_s3 + $0x90] sm:$0xff]  ;;  %v7695_v22 = vld [vmem:[%s12353_s3 + $0x140] sm:$0xff]  ;;  %v864_v23 = vld [vmem:[%s12353_s3 + $0x88] sm:$0xff] }
  0x3f   : > { %789 = vmatpush1.msra.mxu1 %v7652_v33  ;;  %684 = vmatprep.subr.mxu0 %v7622_v34  ;;  %v7694_v24 = vld [vmem:[%s12353_s3 + $0x138] sm:$0xff]  ;;  %v863_v25 = vld [vmem:[%s12353_s3 + $0x80] sm:$0xff]  ;;  %v7693_v26 = vld [vmem:[%s12353_s3 + $0x130] sm:$0xff] }
  0x40   : > { %790 = vmatprep.subr.mxu1 %v7651_v35  ;;  %685 = vmatpush1.msra.mxu0 %v7621_v36 }
  0x41   : > { %791 = vmatpush1.msra.mxu1 %v7650_v37  ;;  %686 = vmatprep.subr.mxu0 %v7620_v38 }
  0x42   : > { %792 = vmatprep.subr.mxu1 %v7649_v39  ;;  %687 = vmatpush1.msra.mxu0 %v7619_v40 }
  0x43   : > { %793 = vmatpush1.msra.mxu1 %v7648_v41  ;;  %688 = vmatprep.subr.mxu0 %v7618_v42 }
  0x44   : > { %794 = vmatprep.subr.mxu1 %v7647_v43  ;;  %689 = vmatpush1.msra.mxu0 %v7617_v44 }
  0x45   : > { %722 = vmatprep.mubr.f32.mxu0 %v8480_v0  ;;  %795 = vmatpush1.msra.mxu1 %v7646_v45 }
  0x46   : > { %828 = vmatprep.mubr.f32.mxu1 %v8480_v0  ;;  %7645 = vmatmul.mubr.msk.f32.vlgmr.msra.gmra.mxu0 %vm437_vm1, %v8635_v56 }
  0x47   : > { %7674 = vmatmul.mubr.msk.f32.vlgmr.msra.gmra.mxu1 %vm437_vm1, %v8635_v56  ;;  %877 = vmatprep.subr.mxu0 %v8480_v0  ;;  %v857_v56 = vld [vmem:[%s12353_s3 + $0x50] sm:$0xff] }
  0x48   : > { %973 = vmatprep.subr.mxu1 %v8480_v0  ;;  %878 = vmatpush1.msra.mxu0 %v862_v46  ;;  %v7716_v46 = vld [vmem:[%s12353_s3 + $0x1d8] sm:$0xff] }
  0x49   : > { %974 = vmatpush1.msra.mxu1 %v7692_v47  ;;  %879 = vmatprep.subr.mxu0 %v8480_v0  ;;  %v7740_v47 = vld [vmem:[%s12353_s3 + $0x288] sm:$0xff] }
  0x4a   : > { %975 = vmatprep.subr.mxu1 %v8480_v0  ;;  %880 = vmatpush1.msra.mxu0 %v861_v48  ;;  %v7715_v48 = vld [vmem:[%s12353_s3 + $0x1d0] sm:$0xff] }
  0x4b   : > { %976 = vmatpush1.msra.mxu1 %v7691_v49  ;;  %881 = vmatprep.subr.mxu0 %v8480_v0  ;;  %v7739_v49 = vld [vmem:[%s12353_s3 + $0x280] sm:$0xff] }
  0x4c   : > { %977 = vmatprep.subr.mxu1 %v8480_v0  ;;  %882 = vmatpush1.msra.mxu0 %v860_v50  ;;  %v7714_v50 = vld [vmem:[%s12353_s3 + $0x1c8] sm:$0xff] }
  0x4d   : > { %978 = vmatpush1.msra.mxu1 %v7690_v51  ;;  %883 = vmatprep.subr.mxu0 %v8480_v0  ;;  %v7738_v51 = vld [vmem:[%s12353_s3 + $0x278] sm:$0xff] }
  0x4e   : > { %979 = vmatprep.subr.mxu1 %v8480_v0  ;;  %884 = vmatpush1.msra.mxu0 %v859_v52  ;;  %v7713_v52 = vld [vmem:[%s12353_s3 + $0x1c0] sm:$0xff] }
  0x4f   : > { %980 = vmatpush1.msra.mxu1 %v7689_v53  ;;  %885 = vmatprep.subr.mxu0 %v8480_v0  ;;  %v7737_v53 = vld [vmem:[%s12353_s3 + $0x270] sm:$0xff] }
  0x50   : > { %981 = vmatprep.subr.mxu1 %v8480_v0  ;;  %886 = vmatpush1.msra.mxu0 %v858_v54  ;;  %v7712_v54 = vld [vmem:[%s12353_s3 + $0x1b8] sm:$0xff] }
  0x51   : > { %982 = vmatpush1.msra.mxu1 %v7688_v55  ;;  %887 = vmatprep.subr.mxu0 %v8480_v0  ;;  %v7736_v55 = vld [vmem:[%s12353_s3 + $0x268] sm:$0xff] }
  0x52   : > { %983 = vmatprep.subr.mxu1 %v8480_v0  ;;  %888 = vmatpush1.msra.mxu0 %v857_v56  ;;  %v7711_v56 = vld [vmem:[%s12353_s3 + $0x1b0] sm:$0xff] }
  0x53   : > { %984 = vmatpush1.msra.mxu1 %v7687_v57  ;;  %889 = vmatprep.subr.mxu0 %v8480_v0  ;;  %v7735_v57 = vld [vmem:[%s12353_s3 + $0x260] sm:$0xff] }
  0x54   : > { %985 = vmatprep.subr.mxu1 %v8480_v0  ;;  %890 = vmatpush1.msra.mxu0 %v856_v58  ;;  %v7710_v58 = vld [vmem:[%s12353_s3 + $0x1a8] sm:$0xff] }
  0x55   : > { %986 = vmatpush1.msra.mxu1 %v7686_v59  ;;  %891 = vmatprep.subr.mxu0 %v8480_v0  ;;  %v7734_v59 = vld [vmem:[%s12353_s3 + $0x258] sm:$0xff] }
  0x56   : > { %987 = vmatprep.subr.mxu1 %v8480_v0  ;;  %892 = vmatpush1.msra.mxu0 %v855_v60  ;;  %v7709_v60 = vld [vmem:[%s12353_s3 + $0x1a0] sm:$0xff] }
  0x57   : > { %988 = vmatpush1.msra.mxu1 %v7685_v61  ;;  %893 = vmatprep.subr.mxu0 %v8480_v0  ;;  %v7733_v61 = vld [vmem:[%s12353_s3 + $0x250] sm:$0xff] }
  0x58   : > { %989 = vmatprep.subr.mxu1 %v8480_v0  ;;  %894 = vmatpush1.msra.mxu0 %v854_v62  ;;  %v7708_v62 = vld [vmem:[%s12353_s3 + $0x198] sm:$0xff] }
  0x59   : > { %990 = vmatpush1.msra.mxu1 %v7684_v63  ;;  %895 = vmatprep.subr.mxu0 %v8480_v0  ;;  %v7732_v63 = vld [vmem:[%s12353_s3 + $0x248] sm:$0xff] }
  0x5a   : > { %991 = vmatprep.subr.mxu1 %v8480_v0  ;;  %896 = vmatpush1.msra.mxu0 %v853_v1  ;;  %v7707_v1 = vld [vmem:[%s12353_s3 + $0x190] sm:$0xff] }
  0x5b   : > { %992 = vmatpush1.msra.mxu1 %v7683_v2  ;;  %897 = vmatprep.subr.mxu0 %v8480_v0  ;;  %v7731_v2 = vld [vmem:[%s12353_s3 + $0x240] sm:$0xff] }
  0x5c   : > { %993 = vmatprep.subr.mxu1 %v8480_v0  ;;  %898 = vmatpush1.msra.mxu0 %v852_v3  ;;  %v7706_v3 = vld [vmem:[%s12353_s3 + $0x188] sm:$0xff] }
  0x5d   : > { %994 = vmatpush1.msra.mxu1 %v7682_v4  ;;  %899 = vmatprep.subr.mxu0 %v8480_v0  ;;  %v7730_v4 = vld [vmem:[%s12353_s3 + $0x238] sm:$0xff] }
  0x5e   : > { %995 = vmatprep.subr.mxu1 %v8480_v0  ;;  %900 = vmatpush1.msra.mxu0 %v851_v5  ;;  %v7705_v5 = vld [vmem:[%s12353_s3 + $0x180] sm:$0xff] }
  0x5f   : > { %996 = vmatpush1.msra.mxu1 %v7681_v6  ;;  %901 = vmatprep.subr.mxu0 %v8480_v0  ;;  %v7729_v6 = vld [vmem:[%s12353_s3 + $0x230] sm:$0xff] }
  0x60   : > { %997 = vmatprep.subr.mxu1 %v8480_v0  ;;  %902 = vmatpush1.msra.mxu0 %v850_v7  ;;  %v7704_v7 = vld [vmem:[%s12353_s3 + $0x178] sm:$0xff] }
  0x61   : > { %998 = vmatpush1.msra.mxu1 %v7680_v8  ;;  %903 = vmatprep.subr.mxu0 %v8480_v0  ;;  %v7728_v8 = vld [vmem:[%s12353_s3 + $0x228] sm:$0xff] }
  0x62   : > { %999 = vmatprep.subr.mxu1 %v8480_v0  ;;  %904 = vmatpush1.msra.mxu0 %v849_v9  ;;  %v7703_v9 = vld [vmem:[%s12353_s3 + $0x170] sm:$0xff] }
  0x63   : > { %1000 = vmatpush1.msra.mxu1 %v7679_v10  ;;  %905 = vmatprep.subr.mxu0 %v8480_v0  ;;  %v7727_v10 = vld [vmem:[%s12353_s3 + $0x220] sm:$0xff] }
  0x64   : > { %1001 = vmatprep.subr.mxu1 %v8480_v0  ;;  %906 = vmatpush1.msra.mxu0 %v848_v11  ;;  %v7702_v11 = vld [vmem:[%s12353_s3 + $0x168] sm:$0xff] }
  0x65   : > { %1002 = vmatpush1.msra.mxu1 %v7678_v12  ;;  %907 = vmatprep.subr.mxu0 %v8480_v0  ;;  %v7726_v12 = vld [vmem:[%s12353_s3 + $0x218] sm:$0xff] }
  0x66   : > { %1003 = vmatprep.subr.mxu1 %v8480_v0  ;;  %908 = vmatpush1.msra.mxu0 %v847_v13  ;;  %v7701_v13 = vld [vmem:[%s12353_s3 + $0x160] sm:$0xff] }
  0x67   : > { %1004 = vmatpush1.msra.mxu1 %v7677_v14  ;;  %929 = vmatprep.subr.mxu0 %v8480_v0  ;;  %v7725_v14 = vld [vmem:[%s12353_s3 + $0x210] sm:$0xff] }
  0x68   : > { %1025 = vmatprep.subr.mxu1 %v8480_v0  ;;  %7675 = vmatpush2.msk.msra.mxu0 %vm873_vm2, %v868_v15  ;;  %v7722_v15 = vld [vmem:[%s12353_s3 + $0x208] sm:$0x1] }
  0x69   : > { %7699 = vmatpush2.msk.msra.mxu1 %vm873_vm2, %v7698_v16  ;;  %931 = vmatprep.subr.mxu0 %v8480_v0  ;;  %v7746_v16 = vld [vmem:[%s12353_s3 + $0x2b8] sm:$0x1] }
  0x6a   : > { %1027 = vmatprep.subr.mxu1 %v8480_v0  ;;  %932 = vmatpush2.msra.mxu0 %v867_v17  ;;  %v7721_v17 = vld [vmem:[%s12353_s3 + $0x200] sm:$0xff] }
  0x6b   : > { %1028 = vmatpush2.msra.mxu1 %v7697_v18  ;;  %933 = vmatprep.subr.mxu0 %v8480_v0  ;;  %v7745_v18 = vld [vmem:[%s12353_s3 + $0x2b0] sm:$0xff] }
  0x6c   : > { %1029 = vmatprep.subr.mxu1 %v8480_v0  ;;  %934 = vmatpush2.msra.mxu0 %v866_v19  ;;  %v7720_v19 = vld [vmem:[%s12353_s3 + $0x1f8] sm:$0xff] }
  0x6d   : > { %1030 = vmatpush2.msra.mxu1 %v7696_v20  ;;  %935 = vmatprep.subr.mxu0 %v8480_v0  ;;  %v7744_v20 = vld [vmem:[%s12353_s3 + $0x2a8] sm:$0xff] }
  0x6e   : > { %1031 = vmatprep.subr.mxu1 %v8480_v0  ;;  %936 = vmatpush2.msra.mxu0 %v865_v21  ;;  %v7719_v21 = vld [vmem:[%s12353_s3 + $0x1f0] sm:$0xff] }
  0x6f   : > { %1032 = vmatpush2.msra.mxu1 %v7695_v22  ;;  %937 = vmatprep.subr.mxu0 %v8480_v0  ;;  %v7743_v22 = vld [vmem:[%s12353_s3 + $0x2a0] sm:$0xff] }
  0x70   : > { %1033 = vmatprep.subr.mxu1 %v8480_v0  ;;  %938 = vmatpush2.msra.mxu0 %v864_v23  ;;  %v7718_v23 = vld [vmem:[%s12353_s3 + $0x1e8] sm:$0xff] }
  0x71   : > { %1034 = vmatpush2.msra.mxu1 %v7694_v24  ;;  %939 = vmatprep.subr.mxu0 %v8480_v0  ;;  %v7742_v24 = vld [vmem:[%s12353_s3 + $0x298] sm:$0xff] }
  0x72   : > { %1035 = vmatprep.subr.mxu1 %v8480_v0  ;;  %940 = vmatpush2.msra.mxu0 %v863_v25  ;;  %v7717_v25 = vld [vmem:[%s12353_s3 + $0x1e0] sm:$0xff] }
  0x73   : > { %1036 = vmatpush2.msra.mxu1 %v7693_v26  ;;  %1069 = vmatprep.subr.mxu0 %v8480_v0  ;;  %v7741_v26 = vld [vmem:[%s12353_s3 + $0x290] sm:$0xff] }
  0x74   : > { %1165 = vmatprep.subr.mxu1 %v8480_v0 }
  0x89   : > { %v841_v40 = vpop.permute.xlu0 %840 }
  0xea   : > { %v514_v27 = vpop.f32.mrf.mxu0 }
  0xeb   : > { %v618_v28 = vpop.f32.mrf.mxu1 }
  0xec   : > { %v516_v29 = vpop.f32.mrf.mxu0  ;;  %v623_v31 = vmax.f32 %v514_v27, %v618_v28  ;;  %v7764_v27 = vld [vmem:[%s12353_s3 + $0x338] sm:$0xff]  ;;  %v7788_v28 = vld [vmem:[%s12353_s3 + $0x3e8] sm:$0xff] }
  0xed   : > { %v620_v30 = vpop.f32.mrf.mxu1 }
  0xee   : > { %v624_v34 = vmax.f32 %v516_v29, %v620_v30  ;;  %v7763_v29 = vld [vmem:[%s12353_s3 + $0x330] sm:$0xff]  ;;  %v7787_v30 = vld [vmem:[%s12353_s3 + $0x3e0] sm:$0xff] }
 0x106   : > { %v724_v32 = vpop.f32.mrf.mxu0 }
 0x107   : > { %v830_v33 = vpop.f32.mrf.mxu1  ;;  %v729_v35 = vmax.f32 %v623_v31, %v724_v32  ;;  %v7762_v31 = vld [vmem:[%s12353_s3 + $0x328] sm:$0xff]  ;;  %v7786_v32 = vld [vmem:[%s12353_s3 + $0x3d8] sm:$0xff] }
 0x108   : > { %v726_v36 = vpop.f32.mrf.mxu0 }
 0x109   : > { %v835_v37 = vmax.f32 %v729_v35, %v830_v33  ;;  %v730_v38 = vmax.f32 %v624_v34, %v726_v36  ;;  %v832_v39 = vpop.f32.mrf.mxu1  ;;  %v7761_v33 = vld [vmem:[%s12353_s3 + $0x320] sm:$0xff]  ;;  %v7785_v34 = vld [vmem:[%s12353_s3 + $0x3d0] sm:$0xff]  ;;  %v7760_v35 = vld [vmem:[%s12353_s3 + $0x318] sm:$0xff] }
 0x10a   : > { %v7784_v36 = vld [vmem:[%s12353_s3 + $0x3c8] sm:$0xff] }
 0x10b   : > { %v836_v41 = vmax.f32 %v730_v38, %v832_v39  ;;  %v843_v42 = vadd.f32 %v841_v40, %v835_v37  ;;  %v7759_v37 = vld [vmem:[%s12353_s3 + $0x310] sm:$0xff]  ;;  %v7783_v38 = vld [vmem:[%s12353_s3 + $0x3c0] sm:$0xff]  ;;  %v7758_v39 = vld [vmem:[%s12353_s3 + $0x308] sm:$0xff] }
 0x10d   : > { %v844_v43 = vadd.f32 %v841_v40, %v836_v41  ;;  %v8885_v45 = vmax.f32 %v843_v42, 0.0  ;;  %v7782_v40 = vld [vmem:[%s12353_s3 + $0x3b8] sm:$0xff]  ;;  %v7757_v41 = vld [vmem:[%s12353_s3 + $0x300] sm:$0xff]  ;;  %v7781_v42 = vld [vmem:[%s12353_s3 + $0x3b0] sm:$0xff] }
 0x10f   : > { %v8883_v44 = vmax.f32 %v844_v43, 0.0  ;;  %v7756_v43 = vld [vmem:[%s12353_s3 + $0x2f8] sm:$0xff] }
 0x111   : > { %7676 = vmatprep.mubr.msk.f32.mxu0 %vm869_vm3, %v8883_v44  ;;  %7700 = vmatprep.mubr.msk.f32.mxu1 %vm869_vm3, %v8883_v44 }
 0x112   : > { %942 = vmatmul.mubr.f32.vlgmr.msra.gmra.mxu0 %v8885_v45  ;;  %1038 = vmatmul.mubr.f32.vlgmr.msra.gmra.mxu1 %v8885_v45 }
 0x113   : > { %1070 = vmatpush1.msra.mxu0 %v7716_v46  ;;  %1166 = vmatpush1.msra.mxu1 %v7740_v47  ;;  %v7780_v46 = vld [vmem:[%s12353_s3 + $0x3a8] sm:$0xff]  ;;  %v7755_v47 = vld [vmem:[%s12353_s3 + $0x2f0] sm:$0xff] }
 0x114   : > { %1071 = vmatprep.subr.mxu0 %v8480_v0  ;;  %7724 = vmatprep.mubr.msk.f32.mxu0 %vm869_vm3, %v8883_v44 }
 0x115   : > { %1167 = vmatprep.subr.mxu1 %v8480_v0  ;;  %7748 = vmatprep.mubr.msk.f32.mxu1 %vm869_vm3, %v8883_v44 }
 0x116   : > { %1072 = vmatpush1.msra.mxu0 %v7715_v48  ;;  %1168 = vmatpush1.msra.mxu1 %v7739_v49  ;;  %v7779_v48 = vld [vmem:[%s12353_s3 + $0x3a0] sm:$0xff]  ;;  %v7754_v49 = vld [vmem:[%s12353_s3 + $0x2e8] sm:$0xff] }
 0x117   : > { %1073 = vmatprep.subr.mxu0 %v8480_v0  ;;  %1169 = vmatprep.subr.mxu1 %v8480_v0 }
 0x118   : > { %1074 = vmatpush1.msra.mxu0 %v7714_v50  ;;  %1170 = vmatpush1.msra.mxu1 %v7738_v51  ;;  %v7778_v50 = vld [vmem:[%s12353_s3 + $0x398] sm:$0xff]  ;;  %v7753_v51 = vld [vmem:[%s12353_s3 + $0x2e0] sm:$0xff] }
 0x119   : > { %1075 = vmatprep.subr.mxu0 %v8480_v0  ;;  %1171 = vmatprep.subr.mxu1 %v8480_v0 }
 0x11a   : > { %1076 = vmatpush1.msra.mxu0 %v7713_v52  ;;  %1172 = vmatpush1.msra.mxu1 %v7737_v53  ;;  %v7777_v52 = vld [vmem:[%s12353_s3 + $0x390] sm:$0xff]  ;;  %v7752_v53 = vld [vmem:[%s12353_s3 + $0x2d8] sm:$0xff] }
 0x11b   : > { %1077 = vmatprep.subr.mxu0 %v8480_v0  ;;  %1173 = vmatprep.subr.mxu1 %v8480_v0 }
 0x11c   : > { %1078 = vmatpush1.msra.mxu0 %v7712_v54  ;;  %1174 = vmatpush1.msra.mxu1 %v7736_v55  ;;  %v7776_v54 = vld [vmem:[%s12353_s3 + $0x388] sm:$0xff]  ;;  %v7751_v55 = vld [vmem:[%s12353_s3 + $0x2d0] sm:$0xff] }
 0x11d   : > { %1079 = vmatprep.subr.mxu0 %v8480_v0  ;;  %1175 = vmatprep.subr.mxu1 %v8480_v0 }
 0x11e   : > { %1080 = vmatpush1.msra.mxu0 %v7711_v56  ;;  %1176 = vmatpush1.msra.mxu1 %v7735_v57  ;;  %v7775_v56 = vld [vmem:[%s12353_s3 + $0x380] sm:$0xff]  ;;  %v7750_v57 = vld [vmem:[%s12353_s3 + $0x2c8] sm:$0xff] }
 0x11f   : > { %1081 = vmatprep.subr.mxu0 %v8480_v0  ;;  %1177 = vmatprep.subr.mxu1 %v8480_v0 }
 0x120   : > { %1082 = vmatpush1.msra.mxu0 %v7710_v58  ;;  %1178 = vmatpush1.msra.mxu1 %v7734_v59  ;;  %v7774_v58 = vld [vmem:[%s12353_s3 + $0x378] sm:$0xff]  ;;  %v7749_v59 = vld [vmem:[%s12353_s3 + $0x2c0] sm:$0xff] }
 0x121   : > { %1083 = vmatprep.subr.mxu0 %v8480_v0  ;;  %1179 = vmatprep.subr.mxu1 %v8480_v0 }
 0x122   : > { %1084 = vmatpush1.msra.mxu0 %v7709_v60  ;;  %1180 = vmatpush1.msra.mxu1 %v7733_v61  ;;  %v7773_v60 = vld [vmem:[%s12353_s3 + $0x370] sm:$0xff]  ;;  %v7770_v61 = vld [vmem:[%s12353_s3 + $0x368] sm:$0x1] }
 0x123   : > { %1085 = vmatprep.subr.mxu0 %v8480_v0  ;;  %1181 = vmatprep.subr.mxu1 %v8480_v0 }
 0x124   : > { %1086 = vmatpush1.msra.mxu0 %v7708_v62  ;;  %1182 = vmatpush1.msra.mxu1 %v7732_v63  ;;  %v7794_v62 = vld [vmem:[%s12353_s3 + $0x418] sm:$0x1]  ;;  %v7769_v63 = vld [vmem:[%s12353_s3 + $0x360] sm:$0xff] }
 0x125   : > { %1087 = vmatprep.subr.mxu0 %v8480_v0  ;;  %1183 = vmatprep.subr.mxu1 %v8480_v0 }
 0x126   : > { %1088 = vmatpush1.msra.mxu0 %v7707_v1  ;;  %1184 = vmatpush1.msra.mxu1 %v7731_v2  ;;  %v7793_v1 = vld [vmem:[%s12353_s3 + $0x410] sm:$0xff]  ;;  %v7768_v2 = vld [vmem:[%s12353_s3 + $0x358] sm:$0xff] }
 0x127   : > { %1089 = vmatprep.subr.mxu0 %v8480_v0  ;;  %1185 = vmatprep.subr.mxu1 %v8480_v0 }
 0x128   : > { %1090 = vmatpush1.msra.mxu0 %v7706_v3  ;;  %1186 = vmatpush1.msra.mxu1 %v7730_v4  ;;  %v7792_v3 = vld [vmem:[%s12353_s3 + $0x408] sm:$0xff]  ;;  %v7767_v4 = vld [vmem:[%s12353_s3 + $0x350] sm:$0xff] }
 0x129   : > { %1091 = vmatprep.subr.mxu0 %v8480_v0  ;;  %1187 = vmatprep.subr.mxu1 %v8480_v0 }
 0x12a   : > { %1092 = vmatpush1.msra.mxu0 %v7705_v5  ;;  %1188 = vmatpush1.msra.mxu1 %v7729_v6  ;;  %v7791_v5 = vld [vmem:[%s12353_s3 + $0x400] sm:$0xff]  ;;  %v7766_v6 = vld [vmem:[%s12353_s3 + $0x348] sm:$0xff] }
 0x12b   : > { %1093 = vmatprep.subr.mxu0 %v8480_v0  ;;  %1189 = vmatprep.subr.mxu1 %v8480_v0 }
 0x12c   : > { %1094 = vmatpush1.msra.mxu0 %v7704_v7  ;;  %1190 = vmatpush1.msra.mxu1 %v7728_v8  ;;  %v7790_v7 = vld [vmem:[%s12353_s3 + $0x3f8] sm:$0xff]  ;;  %v7765_v8 = vld [vmem:[%s12353_s3 + $0x340] sm:$0xff] }
 0x12d   : > { %1095 = vmatprep.subr.mxu0 %v8480_v0  ;;  %1191 = vmatprep.subr.mxu1 %v8480_v0 }
 0x12e   : > { %1096 = vmatpush1.msra.mxu0 %v7703_v9  ;;  %1192 = vmatpush1.msra.mxu1 %v7727_v10  ;;  %v7789_v9 = vld [vmem:[%s12353_s3 + $0x3f0] sm:$0xff]  ;;  %v7812_v10 = vld [vmem:[%s12353_s3 + $0x498] sm:$0xff] }
 0x12f   : > { %1097 = vmatprep.subr.mxu0 %v8480_v0  ;;  %1193 = vmatprep.subr.mxu1 %v8480_v0 }
 0x130   : > { %1098 = vmatpush1.msra.mxu0 %v7702_v11  ;;  %1194 = vmatpush1.msra.mxu1 %v7726_v12  ;;  %v7836_v11 = vld [vmem:[%s12353_s3 + $0x548] sm:$0xff]  ;;  %v7811_v12 = vld [vmem:[%s12353_s3 + $0x490] sm:$0xff] }
 0x131   : > { %1099 = vmatprep.subr.mxu0 %v8480_v0  ;;  %1195 = vmatprep.subr.mxu1 %v8480_v0 }
 0x132   : > { %1100 = vmatpush1.msra.mxu0 %v7701_v13  ;;  %1196 = vmatpush1.msra.mxu1 %v7725_v14  ;;  %v7835_v13 = vld [vmem:[%s12353_s3 + $0x540] sm:$0xff]  ;;  %v7810_v14 = vld [vmem:[%s12353_s3 + $0x488] sm:$0xff] }
 0x133   : > { %1121 = vmatprep.subr.mxu0 %v8480_v0  ;;  %1217 = vmatprep.subr.mxu1 %v8480_v0 }
 0x134   : > { %7723 = vmatpush2.msk.msra.mxu0 %vm873_vm2, %v7722_v15  ;;  %7747 = vmatpush2.msk.msra.mxu1 %vm873_vm2, %v7746_v16  ;;  %v7834_v15 = vld [vmem:[%s12353_s3 + $0x538] sm:$0xff]  ;;  %v7809_v16 = vld [vmem:[%s12353_s3 + $0x480] sm:$0xff] }
 0x135   : > { %1123 = vmatprep.subr.mxu0 %v8480_v0  ;;  %1219 = vmatprep.subr.mxu1 %v8480_v0 }
 0x136   : > { %1124 = vmatpush2.msra.mxu0 %v7721_v17  ;;  %1220 = vmatpush2.msra.mxu1 %v7745_v18  ;;  %v7833_v17 = vld [vmem:[%s12353_s3 + $0x530] sm:$0xff]  ;;  %v7808_v18 = vld [vmem:[%s12353_s3 + $0x478] sm:$0xff] }
 0x137   : > { %1125 = vmatprep.subr.mxu0 %v8480_v0  ;;  %1221 = vmatprep.subr.mxu1 %v8480_v0 }
 0x138   : > { %1126 = vmatpush2.msra.mxu0 %v7720_v19  ;;  %1222 = vmatpush2.msra.mxu1 %v7744_v20  ;;  %v7832_v19 = vld [vmem:[%s12353_s3 + $0x528] sm:$0xff]  ;;  %v7807_v20 = vld [vmem:[%s12353_s3 + $0x470] sm:$0xff] }
 0x139   : > { %1127 = vmatprep.subr.mxu0 %v8480_v0  ;;  %1223 = vmatprep.subr.mxu1 %v8480_v0 }
 0x13a   : > { %1128 = vmatpush2.msra.mxu0 %v7719_v21  ;;  %1224 = vmatpush2.msra.mxu1 %v7743_v22  ;;  %v7831_v21 = vld [vmem:[%s12353_s3 + $0x520] sm:$0xff]  ;;  %v7806_v22 = vld [vmem:[%s12353_s3 + $0x468] sm:$0xff] }
 0x13b   : > { %1129 = vmatprep.subr.mxu0 %v8480_v0  ;;  %1225 = vmatprep.subr.mxu1 %v8480_v0 }
 0x13c   : > { %1130 = vmatpush2.msra.mxu0 %v7718_v23  ;;  %1226 = vmatpush2.msra.mxu1 %v7742_v24  ;;  %v7830_v23 = vld [vmem:[%s12353_s3 + $0x518] sm:$0xff]  ;;  %v7805_v24 = vld [vmem:[%s12353_s3 + $0x460] sm:$0xff] }
 0x13d   : > { %1131 = vmatprep.subr.mxu0 %v8480_v0  ;;  %1227 = vmatprep.subr.mxu1 %v8480_v0 }
 0x13e   : > { %1132 = vmatpush2.msra.mxu0 %v7717_v25  ;;  %1228 = vmatpush2.msra.mxu1 %v7741_v26  ;;  %v7829_v25 = vld [vmem:[%s12353_s3 + $0x510] sm:$0xff]  ;;  %v7804_v26 = vld [vmem:[%s12353_s3 + $0x458] sm:$0xff] }
 0x13f   : > { %1134 = vmatmul.mubr.f32.vlgmr.msra.gmra.mxu0 %v8885_v45  ;;  %1230 = vmatmul.mubr.f32.vlgmr.msra.gmra.mxu1 %v8885_v45 }
 0x140   : > { %1261 = vmatprep.subr.mxu0 %v8480_v0  ;;  %1357 = vmatprep.subr.mxu1 %v8480_v0 }
 0x141   : > { %1262 = vmatpush1.msra.mxu0 %v7764_v27  ;;  %7772 = vmatprep.mubr.msk.f32.mxu0 %vm869_vm3, %v8883_v44  ;;  %v7828_v27 = vld [vmem:[%s12353_s3 + $0x508] sm:$0xff] }
 0x142   : > { %1358 = vmatpush1.msra.mxu1 %v7788_v28  ;;  %7796 = vmatprep.mubr.msk.f32.mxu1 %vm869_vm3, %v8883_v44  ;;  %v7803_v28 = vld [vmem:[%s12353_s3 + $0x450] sm:$0xff] }
 0x143   : > { %1263 = vmatprep.subr.mxu0 %v8480_v0  ;;  %1359 = vmatprep.subr.mxu1 %v8480_v0 }
 0x144   : > { %1264 = vmatpush1.msra.mxu0 %v7763_v29  ;;  %1360 = vmatpush1.msra.mxu1 %v7787_v30  ;;  %v7827_v29 = vld [vmem:[%s12353_s3 + $0x500] sm:$0xff]  ;;  %v7802_v30 = vld [vmem:[%s12353_s3 + $0x448] sm:$0xff] }
 0x145   : > { %1265 = vmatprep.subr.mxu0 %v8480_v0  ;;  %1361 = vmatprep.subr.mxu1 %v8480_v0 }
 0x146   : > { %1266 = vmatpush1.msra.mxu0 %v7762_v31  ;;  %1362 = vmatpush1.msra.mxu1 %v7786_v32  ;;  %v7826_v31 = vld [vmem:[%s12353_s3 + $0x4f8] sm:$0xff]  ;;  %v7801_v32 = vld [vmem:[%s12353_s3 + $0x440] sm:$0xff] }
 0x147   : > { %1267 = vmatprep.subr.mxu0 %v8480_v0  ;;  %1363 = vmatprep.subr.mxu1 %v8480_v0 }
 0x148   : > { %1268 = vmatpush1.msra.mxu0 %v7761_v33  ;;  %1364 = vmatpush1.msra.mxu1 %v7785_v34  ;;  %v7825_v33 = vld [vmem:[%s12353_s3 + $0x4f0] sm:$0xff]  ;;  %v7800_v34 = vld [vmem:[%s12353_s3 + $0x438] sm:$0xff] }
 0x149   : > { %1269 = vmatprep.subr.mxu0 %v8480_v0  ;;  %1365 = vmatprep.subr.mxu1 %v8480_v0 }
 0x14a   : > { %1270 = vmatpush1.msra.mxu0 %v7760_v35  ;;  %1366 = vmatpush1.msra.mxu1 %v7784_v36  ;;  %v7824_v35 = vld [vmem:[%s12353_s3 + $0x4e8] sm:$0xff]  ;;  %v7799_v36 = vld [vmem:[%s12353_s3 + $0x430] sm:$0xff] }
 0x14b   : > { %1271 = vmatprep.subr.mxu0 %v8480_v0  ;;  %1367 = vmatprep.subr.mxu1 %v8480_v0 }
 0x14c   : > { %1272 = vmatpush1.msra.mxu0 %v7759_v37  ;;  %1368 = vmatpush1.msra.mxu1 %v7783_v38  ;;  %v7823_v37 = vld [vmem:[%s12353_s3 + $0x4e0] sm:$0xff]  ;;  %v7798_v38 = vld [vmem:[%s12353_s3 + $0x428] sm:$0xff] }
 0x14d   : > { %1273 = vmatprep.subr.mxu0 %v8480_v0  ;;  %1369 = vmatprep.subr.mxu1 %v8480_v0 }
 0x14e   : > { %1274 = vmatpush1.msra.mxu0 %v7758_v39  ;;  %1370 = vmatpush1.msra.mxu1 %v7782_v40  ;;  %v7822_v39 = vld [vmem:[%s12353_s3 + $0x4d8] sm:$0xff]  ;;  %v7797_v40 = vld [vmem:[%s12353_s3 + $0x420] sm:$0xff] }
 0x14f   : > { %1275 = vmatprep.subr.mxu0 %v8480_v0  ;;  %1371 = vmatprep.subr.mxu1 %v8480_v0 }
 0x150   : > { %1276 = vmatpush1.msra.mxu0 %v7757_v41  ;;  %1372 = vmatpush1.msra.mxu1 %v7781_v42  ;;  %v7821_v41 = vld [vmem:[%s12353_s3 + $0x4d0] sm:$0xff]  ;;  %v7818_v42 = vld [vmem:[%s12353_s3 + $0x4c8] sm:$0x1] }
 0x151   : > { %1277 = vmatprep.subr.mxu0 %v8480_v0  ;;  %1373 = vmatprep.subr.mxu1 %v8480_v0 }
 0x152   : > { %1278 = vmatpush1.msra.mxu0 %v7756_v43  ;;  %1374 = vmatpush1.msra.mxu1 %v7780_v46  ;;  %v7842_v43 = vld [vmem:[%s12353_s3 + $0x578] sm:$0x1]  ;;  %v7817_v46 = vld [vmem:[%s12353_s3 + $0x4c0] sm:$0xff] }
 0x153   : > { %1279 = vmatprep.subr.mxu0 %v8480_v0  ;;  %1375 = vmatprep.subr.mxu1 %v8480_v0 }
 0x154   : > { %1280 = vmatpush1.msra.mxu0 %v7755_v47  ;;  %1376 = vmatpush1.msra.mxu1 %v7779_v48  ;;  %v7841_v47 = vld [vmem:[%s12353_s3 + $0x570] sm:$0xff]  ;;  %v7816_v48 = vld [vmem:[%s12353_s3 + $0x4b8] sm:$0xff] }
 0x155   : > { %1281 = vmatprep.subr.mxu0 %v8480_v0  ;;  %1377 = vmatprep.subr.mxu1 %v8480_v0 }
 0x156   : > { %1282 = vmatpush1.msra.mxu0 %v7754_v49  ;;  %1378 = vmatpush1.msra.mxu1 %v7778_v50  ;;  %v7840_v49 = vld [vmem:[%s12353_s3 + $0x568] sm:$0xff]  ;;  %v7815_v50 = vld [vmem:[%s12353_s3 + $0x4b0] sm:$0xff] }
 0x157   : > { %1283 = vmatprep.subr.mxu0 %v8480_v0  ;;  %1379 = vmatprep.subr.mxu1 %v8480_v0 }
 0x158   : > { %1284 = vmatpush1.msra.mxu0 %v7753_v51  ;;  %1380 = vmatpush1.msra.mxu1 %v7777_v52  ;;  %v7839_v51 = vld [vmem:[%s12353_s3 + $0x560] sm:$0xff]  ;;  %v7814_v52 = vld [vmem:[%s12353_s3 + $0x4a8] sm:$0xff] }
 0x159   : > { %1285 = vmatprep.subr.mxu0 %v8480_v0  ;;  %1381 = vmatprep.subr.mxu1 %v8480_v0 }
 0x15a   : > { %1286 = vmatpush1.msra.mxu0 %v7752_v53  ;;  %1382 = vmatpush1.msra.mxu1 %v7776_v54  ;;  %v7838_v53 = vld [vmem:[%s12353_s3 + $0x558] sm:$0xff]  ;;  %v7813_v54 = vld [vmem:[%s12353_s3 + $0x4a0] sm:$0xff] }
 0x15b   : > { %1287 = vmatprep.subr.mxu0 %v8480_v0  ;;  %1383 = vmatprep.subr.mxu1 %v8480_v0 }
 0x15c   : > { %1288 = vmatpush1.msra.mxu0 %v7751_v55  ;;  %1384 = vmatpush1.msra.mxu1 %v7775_v56  ;;  %v7837_v55 = vld [vmem:[%s12353_s3 + $0x550] sm:$0xff]  ;;  %v7860_v56 = vld [vmem:[%s12353_s3 + $0x5f8] sm:$0xff] }
 0x15d   : > { %1289 = vmatprep.subr.mxu0 %v8480_v0  ;;  %1385 = vmatprep.subr.mxu1 %v8480_v0 }
 0x15e   : > { %1290 = vmatpush1.msra.mxu0 %v7750_v57  ;;  %1386 = vmatpush1.msra.mxu1 %v7774_v58  ;;  %v7884_v57 = vld [vmem:[%s12353_s3 + $0x6a8] sm:$0xff]  ;;  %v7859_v58 = vld [vmem:[%s12353_s3 + $0x5f0] sm:$0xff] }
 0x15f   : > { %1291 = vmatprep.subr.mxu0 %v8480_v0  ;;  %1387 = vmatprep.subr.mxu1 %v8480_v0 }
 0x160   : > { %1292 = vmatpush1.msra.mxu0 %v7749_v59  ;;  %1388 = vmatpush1.msra.mxu1 %v7773_v60  ;;  %v7883_v59 = vld [vmem:[%s12353_s3 + $0x6a0] sm:$0xff]  ;;  %v7858_v60 = vld [vmem:[%s12353_s3 + $0x5e8] sm:$0xff] }
 0x161   : > { %1313 = vmatprep.subr.mxu0 %v8480_v0  ;;  %1409 = vmatprep.subr.mxu1 %v8480_v0 }
 0x162   : > { %7771 = vmatpush2.msk.msra.mxu0 %vm873_vm2, %v7770_v61  ;;  %7795 = vmatpush2.msk.msra.mxu1 %vm873_vm2, %v7794_v62  ;;  %v7882_v61 = vld [vmem:[%s12353_s3 + $0x698] sm:$0xff]  ;;  %v7857_v62 = vld [vmem:[%s12353_s3 + $0x5e0] sm:$0xff] }
 0x163   : > { %1315 = vmatprep.subr.mxu0 %v8480_v0  ;;  %1411 = vmatprep.subr.mxu1 %v8480_v0 }
 0x164   : > { %1316 = vmatpush2.msra.mxu0 %v7769_v63  ;;  %1412 = vmatpush2.msra.mxu1 %v7793_v1  ;;  %v7881_v63 = vld [vmem:[%s12353_s3 + $0x690] sm:$0xff]  ;;  %v7856_v1 = vld [vmem:[%s12353_s3 + $0x5d8] sm:$0xff] }
 0x165   : > { %1317 = vmatprep.subr.mxu0 %v8480_v0  ;;  %1413 = vmatprep.subr.mxu1 %v8480_v0 }
 0x166   : > { %1318 = vmatpush2.msra.mxu0 %v7768_v2  ;;  %1414 = vmatpush2.msra.mxu1 %v7792_v3  ;;  %v7880_v2 = vld [vmem:[%s12353_s3 + $0x688] sm:$0xff]  ;;  %v7855_v3 = vld [vmem:[%s12353_s3 + $0x5d0] sm:$0xff] }
 0x167   : > { %1319 = vmatprep.subr.mxu0 %v8480_v0  ;;  %1415 = vmatprep.subr.mxu1 %v8480_v0 }
 0x168   : > { %1320 = vmatpush2.msra.mxu0 %v7767_v4  ;;  %1416 = vmatpush2.msra.mxu1 %v7791_v5  ;;  %v7879_v4 = vld [vmem:[%s12353_s3 + $0x680] sm:$0xff]  ;;  %v7854_v5 = vld [vmem:[%s12353_s3 + $0x5c8] sm:$0xff] }
 0x169   : > { %1321 = vmatprep.subr.mxu0 %v8480_v0  ;;  %1417 = vmatprep.subr.mxu1 %v8480_v0 }
 0x16a   : > { %1322 = vmatpush2.msra.mxu0 %v7766_v6  ;;  %1418 = vmatpush2.msra.mxu1 %v7790_v7  ;;  %v7878_v6 = vld [vmem:[%s12353_s3 + $0x678] sm:$0xff]  ;;  %v7853_v7 = vld [vmem:[%s12353_s3 + $0x5c0] sm:$0xff] }
 0x16b   : > { %1323 = vmatprep.subr.mxu0 %v8480_v0  ;;  %1419 = vmatprep.subr.mxu1 %v8480_v0 }
 0x16c   : > { %1324 = vmatpush2.msra.mxu0 %v7765_v8  ;;  %1420 = vmatpush2.msra.mxu1 %v7789_v9  ;;  %v7877_v8 = vld [vmem:[%s12353_s3 + $0x670] sm:$0xff]  ;;  %v7852_v9 = vld [vmem:[%s12353_s3 + $0x5b8] sm:$0xff] }
 0x16d   : > { %1326 = vmatmul.mubr.f32.vlgmr.msra.gmra.mxu0 %v8885_v45  ;;  %1422 = vmatmul.mubr.f32.vlgmr.msra.gmra.mxu1 %v8885_v45 }
 0x16e   : > { %1453 = vmatprep.subr.mxu0 %v8480_v0  ;;  %1549 = vmatprep.subr.mxu1 %v8480_v0 }
 0x16f   : > { %1454 = vmatpush1.msra.mxu0 %v7812_v10  ;;  %7820 = vmatprep.mubr.msk.f32.mxu0 %vm869_vm3, %v8883_v44  ;;  %v7876_v10 = vld [vmem:[%s12353_s3 + $0x668] sm:$0xff] }
 0x170   : > { %1550 = vmatpush1.msra.mxu1 %v7836_v11  ;;  %7844 = vmatprep.mubr.msk.f32.mxu1 %vm869_vm3, %v8883_v44  ;;  %v7851_v11 = vld [vmem:[%s12353_s3 + $0x5b0] sm:$0xff] }
 0x171   : > { %1455 = vmatprep.subr.mxu0 %v8480_v0  ;;  %1551 = vmatprep.subr.mxu1 %v8480_v0 }
 0x172   : > { %1456 = vmatpush1.msra.mxu0 %v7811_v12  ;;  %1552 = vmatpush1.msra.mxu1 %v7835_v13  ;;  %v7875_v12 = vld [vmem:[%s12353_s3 + $0x660] sm:$0xff]  ;;  %v7850_v13 = vld [vmem:[%s12353_s3 + $0x5a8] sm:$0xff] }
 0x173   : > { %1457 = vmatprep.subr.mxu0 %v8480_v0  ;;  %1553 = vmatprep.subr.mxu1 %v8480_v0 }
 0x174   : > { %1458 = vmatpush1.msra.mxu0 %v7810_v14  ;;  %1554 = vmatpush1.msra.mxu1 %v7834_v15  ;;  %v7874_v14 = vld [vmem:[%s12353_s3 + $0x658] sm:$0xff]  ;;  %v7849_v15 = vld [vmem:[%s12353_s3 + $0x5a0] sm:$0xff] }
 0x175   : > { %1459 = vmatprep.subr.mxu0 %v8480_v0  ;;  %1555 = vmatprep.subr.mxu1 %v8480_v0 }
 0x176   : > { %1460 = vmatpush1.msra.mxu0 %v7809_v16  ;;  %1556 = vmatpush1.msra.mxu1 %v7833_v17  ;;  %v7873_v16 = vld [vmem:[%s12353_s3 + $0x650] sm:$0xff]  ;;  %v7848_v17 = vld [vmem:[%s12353_s3 + $0x598] sm:$0xff] }
 0x177   : > { %1461 = vmatprep.subr.mxu0 %v8480_v0  ;;  %1557 = vmatprep.subr.mxu1 %v8480_v0 }
 0x178   : > { %1462 = vmatpush1.msra.mxu0 %v7808_v18  ;;  %1558 = vmatpush1.msra.mxu1 %v7832_v19  ;;  %v7872_v18 = vld [vmem:[%s12353_s3 + $0x648] sm:$0xff]  ;;  %v7847_v19 = vld [vmem:[%s12353_s3 + $0x590] sm:$0xff] }
 0x179   : > { %1463 = vmatprep.subr.mxu0 %v8480_v0  ;;  %1559 = vmatprep.subr.mxu1 %v8480_v0 }
 0x17a   : > { %1464 = vmatpush1.msra.mxu0 %v7807_v20  ;;  %1560 = vmatpush1.msra.mxu1 %v7831_v21  ;;  %v7871_v20 = vld [vmem:[%s12353_s3 + $0x640] sm:$0xff]  ;;  %v7846_v21 = vld [vmem:[%s12353_s3 + $0x588] sm:$0xff] }
 0x17b   : > { %1465 = vmatprep.subr.mxu0 %v8480_v0  ;;  %1561 = vmatprep.subr.mxu1 %v8480_v0 }
 0x17c   : > { %1466 = vmatpush1.msra.mxu0 %v7806_v22  ;;  %1562 = vmatpush1.msra.mxu1 %v7830_v23  ;;  %v7870_v22 = vld [vmem:[%s12353_s3 + $0x638] sm:$0xff]  ;;  %v7845_v23 = vld [vmem:[%s12353_s3 + $0x580] sm:$0xff] }
 0x17d   : > { %1467 = vmatprep.subr.mxu0 %v8480_v0  ;;  %1563 = vmatprep.subr.mxu1 %v8480_v0 }
 0x17e   : > { %1468 = vmatpush1.msra.mxu0 %v7805_v24  ;;  %1564 = vmatpush1.msra.mxu1 %v7829_v25  ;;  %v7869_v24 = vld [vmem:[%s12353_s3 + $0x630] sm:$0xff]  ;;  %v7866_v25 = vld [vmem:[%s12353_s3 + $0x628] sm:$0x1] }
 0x17f   : > { %1469 = vmatprep.subr.mxu0 %v8480_v0  ;;  %1565 = vmatprep.subr.mxu1 %v8480_v0 }
 0x180   : > { %1470 = vmatpush1.msra.mxu0 %v7804_v26  ;;  %1566 = vmatpush1.msra.mxu1 %v7828_v27  ;;  %v7890_v26 = vld [vmem:[%s12353_s3 + $0x6d8] sm:$0x1]  ;;  %v7865_v27 = vld [vmem:[%s12353_s3 + $0x620] sm:$0xff] }
 0x181   : > { %1471 = vmatprep.subr.mxu0 %v8480_v0  ;;  %1567 = vmatprep.subr.mxu1 %v8480_v0 }
 0x182   : > { %1472 = vmatpush1.msra.mxu0 %v7803_v28  ;;  %1568 = vmatpush1.msra.mxu1 %v7827_v29  ;;  %v7889_v28 = vld [vmem:[%s12353_s3 + $0x6d0] sm:$0xff]  ;;  %v7864_v29 = vld [vmem:[%s12353_s3 + $0x618] sm:$0xff] }
 0x183   : > { %1473 = vmatprep.subr.mxu0 %v8480_v0  ;;  %1569 = vmatprep.subr.mxu1 %v8480_v0 }
 0x184   : > { %1474 = vmatpush1.msra.mxu0 %v7802_v30  ;;  %1570 = vmatpush1.msra.mxu1 %v7826_v31  ;;  %v7888_v30 = vld [vmem:[%s12353_s3 + $0x6c8] sm:$0xff]  ;;  %v7863_v31 = vld [vmem:[%s12353_s3 + $0x610] sm:$0xff] }
 0x185   : > { %1475 = vmatprep.subr.mxu0 %v8480_v0  ;;  %1571 = vmatprep.subr.mxu1 %v8480_v0 }
 0x186   : > { %1476 = vmatpush1.msra.mxu0 %v7801_v32  ;;  %1572 = vmatpush1.msra.mxu1 %v7825_v33  ;;  %v7887_v32 = vld [vmem:[%s12353_s3 + $0x6c0] sm:$0xff]  ;;  %v7862_v33 = vld [vmem:[%s12353_s3 + $0x608] sm:$0xff] }
 0x187   : > { %1477 = vmatprep.subr.mxu0 %v8480_v0  ;;  %1573 = vmatprep.subr.mxu1 %v8480_v0 }
 0x188   : > { %1478 = vmatpush1.msra.mxu0 %v7800_v34  ;;  %1574 = vmatpush1.msra.mxu1 %v7824_v35  ;;  %v7886_v34 = vld [vmem:[%s12353_s3 + $0x6b8] sm:$0xff]  ;;  %v7861_v35 = vld [vmem:[%s12353_s3 + $0x600] sm:$0xff] }
 0x189   : > { %1479 = vmatprep.subr.mxu0 %v8480_v0  ;;  %1575 = vmatprep.subr.mxu1 %v8480_v0 }
 0x18a   : > { %1480 = vmatpush1.msra.mxu0 %v7799_v36  ;;  %1576 = vmatpush1.msra.mxu1 %v7823_v37  ;;  %v7885_v36 = vld [vmem:[%s12353_s3 + $0x6b0] sm:$0xff]  ;;  %v7908_v37 = vld [vmem:[%s12353_s3 + $0x758] sm:$0xff] }
 0x18b   : > { %1481 = vmatprep.subr.mxu0 %v8480_v0  ;;  %1577 = vmatprep.subr.mxu1 %v8480_v0 }
 0x18c   : > { %1482 = vmatpush1.msra.mxu0 %v7798_v38  ;;  %1578 = vmatpush1.msra.mxu1 %v7822_v39  ;;  %v7932_v38 = vld [vmem:[%s12353_s3 + $0x808] sm:$0xff]  ;;  %v7907_v39 = vld [vmem:[%s12353_s3 + $0x750] sm:$0xff] }
 0x18d   : > { %1483 = vmatprep.subr.mxu0 %v8480_v0  ;;  %1579 = vmatprep.subr.mxu1 %v8480_v0 }
 0x18e   : > { %1484 = vmatpush1.msra.mxu0 %v7797_v40  ;;  %1580 = vmatpush1.msra.mxu1 %v7821_v41  ;;  %v7931_v40 = vld [vmem:[%s12353_s3 + $0x800] sm:$0xff]  ;;  %v7906_v41 = vld [vmem:[%s12353_s3 + $0x748] sm:$0xff] }
 0x18f   : > { %1505 = vmatprep.subr.mxu0 %v8480_v0  ;;  %1601 = vmatprep.subr.mxu1 %v8480_v0 }
 0x190   : > { %7819 = vmatpush2.msk.msra.mxu0 %vm873_vm2, %v7818_v42  ;;  %7843 = vmatpush2.msk.msra.mxu1 %vm873_vm2, %v7842_v43  ;;  %v7930_v42 = vld [vmem:[%s12353_s3 + $0x7f8] sm:$0xff]  ;;  %v7905_v43 = vld [vmem:[%s12353_s3 + $0x740] sm:$0xff] }
 0x191   : > { %1507 = vmatprep.subr.mxu0 %v8480_v0  ;;  %1603 = vmatprep.subr.mxu1 %v8480_v0 }
 0x192   : > { %1508 = vmatpush2.msra.mxu0 %v7817_v46  ;;  %1604 = vmatpush2.msra.mxu1 %v7841_v47  ;;  %v7929_v46 = vld [vmem:[%s12353_s3 + $0x7f0] sm:$0xff]  ;;  %v7904_v47 = vld [vmem:[%s12353_s3 + $0x738] sm:$0xff] }
 0x193   : > { %1509 = vmatprep.subr.mxu0 %v8480_v0  ;;  %1605 = vmatprep.subr.mxu1 %v8480_v0 }
 0x194   : > { %1510 = vmatpush2.msra.mxu0 %v7816_v48  ;;  %1606 = vmatpush2.msra.mxu1 %v7840_v49  ;;  %v7928_v48 = vld [vmem:[%s12353_s3 + $0x7e8] sm:$0xff] }
 0x195   : > { %1511 = vmatprep.subr.mxu0 %v8480_v0  ;;  %1607 = vmatprep.subr.mxu1 %v8480_v0 }
 0x196   : > { %1512 = vmatpush2.msra.mxu0 %v7815_v50  ;;  %1608 = vmatpush2.msra.mxu1 %v7839_v51  ;;  %v7903_v51 = vld [vmem:[%s12353_s3 + $0x730] sm:$0xff] }
 0x197   : > { %1513 = vmatprep.subr.mxu0 %v8480_v0  ;;  %1609 = vmatprep.subr.mxu1 %v8480_v0 }
 0x198   : > { %1514 = vmatpush2.msra.mxu0 %v7814_v52  ;;  %1610 = vmatpush2.msra.mxu1 %v7838_v53  ;;  %v7927_v52 = vld [vmem:[%s12353_s3 + $0x7e0] sm:$0xff] }
 0x199   : > { %1515 = vmatprep.subr.mxu0 %v8480_v0  ;;  %1611 = vmatprep.subr.mxu1 %v8480_v0 }
 0x19a   : > { %1516 = vmatpush2.msra.mxu0 %v7813_v54  ;;  %1612 = vmatpush2.msra.mxu1 %v7837_v55  ;;  %v7902_v55 = vld [vmem:[%s12353_s3 + $0x728] sm:$0xff] }
 0x19b   : > { %1518 = vmatmul.mubr.f32.vlgmr.msra.gmra.mxu0 %v8885_v45  ;;  %1614 = vmatmul.mubr.f32.vlgmr.msra.gmra.mxu1 %v8885_v45 }
 0x19c   : > { %1645 = vmatprep.subr.mxu0 %v8480_v0  ;;  %1741 = vmatprep.subr.mxu1 %v8480_v0 }
 0x19d   : > { %1646 = vmatpush1.msra.mxu0 %v7860_v56  ;;  %7868 = vmatprep.mubr.msk.f32.mxu0 %vm869_vm3, %v8883_v44  ;;  %v7926_v56 = vld [vmem:[%s12353_s3 + $0x7d8] sm:$0xff] }
 0x19e   : > { %1742 = vmatpush1.msra.mxu1 %v7884_v57  ;;  %7892 = vmatprep.mubr.msk.f32.mxu1 %vm869_vm3, %v8883_v44  ;;  %v7901_v57 = vld [vmem:[%s12353_s3 + $0x720] sm:$0xff] }
 0x19f   : > { %1647 = vmatprep.subr.mxu0 %v8480_v0  ;;  %1743 = vmatprep.subr.mxu1 %v8480_v0 }
 0x1a0   : > { %1648 = vmatpush1.msra.mxu0 %v7859_v58  ;;  %1744 = vmatpush1.msra.mxu1 %v7883_v59  ;;  %v7925_v58 = vld [vmem:[%s12353_s3 + $0x7d0] sm:$0xff]  ;;  %v7900_v59 = vld [vmem:[%s12353_s3 + $0x718] sm:$0xff] }
 0x1a1   : > { %1649 = vmatprep.subr.mxu0 %v8480_v0  ;;  %1745 = vmatprep.subr.mxu1 %v8480_v0 }
 0x1a2   : > { %1650 = vmatpush1.msra.mxu0 %v7858_v60  ;;  %1746 = vmatpush1.msra.mxu1 %v7882_v61  ;;  %v7924_v60 = vld [vmem:[%s12353_s3 + $0x7c8] sm:$0xff]  ;;  %v7899_v61 = vld [vmem:[%s12353_s3 + $0x710] sm:$0xff] }
 0x1a3   : > { %1651 = vmatprep.subr.mxu0 %v8480_v0  ;;  %1747 = vmatprep.subr.mxu1 %v8480_v0 }
 0x1a4   : > { %1652 = vmatpush1.msra.mxu0 %v7857_v62  ;;  %1748 = vmatpush1.msra.mxu1 %v7881_v63  ;;  %v7923_v62 = vld [vmem:[%s12353_s3 + $0x7c0] sm:$0xff]  ;;  %v7898_v63 = vld [vmem:[%s12353_s3 + $0x708] sm:$0xff] }
 0x1a5   : > { %1653 = vmatprep.subr.mxu0 %v8480_v0  ;;  %1749 = vmatprep.subr.mxu1 %v8480_v0 }
 0x1a6   : > { %1654 = vmatpush1.msra.mxu0 %v7856_v1  ;;  %1750 = vmatpush1.msra.mxu1 %v7880_v2  ;;  %v7922_v1 = vld [vmem:[%s12353_s3 + $0x7b8] sm:$0xff]  ;;  %v7897_v2 = vld [vmem:[%s12353_s3 + $0x700] sm:$0xff] }
 0x1a7   : > { %1655 = vmatprep.subr.mxu0 %v8480_v0  ;;  %1751 = vmatprep.subr.mxu1 %v8480_v0 }
 0x1a8   : > { %1656 = vmatpush1.msra.mxu0 %v7855_v3  ;;  %1752 = vmatpush1.msra.mxu1 %v7879_v4  ;;  %v7921_v3 = vld [vmem:[%s12353_s3 + $0x7b0] sm:$0xff]  ;;  %v7896_v4 = vld [vmem:[%s12353_s3 + $0x6f8] sm:$0xff] }
 0x1a9   : > { %1657 = vmatprep.subr.mxu0 %v8480_v0  ;;  %1753 = vmatprep.subr.mxu1 %v8480_v0 }
 0x1aa   : > { %1658 = vmatpush1.msra.mxu0 %v7854_v5  ;;  %1754 = vmatpush1.msra.mxu1 %v7878_v6  ;;  %v7920_v5 = vld [vmem:[%s12353_s3 + $0x7a8] sm:$0xff]  ;;  %v7895_v6 = vld [vmem:[%s12353_s3 + $0x6f0] sm:$0xff] }
 0x1ab   : > { %1659 = vmatprep.subr.mxu0 %v8480_v0  ;;  %1755 = vmatprep.subr.mxu1 %v8480_v0 }
 0x1ac   : > { %1660 = vmatpush1.msra.mxu0 %v7853_v7  ;;  %1756 = vmatpush1.msra.mxu1 %v7877_v8  ;;  %v7919_v7 = vld [vmem:[%s12353_s3 + $0x7a0] sm:$0xff]  ;;  %v7894_v8 = vld [vmem:[%s12353_s3 + $0x6e8] sm:$0xff] }
 0x1ad   : > { %1661 = vmatprep.subr.mxu0 %v8480_v0  ;;  %1757 = vmatprep.subr.mxu1 %v8480_v0 }
 0x1ae   : > { %1662 = vmatpush1.msra.mxu0 %v7852_v9  ;;  %1758 = vmatpush1.msra.mxu1 %v7876_v10  ;;  %v7918_v9 = vld [vmem:[%s12353_s3 + $0x798] sm:$0xff]  ;;  %v7893_v10 = vld [vmem:[%s12353_s3 + $0x6e0] sm:$0xff] }
 0x1af   : > { %1663 = vmatprep.subr.mxu0 %v8480_v0  ;;  %1759 = vmatprep.subr.mxu1 %v8480_v0 }
 0x1b0   : > { %1664 = vmatpush1.msra.mxu0 %v7851_v11  ;;  %1760 = vmatpush1.msra.mxu1 %v7875_v12  ;;  %v7917_v11 = vld [vmem:[%s12353_s3 + $0x790] sm:$0xff]  ;;  %v7914_v12 = vld [vmem:[%s12353_s3 + $0x788] sm:$0x1] }
 0x1b1   : > { %1665 = vmatprep.subr.mxu0 %v8480_v0  ;;  %1761 = vmatprep.subr.mxu1 %v8480_v0 }
 0x1b2   : > { %1666 = vmatpush1.msra.mxu0 %v7850_v13  ;;  %1762 = vmatpush1.msra.mxu1 %v7874_v14  ;;  %v7938_v13 = vld [vmem:[%s12353_s3 + $0x838] sm:$0x1]  ;;  %v7913_v14 = vld [vmem:[%s12353_s3 + $0x780] sm:$0xff] }
 0x1b3   : > { %1667 = vmatprep.subr.mxu0 %v8480_v0  ;;  %1763 = vmatprep.subr.mxu1 %v8480_v0 }
 0x1b4   : > { %1668 = vmatpush1.msra.mxu0 %v7849_v15  ;;  %1764 = vmatpush1.msra.mxu1 %v7873_v16  ;;  %v7937_v15 = vld [vmem:[%s12353_s3 + $0x830] sm:$0xff]  ;;  %v7912_v16 = vld [vmem:[%s12353_s3 + $0x778] sm:$0xff] }
 0x1b5   : > { %1669 = vmatprep.subr.mxu0 %v8480_v0  ;;  %1765 = vmatprep.subr.mxu1 %v8480_v0 }
 0x1b6   : > { %1670 = vmatpush1.msra.mxu0 %v7848_v17  ;;  %1766 = vmatpush1.msra.mxu1 %v7872_v18  ;;  %v7936_v17 = vld [vmem:[%s12353_s3 + $0x828] sm:$0xff]  ;;  %v7911_v18 = vld [vmem:[%s12353_s3 + $0x770] sm:$0xff] }
 0x1b7   : > { %1671 = vmatprep.subr.mxu0 %v8480_v0  ;;  %1767 = vmatprep.subr.mxu1 %v8480_v0 }
 0x1b8   : > { %1672 = vmatpush1.msra.mxu0 %v7847_v19  ;;  %1768 = vmatpush1.msra.mxu1 %v7871_v20  ;;  %v7935_v19 = vld [vmem:[%s12353_s3 + $0x820] sm:$0xff]  ;;  %v7910_v20 = vld [vmem:[%s12353_s3 + $0x768] sm:$0xff] }
 0x1b9   : > { %1673 = vmatprep.subr.mxu0 %v8480_v0  ;;  %1769 = vmatprep.subr.mxu1 %v8480_v0 }
 0x1ba   : > { %1674 = vmatpush1.msra.mxu0 %v7846_v21  ;;  %1770 = vmatpush1.msra.mxu1 %v7870_v22  ;;  %v7934_v21 = vld [vmem:[%s12353_s3 + $0x818] sm:$0xff]  ;;  %v7909_v22 = vld [vmem:[%s12353_s3 + $0x760] sm:$0xff] }
 0x1bb   : > { %1675 = vmatprep.subr.mxu0 %v8480_v0  ;;  %1771 = vmatprep.subr.mxu1 %v8480_v0 }
 0x1bc   : > { %1676 = vmatpush1.msra.mxu0 %v7845_v23  ;;  %1772 = vmatpush1.msra.mxu1 %v7869_v24  ;;  %v7933_v23 = vld [vmem:[%s12353_s3 + $0x810] sm:$0xff]  ;;  %v7956_v24 = vld [vmem:[%s12353_s3 + $0x8b8] sm:$0xff] }
 0x1bd   : > { %1697 = vmatprep.subr.mxu0 %v8480_v0  ;;  %1793 = vmatprep.subr.mxu1 %v8480_v0 }
 0x1be   : > { %7867 = vmatpush2.msk.msra.mxu0 %vm873_vm2, %v7866_v25  ;;  %7891 = vmatpush2.msk.msra.mxu1 %vm873_vm2, %v7890_v26  ;;  %v7980_v25 = vld [vmem:[%s12353_s3 + $0x968] sm:$0xff]  ;;  %v7955_v26 = vld [vmem:[%s12353_s3 + $0x8b0] sm:$0xff] }
 0x1bf   : > { %1699 = vmatprep.subr.mxu0 %v8480_v0  ;;  %1795 = vmatprep.subr.mxu1 %v8480_v0 }
 0x1c0   : > { %1700 = vmatpush2.msra.mxu0 %v7865_v27  ;;  %1796 = vmatpush2.msra.mxu1 %v7889_v28  ;;  %v7979_v27 = vld [vmem:[%s12353_s3 + $0x960] sm:$0xff]  ;;  %v7954_v28 = vld [vmem:[%s12353_s3 + $0x8a8] sm:$0xff] }
 0x1c1   : > { %1701 = vmatprep.subr.mxu0 %v8480_v0  ;;  %1797 = vmatprep.subr.mxu1 %v8480_v0 }
 0x1c2   : > { %1702 = vmatpush2.msra.mxu0 %v7864_v29  ;;  %1798 = vmatpush2.msra.mxu1 %v7888_v30  ;;  %v7978_v29 = vld [vmem:[%s12353_s3 + $0x958] sm:$0xff]  ;;  %v7953_v30 = vld [vmem:[%s12353_s3 + $0x8a0] sm:$0xff] }
 0x1c3   : > { %1703 = vmatprep.subr.mxu0 %v8480_v0  ;;  %1799 = vmatprep.subr.mxu1 %v8480_v0 }
 0x1c4   : > { %1704 = vmatpush2.msra.mxu0 %v7863_v31  ;;  %1800 = vmatpush2.msra.mxu1 %v7887_v32  ;;  %v7977_v31 = vld [vmem:[%s12353_s3 + $0x950] sm:$0xff]  ;;  %v7952_v32 = vld [vmem:[%s12353_s3 + $0x898] sm:$0xff] }
 0x1c5   : > { %1705 = vmatprep.subr.mxu0 %v8480_v0  ;;  %1801 = vmatprep.subr.mxu1 %v8480_v0 }
 0x1c6   : > { %1706 = vmatpush2.msra.mxu0 %v7862_v33  ;;  %1802 = vmatpush2.msra.mxu1 %v7886_v34  ;;  %v7976_v33 = vld [vmem:[%s12353_s3 + $0x948] sm:$0xff] }
 0x1c7   : > { %1707 = vmatprep.subr.mxu0 %v8480_v0  ;;  %1803 = vmatprep.subr.mxu1 %v8480_v0 }
 0x1c8   : > { %1708 = vmatpush2.msra.mxu0 %v7861_v35  ;;  %1804 = vmatpush2.msra.mxu1 %v7885_v36  ;;  %v7951_v36 = vld [vmem:[%s12353_s3 + $0x890] sm:$0xff] }
 0x1c9   : > { %1710 = vmatmul.mubr.f32.vlgmr.msra.gmra.mxu0 %v8885_v45  ;;  %1806 = vmatmul.mubr.f32.vlgmr.msra.gmra.mxu1 %v8885_v45 }
 0x1ca   : > { %1837 = vmatprep.subr.mxu0 %v8480_v0  ;;  %1933 = vmatprep.subr.mxu1 %v8480_v0 }
 0x1cb   : > { %1838 = vmatpush1.msra.mxu0 %v7908_v37  ;;  %7916 = vmatprep.mubr.msk.f32.mxu0 %vm869_vm3, %v8883_v44  ;;  %v7975_v37 = vld [vmem:[%s12353_s3 + $0x940] sm:$0xff] }
 0x1cc   : > { %1934 = vmatpush1.msra.mxu1 %v7932_v38  ;;  %7940 = vmatprep.mubr.msk.f32.mxu1 %vm869_vm3, %v8883_v44 }
 0x1cd   : > { %1839 = vmatprep.subr.mxu0 %v8480_v0  ;;  %1935 = vmatprep.subr.mxu1 %v8480_v0 }
 0x1ce   : > { %1840 = vmatpush1.msra.mxu0 %v7907_v39  ;;  %1936 = vmatpush1.msra.mxu1 %v7931_v40  ;;  %v7950_v40 = vld [vmem:[%s12353_s3 + $0x888] sm:$0xff] }
 0x1cf   : > { %1841 = vmatprep.subr.mxu0 %v8480_v0  ;;  %1937 = vmatprep.subr.mxu1 %v8480_v0 }
 0x1d0   : > { %1842 = vmatpush1.msra.mxu0 %v7906_v41  ;;  %1938 = vmatpush1.msra.mxu1 %v7930_v42  ;;  %v7974_v41 = vld [vmem:[%s12353_s3 + $0x938] sm:$0xff]  ;;  %v7949_v42 = vld [vmem:[%s12353_s3 + $0x880] sm:$0xff] }
 0x1d1   : > { %1843 = vmatprep.subr.mxu0 %v8480_v0  ;;  %1939 = vmatprep.subr.mxu1 %v8480_v0 }
 0x1d2   : > { %1844 = vmatpush1.msra.mxu0 %v7905_v43  ;;  %1940 = vmatpush1.msra.mxu1 %v7929_v46  ;;  %v9669_v49 = vpop.f32.mrf.mxu0  ;;  %v9671_v50 = vpop.f32.mrf.mxu1  ;;  %v7973_v43 = vld [vmem:[%s12353_s3 + $0x930] sm:$0xff]  ;;  %v7948_v46 = vld [vmem:[%s12353_s3 + $0x878] sm:$0xff] }
 0x1d3   : > { %1845 = vmatprep.subr.mxu0 %v8480_v0  ;;  %1941 = vmatprep.subr.mxu1 %v8480_v0 }
 0x1d4   : > { %1846 = vmatpush1.msra.mxu0 %v7904_v47  ;;  %1942 = vmatpush1.msra.mxu1 %v7928_v48  ;;  %v945_v53 = vpop.f32.mrf.mxu0  ;;  %v1041_v54 = vpop.f32.mrf.mxu1  ;;  %v7972_v47 = vld [vmem:[%s12353_s3 + $0x928] sm:$0xff]  ;;  %v7947_v48 = vld [vmem:[%s12353_s3 + $0x870] sm:$0xff] }
 0x1d5   : > { %1847 = vmatprep.subr.mxu0 %v8480_v0  ;;  %1943 = vmatprep.subr.mxu1 %v8480_v0  ;;  %v7970_v53 = vld [vmem:[%s12353_s3 + $0x918] sm:$0xff]  ;;  %v7945_v54 = vld [vmem:[%s12353_s3 + $0x860] sm:$0xff] }
 0x1d6   : > { %1848 = vmatpush1.msra.mxu0 %v7903_v51  ;;  %1944 = vmatpush1.msra.mxu1 %v7927_v52  ;;  %v7971_v51 = vld [vmem:[%s12353_s3 + $0x920] sm:$0xff]  ;;  %v7946_v52 = vld [vmem:[%s12353_s3 + $0x868] sm:$0xff] }
 0x1d7   : > { %1849 = vmatprep.subr.mxu0 %v8480_v0  ;;  %1945 = vmatprep.subr.mxu1 %v8480_v0 }
 0x1d8   : > { %1850 = vmatpush1.msra.mxu0 %v7902_v55  ;;  %1946 = vmatpush1.msra.mxu1 %v7926_v56  ;;  %v7969_v55 = vld [vmem:[%s12353_s3 + $0x910] sm:$0xff]  ;;  %v7944_v56 = vld [vmem:[%s12353_s3 + $0x858] sm:$0xff] }
 0x1d9   : > { %1851 = vmatprep.subr.mxu0 %v8480_v0  ;;  %1947 = vmatprep.subr.mxu1 %v8480_v0 }
 0x1da   : > { %1852 = vmatpush1.msra.mxu0 %v7901_v57  ;;  %1948 = vmatpush1.msra.mxu1 %v7925_v58  ;;  %v7968_v57 = vld [vmem:[%s12353_s3 + $0x908] sm:$0xff]  ;;  %v7943_v58 = vld [vmem:[%s12353_s3 + $0x850] sm:$0xff] }
 0x1db   : > { %1853 = vmatprep.subr.mxu0 %v8480_v0  ;;  %1949 = vmatprep.subr.mxu1 %v8480_v0 }
 0x1dc   : > { %1854 = vmatpush1.msra.mxu0 %v7900_v59  ;;  %1950 = vmatpush1.msra.mxu1 %v7924_v60  ;;  %v7967_v59 = vld [vmem:[%s12353_s3 + $0x900] sm:$0xff]  ;;  %v7942_v60 = vld [vmem:[%s12353_s3 + $0x848] sm:$0xff] }
 0x1dd   : > { %1855 = vmatprep.subr.mxu0 %v8480_v0  ;;  %1951 = vmatprep.subr.mxu1 %v8480_v0 }
 0x1de   : > { %1856 = vmatpush1.msra.mxu0 %v7899_v61  ;;  %1952 = vmatpush1.msra.mxu1 %v7923_v62  ;;  %v7966_v61 = vld [vmem:[%s12353_s3 + $0x8f8] sm:$0xff]  ;;  %v7941_v62 = vld [vmem:[%s12353_s3 + $0x840] sm:$0xff] }
 0x1df   : > { %1857 = vmatprep.subr.mxu0 %v8480_v0  ;;  %1953 = vmatprep.subr.mxu1 %v8480_v0 }
 0x1e0   : > { %1858 = vmatpush1.msra.mxu0 %v7898_v63  ;;  %1954 = vmatpush1.msra.mxu1 %v7922_v1  ;;  %v7965_v63 = vld [vmem:[%s12353_s3 + $0x8f0] sm:$0xff]  ;;  %v7962_v1 = vld [vmem:[%s12353_s3 + $0x8e8] sm:$0x1] }
 0x1e1   : > { %1859 = vmatprep.subr.mxu0 %v8480_v0  ;;  %1955 = vmatprep.subr.mxu1 %v8480_v0 }
 0x1e2   : > { %1860 = vmatpush1.msra.mxu0 %v7897_v2  ;;  %1956 = vmatpush1.msra.mxu1 %v7921_v3  ;;  %v7986_v2 = vld [vmem:[%s12353_s3 + $0x998] sm:$0x1]  ;;  %v7961_v3 = vld [vmem:[%s12353_s3 + $0x8e0] sm:$0xff] }
 0x1e3   : > { %1861 = vmatprep.subr.mxu0 %v8480_v0  ;;  %1957 = vmatprep.subr.mxu1 %v8480_v0 }
 0x1e4   : > { %1862 = vmatpush1.msra.mxu0 %v7896_v4  ;;  %1958 = vmatpush1.msra.mxu1 %v7920_v5  ;;  %v7985_v4 = vld [vmem:[%s12353_s3 + $0x990] sm:$0xff]  ;;  %v7960_v5 = vld [vmem:[%s12353_s3 + $0x8d8] sm:$0xff] }
 0x1e5   : > { %1863 = vmatprep.subr.mxu0 %v8480_v0  ;;  %1959 = vmatprep.subr.mxu1 %v8480_v0 }
 0x1e6   : > { %1864 = vmatpush1.msra.mxu0 %v7895_v6  ;;  %1960 = vmatpush1.msra.mxu1 %v7919_v7  ;;  %v7984_v6 = vld [vmem:[%s12353_s3 + $0x988] sm:$0xff]  ;;  %v7959_v7 = vld [vmem:[%s12353_s3 + $0x8d0] sm:$0xff] }
 0x1e7   : > { %1865 = vmatprep.subr.mxu0 %v8480_v0  ;;  %1961 = vmatprep.subr.mxu1 %v8480_v0 }
 0x1e8   : > { %1866 = vmatpush1.msra.mxu0 %v7894_v8  ;;  %1962 = vmatpush1.msra.mxu1 %v7918_v9  ;;  %v7983_v8 = vld [vmem:[%s12353_s3 + $0x980] sm:$0xff]  ;;  %v7958_v9 = vld [vmem:[%s12353_s3 + $0x8c8] sm:$0xff] }
 0x1e9   : > { %1867 = vmatprep.subr.mxu0 %v8480_v0  ;;  %1963 = vmatprep.subr.mxu1 %v8480_v0 }
 0x1ea   : > { %1868 = vmatpush1.msra.mxu0 %v7893_v10  ;;  %1964 = vmatpush1.msra.mxu1 %v7917_v11  ;;  %v7982_v10 = vld [vmem:[%s12353_s3 + $0x978] sm:$0xff]  ;;  %v7957_v11 = vld [vmem:[%s12353_s3 + $0x8c0] sm:$0xff] }
 0x1eb   : > { %1889 = vmatprep.subr.mxu0 %v8480_v0  ;;  %1985 = vmatprep.subr.mxu1 %v8480_v0 }
 0x1ec   : > { %7915 = vmatpush2.msk.msra.mxu0 %vm873_vm2, %v7914_v12  ;;  %7939 = vmatpush2.msk.msra.mxu1 %vm873_vm2, %v7938_v13  ;;  %v7981_v12 = vld [vmem:[%s12353_s3 + $0x970] sm:$0xff]  ;;  %v8004_v13 = vld [vmem:[%s12353_s3 + $0xa18] sm:$0xff] }
 0x1ed   : > { %1891 = vmatprep.subr.mxu0 %v8480_v0  ;;  %1987 = vmatprep.subr.mxu1 %v8480_v0 }
 0x1ee   : > { %1892 = vmatpush2.msra.mxu0 %v7913_v14  ;;  %1988 = vmatpush2.msra.mxu1 %v7937_v15  ;;  %v8028_v14 = vld [vmem:[%s12353_s3 + $0xac8] sm:$0xff]  ;;  %v8003_v15 = vld [vmem:[%s12353_s3 + $0xa10] sm:$0xff] }
 0x1ef   : > { %1893 = vmatprep.subr.mxu0 %v8480_v0  ;;  %1989 = vmatprep.subr.mxu1 %v8480_v0 }
 0x1f0   : > { %1894 = vmatpush2.msra.mxu0 %v7912_v16  ;;  %1990 = vmatpush2.msra.mxu1 %v7936_v17  ;;  %v8027_v16 = vld [vmem:[%s12353_s3 + $0xac0] sm:$0xff]  ;;  %v8002_v17 = vld [vmem:[%s12353_s3 + $0xa08] sm:$0xff] }
 0x1f1   : > { %1895 = vmatprep.subr.mxu0 %v8480_v0  ;;  %1991 = vmatprep.subr.mxu1 %v8480_v0 }
 0x1f2   : > { %1896 = vmatpush2.msra.mxu0 %v7911_v18  ;;  %1992 = vmatpush2.msra.mxu1 %v7935_v19  ;;  %v8026_v18 = vld [vmem:[%s12353_s3 + $0xab8] sm:$0xff]  ;;  %v8001_v19 = vld [vmem:[%s12353_s3 + $0xa00] sm:$0xff] }
 0x1f3   : > { %1897 = vmatprep.subr.mxu0 %v8480_v0  ;;  %1993 = vmatprep.subr.mxu1 %v8480_v0 }
 0x1f4   : > { %1898 = vmatpush2.msra.mxu0 %v7910_v20  ;;  %1994 = vmatpush2.msra.mxu1 %v7934_v21  ;;  %v8025_v20 = vld [vmem:[%s12353_s3 + $0xab0] sm:$0xff]  ;;  %v8000_v21 = vld [vmem:[%s12353_s3 + $0x9f8] sm:$0xff] }
 0x1f5   : > { %1899 = vmatprep.subr.mxu0 %v8480_v0  ;;  %1995 = vmatprep.subr.mxu1 %v8480_v0 }
 0x1f6   : > { %1900 = vmatpush2.msra.mxu0 %v7909_v22  ;;  %1996 = vmatpush2.msra.mxu1 %v7933_v23  ;;  %v8024_v22 = vld [vmem:[%s12353_s3 + $0xaa8] sm:$0xff] }
 0x1f7   : > { %1902 = vmatmul.mubr.f32.vlgmr.msra.gmra.mxu0 %v8885_v45  ;;  %1998 = vmatmul.mubr.f32.vlgmr.msra.gmra.mxu1 %v8885_v45 }
 0x1f8   : > { %2029 = vmatprep.subr.mxu0 %v8480_v0  ;;  %2125 = vmatprep.subr.mxu1 %v8480_v0 }
 0x1f9   : > { %2030 = vmatpush1.msra.mxu0 %v7956_v24  ;;  %7964 = vmatprep.mubr.msk.f32.mxu0 %vm869_vm3, %v8883_v44 }
 0x1fa   : > { %2126 = vmatpush1.msra.mxu1 %v7980_v25  ;;  %7988 = vmatprep.mubr.msk.f32.mxu1 %vm869_vm3, %v8883_v44  ;;  %v7999_v25 = vld [vmem:[%s12353_s3 + $0x9f0] sm:$0xff] }
 0x1fb   : > { %2031 = vmatprep.subr.mxu0 %v8480_v0  ;;  %2127 = vmatprep.subr.mxu1 %v8480_v0 }
 0x1fc   : > { %2032 = vmatpush1.msra.mxu0 %v7955_v26  ;;  %2128 = vmatpush1.msra.mxu1 %v7979_v27  ;;  %v8023_v26 = vld [vmem:[%s12353_s3 + $0xaa0] sm:$0xff] }
 0x1fd   : > { %2033 = vmatprep.subr.mxu0 %v8480_v0  ;;  %2129 = vmatprep.subr.mxu1 %v8480_v0 }
 0x1fe   : > { %2034 = vmatpush1.msra.mxu0 %v7954_v28  ;;  %2130 = vmatpush1.msra.mxu1 %v7978_v29  ;;  %v7998_v29 = vld [vmem:[%s12353_s3 + $0x9e8] sm:$0xff] }
 0x1ff   : > { %2035 = vmatprep.subr.mxu0 %v8480_v0  ;;  %2131 = vmatprep.subr.mxu1 %v8480_v0  ;;  %v9857_v34 = vpop.f32.mrf.mxu0  ;;  %v9859_v35 = vpop.f32.mrf.mxu1 }
 0x200   : > { %2036 = vmatpush1.msra.mxu0 %v7953_v30  ;;  %2132 = vmatpush1.msra.mxu1 %v7977_v31  ;;  %v8022_v30 = vld [vmem:[%s12353_s3 + $0xa98] sm:$0xff]  ;;  %v7997_v31 = vld [vmem:[%s12353_s3 + $0x9e0] sm:$0xff] }
 0x201   : > { %2037 = vmatprep.subr.mxu0 %v8480_v0  ;;  %2133 = vmatprep.subr.mxu1 %v8480_v0  ;;  %v1137_v38 = vpop.f32.mrf.mxu0  ;;  %v1233_v39 = vpop.f32.mrf.mxu1 }
 0x202   : > { %2038 = vmatpush1.msra.mxu0 %v7952_v32  ;;  %2134 = vmatpush1.msra.mxu1 %v7976_v33  ;;  %v8021_v32 = vld [vmem:[%s12353_s3 + $0xa90] sm:$0xff]  ;;  %v7996_v33 = vld [vmem:[%s12353_s3 + $0x9d8] sm:$0xff]  ;;  %v8019_v38 = vld [vmem:[%s12353_s3 + $0xa80] sm:$0xff] }
 0x203   : > { %2039 = vmatprep.subr.mxu0 %v8480_v0  ;;  %2135 = vmatprep.subr.mxu1 %v8480_v0  ;;  %v7994_v39 = vld [vmem:[%s12353_s3 + $0x9c8] sm:$0xff] }
 0x204   : > { %2040 = vmatpush1.msra.mxu0 %v7951_v36  ;;  %2136 = vmatpush1.msra.mxu1 %v7975_v37  ;;  %v8020_v36 = vld [vmem:[%s12353_s3 + $0xa88] sm:$0xff]  ;;  %v7995_v37 = vld [vmem:[%s12353_s3 + $0x9d0] sm:$0xff] }
 0x205   : > { %2041 = vmatprep.subr.mxu0 %v8480_v0  ;;  %2137 = vmatprep.subr.mxu1 %v8480_v0 }
 0x206   : > { %2042 = vmatpush1.msra.mxu0 %v7950_v40  ;;  %2138 = vmatpush1.msra.mxu1 %v7974_v41  ;;  %v8018_v40 = vld [vmem:[%s12353_s3 + $0xa78] sm:$0xff]  ;;  %v7993_v41 = vld [vmem:[%s12353_s3 + $0x9c0] sm:$0xff] }
 0x207   : > { %2043 = vmatprep.subr.mxu0 %v8480_v0  ;;  %2139 = vmatprep.subr.mxu1 %v8480_v0 }
 0x208   : > { %2044 = vmatpush1.msra.mxu0 %v7949_v42  ;;  %2140 = vmatpush1.msra.mxu1 %v7973_v43  ;;  %v8017_v42 = vld [vmem:[%s12353_s3 + $0xa70] sm:$0xff]  ;;  %v7992_v43 = vld [vmem:[%s12353_s3 + $0x9b8] sm:$0xff] }
 0x209   : > { %2045 = vmatprep.subr.mxu0 %v8480_v0  ;;  %2141 = vmatprep.subr.mxu1 %v8480_v0 }
 0x20a   : > { %2046 = vmatpush1.msra.mxu0 %v7948_v46  ;;  %2142 = vmatpush1.msra.mxu1 %v7972_v47  ;;  %v8016_v46 = vld [vmem:[%s12353_s3 + $0xa68] sm:$0xff]  ;;  %v7991_v47 = vld [vmem:[%s12353_s3 + $0x9b0] sm:$0xff] }
 0x20b   : > { %2047 = vmatprep.subr.mxu0 %v8480_v0  ;;  %2143 = vmatprep.subr.mxu1 %v8480_v0 }
 0x20c   : > { %2048 = vmatpush1.msra.mxu0 %v7947_v48  ;;  %2144 = vmatpush1.msra.mxu1 %v7971_v51  ;;  %v8015_v48 = vld [vmem:[%s12353_s3 + $0xa60] sm:$0xff]  ;;  %v7990_v51 = vld [vmem:[%s12353_s3 + $0x9a8] sm:$0xff] }
 0x20d   : > { %2049 = vmatprep.subr.mxu0 %v8480_v0  ;;  %2145 = vmatprep.subr.mxu1 %v8480_v0 }
 0x20e   : > { %2050 = vmatpush1.msra.mxu0 %v7946_v52  ;;  %2146 = vmatpush1.msra.mxu1 %v7970_v53  ;;  %v8014_v52 = vld [vmem:[%s12353_s3 + $0xa58] sm:$0xff]  ;;  %v7989_v53 = vld [vmem:[%s12353_s3 + $0x9a0] sm:$0xff] }
 0x20f   : > { %2051 = vmatprep.subr.mxu0 %v8480_v0  ;;  %2147 = vmatprep.subr.mxu1 %v8480_v0 }
 0x210   : > { %2052 = vmatpush1.msra.mxu0 %v7945_v54  ;;  %2148 = vmatpush1.msra.mxu1 %v7969_v55  ;;  %v8013_v54 = vld [vmem:[%s12353_s3 + $0xa50] sm:$0xff]  ;;  %v8010_v55 = vld [vmem:[%s12353_s3 + $0xa48] sm:$0x1] }
 0x211   : > { %2053 = vmatprep.subr.mxu0 %v8480_v0  ;;  %2149 = vmatprep.subr.mxu1 %v8480_v0 }
 0x212   : > { %2054 = vmatpush1.msra.mxu0 %v7944_v56  ;;  %2150 = vmatpush1.msra.mxu1 %v7968_v57  ;;  %v8034_v56 = vld [vmem:[%s12353_s3 + $0xaf8] sm:$0x1]  ;;  %v8009_v57 = vld [vmem:[%s12353_s3 + $0xa40] sm:$0xff] }
 0x213   : > { %2055 = vmatprep.subr.mxu0 %v8480_v0  ;;  %2151 = vmatprep.subr.mxu1 %v8480_v0 }
 0x214   : > { %2056 = vmatpush1.msra.mxu0 %v7943_v58  ;;  %2152 = vmatpush1.msra.mxu1 %v7967_v59  ;;  %v8033_v58 = vld [vmem:[%s12353_s3 + $0xaf0] sm:$0xff]  ;;  %v8008_v59 = vld [vmem:[%s12353_s3 + $0xa38] sm:$0xff] }
 0x215   : > { %2057 = vmatprep.subr.mxu0 %v8480_v0  ;;  %2153 = vmatprep.subr.mxu1 %v8480_v0 }
 0x216   : > { %2058 = vmatpush1.msra.mxu0 %v7942_v60  ;;  %2154 = vmatpush1.msra.mxu1 %v7966_v61  ;;  %v8032_v60 = vld [vmem:[%s12353_s3 + $0xae8] sm:$0xff]  ;;  %v8007_v61 = vld [vmem:[%s12353_s3 + $0xa30] sm:$0xff] }
 0x217   : > { %2059 = vmatprep.subr.mxu0 %v8480_v0  ;;  %2155 = vmatprep.subr.mxu1 %v8480_v0 }
 0x218   : > { %2060 = vmatpush1.msra.mxu0 %v7941_v62  ;;  %2156 = vmatpush1.msra.mxu1 %v7965_v63  ;;  %v8031_v62 = vld [vmem:[%s12353_s3 + $0xae0] sm:$0xff]  ;;  %v8006_v63 = vld [vmem:[%s12353_s3 + $0xa28] sm:$0xff] }
 0x219   : > { %2081 = vmatprep.subr.mxu0 %v8480_v0  ;;  %2177 = vmatprep.subr.mxu1 %v8480_v0 }
 0x21a   : > { %7963 = vmatpush2.msk.msra.mxu0 %vm873_vm2, %v7962_v1  ;;  %7987 = vmatpush2.msk.msra.mxu1 %vm873_vm2, %v7986_v2  ;;  %v8030_v1 = vld [vmem:[%s12353_s3 + $0xad8] sm:$0xff]  ;;  %v8005_v2 = vld [vmem:[%s12353_s3 + $0xa20] sm:$0xff] }
 0x21b   : > { %2083 = vmatprep.subr.mxu0 %v8480_v0  ;;  %2179 = vmatprep.subr.mxu1 %v8480_v0 }
 0x21c   : > { %2084 = vmatpush2.msra.mxu0 %v7961_v3  ;;  %2180 = vmatpush2.msra.mxu1 %v7985_v4  ;;  %v8029_v3 = vld [vmem:[%s12353_s3 + $0xad0] sm:$0xff]  ;;  %v8052_v4 = vld [vmem:[%s12353_s3 + $0xb78] sm:$0xff] }
 0x21d   : > { %2085 = vmatprep.subr.mxu0 %v8480_v0  ;;  %2181 = vmatprep.subr.mxu1 %v8480_v0 }
 0x21e   : > { %2086 = vmatpush2.msra.mxu0 %v7960_v5  ;;  %2182 = vmatpush2.msra.mxu1 %v7984_v6  ;;  %v8076_v5 = vld [vmem:[%s12353_s3 + $0xc28] sm:$0xff]  ;;  %v8051_v6 = vld [vmem:[%s12353_s3 + $0xb70] sm:$0xff] }
 0x21f   : > { %2087 = vmatprep.subr.mxu0 %v8480_v0  ;;  %2183 = vmatprep.subr.mxu1 %v8480_v0 }
 0x220   : > { %2088 = vmatpush2.msra.mxu0 %v7959_v7  ;;  %2184 = vmatpush2.msra.mxu1 %v7983_v8  ;;  %v8075_v7 = vld [vmem:[%s12353_s3 + $0xc20] sm:$0xff]  ;;  %v8050_v8 = vld [vmem:[%s12353_s3 + $0xb68] sm:$0xff] }
 0x221   : > { %2089 = vmatprep.subr.mxu0 %v8480_v0  ;;  %2185 = vmatprep.subr.mxu1 %v8480_v0 }
 0x222   : > { %2090 = vmatpush2.msra.mxu0 %v7958_v9  ;;  %2186 = vmatpush2.msra.mxu1 %v7982_v10  ;;  %v8074_v9 = vld [vmem:[%s12353_s3 + $0xc18] sm:$0xff]  ;;  %v8049_v10 = vld [vmem:[%s12353_s3 + $0xb60] sm:$0xff] }
 0x223   : > { %2091 = vmatprep.subr.mxu0 %v8480_v0  ;;  %2187 = vmatprep.subr.mxu1 %v8480_v0 }
 0x224   : > { %2092 = vmatpush2.msra.mxu0 %v7957_v11  ;;  %2188 = vmatpush2.msra.mxu1 %v7981_v12  ;;  %v8073_v11 = vld [vmem:[%s12353_s3 + $0xc10] sm:$0xff]  ;;  %v8048_v12 = vld [vmem:[%s12353_s3 + $0xb58] sm:$0xff] }
 0x225   : > { %2094 = vmatmul.mubr.f32.vlgmr.msra.gmra.mxu0 %v8885_v45  ;;  %2190 = vmatmul.mubr.f32.vlgmr.msra.gmra.mxu1 %v8885_v45 }
 0x226   : > { %2221 = vmatprep.subr.mxu0 %v8480_v0  ;;  %2317 = vmatprep.subr.mxu1 %v8480_v0 }
 0x227   : > { %2222 = vmatpush1.msra.mxu0 %v8004_v13  ;;  %8012 = vmatprep.mubr.msk.f32.mxu0 %vm869_vm3, %v8883_v44  ;;  %v8072_v13 = vld [vmem:[%s12353_s3 + $0xc08] sm:$0xff] }
 0x228   : > { %2318 = vmatpush1.msra.mxu1 %v8028_v14  ;;  %8036 = vmatprep.mubr.msk.f32.mxu1 %vm869_vm3, %v8883_v44 }
 0x229   : > { %2223 = vmatprep.subr.mxu0 %v8480_v0  ;;  %2319 = vmatprep.subr.mxu1 %v8480_v0 }
 0x22a   : > { %2224 = vmatpush1.msra.mxu0 %v8003_v15  ;;  %2320 = vmatpush1.msra.mxu1 %v8027_v16  ;;  %v8047_v16 = vld [vmem:[%s12353_s3 + $0xb50] sm:$0xff] }
 0x22b   : > { %2225 = vmatprep.subr.mxu0 %v8480_v0  ;;  %2321 = vmatprep.subr.mxu1 %v8480_v0 }
 0x22c   : > { %2226 = vmatpush1.msra.mxu0 %v8002_v17  ;;  %2322 = vmatpush1.msra.mxu1 %v8026_v18  ;;  %v8071_v17 = vld [vmem:[%s12353_s3 + $0xc00] sm:$0xff] }
 0x22d   : > { %2227 = vmatprep.subr.mxu0 %v8480_v0  ;;  %2323 = vmatprep.subr.mxu1 %v8480_v0  ;;  %v10045_v23 = vpop.f32.mrf.mxu0  ;;  %v10047_v24 = vpop.f32.mrf.mxu1 }
 0x22e   : > { %2228 = vmatpush1.msra.mxu0 %v8001_v19  ;;  %2324 = vmatpush1.msra.mxu1 %v8025_v20  ;;  %v8046_v20 = vld [vmem:[%s12353_s3 + $0xb48] sm:$0xff] }
 0x22f   : > { %2229 = vmatprep.subr.mxu0 %v8480_v0  ;;  %2325 = vmatprep.subr.mxu1 %v8480_v0  ;;  %v1329_v27 = vpop.f32.mrf.mxu0  ;;  %v1425_v28 = vpop.f32.mrf.mxu1 }
 0x230   : > { %2230 = vmatpush1.msra.mxu0 %v8000_v21  ;;  %2326 = vmatpush1.msra.mxu1 %v8024_v22  ;;  %v8070_v21 = vld [vmem:[%s12353_s3 + $0xbf8] sm:$0xff]  ;;  %v8045_v22 = vld [vmem:[%s12353_s3 + $0xb40] sm:$0xff]  ;;  %v8068_v27 = vld [vmem:[%s12353_s3 + $0xbe8] sm:$0xff] }
 0x231   : > { %2231 = vmatprep.subr.mxu0 %v8480_v0  ;;  %2327 = vmatprep.subr.mxu1 %v8480_v0  ;;  %v8043_v28 = vld [vmem:[%s12353_s3 + $0xb30] sm:$0xff] }
 0x232   : > { %2232 = vmatpush1.msra.mxu0 %v7999_v25  ;;  %2328 = vmatpush1.msra.mxu1 %v8023_v26  ;;  %v8069_v25 = vld [vmem:[%s12353_s3 + $0xbf0] sm:$0xff]  ;;  %v8044_v26 = vld [vmem:[%s12353_s3 + $0xb38] sm:$0xff] }
 0x233   : > { %2233 = vmatprep.subr.mxu0 %v8480_v0  ;;  %2329 = vmatprep.subr.mxu1 %v8480_v0 }
 0x234   : > { %2234 = vmatpush1.msra.mxu0 %v7998_v29  ;;  %2330 = vmatpush1.msra.mxu1 %v8022_v30  ;;  %v8067_v29 = vld [vmem:[%s12353_s3 + $0xbe0] sm:$0xff]  ;;  %v8042_v30 = vld [vmem:[%s12353_s3 + $0xb28] sm:$0xff] }
 0x235   : > { %2235 = vmatprep.subr.mxu0 %v8480_v0  ;;  %2331 = vmatprep.subr.mxu1 %v8480_v0 }
 0x236   : > { %2236 = vmatpush1.msra.mxu0 %v7997_v31  ;;  %2332 = vmatpush1.msra.mxu1 %v8021_v32  ;;  %v8066_v31 = vld [vmem:[%s12353_s3 + $0xbd8] sm:$0xff]  ;;  %v8041_v32 = vld [vmem:[%s12353_s3 + $0xb20] sm:$0xff] }
 0x237   : > { %2237 = vmatprep.subr.mxu0 %v8480_v0  ;;  %2333 = vmatprep.subr.mxu1 %v8480_v0 }
 0x238   : > { %2238 = vmatpush1.msra.mxu0 %v7996_v33  ;;  %2334 = vmatpush1.msra.mxu1 %v8020_v36  ;;  %v8065_v33 = vld [vmem:[%s12353_s3 + $0xbd0] sm:$0xff]  ;;  %v8040_v36 = vld [vmem:[%s12353_s3 + $0xb18] sm:$0xff] }
 0x239   : > { %2239 = vmatprep.subr.mxu0 %v8480_v0  ;;  %2335 = vmatprep.subr.mxu1 %v8480_v0 }
 0x23a   : > { %2240 = vmatpush1.msra.mxu0 %v7995_v37  ;;  %2336 = vmatpush1.msra.mxu1 %v8019_v38  ;;  %v8064_v37 = vld [vmem:[%s12353_s3 + $0xbc8] sm:$0xff]  ;;  %v8039_v38 = vld [vmem:[%s12353_s3 + $0xb10] sm:$0xff] }
 0x23b   : > { %2241 = vmatprep.subr.mxu0 %v8480_v0  ;;  %2337 = vmatprep.subr.mxu1 %v8480_v0 }
 0x23c   : > { %2242 = vmatpush1.msra.mxu0 %v7994_v39  ;;  %2338 = vmatpush1.msra.mxu1 %v8018_v40  ;;  %v8063_v39 = vld [vmem:[%s12353_s3 + $0xbc0] sm:$0xff]  ;;  %v8038_v40 = vld [vmem:[%s12353_s3 + $0xb08] sm:$0xff] }
 0x23d   : > { %2243 = vmatprep.subr.mxu0 %v8480_v0  ;;  %2339 = vmatprep.subr.mxu1 %v8480_v0 }
 0x23e   : > { %2244 = vmatpush1.msra.mxu0 %v7993_v41  ;;  %2340 = vmatpush1.msra.mxu1 %v8017_v42  ;;  %v8062_v41 = vld [vmem:[%s12353_s3 + $0xbb8] sm:$0xff]  ;;  %v8037_v42 = vld [vmem:[%s12353_s3 + $0xb00] sm:$0xff] }
 0x23f   : > { %2245 = vmatprep.subr.mxu0 %v8480_v0  ;;  %2341 = vmatprep.subr.mxu1 %v8480_v0 }
 0x240   : > { %2246 = vmatpush1.msra.mxu0 %v7992_v43  ;;  %2342 = vmatpush1.msra.mxu1 %v8016_v46  ;;  %v8061_v43 = vld [vmem:[%s12353_s3 + $0xbb0] sm:$0xff]  ;;  %v8058_v46 = vld [vmem:[%s12353_s3 + $0xba8] sm:$0x1] }
 0x241   : > { %2247 = vmatprep.subr.mxu0 %v8480_v0  ;;  %2343 = vmatprep.subr.mxu1 %v8480_v0 }
 0x242   : > { %2248 = vmatpush1.msra.mxu0 %v7991_v47  ;;  %2344 = vmatpush1.msra.mxu1 %v8015_v48  ;;  %v8082_v47 = vld [vmem:[%s12353_s3 + $0xc58] sm:$0x1]  ;;  %v8057_v48 = vld [vmem:[%s12353_s3 + $0xba0] sm:$0xff] }
 0x243   : > { %2249 = vmatprep.subr.mxu0 %v8480_v0  ;;  %2345 = vmatprep.subr.mxu1 %v8480_v0 }
 0x244   : > { %2250 = vmatpush1.msra.mxu0 %v7990_v51  ;;  %2346 = vmatpush1.msra.mxu1 %v8014_v52  ;;  %v8081_v51 = vld [vmem:[%s12353_s3 + $0xc50] sm:$0xff]  ;;  %v8056_v52 = vld [vmem:[%s12353_s3 + $0xb98] sm:$0xff] }
 0x245   : > { %2251 = vmatprep.subr.mxu0 %v8480_v0  ;;  %2347 = vmatprep.subr.mxu1 %v8480_v0 }
 0x246   : > { %2252 = vmatpush1.msra.mxu0 %v7989_v53  ;;  %2348 = vmatpush1.msra.mxu1 %v8013_v54  ;;  %v8080_v53 = vld [vmem:[%s12353_s3 + $0xc48] sm:$0xff]  ;;  %v8055_v54 = vld [vmem:[%s12353_s3 + $0xb90] sm:$0xff] }
 0x247   : > { %2273 = vmatprep.subr.mxu0 %v8480_v0  ;;  %2369 = vmatprep.subr.mxu1 %v8480_v0 }
 0x248   : > { %8011 = vmatpush2.msk.msra.mxu0 %vm873_vm2, %v8010_v55  ;;  %8035 = vmatpush2.msk.msra.mxu1 %vm873_vm2, %v8034_v56  ;;  %v8079_v55 = vld [vmem:[%s12353_s3 + $0xc40] sm:$0xff]  ;;  %v8054_v56 = vld [vmem:[%s12353_s3 + $0xb88] sm:$0xff] }
 0x249   : > { %2275 = vmatprep.subr.mxu0 %v8480_v0  ;;  %2371 = vmatprep.subr.mxu1 %v8480_v0 }
 0x24a   : > { %2276 = vmatpush2.msra.mxu0 %v8009_v57  ;;  %2372 = vmatpush2.msra.mxu1 %v8033_v58  ;;  %v8078_v57 = vld [vmem:[%s12353_s3 + $0xc38] sm:$0xff]  ;;  %v8053_v58 = vld [vmem:[%s12353_s3 + $0xb80] sm:$0xff] }
 0x24b   : > { %2277 = vmatprep.subr.mxu0 %v8480_v0  ;;  %2373 = vmatprep.subr.mxu1 %v8480_v0 }
 0x24c   : > { %2278 = vmatpush2.msra.mxu0 %v8008_v59  ;;  %2374 = vmatpush2.msra.mxu1 %v8032_v60  ;;  %v8077_v59 = vld [vmem:[%s12353_s3 + $0xc30] sm:$0xff]  ;;  %v8100_v60 = vld [vmem:[%s12353_s3 + $0xcd8] sm:$0xff] }
 0x24d   : > { %2279 = vmatprep.subr.mxu0 %v8480_v0  ;;  %2375 = vmatprep.subr.mxu1 %v8480_v0 }
 0x24e   : > { %2280 = vmatpush2.msra.mxu0 %v8007_v61  ;;  %2376 = vmatpush2.msra.mxu1 %v8031_v62  ;;  %v8124_v61 = vld [vmem:[%s12353_s3 + $0xd88] sm:$0xff]  ;;  %v8099_v62 = vld [vmem:[%s12353_s3 + $0xcd0] sm:$0xff] }
 0x24f   : > { %2281 = vmatprep.subr.mxu0 %v8480_v0  ;;  %2377 = vmatprep.subr.mxu1 %v8480_v0 }
 0x250   : > { %2282 = vmatpush2.msra.mxu0 %v8006_v63  ;;  %2378 = vmatpush2.msra.mxu1 %v8030_v1  ;;  %v8123_v63 = vld [vmem:[%s12353_s3 + $0xd80] sm:$0xff]  ;;  %v8098_v1 = vld [vmem:[%s12353_s3 + $0xcc8] sm:$0xff] }
 0x251   : > { %2283 = vmatprep.subr.mxu0 %v8480_v0  ;;  %2379 = vmatprep.subr.mxu1 %v8480_v0 }
 0x252   : > { %2284 = vmatpush2.msra.mxu0 %v8005_v2  ;;  %2380 = vmatpush2.msra.mxu1 %v8029_v3  ;;  %v8122_v2 = vld [vmem:[%s12353_s3 + $0xd78] sm:$0xff]  ;;  %v8097_v3 = vld [vmem:[%s12353_s3 + $0xcc0] sm:$0xff] }
 0x253   : > { %2286 = vmatmul.mubr.f32.vlgmr.msra.gmra.mxu0 %v8885_v45  ;;  %2382 = vmatmul.mubr.f32.vlgmr.msra.gmra.mxu1 %v8885_v45 }
 0x254   : > { %2413 = vmatprep.subr.mxu0 %v8480_v0  ;;  %2509 = vmatprep.subr.mxu1 %v8480_v0 }
 0x255   : > { %2414 = vmatpush1.msra.mxu0 %v8052_v4  ;;  %8060 = vmatprep.mubr.msk.f32.mxu0 %vm869_vm3, %v8883_v44  ;;  %v8121_v4 = vld [vmem:[%s12353_s3 + $0xd70] sm:$0xff] }
 0x256   : > { %2510 = vmatpush1.msra.mxu1 %v8076_v5  ;;  %8084 = vmatprep.mubr.msk.f32.mxu1 %vm869_vm3, %v8883_v44  ;;  %v8096_v5 = vld [vmem:[%s12353_s3 + $0xcb8] sm:$0xff] }
 0x257   : > { %2415 = vmatprep.subr.mxu0 %v8480_v0  ;;  %2511 = vmatprep.subr.mxu1 %v8480_v0 }
 0x258   : > { %2416 = vmatpush1.msra.mxu0 %v8051_v6  ;;  %2512 = vmatpush1.msra.mxu1 %v8075_v7  ;;  %v8120_v6 = vld [vmem:[%s12353_s3 + $0xd68] sm:$0xff] }
 0x259   : > { %2417 = vmatprep.subr.mxu0 %v8480_v0  ;;  %2513 = vmatprep.subr.mxu1 %v8480_v0 }
 0x25a   : > { %2418 = vmatpush1.msra.mxu0 %v8050_v8  ;;  %2514 = vmatpush1.msra.mxu1 %v8074_v9  ;;  %v8095_v9 = vld [vmem:[%s12353_s3 + $0xcb0] sm:$0xff] }
 0x25b   : > { %2419 = vmatprep.subr.mxu0 %v8480_v0  ;;  %2515 = vmatprep.subr.mxu1 %v8480_v0  ;;  %v10233_v14 = vpop.f32.mrf.mxu0  ;;  %v10235_v15 = vpop.f32.mrf.mxu1 }
 0x25c   : > { %2420 = vmatpush1.msra.mxu0 %v8049_v10  ;;  %2516 = vmatpush1.msra.mxu1 %v8073_v11  ;;  %v8119_v10 = vld [vmem:[%s12353_s3 + $0xd60] sm:$0xff] }
 0x25d   : > { %2421 = vmatprep.subr.mxu0 %v8480_v0  ;;  %2517 = vmatprep.subr.mxu1 %v8480_v0  ;;  %v1521_v18 = vpop.f32.mrf.mxu0  ;;  %v1617_v19 = vpop.f32.mrf.mxu1 }
 0x25e   : > { %2422 = vmatpush1.msra.mxu0 %v8048_v12  ;;  %2518 = vmatpush1.msra.mxu1 %v8072_v13  ;;  %v8094_v13 = vld [vmem:[%s12353_s3 + $0xca8] sm:$0xff]  ;;  %v8117_v18 = vld [vmem:[%s12353_s3 + $0xd50] sm:$0xff]  ;;  %v8092_v19 = vld [vmem:[%s12353_s3 + $0xc98] sm:$0xff] }
 0x25f   : > { %2423 = vmatprep.subr.mxu0 %v8480_v0  ;;  %2519 = vmatprep.subr.mxu1 %v8480_v0 }
 0x260   : > { %2424 = vmatpush1.msra.mxu0 %v8047_v16  ;;  %2520 = vmatpush1.msra.mxu1 %v8071_v17  ;;  %v8118_v16 = vld [vmem:[%s12353_s3 + $0xd58] sm:$0xff]  ;;  %v8093_v17 = vld [vmem:[%s12353_s3 + $0xca0] sm:$0xff] }
 0x261   : > { %2425 = vmatprep.subr.mxu0 %v8480_v0  ;;  %2521 = vmatprep.subr.mxu1 %v8480_v0 }
 0x262   : > { %2426 = vmatpush1.msra.mxu0 %v8046_v20  ;;  %2522 = vmatpush1.msra.mxu1 %v8070_v21  ;;  %v8116_v20 = vld [vmem:[%s12353_s3 + $0xd48] sm:$0xff]  ;;  %v8091_v21 = vld [vmem:[%s12353_s3 + $0xc90] sm:$0xff] }
 0x263   : > { %2427 = vmatprep.subr.mxu0 %v8480_v0  ;;  %2523 = vmatprep.subr.mxu1 %v8480_v0 }
 0x264   : > { %2428 = vmatpush1.msra.mxu0 %v8045_v22  ;;  %2524 = vmatpush1.msra.mxu1 %v8069_v25  ;;  %v8115_v22 = vld [vmem:[%s12353_s3 + $0xd40] sm:$0xff]  ;;  %v8090_v25 = vld [vmem:[%s12353_s3 + $0xc88] sm:$0xff] }
 0x265   : > { %2429 = vmatprep.subr.mxu0 %v8480_v0  ;;  %2525 = vmatprep.subr.mxu1 %v8480_v0 }
 0x266   : > { %2430 = vmatpush1.msra.mxu0 %v8044_v26  ;;  %2526 = vmatpush1.msra.mxu1 %v8068_v27  ;;  %v8114_v26 = vld [vmem:[%s12353_s3 + $0xd38] sm:$0xff]  ;;  %v8089_v27 = vld [vmem:[%s12353_s3 + $0xc80] sm:$0xff] }
 0x267   : > { %2431 = vmatprep.subr.mxu0 %v8480_v0  ;;  %2527 = vmatprep.subr.mxu1 %v8480_v0 }
 0x268   : > { %2432 = vmatpush1.msra.mxu0 %v8043_v28  ;;  %2528 = vmatpush1.msra.mxu1 %v8067_v29  ;;  %v8113_v28 = vld [vmem:[%s12353_s3 + $0xd30] sm:$0xff]  ;;  %v8088_v29 = vld [vmem:[%s12353_s3 + $0xc78] sm:$0xff] }
 0x269   : > { %2433 = vmatprep.subr.mxu0 %v8480_v0  ;;  %2529 = vmatprep.subr.mxu1 %v8480_v0 }
 0x26a   : > { %2434 = vmatpush1.msra.mxu0 %v8042_v30  ;;  %2530 = vmatpush1.msra.mxu1 %v8066_v31  ;;  %v8112_v30 = vld [vmem:[%s12353_s3 + $0xd28] sm:$0xff]  ;;  %v8087_v31 = vld [vmem:[%s12353_s3 + $0xc70] sm:$0xff] }
 0x26b   : > { %2435 = vmatprep.subr.mxu0 %v8480_v0  ;;  %2531 = vmatprep.subr.mxu1 %v8480_v0 }
 0x26c   : > { %2436 = vmatpush1.msra.mxu0 %v8041_v32  ;;  %2532 = vmatpush1.msra.mxu1 %v8065_v33  ;;  %v8111_v32 = vld [vmem:[%s12353_s3 + $0xd20] sm:$0xff]  ;;  %v8086_v33 = vld [vmem:[%s12353_s3 + $0xc68] sm:$0xff] }
 0x26d   : > { %2437 = vmatprep.subr.mxu0 %v8480_v0  ;;  %2533 = vmatprep.subr.mxu1 %v8480_v0 }
 0x26e   : > { %2438 = vmatpush1.msra.mxu0 %v8040_v36  ;;  %2534 = vmatpush1.msra.mxu1 %v8064_v37  ;;  %v8110_v36 = vld [vmem:[%s12353_s3 + $0xd18] sm:$0xff]  ;;  %v8085_v37 = vld [vmem:[%s12353_s3 + $0xc60] sm:$0xff] }
 0x26f   : > { %2439 = vmatprep.subr.mxu0 %v8480_v0  ;;  %2535 = vmatprep.subr.mxu1 %v8480_v0 }
 0x270   : > { %2440 = vmatpush1.msra.mxu0 %v8039_v38  ;;  %2536 = vmatpush1.msra.mxu1 %v8063_v39  ;;  %v8109_v38 = vld [vmem:[%s12353_s3 + $0xd10] sm:$0xff]  ;;  %v8106_v39 = vld [vmem:[%s12353_s3 + $0xd08] sm:$0x1] }
 0x271   : > { %2441 = vmatprep.subr.mxu0 %v8480_v0  ;;  %2537 = vmatprep.subr.mxu1 %v8480_v0 }
 0x272   : > { %2442 = vmatpush1.msra.mxu0 %v8038_v40  ;;  %2538 = vmatpush1.msra.mxu1 %v8062_v41  ;;  %v8130_v40 = vld [vmem:[%s12353_s3 + $0xdb8] sm:$0x1]  ;;  %v8105_v41 = vld [vmem:[%s12353_s3 + $0xd00] sm:$0xff] }
 0x273   : > { %2443 = vmatprep.subr.mxu0 %v8480_v0  ;;  %2539 = vmatprep.subr.mxu1 %v8480_v0 }
 0x274   : > { %2444 = vmatpush1.msra.mxu0 %v8037_v42  ;;  %2540 = vmatpush1.msra.mxu1 %v8061_v43  ;;  %v8129_v42 = vld [vmem:[%s12353_s3 + $0xdb0] sm:$0xff]  ;;  %v8104_v43 = vld [vmem:[%s12353_s3 + $0xcf8] sm:$0xff] }
 0x275   : > { %2465 = vmatprep.subr.mxu0 %v8480_v0  ;;  %2561 = vmatprep.subr.mxu1 %v8480_v0 }
 0x276   : > { %8059 = vmatpush2.msk.msra.mxu0 %vm873_vm2, %v8058_v46  ;;  %8083 = vmatpush2.msk.msra.mxu1 %vm873_vm2, %v8082_v47  ;;  %v8128_v46 = vld [vmem:[%s12353_s3 + $0xda8] sm:$0xff]  ;;  %v8103_v47 = vld [vmem:[%s12353_s3 + $0xcf0] sm:$0xff] }
 0x277   : > { %2467 = vmatprep.subr.mxu0 %v8480_v0  ;;  %2563 = vmatprep.subr.mxu1 %v8480_v0 }
 0x278   : > { %2468 = vmatpush2.msra.mxu0 %v8057_v48  ;;  %2564 = vmatpush2.msra.mxu1 %v8081_v51  ;;  %v8127_v48 = vld [vmem:[%s12353_s3 + $0xda0] sm:$0xff]  ;;  %v8102_v51 = vld [vmem:[%s12353_s3 + $0xce8] sm:$0xff] }
 0x279   : > { %2469 = vmatprep.subr.mxu0 %v8480_v0  ;;  %2565 = vmatprep.subr.mxu1 %v8480_v0 }
 0x27a   : > { %2470 = vmatpush2.msra.mxu0 %v8056_v52  ;;  %2566 = vmatpush2.msra.mxu1 %v8080_v53  ;;  %v8126_v52 = vld [vmem:[%s12353_s3 + $0xd98] sm:$0xff]  ;;  %v8101_v53 = vld [vmem:[%s12353_s3 + $0xce0] sm:$0xff] }
 0x27b   : > { %2471 = vmatprep.subr.mxu0 %v8480_v0  ;;  %2567 = vmatprep.subr.mxu1 %v8480_v0 }
 0x27c   : > { %2472 = vmatpush2.msra.mxu0 %v8055_v54  ;;  %2568 = vmatpush2.msra.mxu1 %v8079_v55  ;;  %v8125_v54 = vld [vmem:[%s12353_s3 + $0xd90] sm:$0xff]  ;;  %v8148_v55 = vld [vmem:[%s12353_s3 + $0xe38] sm:$0xff] }
 0x27d   : > { %2473 = vmatprep.subr.mxu0 %v8480_v0  ;;  %2569 = vmatprep.subr.mxu1 %v8480_v0 }
 0x27e   : > { %2474 = vmatpush2.msra.mxu0 %v8054_v56  ;;  %2570 = vmatpush2.msra.mxu1 %v8078_v57  ;;  %v8172_v56 = vld [vmem:[%s12353_s3 + $0xee8] sm:$0xff]  ;;  %v8147_v57 = vld [vmem:[%s12353_s3 + $0xe30] sm:$0xff] }
 0x27f   : > { %2475 = vmatprep.subr.mxu0 %v8480_v0  ;;  %2571 = vmatprep.subr.mxu1 %v8480_v0 }
 0x280   : > { %2476 = vmatpush2.msra.mxu0 %v8053_v58  ;;  %2572 = vmatpush2.msra.mxu1 %v8077_v59  ;;  %v8171_v58 = vld [vmem:[%s12353_s3 + $0xee0] sm:$0xff]  ;;  %v8146_v59 = vld [vmem:[%s12353_s3 + $0xe28] sm:$0xff] }
 0x281   : > { %2478 = vmatmul.mubr.f32.vlgmr.msra.gmra.mxu0 %v8885_v45  ;;  %2574 = vmatmul.mubr.f32.vlgmr.msra.gmra.mxu1 %v8885_v45 }
 0x282   : > { %2605 = vmatprep.subr.mxu0 %v8480_v0  ;;  %2701 = vmatprep.subr.mxu1 %v8480_v0 }
 0x283   : > { %2606 = vmatpush1.msra.mxu0 %v8100_v60  ;;  %8108 = vmatprep.mubr.msk.f32.mxu0 %vm869_vm3, %v8883_v44  ;;  %v8170_v60 = vld [vmem:[%s12353_s3 + $0xed8] sm:$0xff] }
 0x284   : > { %2702 = vmatpush1.msra.mxu1 %v8124_v61  ;;  %8132 = vmatprep.mubr.msk.f32.mxu1 %vm869_vm3, %v8883_v44  ;;  %v8145_v61 = vld [vmem:[%s12353_s3 + $0xe20] sm:$0xff] }
 0x285   : > { %2607 = vmatprep.subr.mxu0 %v8480_v0  ;;  %2703 = vmatprep.subr.mxu1 %v8480_v0 }
 0x286   : > { %2608 = vmatpush1.msra.mxu0 %v8099_v62  ;;  %2704 = vmatpush1.msra.mxu1 %v8123_v63  ;;  %v8169_v62 = vld [vmem:[%s12353_s3 + $0xed0] sm:$0xff]  ;;  %v8144_v63 = vld [vmem:[%s12353_s3 + $0xe18] sm:$0xff] }
 0x287   : > { %2609 = vmatprep.subr.mxu0 %v8480_v0  ;;  %2705 = vmatprep.subr.mxu1 %v8480_v0 }
 0x288   : > { %2610 = vmatpush1.msra.mxu0 %v8098_v1  ;;  %2706 = vmatpush1.msra.mxu1 %v8122_v2  ;;  %v8168_v1 = vld [vmem:[%s12353_s3 + $0xec8] sm:$0xff] }
 0x289   : > { %2611 = vmatprep.subr.mxu0 %v8480_v0  ;;  %2707 = vmatprep.subr.mxu1 %v8480_v0  ;;  %v10421_v7 = vpop.f32.mrf.mxu0  ;;  %v10423_v8 = vpop.f32.mrf.mxu1 }
 0x28a   : > { %2612 = vmatpush1.msra.mxu0 %v8097_v3  ;;  %2708 = vmatpush1.msra.mxu1 %v8121_v4  ;;  %v8143_v4 = vld [vmem:[%s12353_s3 + $0xe10] sm:$0xff] }
 0x28b   : > { %2613 = vmatprep.subr.mxu0 %v8480_v0  ;;  %2709 = vmatprep.subr.mxu1 %v8480_v0  ;;  %v1713_v11 = vpop.f32.mrf.mxu0  ;;  %v1809_v12 = vpop.f32.mrf.mxu1 }
 0x28c   : > { %2614 = vmatpush1.msra.mxu0 %v8096_v5  ;;  %2710 = vmatpush1.msra.mxu1 %v8120_v6  ;;  %v8167_v5 = vld [vmem:[%s12353_s3 + $0xec0] sm:$0xff]  ;;  %v8166_v11 = vld [vmem:[%s12353_s3 + $0xeb8] sm:$0xff] }
 0x28d   : > { %2615 = vmatprep.subr.mxu0 %v8480_v0  ;;  %2711 = vmatprep.subr.mxu1 %v8480_v0  ;;  %v8141_v12 = vld [vmem:[%s12353_s3 + $0xe00] sm:$0xff] }
 0x28e   : > { %2616 = vmatpush1.msra.mxu0 %v8095_v9  ;;  %2712 = vmatpush1.msra.mxu1 %v8119_v10  ;;  %v8142_v10 = vld [vmem:[%s12353_s3 + $0xe08] sm:$0xff] }
 0x28f   : > { %2617 = vmatprep.subr.mxu0 %v8480_v0  ;;  %2713 = vmatprep.subr.mxu1 %v8480_v0 }
 0x290   : > { %2618 = vmatpush1.msra.mxu0 %v8094_v13  ;;  %2714 = vmatpush1.msra.mxu1 %v8118_v16  ;;  %v8165_v13 = vld [vmem:[%s12353_s3 + $0xeb0] sm:$0xff]  ;;  %v8140_v16 = vld [vmem:[%s12353_s3 + $0xdf8] sm:$0xff] }
 0x291   : > { %2619 = vmatprep.subr.mxu0 %v8480_v0  ;;  %2715 = vmatprep.subr.mxu1 %v8480_v0 }
 0x292   : > { %2620 = vmatpush1.msra.mxu0 %v8093_v17  ;;  %2716 = vmatpush1.msra.mxu1 %v8117_v18  ;;  %v8164_v17 = vld [vmem:[%s12353_s3 + $0xea8] sm:$0xff]  ;;  %v8139_v18 = vld [vmem:[%s12353_s3 + $0xdf0] sm:$0xff] }
 0x293   : > { %2621 = vmatprep.subr.mxu0 %v8480_v0  ;;  %2717 = vmatprep.subr.mxu1 %v8480_v0 }
 0x294   : > { %2622 = vmatpush1.msra.mxu0 %v8092_v19  ;;  %2718 = vmatpush1.msra.mxu1 %v8116_v20  ;;  %v8163_v19 = vld [vmem:[%s12353_s3 + $0xea0] sm:$0xff]  ;;  %v8138_v20 = vld [vmem:[%s12353_s3 + $0xde8] sm:$0xff] }
 0x295   : > { %2623 = vmatprep.subr.mxu0 %v8480_v0  ;;  %2719 = vmatprep.subr.mxu1 %v8480_v0 }
 0x296   : > { %2624 = vmatpush1.msra.mxu0 %v8091_v21  ;;  %2720 = vmatpush1.msra.mxu1 %v8115_v22  ;;  %v8162_v21 = vld [vmem:[%s12353_s3 + $0xe98] sm:$0xff]  ;;  %v8137_v22 = vld [vmem:[%s12353_s3 + $0xde0] sm:$0xff] }
 0x297   : > { %2625 = vmatprep.subr.mxu0 %v8480_v0  ;;  %2721 = vmatprep.subr.mxu1 %v8480_v0 }
 0x298   : > { %2626 = vmatpush1.msra.mxu0 %v8090_v25  ;;  %2722 = vmatpush1.msra.mxu1 %v8114_v26  ;;  %v8161_v25 = vld [vmem:[%s12353_s3 + $0xe90] sm:$0xff]  ;;  %v8136_v26 = vld [vmem:[%s12353_s3 + $0xdd8] sm:$0xff] }
 0x299   : > { %2627 = vmatprep.subr.mxu0 %v8480_v0  ;;  %2723 = vmatprep.subr.mxu1 %v8480_v0 }
 0x29a   : > { %2628 = vmatpush1.msra.mxu0 %v8089_v27  ;;  %2724 = vmatpush1.msra.mxu1 %v8113_v28  ;;  %v8160_v27 = vld [vmem:[%s12353_s3 + $0xe88] sm:$0xff]  ;;  %v8135_v28 = vld [vmem:[%s12353_s3 + $0xdd0] sm:$0xff] }
 0x29b   : > { %2629 = vmatprep.subr.mxu0 %v8480_v0  ;;  %2725 = vmatprep.subr.mxu1 %v8480_v0 }
 0x29c   : > { %2630 = vmatpush1.msra.mxu0 %v8088_v29  ;;  %2726 = vmatpush1.msra.mxu1 %v8112_v30  ;;  %v8159_v29 = vld [vmem:[%s12353_s3 + $0xe80] sm:$0xff]  ;;  %v8134_v30 = vld [vmem:[%s12353_s3 + $0xdc8] sm:$0xff] }
 0x29d   : > { %2631 = vmatprep.subr.mxu0 %v8480_v0  ;;  %2727 = vmatprep.subr.mxu1 %v8480_v0 }
 0x29e   : > { %2632 = vmatpush1.msra.mxu0 %v8087_v31  ;;  %2728 = vmatpush1.msra.mxu1 %v8111_v32  ;;  %v8158_v31 = vld [vmem:[%s12353_s3 + $0xe78] sm:$0xff]  ;;  %v8133_v32 = vld [vmem:[%s12353_s3 + $0xdc0] sm:$0xff] }
 0x29f   : > { %2633 = vmatprep.subr.mxu0 %v8480_v0  ;;  %2729 = vmatprep.subr.mxu1 %v8480_v0 }
 0x2a0   : > { %2634 = vmatpush1.msra.mxu0 %v8086_v33  ;;  %2730 = vmatpush1.msra.mxu1 %v8110_v36  ;;  %v8157_v33 = vld [vmem:[%s12353_s3 + $0xe70] sm:$0xff]  ;;  %v8154_v36 = vld [vmem:[%s12353_s3 + $0xe68] sm:$0x1] }
 0x2a1   : > { %2635 = vmatprep.subr.mxu0 %v8480_v0  ;;  %2731 = vmatprep.subr.mxu1 %v8480_v0 }
 0x2a2   : > { %2636 = vmatpush1.msra.mxu0 %v8085_v37  ;;  %2732 = vmatpush1.msra.mxu1 %v8109_v38  ;;  %v8178_v37 = vld [vmem:[%s12353_s3 + $0xf18] sm:$0x1]  ;;  %v8153_v38 = vld [vmem:[%s12353_s3 + $0xe60] sm:$0xff] }
 0x2a3   : > { %2657 = vmatprep.subr.mxu0 %v8480_v0  ;;  %2753 = vmatprep.subr.mxu1 %v8480_v0 }
 0x2a4   : > { %8107 = vmatpush2.msk.msra.mxu0 %vm873_vm2, %v8106_v39  ;;  %8131 = vmatpush2.msk.msra.mxu1 %vm873_vm2, %v8130_v40  ;;  %v8177_v39 = vld [vmem:[%s12353_s3 + $0xf10] sm:$0xff]  ;;  %v8152_v40 = vld [vmem:[%s12353_s3 + $0xe58] sm:$0xff] }
 0x2a5   : > { %2659 = vmatprep.subr.mxu0 %v8480_v0  ;;  %2755 = vmatprep.subr.mxu1 %v8480_v0 }
 0x2a6   : > { %2660 = vmatpush2.msra.mxu0 %v8105_v41  ;;  %2756 = vmatpush2.msra.mxu1 %v8129_v42  ;;  %v8176_v41 = vld [vmem:[%s12353_s3 + $0xf08] sm:$0xff]  ;;  %v8151_v42 = vld [vmem:[%s12353_s3 + $0xe50] sm:$0xff] }
 0x2a7   : > { %2661 = vmatprep.subr.mxu0 %v8480_v0  ;;  %2757 = vmatprep.subr.mxu1 %v8480_v0 }
 0x2a8   : > { %2662 = vmatpush2.msra.mxu0 %v8104_v43  ;;  %2758 = vmatpush2.msra.mxu1 %v8128_v46  ;;  %v8175_v43 = vld [vmem:[%s12353_s3 + $0xf00] sm:$0xff]  ;;  %v8150_v46 = vld [vmem:[%s12353_s3 + $0xe48] sm:$0xff] }
 0x2a9   : > { %2663 = vmatprep.subr.mxu0 %v8480_v0  ;;  %2759 = vmatprep.subr.mxu1 %v8480_v0 }
 0x2aa   : > { %2664 = vmatpush2.msra.mxu0 %v8103_v47  ;;  %2760 = vmatpush2.msra.mxu1 %v8127_v48  ;;  %v8174_v47 = vld [vmem:[%s12353_s3 + $0xef8] sm:$0xff]  ;;  %v8149_v48 = vld [vmem:[%s12353_s3 + $0xe40] sm:$0xff] }
 0x2ab   : > { %2665 = vmatprep.subr.mxu0 %v8480_v0  ;;  %2761 = vmatprep.subr.mxu1 %v8480_v0 }
 0x2ac   : > { %2666 = vmatpush2.msra.mxu0 %v8102_v51  ;;  %2762 = vmatpush2.msra.mxu1 %v8126_v52  ;;  %v8173_v51 = vld [vmem:[%s12353_s3 + $0xef0] sm:$0xff]  ;;  %v8196_v52 = vld [vmem:[%s12353_s3 + $0xf98] sm:$0xff] }
 0x2ad   : > { %2667 = vmatprep.subr.mxu0 %v8480_v0  ;;  %2763 = vmatprep.subr.mxu1 %v8480_v0 }
 0x2ae   : > { %2668 = vmatpush2.msra.mxu0 %v8101_v53  ;;  %2764 = vmatpush2.msra.mxu1 %v8125_v54  ;;  %v8220_v53 = vld [vmem:[%s12353_s3 + $0x1048] sm:$0xff]  ;;  %v8195_v54 = vld [vmem:[%s12353_s3 + $0xf90] sm:$0xff] }
 0x2af   : > { %2670 = vmatmul.mubr.f32.vlgmr.msra.gmra.mxu0 %v8885_v45  ;;  %2766 = vmatmul.mubr.f32.vlgmr.msra.gmra.mxu1 %v8885_v45 }
 0x2b0   : > { %2797 = vmatprep.subr.mxu0 %v8480_v0  ;;  %2893 = vmatprep.subr.mxu1 %v8480_v0 }
 0x2b1   : > { %2798 = vmatpush1.msra.mxu0 %v8148_v55  ;;  %8156 = vmatprep.mubr.msk.f32.mxu0 %vm869_vm3, %v8883_v44  ;;  %v8219_v55 = vld [vmem:[%s12353_s3 + $0x1040] sm:$0xff] }
 0x2b2   : > { %2894 = vmatpush1.msra.mxu1 %v8172_v56  ;;  %8180 = vmatprep.mubr.msk.f32.mxu1 %vm869_vm3, %v8883_v44  ;;  %v8194_v56 = vld [vmem:[%s12353_s3 + $0xf88] sm:$0xff] }
 0x2b3   : > { %2799 = vmatprep.subr.mxu0 %v8480_v0  ;;  %2895 = vmatprep.subr.mxu1 %v8480_v0 }
 0x2b4   : > { %2800 = vmatpush1.msra.mxu0 %v8147_v57  ;;  %2896 = vmatpush1.msra.mxu1 %v8171_v58  ;;  %v8218_v57 = vld [vmem:[%s12353_s3 + $0x1038] sm:$0xff]  ;;  %v8193_v58 = vld [vmem:[%s12353_s3 + $0xf80] sm:$0xff] }
 0x2b5   : > { %2801 = vmatprep.subr.mxu0 %v8480_v0  ;;  %2897 = vmatprep.subr.mxu1 %v8480_v0 }
 0x2b6   : > { %2802 = vmatpush1.msra.mxu0 %v8146_v59  ;;  %2898 = vmatpush1.msra.mxu1 %v8170_v60  ;;  %v8217_v59 = vld [vmem:[%s12353_s3 + $0x1030] sm:$0xff]  ;;  %v8192_v60 = vld [vmem:[%s12353_s3 + $0xf78] sm:$0xff] }
 0x2b7   : > { %2803 = vmatprep.subr.mxu0 %v8480_v0  ;;  %2899 = vmatprep.subr.mxu1 %v8480_v0  ;;  %v10609_v2 = vpop.f32.mrf.mxu0  ;;  %v10611_v3 = vpop.f32.mrf.mxu1 }
 0x2b8   : > { %2804 = vmatpush1.msra.mxu0 %v8145_v61  ;;  %2900 = vmatpush1.msra.mxu1 %v8169_v62  ;;  %v8216_v61 = vld [vmem:[%s12353_s3 + $0x1028] sm:$0xff] }
 0x2b9   : > { %2805 = vmatprep.subr.mxu0 %v8480_v0  ;;  %2901 = vmatprep.subr.mxu1 %v8480_v0  ;;  %v1905_v6 = vpop.f32.mrf.mxu0  ;;  %v2001_v9 = vpop.f32.mrf.mxu1 }
 0x2ba   : > { %2806 = vmatpush1.msra.mxu0 %v8144_v63  ;;  %2902 = vmatpush1.msra.mxu1 %v8168_v1  ;;  %v8191_v1 = vld [vmem:[%s12353_s3 + $0xf70] sm:$0xff]  ;;  %v8190_v9 = vld [vmem:[%s12353_s3 + $0xf68] sm:$0xff] }
 0x2bb   : > { %2807 = vmatprep.subr.mxu0 %v8480_v0  ;;  %2903 = vmatprep.subr.mxu1 %v8480_v0 }
 0x2bc   : > { %2808 = vmatpush1.msra.mxu0 %v8143_v4  ;;  %2904 = vmatpush1.msra.mxu1 %v8167_v5  ;;  %v8215_v4 = vld [vmem:[%s12353_s3 + $0x1020] sm:$0xff] }
 0x2bd   : > { %2809 = vmatprep.subr.mxu0 %v8480_v0  ;;  %2905 = vmatprep.subr.mxu1 %v8480_v0 }
 0x2be   : > { %2810 = vmatpush1.msra.mxu0 %v8142_v10  ;;  %2906 = vmatpush1.msra.mxu1 %v8166_v11  ;;  %v8214_v10 = vld [vmem:[%s12353_s3 + $0x1018] sm:$0xff]  ;;  %v8189_v11 = vld [vmem:[%s12353_s3 + $0xf60] sm:$0xff] }
 0x2bf   : > { %2811 = vmatprep.subr.mxu0 %v8480_v0  ;;  %2907 = vmatprep.subr.mxu1 %v8480_v0 }
 0x2c0   : > { %2812 = vmatpush1.msra.mxu0 %v8141_v12  ;;  %2908 = vmatpush1.msra.mxu1 %v8165_v13  ;;  %v8213_v12 = vld [vmem:[%s12353_s3 + $0x1010] sm:$0xff]  ;;  %v8188_v13 = vld [vmem:[%s12353_s3 + $0xf58] sm:$0xff] }
 0x2c1   : > { %2813 = vmatprep.subr.mxu0 %v8480_v0  ;;  %2909 = vmatprep.subr.mxu1 %v8480_v0 }
 0x2c2   : > { %2814 = vmatpush1.msra.mxu0 %v8140_v16  ;;  %2910 = vmatpush1.msra.mxu1 %v8164_v17  ;;  %v8212_v16 = vld [vmem:[%s12353_s3 + $0x1008] sm:$0xff]  ;;  %v8187_v17 = vld [vmem:[%s12353_s3 + $0xf50] sm:$0xff] }
 0x2c3   : > { %2815 = vmatprep.subr.mxu0 %v8480_v0  ;;  %2911 = vmatprep.subr.mxu1 %v8480_v0 }
 0x2c4   : > { %2816 = vmatpush1.msra.mxu0 %v8139_v18  ;;  %2912 = vmatpush1.msra.mxu1 %v8163_v19  ;;  %v8211_v18 = vld [vmem:[%s12353_s3 + $0x1000] sm:$0xff]  ;;  %v8186_v19 = vld [vmem:[%s12353_s3 + $0xf48] sm:$0xff] }
 0x2c5   : > { %2817 = vmatprep.subr.mxu0 %v8480_v0  ;;  %2913 = vmatprep.subr.mxu1 %v8480_v0 }
 0x2c6   : > { %2818 = vmatpush1.msra.mxu0 %v8138_v20  ;;  %2914 = vmatpush1.msra.mxu1 %v8162_v21  ;;  %v8210_v20 = vld [vmem:[%s12353_s3 + $0xff8] sm:$0xff]  ;;  %v8185_v21 = vld [vmem:[%s12353_s3 + $0xf40] sm:$0xff] }
 0x2c7   : > { %2819 = vmatprep.subr.mxu0 %v8480_v0  ;;  %2915 = vmatprep.subr.mxu1 %v8480_v0 }
 0x2c8   : > { %2820 = vmatpush1.msra.mxu0 %v8137_v22  ;;  %2916 = vmatpush1.msra.mxu1 %v8161_v25  ;;  %v8209_v22 = vld [vmem:[%s12353_s3 + $0xff0] sm:$0xff]  ;;  %v8184_v25 = vld [vmem:[%s12353_s3 + $0xf38] sm:$0xff] }
 0x2c9   : > { %2821 = vmatprep.subr.mxu0 %v8480_v0  ;;  %2917 = vmatprep.subr.mxu1 %v8480_v0 }
 0x2ca   : > { %2822 = vmatpush1.msra.mxu0 %v8136_v26  ;;  %2918 = vmatpush1.msra.mxu1 %v8160_v27  ;;  %v8208_v26 = vld [vmem:[%s12353_s3 + $0xfe8] sm:$0xff]  ;;  %v8183_v27 = vld [vmem:[%s12353_s3 + $0xf30] sm:$0xff] }
 0x2cb   : > { %2823 = vmatprep.subr.mxu0 %v8480_v0  ;;  %2919 = vmatprep.subr.mxu1 %v8480_v0 }
 0x2cc   : > { %2824 = vmatpush1.msra.mxu0 %v8135_v28  ;;  %2920 = vmatpush1.msra.mxu1 %v8159_v29  ;;  %v8207_v28 = vld [vmem:[%s12353_s3 + $0xfe0] sm:$0xff]  ;;  %v8182_v29 = vld [vmem:[%s12353_s3 + $0xf28] sm:$0xff] }
 0x2cd   : > { %2825 = vmatprep.subr.mxu0 %v8480_v0  ;;  %2921 = vmatprep.subr.mxu1 %v8480_v0 }
 0x2ce   : > { %2826 = vmatpush1.msra.mxu0 %v8134_v30  ;;  %2922 = vmatpush1.msra.mxu1 %v8158_v31  ;;  %v8206_v30 = vld [vmem:[%s12353_s3 + $0xfd8] sm:$0xff]  ;;  %v8181_v31 = vld [vmem:[%s12353_s3 + $0xf20] sm:$0xff] }
 0x2cf   : > { %2827 = vmatprep.subr.mxu0 %v8480_v0  ;;  %2923 = vmatprep.subr.mxu1 %v8480_v0 }
 0x2d0   : > { %2828 = vmatpush1.msra.mxu0 %v8133_v32  ;;  %2924 = vmatpush1.msra.mxu1 %v8157_v33  ;;  %v8205_v32 = vld [vmem:[%s12353_s3 + $0xfd0] sm:$0xff]  ;;  %v8202_v33 = vld [vmem:[%s12353_s3 + $0xfc8] sm:$0x1] }
 0x2d1   : > { %2849 = vmatprep.subr.mxu0 %v8480_v0  ;;  %2945 = vmatprep.subr.mxu1 %v8480_v0 }
 0x2d2   : > { %8155 = vmatpush2.msk.msra.mxu0 %vm873_vm2, %v8154_v36  ;;  %8179 = vmatpush2.msk.msra.mxu1 %vm873_vm2, %v8178_v37  ;;  %v8226_v36 = vld [vmem:[%s12353_s3 + $0x1078] sm:$0x1]  ;;  %v8201_v37 = vld [vmem:[%s12353_s3 + $0xfc0] sm:$0xff] }
 0x2d3   : > { %2851 = vmatprep.subr.mxu0 %v8480_v0  ;;  %2947 = vmatprep.subr.mxu1 %v8480_v0 }
 0x2d4   : > { %2852 = vmatpush2.msra.mxu0 %v8153_v38  ;;  %2948 = vmatpush2.msra.mxu1 %v8177_v39  ;;  %v8225_v38 = vld [vmem:[%s12353_s3 + $0x1070] sm:$0xff]  ;;  %v8200_v39 = vld [vmem:[%s12353_s3 + $0xfb8] sm:$0xff] }
 0x2d5   : > { %2853 = vmatprep.subr.mxu0 %v8480_v0  ;;  %2949 = vmatprep.subr.mxu1 %v8480_v0 }
 0x2d6   : > { %2854 = vmatpush2.msra.mxu0 %v8152_v40  ;;  %2950 = vmatpush2.msra.mxu1 %v8176_v41  ;;  %v8224_v40 = vld [vmem:[%s12353_s3 + $0x1068] sm:$0xff]  ;;  %v8199_v41 = vld [vmem:[%s12353_s3 + $0xfb0] sm:$0xff] }
 0x2d7   : > { %2855 = vmatprep.subr.mxu0 %v8480_v0  ;;  %2951 = vmatprep.subr.mxu1 %v8480_v0 }
 0x2d8   : > { %2856 = vmatpush2.msra.mxu0 %v8151_v42  ;;  %2952 = vmatpush2.msra.mxu1 %v8175_v43  ;;  %v8223_v42 = vld [vmem:[%s12353_s3 + $0x1060] sm:$0xff]  ;;  %v8198_v43 = vld [vmem:[%s12353_s3 + $0xfa8] sm:$0xff] }
 0x2d9   : > { %2857 = vmatprep.subr.mxu0 %v8480_v0  ;;  %2953 = vmatprep.subr.mxu1 %v8480_v0 }
 0x2da   : > { %2858 = vmatpush2.msra.mxu0 %v8150_v46  ;;  %2954 = vmatpush2.msra.mxu1 %v8174_v47  ;;  %v8222_v46 = vld [vmem:[%s12353_s3 + $0x1058] sm:$0xff]  ;;  %v8197_v47 = vld [vmem:[%s12353_s3 + $0xfa0] sm:$0xff] }
 0x2db   : > { %2859 = vmatprep.subr.mxu0 %v8480_v0  ;;  %2955 = vmatprep.subr.mxu1 %v8480_v0 }
 0x2dc   : > { %2860 = vmatpush2.msra.mxu0 %v8149_v48  ;;  %2956 = vmatpush2.msra.mxu1 %v8173_v51  ;;  %v8221_v48 = vld [vmem:[%s12353_s3 + $0x1050] sm:$0xff]  ;;  %v8244_v51 = vld [vmem:[%s12353_s3 + $0x10f8] sm:$0xff] }
 0x2dd   : > { %2862 = vmatmul.mubr.f32.vlgmr.msra.gmra.mxu0 %v8885_v45  ;;  %2958 = vmatmul.mubr.f32.vlgmr.msra.gmra.mxu1 %v8885_v45 }
 0x2de   : > { %2989 = vmatprep.subr.mxu0 %v8480_v0  ;;  %3085 = vmatprep.subr.mxu1 %v8480_v0 }
 0x2df   : > { %2990 = vmatpush1.msra.mxu0 %v8196_v52  ;;  %8204 = vmatprep.mubr.msk.f32.mxu0 %vm869_vm3, %v8883_v44  ;;  %v8243_v52 = vld [vmem:[%s12353_s3 + $0x10f0] sm:$0xff] }
 0x2e0   : > { %3086 = vmatpush1.msra.mxu1 %v8220_v53  ;;  %8228 = vmatprep.mubr.msk.f32.mxu1 %vm869_vm3, %v8883_v44  ;;  %v8242_v53 = vld [vmem:[%s12353_s3 + $0x10e8] sm:$0xff] }
 0x2e1   : > { %2991 = vmatprep.subr.mxu0 %v8480_v0  ;;  %3087 = vmatprep.subr.mxu1 %v8480_v0 }
 0x2e2   : > { %2992 = vmatpush1.msra.mxu0 %v8195_v54  ;;  %3088 = vmatpush1.msra.mxu1 %v8219_v55  ;;  %v8240_v54 = vld [vmem:[%s12353_s3 + $0x10d8] sm:$0xff] }
 0x2e3   : > { %2993 = vmatprep.subr.mxu0 %v8480_v0  ;;  %3089 = vmatprep.subr.mxu1 %v8480_v0 }
 0x2e4   : > { %2994 = vmatpush1.msra.mxu0 %v8194_v56  ;;  %3090 = vmatpush1.msra.mxu1 %v8218_v57  ;;  %v8239_v57 = vld [vmem:[%s12353_s3 + $0x10d0] sm:$0xff] }
 0x2e5   : > { %2995 = vmatprep.subr.mxu0 %v8480_v0  ;;  %3091 = vmatprep.subr.mxu1 %v8480_v0  ;;  %v10797_v62 = vpop.f32.mrf.mxu0  ;;  %v10799_v63 = vpop.f32.mrf.mxu1 }
 0x2e6   : > { %2996 = vmatpush1.msra.mxu0 %v8193_v58  ;;  %3092 = vmatpush1.msra.mxu1 %v8217_v59 }
 0x2e7   : > { %2997 = vmatprep.subr.mxu0 %v8480_v0  ;;  %3093 = vmatprep.subr.mxu1 %v8480_v0  ;;  %v2097_v5 = vpop.f32.mrf.mxu0  ;;  %v2193_v6 = vpop.f32.mrf.mxu1 }
 0x2e8   : > { %2998 = vmatpush1.msra.mxu0 %v8192_v60  ;;  %3094 = vmatpush1.msra.mxu1 %v8216_v61  ;;  %v8238_v60 = vld [vmem:[%s12353_s3 + $0x10c8] sm:$0xff]  ;;  %v8237_v61 = vld [vmem:[%s12353_s3 + $0x10c0] sm:$0xff] }
 0x2e9   : > { %2999 = vmatprep.subr.mxu0 %v8480_v0  ;;  %3095 = vmatprep.subr.mxu1 %v8480_v0 }
 0x2ea   : > { %3000 = vmatpush1.msra.mxu0 %v8191_v1  ;;  %3096 = vmatpush1.msra.mxu1 %v8215_v4  ;;  %v8236_v1 = vld [vmem:[%s12353_s3 + $0x10b8] sm:$0xff] }
 0x2eb   : > { %3001 = vmatprep.subr.mxu0 %v8480_v0  ;;  %3097 = vmatprep.subr.mxu1 %v8480_v0 }
 0x2ec   : > { %3002 = vmatpush1.msra.mxu0 %v8190_v9  ;;  %3098 = vmatpush1.msra.mxu1 %v8214_v10 }
 0x2ed   : > { %3003 = vmatprep.subr.mxu0 %v8480_v0  ;;  %3099 = vmatprep.subr.mxu1 %v8480_v0 }
 0x2ee   : > { %3004 = vmatpush1.msra.mxu0 %v8189_v11  ;;  %3100 = vmatpush1.msra.mxu1 %v8213_v12 }
 0x2ef   : > { %3005 = vmatprep.subr.mxu0 %v8480_v0  ;;  %3101 = vmatprep.subr.mxu1 %v8480_v0 }
 0x2f0   : > { %3006 = vmatpush1.msra.mxu0 %v8188_v13  ;;  %3102 = vmatpush1.msra.mxu1 %v8212_v16  ;;  %v3252_v13 = vld [vmem:[%s12354_s4 + $0x8] sm:$0xff] }
 0x2f1   : > { %3007 = vmatprep.subr.mxu0 %v8480_v0  ;;  %3103 = vmatprep.subr.mxu1 %v8480_v0 }
 0x2f2   : > { %3008 = vmatpush1.msra.mxu0 %v8187_v17  ;;  %3104 = vmatpush1.msra.mxu1 %v8211_v18 }
 0x2f3   : > { %3009 = vmatprep.subr.mxu0 %v8480_v0  ;;  %3105 = vmatprep.subr.mxu1 %v8480_v0 }
 0x2f4   : > { %3010 = vmatpush1.msra.mxu0 %v8186_v19  ;;  %3106 = vmatpush1.msra.mxu1 %v8210_v20 }
 0x2f5   : > { %3011 = vmatprep.subr.mxu0 %v8480_v0  ;;  %3107 = vmatprep.subr.mxu1 %v8480_v0 }
 0x2f6   : > { %3012 = vmatpush1.msra.mxu0 %v8185_v21  ;;  %3108 = vmatpush1.msra.mxu1 %v8209_v22 }
 0x2f7   : > { %3013 = vmatprep.subr.mxu0 %v8480_v0  ;;  %3109 = vmatprep.subr.mxu1 %v8480_v0 }
 0x2f8   : > { %3014 = vmatpush1.msra.mxu0 %v8184_v25  ;;  %3110 = vmatpush1.msra.mxu1 %v8208_v26 }
 0x2f9   : > { %3015 = vmatprep.subr.mxu0 %v8480_v0  ;;  %3111 = vmatprep.subr.mxu1 %v8480_v0 }
 0x2fa   : > { %3016 = vmatpush1.msra.mxu0 %v8183_v27  ;;  %3112 = vmatpush1.msra.mxu1 %v8207_v28  ;;  %v3251_v28 = vld [vmem:[%s12354_s4] sm:$0xff] }
 0x2fb   : > { %3017 = vmatprep.subr.mxu0 %v8480_v0  ;;  %3113 = vmatprep.subr.mxu1 %v8480_v0 }
 0x2fc   : > { %3018 = vmatpush1.msra.mxu0 %v8182_v29  ;;  %3114 = vmatpush1.msra.mxu1 %v8206_v30  ;;  %v3254_v29 = vld [vmem:[%s12354_s4 + $0x18] sm:$0x3]  ;;  %v3253_v30 = vld [vmem:[%s12354_s4 + $0x10] sm:$0x3] }
 0x2fd   : > { %3019 = vmatprep.subr.mxu0 %v8480_v0  ;;  %3115 = vmatprep.subr.mxu1 %v8480_v0 }
 0x2fe   : > { %3020 = vmatpush1.msra.mxu0 %v8181_v31  ;;  %3116 = vmatpush1.msra.mxu1 %v8205_v32  ;;  %v3387_v31 = vld [vmem:[%s12356_s6 + $0x48] sm:$0xff]  ;;  %v3386_v32 = vld [vmem:[%s12356_s6 + $0x40] sm:$0xff] }
 0x2ff   : > { %3041 = vmatprep.subr.mxu0 %v8480_v0  ;;  %3137 = vmatprep.subr.mxu1 %v8480_v0 }
 0x300   : > { %8203 = vmatpush2.msk.msra.mxu0 %vm873_vm2, %v8202_v33  ;;  %8227 = vmatpush2.msk.msra.mxu1 %vm873_vm2, %v8226_v36  ;;  %v3379_v33 = vld [vmem:[%s12356_s6 + $0x8] sm:$0xff]  ;;  %v3389_v36 = vld [vmem:[%s12356_s6 + $0x58] sm:$0xff] }
 0x301   : > { %3043 = vmatprep.subr.mxu0 %v8480_v0  ;;  %3139 = vmatprep.subr.mxu1 %v8480_v0 }
 0x302   : > { %3044 = vmatpush2.msra.mxu0 %v8201_v37  ;;  %3140 = vmatpush2.msra.mxu1 %v8225_v38  ;;  %v3388_v37 = vld [vmem:[%s12356_s6 + $0x50] sm:$0xff]  ;;  %v3381_v38 = vld [vmem:[%s12356_s6 + $0x18] sm:$0xff] }
 0x303   : > { %3045 = vmatprep.subr.mxu0 %v8480_v0  ;;  %3141 = vmatprep.subr.mxu1 %v8480_v0 }
 0x304   : > { %3046 = vmatpush2.msra.mxu0 %v8200_v39  ;;  %3142 = vmatpush2.msra.mxu1 %v8224_v40  ;;  %v3378_v39 = vld [vmem:[%s12356_s6] sm:$0xff]  ;;  %v3380_v40 = vld [vmem:[%s12356_s6 + $0x10] sm:$0xff] }
 0x305   : > { %3047 = vmatprep.subr.mxu0 %v8480_v0  ;;  %3143 = vmatprep.subr.mxu1 %v8480_v0 }
 0x306   : > { %3048 = vmatpush2.msra.mxu0 %v8199_v41  ;;  %3144 = vmatpush2.msra.mxu1 %v8223_v42  ;;  %v3391_v41 = vld [vmem:[%s12356_s6 + $0x68] sm:$0xff]  ;;  %v3393_v42 = vld [vmem:[%s12356_s6 + $0x78] sm:$0xff] }
 0x307   : > { %3049 = vmatprep.subr.mxu0 %v8480_v0  ;;  %3145 = vmatprep.subr.mxu1 %v8480_v0 }
 0x308   : > { %3050 = vmatpush2.msra.mxu0 %v8198_v43  ;;  %3146 = vmatpush2.msra.mxu1 %v8222_v46  ;;  %v3260_v43 = vpop.permute.xlu0 %3259 }
 0x309   : > { %3051 = vmatprep.subr.mxu0 %v8480_v0  ;;  %3147 = vmatprep.subr.mxu1 %v8480_v0 }
 0x30a   : > { %3052 = vmatpush2.msra.mxu0 %v8197_v47  ;;  %3148 = vmatpush2.msra.mxu1 %v8221_v48 }
 0x30b   : > { %3054 = vmatmul.mubr.f32.vlgmr.msra.gmra.mxu0 %v8885_v45  ;;  %3150 = vmatmul.mubr.f32.vlgmr.msra.gmra.mxu1 %v8885_v45 }
 0x30c   : > { %3181 = vmatprep.subr.mxu0 %v8480_v0  ;;  %8252 = vmatprep.mubr.msk.f32.mxu0 %vm869_vm3, %v8883_v44  ;;  %v8241_v44 = vld [vmem:[%s12353_s3 + $0x10e0] sm:$0xff] }
 0x30d   : > { %3182 = vmatpush1.msra.mxu0 %v8244_v51  ;;  %3274 = vmatprep.subr.mxu1 %v8480_v0 }
 0x30e   : > { %3183 = vmatprep.subr.mxu0 %v8480_v0  ;;  %8253 = vmatprep.mubr.msk.f32.mxu1 %vm3267_vm4, %v3252_v13  ;;  %v4112_v13 = vld [vmem:[%s12356_s6 + $0x148] sm:$0xff] }
 0x30f   : > { %3184 = vmatpush1.msra.mxu0 %v8243_v52 }
 0x310   : > { %3185 = vmatprep.subr.mxu0 %v8480_v0 }
 0x311   : > { %3186 = vmatpush1.msra.mxu0 %v8242_v53 }
 0x312   : > { %3187 = vmatprep.subr.mxu0 %v8480_v0 }
 0x313   : > { %3188 = vmatpush1.msra.mxu0 %v8241_v44  ;;  %v2287_v55 = vpop.f32.mrf.mxu0  ;;  %v2383_v56 = vpop.f32.mrf.mxu1 }
 0x314   : > { %3189 = vmatprep.subr.mxu0 %v8480_v0  ;;  %3275 = vmatpush1.msra.mxu1 %v2383_v56 }
 0x315   : > { %3190 = vmatpush1.msra.mxu0 %v8240_v54  ;;  %v2289_v58 = vpop.f32.mrf.mxu0  ;;  %v2385_v59 = vpop.f32.mrf.mxu1  ;;  %3276 = vmatprep.subr.mxu1 %v8480_v0 }
 0x316   : > { %3191 = vmatprep.subr.mxu0 %v8480_v0  ;;  %3277 = vmatpush1.msra.mxu1 %v2287_v55 }
 0x317   : > { %3192 = vmatpush1.msra.mxu0 %v8239_v57  ;;  %3278 = vmatprep.subr.mxu1 %v8480_v0 }
 0x318   : > { %3193 = vmatprep.subr.mxu0 %v8480_v0  ;;  %3279 = vmatpush1.msra.mxu1 %v10799_v63  ;;  %v8235_v63 = vld [vmem:[%s12353_s3 + $0x10b0] sm:$0xff] }
 0x319   : > { %3194 = vmatpush1.msra.mxu0 %v8238_v60  ;;  %3280 = vmatprep.subr.mxu1 %v8480_v0 }
 0x31a   : > { %3195 = vmatprep.subr.mxu0 %v8480_v0  ;;  %3281 = vmatpush1.msra.mxu1 %v10797_v62  ;;  %v8234_v62 = vld [vmem:[%s12353_s3 + $0x10a8] sm:$0xff] }
 0x31b   : > { %3196 = vmatpush1.msra.mxu0 %v8237_v61  ;;  %3282 = vmatprep.subr.mxu1 %v8480_v0  ;;  %v3390_v61 = vld [vmem:[%s12356_s6 + $0x60] sm:$0xff] }
 0x31c   : > { %3197 = vmatprep.subr.mxu0 %v8480_v0  ;;  %3283 = vmatpush1.msra.mxu1 %v10611_v3  ;;  %v8233_v3 = vld [vmem:[%s12353_s3 + $0x10a0] sm:$0xff] }
 0x31d   : > { %3198 = vmatpush1.msra.mxu0 %v8236_v1  ;;  %3284 = vmatprep.subr.mxu1 %v8480_v0  ;;  %v3392_v1 = vld [vmem:[%s12356_s6 + $0x70] sm:$0xff] }
 0x31e   : > { %3199 = vmatprep.subr.mxu0 %v8480_v0  ;;  %3285 = vmatpush1.msra.mxu1 %v10609_v2  ;;  %v8232_v2 = vld [vmem:[%s12353_s3 + $0x1098] sm:$0xff] }
 0x31f   : > { %3200 = vmatpush1.msra.mxu0 %v8235_v63  ;;  %3286 = vmatprep.subr.mxu1 %v8480_v0  ;;  %v3383_v63 = vld [vmem:[%s12356_s6 + $0x28] sm:$0xff] }
 0x320   : > { %3201 = vmatprep.subr.mxu0 %v8480_v0  ;;  %3287 = vmatpush1.msra.mxu1 %v10423_v8  ;;  %v8231_v8 = vld [vmem:[%s12353_s3 + $0x1090] sm:$0xff] }
 0x321   : > { %3202 = vmatpush1.msra.mxu0 %v8234_v62  ;;  %3288 = vmatprep.subr.mxu1 %v8480_v0  ;;  %v3385_v62 = vld [vmem:[%s12356_s6 + $0x38] sm:$0xff] }
 0x322   : > { %3203 = vmatprep.subr.mxu0 %v8480_v0  ;;  %3289 = vmatpush1.msra.mxu1 %v10421_v7  ;;  %v8230_v7 = vld [vmem:[%s12353_s3 + $0x1088] sm:$0xff] }
 0x323   : > { %3204 = vmatpush1.msra.mxu0 %v8233_v3  ;;  %3290 = vmatprep.subr.mxu1 %v8480_v0  ;;  %v3382_v3 = vld [vmem:[%s12356_s6 + $0x20] sm:$0xff] }
 0x324   : > { %3205 = vmatprep.subr.mxu0 %v8480_v0  ;;  %3291 = vmatpush1.msra.mxu1 %v10235_v15  ;;  %v8229_v15 = vld [vmem:[%s12353_s3 + $0x1080] sm:$0xff] }
 0x325   : > { %3206 = vmatpush1.msra.mxu0 %v8232_v2  ;;  %3292 = vmatprep.subr.mxu1 %v8480_v0  ;;  %v3384_v2 = vld [vmem:[%s12356_s6 + $0x30] sm:$0xff] }
 0x326   : > { %3207 = vmatprep.subr.mxu0 %v8480_v0  ;;  %3293 = vmatpush1.msra.mxu1 %v10233_v14  ;;  %v8250_v14 = vld [vmem:[%s12353_s3 + $0x1128] sm:$0x1] }
 0x327   : > { %3208 = vmatpush1.msra.mxu0 %v8231_v8  ;;  %3294 = vmatprep.subr.mxu1 %v8480_v0  ;;  %v3750_v8 = vld [vmem:[%s12356_s6 + $0xc8] sm:$0xff] }
 0x328   : > { %3209 = vmatprep.subr.mxu0 %v8480_v0  ;;  %3295 = vmatpush1.msra.mxu1 %v10047_v24  ;;  %v8249_v24 = vld [vmem:[%s12353_s3 + $0x1120] sm:$0xff] }
 0x329   : > { %3210 = vmatpush1.msra.mxu0 %v8230_v7  ;;  %3296 = vmatprep.subr.mxu1 %v8480_v0  ;;  %v3752_v7 = vld [vmem:[%s12356_s6 + $0xd8] sm:$0xff] }
 0x32a   : > { %3211 = vmatprep.subr.mxu0 %v8480_v0  ;;  %3297 = vmatpush1.msra.mxu1 %v10045_v23  ;;  %v8248_v23 = vld [vmem:[%s12353_s3 + $0x1118] sm:$0xff] }
 0x32b   : > { %3212 = vmatpush1.msra.mxu0 %v8229_v15  ;;  %3298 = vmatprep.subr.mxu1 %v8480_v0  ;;  %v3749_v15 = vld [vmem:[%s12356_s6 + $0xc0] sm:$0xff] }
 0x32c   : > { %3233 = vmatprep.subr.mxu0 %v8480_v0  ;;  %3299 = vmatpush1.msra.mxu1 %v9859_v35  ;;  %v8247_v35 = vld [vmem:[%s12353_s3 + $0x1110] sm:$0xff] }
 0x32d   : > { %8251 = vmatpush2.msk.msra.mxu0 %vm873_vm2, %v8250_v14  ;;  %3300 = vmatprep.subr.mxu1 %v8480_v0  ;;  %v3751_v14 = vld [vmem:[%s12356_s6 + $0xd0] sm:$0xff] }
 0x32e   : > { %3235 = vmatprep.subr.mxu0 %v8480_v0  ;;  %3301 = vmatpush1.msra.mxu1 %v9857_v34  ;;  %v8246_v34 = vld [vmem:[%s12353_s3 + $0x1108] sm:$0xff] }
 0x32f   : > { %3236 = vmatpush2.msra.mxu0 %v8249_v24  ;;  %3302 = vmatprep.subr.mxu1 %v8480_v0  ;;  %v3742_v24 = vld [vmem:[%s12356_s6 + $0x88] sm:$0xff] }
 0x330   : > { %3237 = vmatprep.subr.mxu0 %v8480_v0  ;;  %3303 = vmatpush1.msra.mxu1 %v9671_v50  ;;  %v8245_v50 = vld [vmem:[%s12353_s3 + $0x1100] sm:$0xff] }
 0x331   : > { %3238 = vmatpush2.msra.mxu0 %v8248_v23  ;;  %3304 = vmatprep.subr.mxu1 %v8480_v0  ;;  %v3744_v23 = vld [vmem:[%s12356_s6 + $0x98] sm:$0xff] }
 0x332   : > { %3239 = vmatprep.subr.mxu0 %v8480_v0  ;;  %3305 = vmatpush1.msra.mxu1 %v9669_v49 }
 0x333   : > { %3240 = vmatpush2.msra.mxu0 %v8247_v35  ;;  %3320 = vmatprep.subr.mxu1 %v8480_v0  ;;  %v3741_v35 = vld [vmem:[%s12356_s6 + $0x80] sm:$0xff] }
 0x334   : > { %3241 = vmatprep.subr.mxu0 %v8480_v0 }
 0x335   : > { %3242 = vmatpush2.msra.mxu0 %v8246_v34  ;;  %v3743_v34 = vld [vmem:[%s12356_s6 + $0x90] sm:$0xff] }
 0x336   : > { %3243 = vmatprep.subr.mxu0 %v8480_v0 }
 0x337   : > { %3244 = vmatpush2.msra.mxu0 %v8245_v50  ;;  %v3754_v50 = vld [vmem:[%s12356_s6 + $0xe8] sm:$0xff] }
 0x338   : > { %3246 = vmatmul.mubr.f32.vlgmr.msra.gmra.mxu0 %v8885_v45  ;;  %v3256_v45 = vld [vmem:[%s12355_s5 + $0x8] sm:$0x3]  ;;  %3497 = vmatprep.subr.mxu0 %v3389_v36  ;;  %v4476_v36 = vld [vmem:[%s12356_s6 + $0x1d8] sm:$0xff] }
 0x339   : > { %3533 = vmatprep.mubr.f32.mxu0 %v8480_v0  ;;  %3264 = vperm.xlu1 %8471, %v3256_v45   ;;  %v4114_v45 = vld [vmem:[%s12356_s6 + $0x158] sm:$0xff] }
 0x33a   : > { %3498 = vmatpush1.msra.mxu0 %v3388_v37  ;;  %v4473_v37 = vld [vmem:[%s12356_s6 + $0x1c0] sm:$0xff] }
 0x33b   : > { %3499 = vmatprep.subr.mxu0 %v3381_v38  ;;  %v4475_v38 = vld [vmem:[%s12356_s6 + $0x1d0] sm:$0xff] }
 0x33c   : > { %3500 = vmatpush1.msra.mxu0 %v3380_v40  ;;  %v4468_v40 = vld [vmem:[%s12356_s6 + $0x198] sm:$0xff] }
 0x33d   : > { %3568 = vmatprep.subr.mxu0 %v3391_v41  ;;  %v4465_v41 = vld [vmem:[%s12356_s6 + $0x180] sm:$0xff] }
 0x341   : > { %v2479_v4 = vpop.f32.mrf.mxu0  ;;  %v2575_v5 = vpop.f32.mrf.mxu1 }
 0x343   : > { %v2481_v49 = vpop.f32.mrf.mxu0  ;;  %v2577_v6 = vpop.f32.mrf.mxu1 }
 0x344   : > { %v3753_v49 = vld [vmem:[%s12356_s6 + $0xe0] sm:$0xff]  ;;  %v3755_v6 = vld [vmem:[%s12356_s6 + $0xf0] sm:$0xff] }
 0x36f   : > { %v2671_v9 = vpop.f32.mrf.mxu0  ;;  %v2767_v10 = vpop.f32.mrf.mxu1 }
 0x371   : > { %v2673_v11 = vpop.f32.mrf.mxu0  ;;  %v2769_v12 = vpop.f32.mrf.mxu1 }
 0x372   : > { %v3745_v11 = vld [vmem:[%s12356_s6 + $0xa0] sm:$0xff]  ;;  %v3747_v12 = vld [vmem:[%s12356_s6 + $0xb0] sm:$0xff] }
 0x39d   : > { %v2863_v16 = vpop.f32.mrf.mxu0  ;;  %v2959_v17 = vpop.f32.mrf.mxu1 }
 0x39f   : > { %v2865_v18 = vpop.f32.mrf.mxu0  ;;  %v2961_v19 = vpop.f32.mrf.mxu1 }
 0x3a0   : > { %v4104_v18 = vld [vmem:[%s12356_s6 + $0x108] sm:$0xff]  ;;  %v4106_v19 = vld [vmem:[%s12356_s6 + $0x118] sm:$0xff] }
 0x3b4   : > { %v3265_v51 = vpop.permute.xlu1 %3264 }
 0x3cb   : > { %v3055_v20 = vpop.f32.mrf.mxu0  ;;  %v3151_v21 = vpop.f32.mrf.mxu1 }
 0x3cd   : > { %v3057_v22 = vpop.f32.mrf.mxu0  ;;  %v3153_v25 = vpop.f32.mrf.mxu1 }
 0x3ce   : > { %v4116_v22 = vld [vmem:[%s12356_s6 + $0x168] sm:$0xff]  ;;  %v4118_v25 = vld [vmem:[%s12356_s6 + $0x178] sm:$0xff] }
 0x3f8   : > { %v3247_v26 = vpop.f32.mrf.mxu0 }
 0x3f9   : > { %3321 = vmatpush2.msra.mxu1 %v3247_v26 }
 0x3fa   : > { %v3249_v27 = vpop.f32.mrf.mxu0  ;;  %3322 = vmatprep.subr.mxu1 %v8480_v0 }
 0x3fb   : > { %3323 = vmatpush2.msra.mxu1 %v3151_v21  ;;  %v4105_v21 = vld [vmem:[%s12356_s6 + $0x110] sm:$0xff]  ;;  %v4115_v27 = vld [vmem:[%s12356_s6 + $0x160] sm:$0xff] }
 0x3fc   : > { %3324 = vmatprep.subr.mxu1 %v8480_v0 }
 0x3fd   : > { %3325 = vmatpush2.msra.mxu1 %v3055_v20  ;;  %v4103_v20 = vld [vmem:[%s12356_s6 + $0x100] sm:$0xff] }
 0x3fe   : > { %3326 = vmatprep.subr.mxu1 %v8480_v0 }
 0x3ff   : > { %3327 = vmatpush2.msra.mxu1 %v2959_v17  ;;  %v4113_v17 = vld [vmem:[%s12356_s6 + $0x150] sm:$0xff] }
 0x400   : > { %3328 = vmatprep.subr.mxu1 %v8480_v0 }
 0x401   : > { %3329 = vmatpush2.msra.mxu1 %v2863_v16  ;;  %v4111_v16 = vld [vmem:[%s12356_s6 + $0x140] sm:$0xff] }
 0x402   : > { %3330 = vmatprep.subr.mxu1 %v8480_v0 }
 0x403   : > { %3331 = vmatpush2.msra.mxu1 %v2767_v10  ;;  %v3748_v10 = vld [vmem:[%s12356_s6 + $0xb8] sm:$0xff] }
 0x404   : > { %3332 = vmatprep.subr.mxu1 %v8480_v0 }
 0x405   : > { %3333 = vmatpush2.msra.mxu1 %v2671_v9  ;;  %v3746_v9 = vld [vmem:[%s12356_s6 + $0xa8] sm:$0xff] }
 0x406   : > { %3334 = vmatprep.subr.mxu1 %v8480_v0 }
 0x407   : > { %3335 = vmatpush2.msra.mxu1 %v2575_v5 }
 0x408   : > { %3336 = vmatprep.subr.mxu1 %v8480_v0 }
 0x409   : > { %3337 = vmatpush2.msra.mxu1 %v2479_v4  ;;  %v3756_v4 = vld [vmem:[%s12356_s6 + $0xf8] sm:$0xff] }
 0x40a   : > { %3339 = vmatmul.mubr.f32.vlgmr.msra.gmra.mxu1 %v3251_v28  ;;  %3426 = vmatprep.subr.mxu1 %v3387_v31  ;;  %v4117_v28 = vld [vmem:[%s12356_s6 + $0x170] sm:$0xff]  ;;  %v4107_v31 = vld [vmem:[%s12356_s6 + $0x120] sm:$0xff] }
 0x40b   : > { %8254 = vmatprep.mubr.msk.f32.mxu1 %vm3267_vm4, %v3254_v29  ;;  %3427 = vmatpush1.msra.mxu1 %v3386_v32  ;;  %v4108_v29 = vld [vmem:[%s12356_s6 + $0x128] sm:$0xff]  ;;  %v4109_v32 = vld [vmem:[%s12356_s6 + $0x130] sm:$0xff] }
 0x40c   : > { %3428 = vmatprep.subr.mxu1 %v3379_v33  ;;  %v4474_v33 = vld [vmem:[%s12356_s6 + $0x1c8] sm:$0xff] }
 0x40d   : > { %3429 = vmatpush1.msra.mxu1 %v3378_v39  ;;  %v4466_v39 = vld [vmem:[%s12356_s6 + $0x188] sm:$0xff] }
 0x40e   : > { %3344 = vmatmul.mubr.f32.gmra.mxu1 %v3253_v30  ;;  %3639 = vmatprep.subr.mxu1 %v3393_v42  ;;  %v4110_v30 = vld [vmem:[%s12356_s6 + $0x138] sm:$0xff]  ;;  %v4467_v42 = vld [vmem:[%s12356_s6 + $0x190] sm:$0xff] }
 0x40f   : > { %3462 = vmatprep.mubr.f32.mxu1 %v8480_v0 }
 0x4ca   : > { %v3340_v46 = vpop.f32.mrf.mxu1 }
 0x4cb   : > { %v3341_v47 = vadd.f32 %v3340_v46, %v3260_v43  ;;  %v4478_v43 = vld [vmem:[%s12356_s6 + $0x1e8] sm:$0xff]  ;;  %v4480_v46 = vld [vmem:[%s12356_s6 + $0x1f8] sm:$0xff] }
 0x4cc   : > { %v3342_v48 = vpop.f32.mrf.mxu1 }
 0x4cd   : > { %3359 = vrot.lane.b32.xlu0 %v3341_v47, %s8482_s27  ;;  %3351 = vrot.lane.b32.xlu1 %v3341_v47, %s8483_s28  ;;  %v4477_v48 = vld [vmem:[%s12356_s6 + $0x1e0] sm:$0xff] }
 0x4ce   : > { %v3345_v52 = vpop.f32.mrf.mxu1 }
 0x4cf   : > { %v11123_v53 = vadd.f32 %v3345_v52, %v3265_v51  ;;  %v4479_v51 = vld [vmem:[%s12356_s6 + $0x1f0] sm:$0xff]  ;;  %v4470_v52 = vld [vmem:[%s12356_s6 + $0x1a8] sm:$0xff] }
 0x4d0   : > { %v3347_v44 = vpop.f32.mrf.mxu1 }
 0x4d1   : > { %3353 = vrot.lane.b32.xlu0 %v11123_v53, %s8483_s28  ;;  %3367 = vrot.lane.b32.xlu1 %v3341_v47, %s8484_s29  ;;  %v4472_v44 = vld [vmem:[%s12356_s6 + $0x1b8] sm:$0xff] }
 0x4d5   : > { %3361 = vrot.lane.b32.xlu1 %v11123_v53, %s8482_s27  ;;  %3369 = vrot.lane.b32.xlu0 %v11123_v53, %s8484_s29 }
 0x53f   : > { %v3352_v54 = vpop.permute.xlu1 %3351  ;;  %v3360_v56 = vpop.permute.xlu0 %3359 }
 0x540   : > { %v3357_v55 = vmax.f32 %v3341_v47, %v3352_v54  ;;  %v4469_v54 = vld [vmem:[%s12356_s6 + $0x1a0] sm:$0xff] }
 0x542   : > { %v3365_v57 = vmax.f32 %v3357_v55, %v3360_v56  ;;  %v4471_v55 = vld [vmem:[%s12356_s6 + $0x1b0] sm:$0xff]  ;;  %v4836_v56 = vld [vmem:[%s12356_s6 + $0x248] sm:$0xff] }
 0x543   : > { %v3368_v58 = vpop.permute.xlu1 %3367 }
 0x544   : > { %v3373_v59 = vmax.f32 %v3365_v57, %v3368_v58  ;;  %v4838_v57 = vld [vmem:[%s12356_s6 + $0x258] sm:$0xff]  ;;  %v4835_v58 = vld [vmem:[%s12356_s6 + $0x240] sm:$0xff] }
 0x546   : > { %v11128_v60 = vmax.f32 %v3373_v59, 0.0  ;;  %v4837_v59 = vld [vmem:[%s12356_s6 + $0x250] sm:$0xff] }
 0x548   : > { %8255 = vmatmul.mubr.msk.f32.vlgmr.msra.gmra.mxu1 %vm3394_vm5, %v11128_v60  ;;  %8256 = vmatmul.mubr.msk.f32.vlgmr.msra.gmra.mxu0 %vm3394_vm5, %v11128_v60  ;;  %v3757_v5 = vrot.slane %v11128_v60, 1  ;;  %v4119_v26 = vrot.slane %v11128_v60, 2  ;;  %v4481_v47 = vrot.slane %v11128_v60, 3 }
 0x549   : > { %3569 = vmatpush1.msra.mxu0 %v3390_v61  ;;  %3640 = vmatpush1.msra.mxu1 %v3392_v1  ;;  %v4828_v61 = vld [vmem:[%s12356_s6 + $0x208] sm:$0xff]  ;;  %v4830_v1 = vld [vmem:[%s12356_s6 + $0x218] sm:$0xff] }
 0x54a   : > { %3570 = vmatprep.subr.mxu0 %v3383_v63  ;;  %3641 = vmatprep.subr.mxu1 %v3385_v62  ;;  %v4827_v63 = vld [vmem:[%s12356_s6 + $0x200] sm:$0xff]  ;;  %v4829_v62 = vld [vmem:[%s12356_s6 + $0x210] sm:$0xff] }
 0x54b   : > { %3571 = vmatpush1.msra.mxu0 %v3382_v3  ;;  %3642 = vmatpush1.msra.mxu1 %v3384_v2  ;;  %v4840_v3 = vld [vmem:[%s12356_s6 + $0x268] sm:$0xff]  ;;  %v4842_v2 = vld [vmem:[%s12356_s6 + $0x278] sm:$0xff] }
 0x54c   : > { %3604 = vmatprep.mubr.f32.mxu0 %v8480_v0  ;;  %3675 = vmatprep.mubr.f32.mxu1 %v8480_v0 }
 0x54d   : > { %3788 = vmatprep.subr.mxu0 %v3750_v8  ;;  %3859 = vmatprep.subr.mxu1 %v3752_v7  ;;  %v4843_v8 = vrot.slane %v11128_v60, 4  ;;  %v4839_v7 = vld [vmem:[%s12356_s6 + $0x260] sm:$0xff] }
 0x54e   : > { %8257 = vmatmul.mubr.msk.f32.vlgmr.msra.gmra.mxu0 %vm3394_vm5, %v11128_v60  ;;  %8258 = vmatmul.mubr.msk.f32.vlgmr.msra.gmra.mxu1 %vm3394_vm5, %v11128_v60 }
 0x54f   : > { %3789 = vmatpush1.msra.mxu0 %v3749_v15  ;;  %3860 = vmatpush1.msra.mxu1 %v3751_v14  ;;  %v4841_v15 = vld [vmem:[%s12356_s6 + $0x270] sm:$0xff]  ;;  %v4832_v14 = vld [vmem:[%s12356_s6 + $0x228] sm:$0xff] }
 0x550   : > { %3790 = vmatprep.subr.mxu0 %v3742_v24  ;;  %3861 = vmatprep.subr.mxu1 %v3744_v23  ;;  %v4834_v24 = vld [vmem:[%s12356_s6 + $0x238] sm:$0xff]  ;;  %v4831_v23 = vld [vmem:[%s12356_s6 + $0x220] sm:$0xff] }
 0x551   : > { %3791 = vmatpush1.msra.mxu0 %v3741_v35  ;;  %3862 = vmatpush1.msra.mxu1 %v3743_v34  ;;  %v4833_v35 = vld [vmem:[%s12356_s6 + $0x230] sm:$0xff]  ;;  %v5198_v34 = vld [vmem:[%s12356_s6 + $0x2c8] sm:$0xff] }
 0x552   : > { %3824 = vmatprep.mubr.f32.mxu0 %v8480_v0  ;;  %3895 = vmatprep.mubr.f32.mxu1 %v8480_v0 }
 0x553   : > { %3930 = vmatprep.subr.mxu0 %v3754_v50  ;;  %4001 = vmatprep.subr.mxu1 %v3756_v4  ;;  %v5200_v50 = vld [vmem:[%s12356_s6 + $0x2d8] sm:$0xff]  ;;  %v5197_v4 = vld [vmem:[%s12356_s6 + $0x2c0] sm:$0xff] }
 0x554   : > { %8259 = vmatmul.mubr.msk.f32.vlgmr.msra.gmra.mxu0 %vm3394_vm5, %v3757_v5  ;;  %8260 = vmatmul.mubr.msk.f32.vlgmr.msra.gmra.mxu1 %vm3394_vm5, %v3757_v5 }
 0x555   : > { %3931 = vmatpush1.msra.mxu0 %v3753_v49  ;;  %4002 = vmatpush1.msra.mxu1 %v3755_v6  ;;  %v5190_v49 = vld [vmem:[%s12356_s6 + $0x288] sm:$0xff]  ;;  %v5192_v6 = vld [vmem:[%s12356_s6 + $0x298] sm:$0xff] }
 0x556   : > { %3932 = vmatprep.subr.mxu0 %v3746_v9  ;;  %4003 = vmatprep.subr.mxu1 %v3748_v10  ;;  %v5189_v9 = vld [vmem:[%s12356_s6 + $0x280] sm:$0xff]  ;;  %v5191_v10 = vld [vmem:[%s12356_s6 + $0x290] sm:$0xff] }
 0x557   : > { %3933 = vmatpush1.msra.mxu0 %v3745_v11  ;;  %4004 = vmatpush1.msra.mxu1 %v3747_v12  ;;  %v5202_v11 = vld [vmem:[%s12356_s6 + $0x2e8] sm:$0xff]  ;;  %v5204_v12 = vld [vmem:[%s12356_s6 + $0x2f8] sm:$0xff] }
 0x558   : > { %3966 = vmatprep.mubr.f32.mxu0 %v8480_v0  ;;  %4037 = vmatprep.mubr.f32.mxu1 %v8480_v0 }
 0x559   : > { %4150 = vmatprep.subr.mxu0 %v4112_v13  ;;  %4221 = vmatprep.subr.mxu1 %v4114_v45  ;;  %v5205_v13 = vrot.slane %v11128_v60, 5  ;;  %v5201_v45 = vld [vmem:[%s12356_s6 + $0x2e0] sm:$0xff] }
 0x55a   : > { %8261 = vmatmul.mubr.msk.f32.vlgmr.msra.gmra.mxu0 %vm3394_vm5, %v3757_v5  ;;  %8262 = vmatmul.mubr.msk.f32.vlgmr.msra.gmra.mxu1 %vm3394_vm5, %v3757_v5  ;;  %v5199_v5 = vld [vmem:[%s12356_s6 + $0x2d0] sm:$0xff] }
 0x55b   : > { %4151 = vmatpush1.msra.mxu0 %v4111_v16  ;;  %4222 = vmatpush1.msra.mxu1 %v4113_v17  ;;  %v5203_v16 = vld [vmem:[%s12356_s6 + $0x2f0] sm:$0xff]  ;;  %v5194_v17 = vld [vmem:[%s12356_s6 + $0x2a8] sm:$0xff] }
 0x55c   : > { %4152 = vmatprep.subr.mxu0 %v4104_v18  ;;  %4223 = vmatprep.subr.mxu1 %v4106_v19  ;;  %v5196_v18 = vld [vmem:[%s12356_s6 + $0x2b8] sm:$0xff]  ;;  %v5193_v19 = vld [vmem:[%s12356_s6 + $0x2a0] sm:$0xff] }
 0x55d   : > { %4153 = vmatpush1.msra.mxu0 %v4103_v20  ;;  %4224 = vmatpush1.msra.mxu1 %v4105_v21  ;;  %v5195_v20 = vld [vmem:[%s12356_s6 + $0x2b0] sm:$0xff]  ;;  %v5560_v21 = vld [vmem:[%s12356_s6 + $0x348] sm:$0xff] }
 0x55e   : > { %4186 = vmatprep.mubr.f32.mxu0 %v8480_v0  ;;  %4257 = vmatprep.mubr.f32.mxu1 %v8480_v0 }
 0x55f   : > { %4292 = vmatprep.subr.mxu0 %v4116_v22  ;;  %4363 = vmatprep.subr.mxu1 %v4118_v25  ;;  %v5562_v22 = vld [vmem:[%s12356_s6 + $0x358] sm:$0xff]  ;;  %v5559_v25 = vld [vmem:[%s12356_s6 + $0x340] sm:$0xff] }
 0x560   : > { %8263 = vmatmul.mubr.msk.f32.vlgmr.msra.gmra.mxu0 %vm3394_vm5, %v4119_v26  ;;  %8264 = vmatmul.mubr.msk.f32.vlgmr.msra.gmra.mxu1 %vm3394_vm5, %v4119_v26 }
 0x561   : > { %4293 = vmatpush1.msra.mxu0 %v4115_v27  ;;  %4364 = vmatpush1.msra.mxu1 %v4117_v28  ;;  %v5552_v27 = vld [vmem:[%s12356_s6 + $0x308] sm:$0xff]  ;;  %v5554_v28 = vld [vmem:[%s12356_s6 + $0x318] sm:$0xff] }
 0x562   : > { %4294 = vmatprep.subr.mxu0 %v4108_v29  ;;  %4365 = vmatprep.subr.mxu1 %v4110_v30  ;;  %v5551_v29 = vld [vmem:[%s12356_s6 + $0x300] sm:$0xff]  ;;  %v5553_v30 = vld [vmem:[%s12356_s6 + $0x310] sm:$0xff] }
 0x563   : > { %4295 = vmatpush1.msra.mxu0 %v4107_v31  ;;  %4366 = vmatpush1.msra.mxu1 %v4109_v32  ;;  %v5564_v31 = vld [vmem:[%s12356_s6 + $0x368] sm:$0xff]  ;;  %v5566_v32 = vld [vmem:[%s12356_s6 + $0x378] sm:$0xff] }
 0x564   : > { %4328 = vmatprep.mubr.f32.mxu0 %v8480_v0  ;;  %4399 = vmatprep.mubr.f32.mxu1 %v8480_v0 }
 0x565   : > { %4512 = vmatprep.subr.mxu0 %v4474_v33  ;;  %4583 = vmatprep.subr.mxu1 %v4476_v36  ;;  %v5567_v33 = vrot.slane %v11128_v60, 6  ;;  %v5563_v36 = vld [vmem:[%s12356_s6 + $0x360] sm:$0xff] }
 0x566   : > { %8265 = vmatmul.mubr.msk.f32.vlgmr.msra.gmra.mxu0 %vm3394_vm5, %v4119_v26  ;;  %8266 = vmatmul.mubr.msk.f32.vlgmr.msra.gmra.mxu1 %vm3394_vm5, %v4119_v26  ;;  %v5561_v26 = vld [vmem:[%s12356_s6 + $0x350] sm:$0xff] }
 0x567   : > { %4513 = vmatpush1.msra.mxu0 %v4473_v37  ;;  %4584 = vmatpush1.msra.mxu1 %v4475_v38  ;;  %v5565_v37 = vld [vmem:[%s12356_s6 + $0x370] sm:$0xff]  ;;  %v5556_v38 = vld [vmem:[%s12356_s6 + $0x328] sm:$0xff] }
 0x568   : > { %4514 = vmatprep.subr.mxu0 %v4466_v39  ;;  %4585 = vmatprep.subr.mxu1 %v4468_v40  ;;  %v5558_v39 = vld [vmem:[%s12356_s6 + $0x338] sm:$0xff]  ;;  %v5555_v40 = vld [vmem:[%s12356_s6 + $0x320] sm:$0xff] }
 0x569   : > { %4515 = vmatpush1.msra.mxu0 %v4465_v41  ;;  %4586 = vmatpush1.msra.mxu1 %v4467_v42  ;;  %v5557_v41 = vld [vmem:[%s12356_s6 + $0x330] sm:$0xff]  ;;  %v5922_v42 = vld [vmem:[%s12356_s6 + $0x3c8] sm:$0xff] }
 0x56a   : > { %4548 = vmatprep.mubr.f32.mxu0 %v8480_v0  ;;  %4619 = vmatprep.mubr.f32.mxu1 %v8480_v0 }
 0x56b   : > { %4654 = vmatprep.subr.mxu0 %v4478_v43  ;;  %4725 = vmatprep.subr.mxu1 %v4480_v46  ;;  %v5924_v43 = vld [vmem:[%s12356_s6 + $0x3d8] sm:$0xff]  ;;  %v5921_v46 = vld [vmem:[%s12356_s6 + $0x3c0] sm:$0xff] }
 0x56c   : > { %8267 = vmatmul.mubr.msk.f32.vlgmr.msra.gmra.mxu0 %vm3394_vm5, %v4481_v47  ;;  %8268 = vmatmul.mubr.msk.f32.vlgmr.msra.gmra.mxu1 %vm3394_vm5, %v4481_v47 }
 0x56d   : > { %4655 = vmatpush1.msra.mxu0 %v4477_v48  ;;  %4726 = vmatpush1.msra.mxu1 %v4479_v51  ;;  %v5914_v48 = vld [vmem:[%s12356_s6 + $0x388] sm:$0xff]  ;;  %v5916_v51 = vld [vmem:[%s12356_s6 + $0x398] sm:$0xff] }
 0x56e   : > { %4656 = vmatprep.subr.mxu0 %v4470_v52  ;;  %4727 = vmatprep.subr.mxu1 %v4472_v44  ;;  %v5913_v52 = vld [vmem:[%s12356_s6 + $0x380] sm:$0xff]  ;;  %v5915_v44 = vld [vmem:[%s12356_s6 + $0x390] sm:$0xff] }
 0x56f   : > { %4657 = vmatpush1.msra.mxu0 %v4469_v54  ;;  %4728 = vmatpush1.msra.mxu1 %v4471_v55  ;;  %v5926_v54 = vld [vmem:[%s12356_s6 + $0x3e8] sm:$0xff]  ;;  %v5928_v55 = vld [vmem:[%s12356_s6 + $0x3f8] sm:$0xff] }
 0x570   : > { %4690 = vmatprep.mubr.f32.mxu0 %v8480_v0  ;;  %4761 = vmatprep.mubr.f32.mxu1 %v8480_v0 }
 0x571   : > { %4874 = vmatprep.subr.mxu0 %v4836_v56  ;;  %4945 = vmatprep.subr.mxu1 %v4838_v57  ;;  %v3354_v56 = vpop.permute.xlu0 %3353  ;;  %v5929_v57 = vrot.slane %v11128_v60, 7 }
 0x572   : > { %8269 = vmatmul.mubr.msk.f32.vlgmr.msra.gmra.mxu0 %vm3394_vm5, %v4481_v47  ;;  %8270 = vmatmul.mubr.msk.f32.vlgmr.msra.gmra.mxu1 %vm3394_vm5, %v4481_v47  ;;  %v5923_v47 = vld [vmem:[%s12356_s6 + $0x3d0] sm:$0xff]  ;;  %v3358_v60 = vmax.f32 %v11123_v53, %v3354_v56  ;;  %v6284_v53 = vld [vmem:[%s12356_s6 + $0x448] sm:$0xff]  ;;  %v7027_v56 = vld [vmem:[%s12358_s8 + $0xd8] sm:$0xff] }
 0x573   : > { %4875 = vmatpush1.msra.mxu0 %v4835_v58  ;;  %4946 = vmatpush1.msra.mxu1 %v4837_v59  ;;  %v5925_v58 = vld [vmem:[%s12356_s6 + $0x3e0] sm:$0xff]  ;;  %v5927_v59 = vld [vmem:[%s12356_s6 + $0x3f0] sm:$0xff] }
 0x574   : > { %4876 = vmatprep.subr.mxu0 %v4828_v61  ;;  %4947 = vmatprep.subr.mxu1 %v4830_v1  ;;  %v3362_v61 = vpop.permute.xlu1 %3361  ;;  %v5918_v1 = vld [vmem:[%s12356_s6 + $0x3a8] sm:$0xff] }
 0x575   : > { %4877 = vmatpush1.msra.mxu0 %v4827_v63  ;;  %4948 = vmatpush1.msra.mxu1 %v4829_v62  ;;  %v5920_v63 = vld [vmem:[%s12356_s6 + $0x3b8] sm:$0xff]  ;;  %v5917_v62 = vld [vmem:[%s12356_s6 + $0x3a0] sm:$0xff] }
 0x576   : > { %4910 = vmatprep.mubr.f32.mxu0 %v8480_v0  ;;  %4981 = vmatprep.mubr.f32.mxu1 %v8480_v0 }
 0x577   : > { %5016 = vmatprep.subr.mxu0 %v4840_v3  ;;  %5087 = vmatprep.subr.mxu1 %v4842_v2  ;;  %v5919_v3 = vld [vmem:[%s12356_s6 + $0x3b0] sm:$0xff]  ;;  %v3366_v2 = vmax.f32 %v3358_v60, %v3362_v61 }
 0x578   : > { %8271 = vmatmul.mubr.msk.f32.vlgmr.msra.gmra.mxu0 %vm3394_vm5, %v4843_v8  ;;  %8272 = vmatmul.mubr.msk.f32.vlgmr.msra.gmra.mxu1 %vm3394_vm5, %v4843_v8  ;;  %v7026_v61 = vld [vmem:[%s12358_s8 + $0xd0] sm:$0xff] }
 0x579   : > { %5017 = vmatpush1.msra.mxu0 %v4839_v7  ;;  %5088 = vmatpush1.msra.mxu1 %v4841_v15  ;;  %v3370_v7 = vpop.permute.xlu0 %3369  ;;  %v6283_v15 = vld [vmem:[%s12356_s6 + $0x440] sm:$0xff]  ;;  %v7042_v60 = vld [vmem:[%s12358_s8 + $0x150] sm:$0xff] }
 0x57a   : > { %5018 = vmatprep.subr.mxu0 %v4832_v14  ;;  %5089 = vmatprep.subr.mxu1 %v4834_v24  ;;  %v6285_v14 = vld [vmem:[%s12356_s6 + $0x450] sm:$0xff]  ;;  %v6276_v24 = vld [vmem:[%s12356_s6 + $0x408] sm:$0xff] }
 0x57b   : > { %5019 = vmatpush1.msra.mxu0 %v4831_v23  ;;  %5090 = vmatpush1.msra.mxu1 %v4833_v35  ;;  %v6278_v23 = vld [vmem:[%s12356_s6 + $0x418] sm:$0xff]  ;;  %v3374_v35 = vmax.f32 %v3366_v2, %v3370_v7  ;;  %v7009_v2 = vld [vmem:[%s12358_s8 + $0x48] sm:$0xff]  ;;  %v7056_v7 = vld [vmem:[%s12358_s8 + $0x1c0] sm:$0xff] }
 0x57c   : > { %5052 = vmatprep.mubr.f32.mxu0 %v8480_v0  ;;  %5123 = vmatprep.mubr.f32.mxu1 %v8480_v0 }
 0x57d   : > { %5236 = vmatprep.subr.mxu0 %v5198_v34  ;;  %5307 = vmatprep.subr.mxu1 %v5200_v50  ;;  %v6275_v34 = vld [vmem:[%s12356_s6 + $0x400] sm:$0xff]  ;;  %v6277_v50 = vld [vmem:[%s12356_s6 + $0x410] sm:$0xff] }
 0x57e   : > { %8273 = vmatmul.mubr.msk.f32.vlgmr.msra.gmra.mxu0 %vm3394_vm5, %v4843_v8  ;;  %8274 = vmatmul.mubr.msk.f32.vlgmr.msra.gmra.mxu1 %vm3394_vm5, %v4843_v8  ;;  %v6286_v8 = vld [vmem:[%s12356_s6 + $0x458] sm:$0xff] }
 0x57f   : > { %5237 = vmatpush1.msra.mxu0 %v5197_v4  ;;  %5308 = vmatpush1.msra.mxu1 %v5199_v5  ;;  %v6288_v4 = vld [vmem:[%s12356_s6 + $0x468] sm:$0xff]  ;;  %v6290_v5 = vld [vmem:[%s12356_s6 + $0x478] sm:$0xff] }
 0x580   : > { %5238 = vmatprep.subr.mxu0 %v5190_v49  ;;  %5309 = vmatprep.subr.mxu1 %v5192_v6  ;;  %v3376_v49 = vmax.f32 %v3374_v35, 0.0  ;;  %v6287_v6 = vld [vmem:[%s12356_s6 + $0x460] sm:$0xff]  ;;  %v7007_v35 = vld [vmem:[%s12358_s8 + $0x38] sm:$0xff] }
 0x581   : > { %5239 = vmatpush1.msra.mxu0 %v5189_v9  ;;  %5310 = vmatpush1.msra.mxu1 %v5191_v10  ;;  %v6289_v9 = vld [vmem:[%s12356_s6 + $0x470] sm:$0xff]  ;;  %v6280_v10 = vld [vmem:[%s12356_s6 + $0x428] sm:$0xff] }
 0x582   : > { %5272 = vmatprep.mubr.f32.mxu0 %v8480_v0  ;;  %5343 = vmatprep.mubr.f32.mxu1 %v8480_v0 }
 0x583   : > { %5378 = vmatprep.subr.mxu0 %v5202_v11  ;;  %5449 = vmatprep.subr.mxu1 %v5204_v12  ;;  %v6282_v11 = vld [vmem:[%s12356_s6 + $0x438] sm:$0xff]  ;;  %v6279_v12 = vld [vmem:[%s12356_s6 + $0x420] sm:$0xff] }
 0x584   : > { %8275 = vmatmul.mubr.msk.f32.vlgmr.msra.gmra.mxu0 %vm3394_vm5, %v5205_v13  ;;  %8276 = vmatmul.mubr.msk.f32.vlgmr.msra.gmra.mxu1 %vm3394_vm5, %v5205_v13 }
 0x585   : > { %5379 = vmatpush1.msra.mxu0 %v5201_v45  ;;  %5450 = vmatpush1.msra.mxu1 %v5203_v16  ;;  %v6646_v45 = vld [vmem:[%s12356_s6 + $0x4c8] sm:$0xff]  ;;  %v6648_v16 = vld [vmem:[%s12356_s6 + $0x4d8] sm:$0xff] }
 0x586   : > { %5380 = vmatprep.subr.mxu0 %v5194_v17  ;;  %5451 = vmatprep.subr.mxu1 %v5196_v18  ;;  %v6645_v17 = vld [vmem:[%s12356_s6 + $0x4c0] sm:$0xff]  ;;  %v6647_v18 = vld [vmem:[%s12356_s6 + $0x4d0] sm:$0xff] }
 0x587   : > { %5381 = vmatpush1.msra.mxu0 %v5193_v19  ;;  %5452 = vmatpush1.msra.mxu1 %v5195_v20  ;;  %v6638_v19 = vld [vmem:[%s12356_s6 + $0x488] sm:$0xff]  ;;  %v6640_v20 = vld [vmem:[%s12356_s6 + $0x498] sm:$0xff] }
 0x588   : > { %5414 = vmatprep.mubr.f32.mxu0 %v8480_v0  ;;  %5485 = vmatprep.mubr.f32.mxu1 %v8480_v0 }
 0x589   : > { %5598 = vmatprep.subr.mxu0 %v5560_v21  ;;  %5669 = vmatprep.subr.mxu1 %v5562_v22  ;;  %v6637_v21 = vld [vmem:[%s12356_s6 + $0x480] sm:$0xff]  ;;  %v6639_v22 = vld [vmem:[%s12356_s6 + $0x490] sm:$0xff] }
 0x58a   : > { %8277 = vmatmul.mubr.msk.f32.vlgmr.msra.gmra.mxu0 %vm3394_vm5, %v5205_v13  ;;  %8278 = vmatmul.mubr.msk.f32.vlgmr.msra.gmra.mxu1 %vm3394_vm5, %v5205_v13  ;;  %v6281_v13 = vld [vmem:[%s12356_s6 + $0x430] sm:$0xff] }
 0x58b   : > { %5599 = vmatpush1.msra.mxu0 %v5559_v25  ;;  %5670 = vmatpush1.msra.mxu1 %v5561_v26  ;;  %v6650_v25 = vld [vmem:[%s12356_s6 + $0x4e8] sm:$0xff]  ;;  %v6652_v26 = vld [vmem:[%s12356_s6 + $0x4f8] sm:$0xff] }
 0x58c   : > { %5600 = vmatprep.subr.mxu0 %v5552_v27  ;;  %5671 = vmatprep.subr.mxu1 %v5554_v28  ;;  %v6653_v27 = vrot.slane %v3376_v49, 1  ;;  %v6649_v28 = vld [vmem:[%s12356_s6 + $0x4e0] sm:$0xff] }
 0x58d   : > { %5601 = vmatpush1.msra.mxu0 %v5551_v29  ;;  %5672 = vmatpush1.msra.mxu1 %v5553_v30  ;;  %v6651_v29 = vld [vmem:[%s12356_s6 + $0x4f0] sm:$0xff]  ;;  %v6642_v30 = vld [vmem:[%s12356_s6 + $0x4a8] sm:$0xff] }
 0x58e   : > { %5634 = vmatprep.mubr.f32.mxu0 %v8480_v0  ;;  %5705 = vmatprep.mubr.f32.mxu1 %v8480_v0 }
 0x58f   : > { %5740 = vmatprep.subr.mxu0 %v5564_v31  ;;  %5811 = vmatprep.subr.mxu1 %v5566_v32  ;;  %v6644_v31 = vld [vmem:[%s12356_s6 + $0x4b8] sm:$0xff]  ;;  %v6641_v32 = vld [vmem:[%s12356_s6 + $0x4a0] sm:$0xff] }
 0x590   : > { %8279 = vmatmul.mubr.msk.f32.vlgmr.msra.gmra.mxu0 %vm3394_vm5, %v5567_v33  ;;  %8280 = vmatmul.mubr.msk.f32.vlgmr.msra.gmra.mxu1 %vm3394_vm5, %v5567_v33 }
 0x591   : > { %5741 = vmatpush1.msra.mxu0 %v5563_v36  ;;  %5812 = vmatpush1.msra.mxu1 %v5565_v37  ;;  %v7031_v36 = vld [vmem:[%s12358_s8 + $0xf8] sm:$0xff] }
 0x592   : > { %5742 = vmatprep.subr.mxu0 %v5556_v38  ;;  %5813 = vmatprep.subr.mxu1 %v5558_v39  ;;  %v7063_v37 = vld [vmem:[%s12358_s8 + $0x1f8] sm:$0xff] }
 0x593   : > { %5743 = vmatpush1.msra.mxu0 %v5555_v40  ;;  %5814 = vmatpush1.msra.mxu1 %v5557_v41  ;;  %v7015_v38 = vld [vmem:[%s12358_s8 + $0x78] sm:$0xff]  ;;  %v7030_v40 = vld [vmem:[%s12358_s8 + $0xf0] sm:$0xff] }
 0x594   : > { %5776 = vmatprep.mubr.f32.mxu0 %v8480_v0  ;;  %5847 = vmatprep.mubr.f32.mxu1 %v8480_v0  ;;  %v7047_v39 = vld [vmem:[%s12358_s8 + $0x178] sm:$0xff]  ;;  %v7062_v41 = vld [vmem:[%s12358_s8 + $0x1f0] sm:$0xff] }
 0x595   : > { %5960 = vmatprep.subr.mxu0 %v5922_v42  ;;  %6031 = vmatprep.subr.mxu1 %v5924_v43  ;;  %v7014_v42 = vld [vmem:[%s12358_s8 + $0x70] sm:$0xff] }
 0x596   : > { %8281 = vmatmul.mubr.msk.f32.vlgmr.msra.gmra.mxu0 %vm3394_vm5, %v5567_v33  ;;  %8282 = vmatmul.mubr.msk.f32.vlgmr.msra.gmra.mxu1 %vm3394_vm5, %v5567_v33  ;;  %v6643_v33 = vld [vmem:[%s12356_s6 + $0x4b0] sm:$0xff] }
 0x597   : > { %5961 = vmatpush1.msra.mxu0 %v5921_v46  ;;  %6032 = vmatpush1.msra.mxu1 %v5923_v47  ;;  %v7046_v43 = vld [vmem:[%s12358_s8 + $0x170] sm:$0xff]  ;;  %v7029_v46 = vld [vmem:[%s12358_s8 + $0xe8] sm:$0xff] }
 0x598   : > { %5962 = vmatprep.subr.mxu0 %v5914_v48  ;;  %6033 = vmatprep.subr.mxu1 %v5916_v51  ;;  %v7061_v47 = vld [vmem:[%s12358_s8 + $0x1e8] sm:$0xff] }
 0x599   : > { %5963 = vmatpush1.msra.mxu0 %v5913_v52  ;;  %6034 = vmatpush1.msra.mxu1 %v5915_v44  ;;  %v7013_v48 = vld [vmem:[%s12358_s8 + $0x68] sm:$0xff]  ;;  %v7028_v52 = vld [vmem:[%s12358_s8 + $0xe0] sm:$0xff] }
 0x59a   : > { %5996 = vmatprep.mubr.f32.mxu0 %v8480_v0  ;;  %6067 = vmatprep.mubr.f32.mxu1 %v8480_v0  ;;  %v7045_v51 = vld [vmem:[%s12358_s8 + $0x168] sm:$0xff]  ;;  %v7060_v44 = vld [vmem:[%s12358_s8 + $0x1e0] sm:$0xff] }
 0x59b   : > { %6102 = vmatprep.subr.mxu0 %v5926_v54  ;;  %6173 = vmatprep.subr.mxu1 %v5928_v55  ;;  %v7012_v54 = vld [vmem:[%s12358_s8 + $0x60] sm:$0xff] }
 0x59c   : > { %8283 = vmatmul.mubr.msk.f32.vlgmr.msra.gmra.mxu0 %vm3394_vm5, %v5929_v57  ;;  %8284 = vmatmul.mubr.msk.f32.vlgmr.msra.gmra.mxu1 %vm3394_vm5, %v5929_v57  ;;  %v7044_v55 = vld [vmem:[%s12358_s8 + $0x160] sm:$0xff] }
 0x59d   : > { %6103 = vmatpush1.msra.mxu0 %v5925_v58  ;;  %6174 = vmatpush1.msra.mxu1 %v5927_v59  ;;  %v7011_v58 = vld [vmem:[%s12358_s8 + $0x58] sm:$0xff] }
 0x59e   : > { %6104 = vmatprep.subr.mxu0 %v5918_v1  ;;  %6175 = vmatprep.subr.mxu1 %v5920_v63  ;;  %v7043_v59 = vld [vmem:[%s12358_s8 + $0x158] sm:$0xff]  ;;  %v7058_v1 = vld [vmem:[%s12358_s8 + $0x1d0] sm:$0xff] }
 0x59f   : > { %6105 = vmatpush1.msra.mxu0 %v5917_v62  ;;  %6176 = vmatpush1.msra.mxu1 %v5919_v3  ;;  %v7010_v63 = vld [vmem:[%s12358_s8 + $0x50] sm:$0xff]  ;;  %v7025_v62 = vld [vmem:[%s12358_s8 + $0xc8] sm:$0xff] }
 0x5a0   : > { %6138 = vmatprep.mubr.f32.mxu0 %v8480_v0  ;;  %6209 = vmatprep.mubr.f32.mxu1 %v8480_v0  ;;  %v7057_v3 = vld [vmem:[%s12358_s8 + $0x1c8] sm:$0xff] }
 0x5a1   : > { %6322 = vmatprep.subr.mxu0 %v6284_v53  ;;  %6393 = vmatprep.subr.mxu1 %v6286_v8  ;;  %v7041_v53 = vld [vmem:[%s12358_s8 + $0x148] sm:$0xff]  ;;  %v7024_v8 = vld [vmem:[%s12358_s8 + $0xc0] sm:$0xff] }
 0x5a2   : > { %8285 = vmatmul.mubr.msk.f32.vlgmr.msra.gmra.mxu0 %vm3394_vm5, %v5929_v57  ;;  %8286 = vmatmul.mubr.msk.f32.vlgmr.msra.gmra.mxu1 %vm3394_vm5, %v5929_v57  ;;  %v7059_v57 = vld [vmem:[%s12358_s8 + $0x1d8] sm:$0xff] }
 0x5a3   : > { %6323 = vmatpush1.msra.mxu0 %v6283_v15  ;;  %6394 = vmatpush1.msra.mxu1 %v6285_v14  ;;  %v7008_v15 = vld [vmem:[%s12358_s8 + $0x40] sm:$0xff] }
 0x5a4   : > { %6324 = vmatprep.subr.mxu0 %v6276_v24  ;;  %6395 = vmatprep.subr.mxu1 %v6278_v23  ;;  %v7040_v14 = vld [vmem:[%s12358_s8 + $0x140] sm:$0xff]  ;;  %v7023_v24 = vld [vmem:[%s12358_s8 + $0xb8] sm:$0xff] }
 0x5a5   : > { %6325 = vmatpush1.msra.mxu0 %v6275_v34  ;;  %6396 = vmatpush1.msra.mxu1 %v6277_v50  ;;  %v7055_v23 = vld [vmem:[%s12358_s8 + $0x1b8] sm:$0xff]  ;;  %v7022_v50 = vld [vmem:[%s12358_s8 + $0xb0] sm:$0xff] }
 0x5a6   : > { %6358 = vmatprep.mubr.f32.mxu0 %v8480_v0  ;;  %6429 = vmatprep.mubr.f32.mxu1 %v8480_v0  ;;  %v7039_v34 = vld [vmem:[%s12358_s8 + $0x138] sm:$0xff] }
 0x5a7   : > { %6464 = vmatprep.subr.mxu0 %v6288_v4  ;;  %6535 = vmatprep.subr.mxu1 %v6290_v5  ;;  %v7054_v4 = vld [vmem:[%s12358_s8 + $0x1b0] sm:$0xff] }
 0x5a8   : > { %8287 = vmatmul.mubr.msk.f32.vlgmr.msra.gmra.mxu0 %vm3394_vm5, %v3376_v49  ;;  %8288 = vmatmul.mubr.msk.f32.vlgmr.msra.gmra.mxu1 %vm3394_vm5, %v3376_v49  ;;  %v7006_v5 = vld [vmem:[%s12358_s8 + $0x30] sm:$0xff] }
 0x5a9   : > { %6465 = vmatpush1.msra.mxu0 %v6287_v6  ;;  %6536 = vmatpush1.msra.mxu1 %v6289_v9  ;;  %v7021_v6 = vld [vmem:[%s12358_s8 + $0xa8] sm:$0xff] }
 0x5aa   : > { %6466 = vmatprep.subr.mxu0 %v6280_v10  ;;  %6537 = vmatprep.subr.mxu1 %v6282_v11  ;;  %v7053_v9 = vld [vmem:[%s12358_s8 + $0x1a8] sm:$0xff] }
 0x5ab   : > { %6467 = vmatpush1.msra.mxu0 %v6279_v12  ;;  %6538 = vmatpush1.msra.mxu1 %v6281_v13  ;;  %v7005_v10 = vld [vmem:[%s12358_s8 + $0x28] sm:$0xff]  ;;  %v7020_v12 = vld [vmem:[%s12358_s8 + $0xa0] sm:$0xff] }
 0x5ac   : > { %6500 = vmatprep.mubr.f32.mxu0 %v8480_v0  ;;  %6571 = vmatprep.mubr.f32.mxu1 %v8480_v0  ;;  %v7037_v11 = vld [vmem:[%s12358_s8 + $0x128] sm:$0xff]  ;;  %v7052_v13 = vld [vmem:[%s12358_s8 + $0x1a0] sm:$0xff] }
 0x5ad   : > { %6684 = vmatprep.subr.mxu0 %v6646_v45  ;;  %6755 = vmatprep.subr.mxu1 %v6648_v16  ;;  %v7004_v45 = vld [vmem:[%s12358_s8 + $0x20] sm:$0xff] }
 0x5ae   : > { %8289 = vmatmul.mubr.msk.f32.vlgmr.msra.gmra.mxu0 %vm3394_vm5, %v3376_v49  ;;  %8290 = vmatmul.mubr.msk.f32.vlgmr.msra.gmra.mxu1 %vm3394_vm5, %v3376_v49  ;;  %v7038_v49 = vld [vmem:[%s12358_s8 + $0x130] sm:$0xff]  ;;  %v7036_v16 = vld [vmem:[%s12358_s8 + $0x120] sm:$0xff] }
 0x5af   : > { %6685 = vmatpush1.msra.mxu0 %v6645_v17  ;;  %6756 = vmatpush1.msra.mxu1 %v6647_v18  ;;  %v7019_v17 = vld [vmem:[%s12358_s8 + $0x98] sm:$0xff] }
 0x5b0   : > { %6686 = vmatprep.subr.mxu0 %v6638_v19  ;;  %6757 = vmatprep.subr.mxu1 %v6640_v20  ;;  %v7051_v18 = vld [vmem:[%s12358_s8 + $0x198] sm:$0xff] }
 0x5b1   : > { %6687 = vmatpush1.msra.mxu0 %v6637_v21  ;;  %6758 = vmatpush1.msra.mxu1 %v6639_v22  ;;  %v7003_v19 = vld [vmem:[%s12358_s8 + $0x18] sm:$0xff]  ;;  %v7018_v21 = vld [vmem:[%s12358_s8 + $0x90] sm:$0xff] }
 0x5b2   : > { %6720 = vmatprep.mubr.f32.mxu0 %v8480_v0  ;;  %6791 = vmatprep.mubr.f32.mxu1 %v8480_v0  ;;  %v7035_v20 = vld [vmem:[%s12358_s8 + $0x118] sm:$0xff]  ;;  %v7050_v22 = vld [vmem:[%s12358_s8 + $0x190] sm:$0xff] }
 0x5b3   : > { %6826 = vmatprep.subr.mxu0 %v6650_v25  ;;  %6897 = vmatprep.subr.mxu1 %v6652_v26  ;;  %v7002_v25 = vld [vmem:[%s12358_s8 + $0x10] sm:$0xff] }
 0x5b4   : > { %8291 = vmatmul.mubr.msk.f32.vlgmr.msra.gmra.mxu0 %vm3394_vm5, %v6653_v27  ;;  %8292 = vmatmul.mubr.msk.f32.vlgmr.msra.gmra.mxu1 %vm3394_vm5, %v6653_v27  ;;  %v7034_v26 = vld [vmem:[%s12358_s8 + $0x110] sm:$0xff] }
 0x5b5   : > { %6827 = vmatpush1.msra.mxu0 %v6649_v28  ;;  %6898 = vmatpush1.msra.mxu1 %v6651_v29  ;;  %v7049_v28 = vld [vmem:[%s12358_s8 + $0x188] sm:$0xff] }
 0x5b6   : > { %6828 = vmatprep.subr.mxu0 %v6642_v30  ;;  %6899 = vmatprep.subr.mxu1 %v6644_v31  ;;  %v7001_v31 = vld [vmem:[%s12358_s8 + $0x8] sm:$0xff] }
 0x5b7   : > { %6829 = vmatpush1.msra.mxu0 %v6641_v32  ;;  %6900 = vmatpush1.msra.mxu1 %v6643_v33  ;;  %v7033_v32 = vld [vmem:[%s12358_s8 + $0x108] sm:$0xff]  ;;  %v7016_v33 = vld [vmem:[%s12358_s8 + $0x80] sm:$0xff] }
 0x5b8   : > { %6862 = vmatprep.mubr.f32.mxu0 %v8480_v0  ;;  %6933 = vmatprep.mubr.f32.mxu1 %v8480_v0 }
 0x5b9   : > { %8293 = vmatmul.mubr.msk.f32.vlgmr.msra.gmra.mxu0 %vm3394_vm5, %v6653_v27  ;;  %8294 = vmatmul.mubr.msk.f32.vlgmr.msra.gmra.mxu1 %vm3394_vm5, %v6653_v27  ;;  %v7017_v27 = vld [vmem:[%s12358_s8 + $0x88] sm:$0xff] }
 0x5ba   : > { %8298 = vmatprep.subr.mxu0 %v7031_v36  ;;  %8333 = vmatprep.subr.mxu1 %v7063_v37  ;;  %v7048_v36 = vld [vmem:[%s12358_s8 + $0x180] sm:$0xff] }
 0x5bb   : > { %8299 = vmatpush3.msra.mxu0 %v7015_v38  ;;  %8334 = vmatpush3.msra.mxu1 %v7047_v39  ;;  %v7000_v37 = vld [vmem:[%s12358_s8] sm:$0xff] }
 0x5bc   : > { %8300 = vmatprep.subr.mxu0 %v7030_v40  ;;  %8335 = vmatprep.subr.mxu1 %v7062_v41  ;;  %v7032_v38 = vld [vmem:[%s12358_s8 + $0x100] sm:$0xff]  ;;  %v7095_v41 = vld [vmem:[%s12358_s8 + $0x2f8] sm:$0xff] }
 0x5bd   : > { %8301 = vmatpush3.msra.mxu0 %v7014_v42  ;;  %8336 = vmatpush3.msra.mxu1 %v7046_v43  ;;  %v7127_v42 = vld [vmem:[%s12358_s8 + $0x3f8] sm:$0xff] }
 0x5be   : > { %8302 = vmatprep.subr.mxu0 %v7029_v46  ;;  %8337 = vmatprep.subr.mxu1 %v7061_v47 }
 0x5bf   : > { %8303 = vmatpush3.msra.mxu0 %v7013_v48  ;;  %8338 = vmatpush3.msra.mxu1 %v7045_v51 }
 0x5c0   : > { %8304 = vmatprep.subr.mxu0 %v7028_v52  ;;  %8339 = vmatprep.subr.mxu1 %v7060_v44 }
 0x5c1   : > { %8305 = vmatpush3.msra.mxu0 %v7012_v54  ;;  %8340 = vmatpush3.msra.mxu1 %v7044_v55 }
 0x5c2   : > { %8306 = vmatprep.subr.mxu0 %v7027_v56  ;;  %8341 = vmatprep.subr.mxu1 %v7059_v57 }
 0x5c3   : > { %8307 = vmatpush3.msra.mxu0 %v7011_v58  ;;  %8342 = vmatpush3.msra.mxu1 %v7043_v59 }
 0x5c4   : > { %8308 = vmatprep.subr.mxu0 %v7026_v61  ;;  %8343 = vmatprep.subr.mxu1 %v7058_v1 }
 0x5c5   : > { %8309 = vmatpush3.msra.mxu0 %v7010_v63  ;;  %8344 = vmatpush3.msra.mxu1 %v7042_v60 }
 0x5c6   : > { %8310 = vmatprep.subr.mxu0 %v7025_v62  ;;  %8345 = vmatprep.subr.mxu1 %v7057_v3 }
 0x5c7   : > { %8311 = vmatpush3.msra.mxu0 %v7009_v2  ;;  %8346 = vmatpush3.msra.mxu1 %v7041_v53 }
 0x5c8   : > { %8312 = vmatprep.subr.mxu0 %v7024_v8  ;;  %8347 = vmatprep.subr.mxu1 %v7056_v7 }
 0x5c9   : > { %8313 = vmatpush3.msra.mxu0 %v7008_v15  ;;  %8348 = vmatpush3.msra.mxu1 %v7040_v14 }
 0x5ca   : > { %8314 = vmatprep.subr.mxu0 %v7023_v24  ;;  %8349 = vmatprep.subr.mxu1 %v7055_v23 }
 0x5cb   : > { %8315 = vmatpush3.msra.mxu0 %v7007_v35  ;;  %8350 = vmatpush3.msra.mxu1 %v7039_v34 }
 0x5cc   : > { %8316 = vmatprep.subr.mxu0 %v7022_v50  ;;  %8351 = vmatprep.subr.mxu1 %v7054_v4 }
 0x5cd   : > { %8317 = vmatpush3.msra.mxu0 %v7006_v5  ;;  %8352 = vmatpush3.msra.mxu1 %v7038_v49 }
 0x5ce   : > { %8318 = vmatprep.subr.mxu0 %v7021_v6  ;;  %8353 = vmatprep.subr.mxu1 %v7053_v9 }
 0x5cf   : > { %8319 = vmatpush3.msra.mxu0 %v7005_v10  ;;  %8354 = vmatpush3.msra.mxu1 %v7037_v11 }
 0x5d0   : > { %8320 = vmatprep.subr.mxu0 %v7020_v12  ;;  %8355 = vmatprep.subr.mxu1 %v7052_v13 }
 0x5d1   : > { %8321 = vmatpush3.msra.mxu0 %v7004_v45  ;;  %8356 = vmatpush3.msra.mxu1 %v7036_v16 }
 0x5d2   : > { %8322 = vmatprep.subr.mxu0 %v7019_v17  ;;  %8357 = vmatprep.subr.mxu1 %v7051_v18 }
 0x5d3   : > { %8323 = vmatpush3.msra.mxu0 %v7003_v19  ;;  %8358 = vmatpush3.msra.mxu1 %v7035_v20  ;;  %v8485_v20 = vmov 1966171168  }
 0x5d4   : > { %8324 = vmatprep.subr.mxu0 %v7018_v21  ;;  %8359 = vmatprep.subr.mxu1 %v7050_v22  ;;  %v3695_v21 = vunpack.c.l.s4 %v8485_v20  ;;  %v3697_v22 = vlaneseq }
 0x5d5   : > { %8325 = vmatpush3.msra.mxu0 %v7002_v25  ;;  %8360 = vmatpush3.msra.mxu1 %v7034_v26 }
 0x5d6   : > { %8326 = vmatprep.subr.mxu0 %v7017_v27  ;;  %8361 = vmatprep.subr.mxu1 %v7049_v28  ;;  %v3696_v27 = vunpack.c.0.s8 %v3695_v21  ;;  %v11960_v28 = vshrl.u32 %v3697_v22, 7 }
 0x5d7   : > { %8327 = vmatpush3.msra.mxu0 %v7001_v31  ;;  %8362 = vmatpush3.msra.mxu1 %v7033_v32 }
 0x5d8   : > { %8328 = vmatprep.subr.mxu0 %v7016_v33  ;;  %8363 = vmatprep.subr.mxu1 %v7048_v36 }
 0x5d9   : > { %8329 = vmatpush3.msra.mxu0 %v7000_v37  ;;  %8364 = vmatpush3.msra.mxu1 %v7032_v38  ;;  %v11971_v37 = vsub.s32 %v3696_v27, %v11960_v28 }
 0x5da   : > { %8368 = vmatprep.subr.mxu0 %v7095_v41  ;;  %8403 = vmatprep.subr.mxu1 %v7127_v42 }
 0x608   : > { %v11844_v29 = vpop.f32.mrf.mxu1  ;;  %v11846_v30 = vpop.f32.mrf.mxu0 }
 0x60a   : > { %v11866_v39 = vpop.f32.mrf.mxu1  ;;  %v11868_v40 = vpop.f32.mrf.mxu0 }
 0x60b   : > { %v3690_v42 = vcombine.low %v11844_v29, %v11866_v39  ;;  %v3691_v20 = vcombine.low %v11846_v30, %v11868_v40 }
 0x60d   : > { %v3700_v40 = vrot.slane %v3690_v42, %v11971_v37 }
 0x60e   : > { %v11876_v43 = vpop.f32.mrf.mxu0  ;;  %v11878_v46 = vpop.f32.mrf.mxu1 }
 0x610   : > { %v11880_v47 = vpop.f32.mrf.mxu0  ;;  %v11882_v48 = vpop.f32.mrf.mxu1 }
 0x611   : > { %v3692_v33 = vcombine.low %v11876_v43, %v11880_v47  ;;  %v3693_v36 = vcombine.low %v11878_v46, %v11882_v48 }
 0x613   : > { %v3714_v48 = vrot.slane %v3692_v33, %v11971_v37 }
 0x614   : > { %v11884_v51 = vpop.f32.mrf.mxu0  ;;  %v11886_v52 = vpop.f32.mrf.mxu1 }
 0x616   : > { %v11888_v44 = vpop.f32.mrf.mxu0  ;;  %v11890_v54 = vpop.f32.mrf.mxu1 }
 0x617   : > { %v4052_v21 = vcombine.low %v11884_v51, %v11888_v44  ;;  %v4053_v43 = vcombine.low %v11886_v52, %v11890_v54  ;;  %v3707_v51 = vrot.slane %v3691_v20, %v11971_v37 }
 0x619   : > { %v4062_v52 = vrot.slane %v4052_v21, %v11971_v37  ;;  %v4069_v44 = vrot.slane %v4053_v43, %v11971_v37 }
 0x61a   : > { %v3968_v55 = vpop.f32.mrf.mxu0  ;;  %v4039_v56 = vpop.f32.mrf.mxu1 }
 0x61c   : > { %v3970_v57 = vpop.f32.mrf.mxu0  ;;  %v4041_v58 = vpop.f32.mrf.mxu1 }
 0x61d   : > { %v4054_v38 = vcombine.low %v3968_v55, %v3970_v57  ;;  %v4055_v41 = vcombine.low %v4039_v56, %v4041_v58  ;;  %v3721_v55 = vrot.slane %v3693_v36, %v11971_v37  ;;  %v3722_v36 = vcombine.low %v3700_v40, %v3707_v51 }
 0x61f   : > { %v4076_v30 = vrot.slane %v4054_v38, %v11971_v37  ;;  %v4083_v39 = vrot.slane %v4055_v41, %v11971_v37  ;;  %v3723_v54 = vcombine.low %v3714_v48, %v3721_v55  ;;  %v4084_v38 = vcombine.low %v4062_v52, %v4069_v44 }
 0x620   : > { %v11892_v59 = vpop.f32.mrf.mxu0  ;;  %v11894_v61 = vpop.f32.mrf.mxu1 }
 0x621   : > { %v4085_v22 = vcombine.low %v4076_v30, %v4083_v39  ;;  %v3737_v43 = vrot.slane %v3723_v54, %v11971_v37 }
 0x622   : > { %v11896_v1 = vpop.f32.mrf.mxu0  ;;  %v11898_v63 = vpop.f32.mrf.mxu1 }
 0x623   : > { %v4414_v20 = vcombine.low %v11892_v59, %v11896_v1  ;;  %v4415_v21 = vcombine.low %v11894_v61, %v11898_v63  ;;  %v4099_v48 = vrot.slane %v4085_v22, %v11971_v37 }
 0x625   : > { %v4424_v63 = vrot.slane %v4414_v20, %v11971_v37  ;;  %v4431_v30 = vrot.slane %v4415_v21, %v11971_v37 }
 0x626   : > { %v11900_v60 = vpop.f32.mrf.mxu0  ;;  %v11902_v62 = vpop.f32.mrf.mxu1 }
 0x627   : > { %v4446_v22 = vcombine.low %v4424_v63, %v4431_v30 }
 0x628   : > { %v11904_v3 = vpop.f32.mrf.mxu0  ;;  %v11906_v2 = vpop.f32.mrf.mxu1 }
 0x629   : > { %v4416_v27 = vcombine.low %v11900_v60, %v11904_v3  ;;  %v4417_v33 = vcombine.low %v11902_v62, %v11906_v2  ;;  %v3730_v3 = vrot.slane %v3722_v36, %v11971_v37  ;;  %v4092_v2 = vrot.slane %v4084_v38, %v11971_v37 }
 0x62b   : > { %v4438_v60 = vrot.slane %v4416_v27, %v11971_v37  ;;  %v4445_v62 = vrot.slane %v4417_v33, %v11971_v37  ;;  %v3738_v51 = vcombine.low %v3730_v3, %v3737_v43 }
 0x62c   : > { %v11908_v53 = vpop.f32.mrf.mxu0  ;;  %v11910_v8 = vpop.f32.mrf.mxu1 }
 0x62e   : > { %v11912_v7 = vpop.f32.mrf.mxu0  ;;  %v11914_v15 = vpop.f32.mrf.mxu1 }
 0x62f   : > { %v4776_v44 = vcombine.low %v11908_v53, %v11912_v7  ;;  %v4777_v54 = vcombine.low %v11910_v8, %v11914_v15 }
 0x632   : > { %v11916_v14 = vpop.f32.mrf.mxu0  ;;  %v11918_v24 = vpop.f32.mrf.mxu1 }
 0x634   : > { %v11920_v23 = vpop.f32.mrf.mxu0  ;;  %v11922_v35 = vpop.f32.mrf.mxu1 }
 0x635   : > { %v4778_v55 = vcombine.low %v11916_v14, %v11920_v23  ;;  %v4779_v59 = vcombine.low %v11918_v24, %v11922_v35  ;;  %v3377_v24 = vld [vmem:[%s12357_s7] sm:$0xff]  ;;  %v4100_v23 = vcombine.low %v4092_v2, %v4099_v48  ;;  %v4447_v35 = vcombine.low %v4438_v60, %v4445_v62 }
 0x636   : > { %v3740_v36 = vadd.f32 %v3738_v51, %v3377_v24 }
 0x638   : > { %v11924_v34 = vpop.f32.mrf.mxu0  ;;  %v11926_v50 = vpop.f32.mrf.mxu1 }
 0x63a   : > { %v11928_v4 = vpop.f32.mrf.mxu0  ;;  %v11930_v5 = vpop.f32.mrf.mxu1 }
 0x63e   : > { %v11932_v49 = vpop.f32.mrf.mxu0  ;;  %v11934_v6 = vpop.f32.mrf.mxu1 }
 0x640   : > { %v11936_v9 = vpop.f32.mrf.mxu0  ;;  %v11938_v10 = vpop.f32.mrf.mxu1 }
 0x641   : > { %v5140_v39 = vcombine.low %v11932_v49, %v11936_v9  ;;  %v5141_v40 = vcombine.low %v11934_v6, %v11938_v10  ;;  %v4800_v49 = vrot.slane %v4778_v55, %v11971_v37  ;;  %v4807_v9 = vrot.slane %v4779_v59, %v11971_v37 }
 0x642   : > { %v5138_v6 = vcombine.low %v11924_v34, %v11928_v4  ;;  %v5139_v10 = vcombine.low %v11926_v50, %v11930_v5  ;;  %v4461_v34 = vrot.slane %v4447_v35, %v11971_v37  ;;  %v4786_v50 = vrot.slane %v4776_v44, %v11971_v37 }
 0x643   : > { %v5162_v27 = vrot.slane %v5140_v39, %v11971_v37  ;;  %v5169_v33 = vrot.slane %v5141_v40, %v11971_v37  ;;  %v4793_v4 = vrot.slane %v4777_v54, %v11971_v37  ;;  %v4102_v5 = vadd.f32 %v4100_v23, %v3740_v36 }
 0x644   : > { %v11940_v11 = vpop.f32.mrf.mxu0  ;;  %v11942_v12 = vpop.f32.mrf.mxu1  ;;  %v4809_v38 = vcombine.low %v4800_v49, %v4807_v9  ;;  %v5148_v20 = vrot.slane %v5138_v6, %v11971_v37  ;;  %v5155_v21 = vrot.slane %v5139_v10, %v11971_v37 }
 0x645   : > { %v4808_v59 = vcombine.low %v4786_v50, %v4793_v4 }
 0x646   : > { %v11944_v13 = vpop.f32.mrf.mxu0  ;;  %v11946_v45 = vpop.f32.mrf.mxu1 }
 0x647   : > { %v5500_v43 = vcombine.low %v11940_v11, %v11944_v13  ;;  %v5501_v48 = vcombine.low %v11942_v12, %v11946_v45  ;;  %v4823_v11 = vrot.slane %v4809_v38, %v11971_v37  ;;  %v5170_v13 = vcombine.low %v5148_v20, %v5155_v21 }
 0x648   : > { %v4816_v23 = vrot.slane %v4808_v59, %v11971_v37 }
 0x649   : > { %v5178_v49 = vrot.slane %v5170_v13, %v11971_v37 }
 0x64a   : > { %v11948_v16 = vpop.f32.mrf.mxu0  ;;  %v11950_v17 = vpop.f32.mrf.mxu1  ;;  %v4824_v36 = vcombine.low %v4816_v23, %v4823_v11  ;;  %v7140_v23 = vsub.s32 2, %v11960_v28 }
 0x64c   : > { %v11952_v18 = vpop.f32.mrf.mxu0  ;;  %v11954_v19 = vpop.f32.mrf.mxu1 }
 0x64d   : > { %v5502_v53 = vcombine.low %v11948_v16, %v11952_v18  ;;  %v5503_v8 = vcombine.low %v11950_v17, %v11954_v19  ;;  %v4454_v17 = vrot.slane %v4446_v22, %v11971_v37  ;;  %v5171_v19 = vcombine.low %v5162_v27, %v5169_v33 }
 0x64f   : > { %v5524_v60 = vrot.slane %v5502_v53, %v11971_v37  ;;  %v5531_v62 = vrot.slane %v5503_v8, %v11971_v37  ;;  %v4462_v55 = vcombine.low %v4454_v17, %v4461_v34 }
 0x650   : > { %v11956_v25 = vpop.f32.mrf.mxu0  ;;  %v11958_v26 = vpop.f32.mrf.mxu1 }
 0x651   : > { %v5533_v40 = vcombine.low %v5524_v60, %v5531_v62  ;;  %v4464_v33 = vadd.f32 %v4462_v55, %v4102_v5 }
 0x652   : > { %v11962_v31 = vpop.f32.mrf.mxu0  ;;  %v11964_v32 = vpop.f32.mrf.mxu1 }
 0x653   : > { %v5862_v12 = vcombine.low %v11956_v25, %v11962_v31  ;;  %v5863_v45 = vcombine.low %v11958_v26, %v11964_v32  ;;  %v5547_v53 = vrot.slane %v5533_v40, %v11971_v37 }
 0x656   : > { %v11981_v47 = vpop.f32.mrf.mxu0  ;;  %v11983_v46 = vpop.f32.mrf.mxu1 }
 0x658   : > { %v11987_v56 = vpop.f32.mrf.mxu0  ;;  %v11989_v29 = vpop.f32.mrf.mxu1 }
 0x659   : > { %v5864_v3 = vcombine.low %v11981_v47, %v11987_v56  ;;  %v5865_v2 = vcombine.low %v11983_v46, %v11989_v29  ;;  %v5510_v56 = vrot.slane %v5500_v43, %v11971_v37  ;;  %v5517_v46 = vrot.slane %v5501_v48, %v11971_v37 }
 0x65b   : > { %v5886_v25 = vrot.slane %v5864_v3, %v11971_v37  ;;  %v5893_v31 = vrot.slane %v5865_v2, %v11971_v37  ;;  %v5532_v35 = vcombine.low %v5510_v56, %v5517_v46 }
 0x65c   : > { %v11997_v57 = vpop.f32.mrf.mxu0  ;;  %v11999_v58 = vpop.f32.mrf.mxu1 }
 0x65d   : > { %v5895_v9 = vcombine.low %v5886_v25, %v5893_v31  ;;  %v5540_v20 = vrot.slane %v5532_v35, %v11971_v37 }
 0x65e   : > { %v12005_v41 = vpop.f32.mrf.mxu0  ;;  %v12007_v42 = vpop.f32.mrf.mxu1 }
 0x65f   : > { %v6224_v29 = vcombine.low %v11997_v57, %v12005_v41  ;;  %v5872_v57 = vrot.slane %v5862_v12, %v11971_v37  ;;  %v5879_v41 = vrot.slane %v5863_v45, %v11971_v37  ;;  %v5909_v17 = vrot.slane %v5895_v9, %v11971_v37 }
 0x660   : > { %v5548_v43 = vcombine.low %v5540_v20, %v5547_v53  ;;  %v7124_v20 = vld [vmem:[%s12358_s8 + $0x3e0] sm:$0xff] }
 0x661   : > { %v6234_v44 = vrot.slane %v6224_v29, %v11971_v37 }
 0x662   : > { %v12023_v1 = vpop.f32.mrf.mxu0  ;;  %v12025_v61 = vpop.f32.mrf.mxu1 }
 0x664   : > { %v6142_v52 = vpop.f32.mrf.mxu0  ;;  %v6213_v14 = vpop.f32.mrf.mxu1 }
 0x665   : > { %v6226_v63 = vcombine.low %v12023_v1, %v6142_v52  ;;  %v6227_v30 = vcombine.low %v12025_v61, %v6213_v14  ;;  %v6225_v1 = vcombine.low %v11999_v58, %v12007_v42  ;;  %v5185_v61 = vrot.slane %v5171_v19, %v11971_v37 }
 0x666   : > { %v4826_v19 = vadd.f32 %v4824_v36, %v4464_v33  ;;  %v7126_v36 = vld [vmem:[%s12358_s8 + $0x3f0] sm:$0xff] }
 0x667   : > { %v6248_v51 = vrot.slane %v6226_v63, %v11971_v37  ;;  %v6255_v52 = vrot.slane %v6227_v30, %v11971_v37  ;;  %v6241_v54 = vrot.slane %v6225_v1, %v11971_v37 }
 0x668   : > { %v12052_v7 = vpop.f32.mrf.mxu0  ;;  %v12054_v15 = vpop.f32.mrf.mxu1 }
 0x669   : > { %v6257_v8 = vcombine.low %v6248_v51, %v6255_v52  ;;  %v6256_v21 = vcombine.low %v6234_v44, %v6241_v54  ;;  %v7152_v44 = vsub.s32 5, %v11960_v28  ;;  %v7160_v54 = vsub.s32 7, %v11960_v28 }
 0x66a   : > { %v6362_v16 = vpop.f32.mrf.mxu0  ;;  %v6433_v18 = vpop.f32.mrf.mxu1 }
 0x66b   : > { %v6586_v58 = vcombine.low %v12052_v7, %v6362_v16  ;;  %v6587_v42 = vcombine.low %v12054_v15, %v6433_v18  ;;  %v5186_v7 = vcombine.low %v5178_v49, %v5185_v61  ;;  %v5894_v15 = vcombine.low %v5872_v57, %v5879_v41 }
 0x66c   : > { %v6271_v48 = vrot.slane %v6257_v8, %v11971_v37  ;;  %v6264_v30 = vrot.slane %v6256_v21, %v11971_v37  ;;  %v7136_v57 = vsub.s32 1, %v11960_v28  ;;  %v7078_v8 = vld [vmem:[%s12358_s8 + $0x270] sm:$0xff]  ;;  %v7076_v21 = vld [vmem:[%s12358_s8 + $0x260] sm:$0xff] }
 0x66d   : > { %v6596_v34 = vrot.slane %v6586_v58, %v11971_v37  ;;  %v6603_v50 = vrot.slane %v6587_v42, %v11971_v37  ;;  %v5902_v3 = vrot.slane %v5894_v15, %v11971_v37  ;;  %v5188_v63 = vadd.f32 %v5186_v7, %v4826_v19  ;;  %v7110_v7 = vld [vmem:[%s12358_s8 + $0x370] sm:$0xff]  ;;  %v7093_v15 = vld [vmem:[%s12358_s8 + $0x2e8] sm:$0xff]  ;;  %v7107_v19 = vld [vmem:[%s12358_s8 + $0x358] sm:$0xff] }
 0x66e   : > { %v6502_v39 = vpop.f32.mrf.mxu0  ;;  %v6573_v47 = vpop.f32.mrf.mxu1  ;;  %v6272_v46 = vcombine.low %v6264_v30, %v6271_v48  ;;  %v7144_v58 = vsub.s32 3, %v11960_v28  ;;  %v7132_v42 = vsub.s32 0, %v11960_v28  ;;  %v7122_v48 = vld [vmem:[%s12358_s8 + $0x3d0] sm:$0xff]  ;;  %v7120_v30 = vld [vmem:[%s12358_s8 + $0x3c0] sm:$0xff] }
 0x66f   : > { %v6618_v2 = vcombine.low %v6596_v34, %v6603_v50  ;;  %v5910_v12 = vcombine.low %v5902_v3, %v5909_v17  ;;  %v5550_v56 = vadd.f32 %v5548_v43, %v5188_v63  ;;  %v7125_v34 = vld [vmem:[%s12358_s8 + $0x3e8] sm:$0xff]  ;;  %v7123_v17 = vld [vmem:[%s12358_s8 + $0x3d8] sm:$0xff]  ;;  %v7090_v43 = vld [vmem:[%s12358_s8 + $0x2d0] sm:$0xff] }
 0x670   : > { %v6504_v26 = vpop.f32.mrf.mxu0  ;;  %v6575_v32 = vpop.f32.mrf.mxu1  ;;  %v7077_v50 = vld [vmem:[%s12358_s8 + $0x268] sm:$0xff]  ;;  %v7088_v63 = vld [vmem:[%s12358_s8 + $0x2c0] sm:$0xff] }
 0x671   : > { %v6588_v14 = vcombine.low %v6502_v39, %v6504_v26  ;;  %v6589_v24 = vcombine.low %v6573_v47, %v6575_v32  ;;  %v6626_v29 = vrot.slane %v6618_v2, %v11971_v37  ;;  %v5912_v25 = vadd.f32 %v5910_v12, %v5550_v56  ;;  %v7089_v3 = vld [vmem:[%s12358_s8 + $0x2c8] sm:$0xff]  ;;  %v7087_v12 = vld [vmem:[%s12358_s8 + $0x2b8] sm:$0xff]  ;;  %v7086_v56 = vld [vmem:[%s12358_s8 + $0x2b0] sm:$0xff] }
 0x672   : > { %v7121_v2 = vld [vmem:[%s12358_s8 + $0x3c8] sm:$0xff] }
 0x673   : > { %v6610_v6 = vrot.slane %v6588_v14, %v11971_v37  ;;  %v6617_v10 = vrot.slane %v6589_v24, %v11971_v37  ;;  %v6274_v32 = vadd.f32 %v6272_v46, %v5912_v25  ;;  %v7118_v46 = vld [vmem:[%s12358_s8 + $0x3b0] sm:$0xff]  ;;  %v7069_v25 = vld [vmem:[%s12358_s8 + $0x228] sm:$0xff] }
 0x674   : > { %v6722_v22 = vpop.f32.mrf.mxu0  ;;  %v6793_v27 = vpop.f32.mrf.mxu1 }
 0x675   : > { %v6619_v5 = vcombine.low %v6610_v6, %v6617_v10  ;;  %v7079_v10 = vld [vmem:[%s12358_s8 + $0x278] sm:$0xff] }
 0x676   : > { %v6724_v4 = vpop.f32.mrf.mxu0  ;;  %v6795_v38 = vpop.f32.mrf.mxu1 }
 0x677   : > { %v6948_v16 = vcombine.low %v6722_v22, %v6724_v4  ;;  %v6949_v18 = vcombine.low %v6793_v27, %v6795_v38  ;;  %v6633_v45 = vrot.slane %v6619_v5, %v11971_v37  ;;  %v7111_v22 = vld [vmem:[%s12358_s8 + $0x378] sm:$0xff]  ;;  %v7094_v27 = vld [vmem:[%s12358_s8 + $0x2f0] sm:$0xff]  ;;  %v7109_v4 = vld [vmem:[%s12358_s8 + $0x368] sm:$0xff] }
 0x678   : > { %v7092_v38 = vld [vmem:[%s12358_s8 + $0x2e0] sm:$0xff]  ;;  %v7075_v5 = vld [vmem:[%s12358_s8 + $0x258] sm:$0xff] }
 0x679   : > { %v6864_v60 = vpop.f32.mrf.mxu0  ;;  %v6935_v62 = vpop.f32.mrf.mxu1  ;;  %v6958_v55 = vrot.slane %v6948_v16, %v11971_v37  ;;  %v6965_v59 = vrot.slane %v6949_v18, %v11971_v37  ;;  %v6634_v31 = vcombine.low %v6626_v29, %v6633_v45  ;;  %v7108_v16 = vld [vmem:[%s12358_s8 + $0x360] sm:$0xff]  ;;  %v7091_v18 = vld [vmem:[%s12358_s8 + $0x2d8] sm:$0xff]  ;;  %v7070_v29 = vld [vmem:[%s12358_s8 + $0x230] sm:$0xff] }
 0x67a   : > { %v7119_v45 = vld [vmem:[%s12358_s8 + $0x3b8] sm:$0xff] }
 0x67b   : > { %v6866_v11 = vpop.f32.mrf.mxu0  ;;  %v6937_v13 = vpop.f32.mrf.mxu1  ;;  %v6980_v1 = vcombine.low %v6958_v55, %v6965_v59  ;;  %v6636_v14 = vadd.f32 %v6634_v31, %v6274_v32  ;;  %v7073_v55 = vld [vmem:[%s12358_s8 + $0x248] sm:$0xff]  ;;  %v7116_v32 = vld [vmem:[%s12358_s8 + $0x3a0] sm:$0xff] }
 0x67c   : > { %v6950_v39 = vcombine.low %v6864_v60, %v6866_v11  ;;  %v6951_v47 = vcombine.low %v6935_v62, %v6937_v13  ;;  %v7074_v60 = vld [vmem:[%s12358_s8 + $0x250] sm:$0xff]  ;;  %v7105_v59 = vld [vmem:[%s12358_s8 + $0x348] sm:$0xff]  ;;  %v7072_v11 = vld [vmem:[%s12358_s8 + $0x240] sm:$0xff] }
 0x67d   : > { %v6988_v51 = vrot.slane %v6980_v1, %v11971_v37  ;;  %v7106_v62 = vld [vmem:[%s12358_s8 + $0x350] sm:$0xff]  ;;  %v7104_v13 = vld [vmem:[%s12358_s8 + $0x340] sm:$0xff]  ;;  %v7101_v31 = vld [vmem:[%s12358_s8 + $0x328] sm:$0xff] }
 0x67e   : > { %v6972_v61 = vrot.slane %v6950_v39, %v11971_v37  ;;  %v6979_v40 = vrot.slane %v6951_v47, %v11971_v37  ;;  %v7071_v39 = vld [vmem:[%s12358_s8 + $0x238] sm:$0xff]  ;;  %v7102_v1 = vld [vmem:[%s12358_s8 + $0x330] sm:$0xff] }
 0x67f   : > { %v7103_v47 = vld [vmem:[%s12358_s8 + $0x338] sm:$0xff] }
 0x680   : > { %v6981_v26 = vcombine.low %v6972_v61, %v6979_v40  ;;  %v7085_v61 = vld [vmem:[%s12358_s8 + $0x2a8] sm:$0xff] }
 0x681   : > { %v7117_v40 = vld [vmem:[%s12358_s8 + $0x3a8] sm:$0xff] }
 0x682   : > { %v6995_v52 = vrot.slane %v6981_v26, %v11971_v37  ;;  %v7084_v26 = vld [vmem:[%s12358_s8 + $0x2a0] sm:$0xff] }
 0x684   : > { %v6996_v24 = vcombine.low %v6988_v51, %v6995_v52  ;;  %v7068_v51 = vld [vmem:[%s12358_s8 + $0x220] sm:$0xff] }
 0x685   : > { %v7100_v52 = vld [vmem:[%s12358_s8 + $0x320] sm:$0xff] }
 0x686   : > { %v6998_v41 = vadd.f32 %v6996_v24, %v6636_v14  ;;  %v7083_v14 = vld [vmem:[%s12358_s8 + $0x298] sm:$0xff] }
 0x687   : > { %v7115_v24 = vld [vmem:[%s12358_s8 + $0x398] sm:$0xff] }
 0x688   : > { %v12120_v35 = vmax.f32 %v6998_v41, 0.0  ;;  %v7099_v41 = vld [vmem:[%s12358_s8 + $0x318] sm:$0xff] }
 0x68a   : > { %v7137_v49 = vrot.slane %v12120_v35, %v7136_v57  ;;  %v7145_v37 = vrot.slane %v12120_v35, %v7144_v58  ;;  %v7133_v9 = vrot.slane %v12120_v35, %v7132_v42  ;;  %v7141_v6 = vrot.slane %v12120_v35, %v7140_v23  ;;  %v7067_v57 = vld [vmem:[%s12358_s8 + $0x218] sm:$0xff]  ;;  %v7082_v58 = vld [vmem:[%s12358_s8 + $0x290] sm:$0xff] }
 0x68b   : > { %v7153_v33 = vrot.slane %v12120_v35, %v7152_v44  ;;  %v7161_v53 = vrot.slane %v12120_v35, %v7160_v54  ;;  %v7114_v42 = vld [vmem:[%s12358_s8 + $0x390] sm:$0xff]  ;;  %v7081_v54 = vld [vmem:[%s12358_s8 + $0x288] sm:$0xff] }
 0x68c   : > { %7234 = vmatprep.mubr.f32.mxu0 %v7137_v49  ;;  %7304 = vmatprep.mubr.f32.mxu1 %v7145_v37  ;;  %v7066_v23 = vld [vmem:[%s12358_s8 + $0x210] sm:$0xff]  ;;  %v7113_v49 = vld [vmem:[%s12358_s8 + $0x388] sm:$0xff] }
 0x68d   : > { %7235 = vmatmul.mubr.f32.vlgmr.msra.gmra.mxu0 %v7133_v9  ;;  %7305 = vmatmul.mubr.f32.vlgmr.msra.gmra.mxu1 %v7141_v6  ;;  %v7098_v44 = vld [vmem:[%s12358_s8 + $0x310] sm:$0xff]  ;;  %v7065_v37 = vld [vmem:[%s12358_s8 + $0x208] sm:$0xff]  ;;  %v7148_v6 = vsub.s32 4, %v11960_v28 }
 0x68e   : > { %8369 = vmatpush3.msra.mxu0 %v7079_v10  ;;  %8404 = vmatpush3.msra.mxu1 %v7111_v22  ;;  %v7097_v9 = vld [vmem:[%s12358_s8 + $0x308] sm:$0xff]  ;;  %v7156_v10 = vsub.s32 6, %v11960_v28  ;;  %v7080_v22 = vld [vmem:[%s12358_s8 + $0x280] sm:$0xff] }
 0x68f   : > { %8370 = vmatprep.subr.mxu0 %v7094_v27  ;;  %7374 = vmatprep.mubr.f32.mxu0 %v7153_v33  ;;  %v7112_v27 = vld [vmem:[%s12358_s8 + $0x380] sm:$0xff] }
 0x690   : > { %8405 = vmatprep.subr.mxu1 %v7126_v36  ;;  %7444 = vmatprep.mubr.f32.mxu1 %v7161_v53  ;;  %v7064_v33 = vld [vmem:[%s12358_s8 + $0x200] sm:$0xff]  ;;  %v7149_v36 = vrot.slane %v12120_v35, %v7148_v6  ;;  %v7157_v53 = vrot.slane %v12120_v35, %v7156_v10  ;;  %v7452_v35 = vld [vmem:[%s12360_s10 + $0x8] sm:$0xff] }
 0x691   : > { %8371 = vmatpush3.msra.mxu0 %v7078_v8  ;;  %8406 = vmatpush3.msra.mxu1 %v7110_v7  ;;  %v7096_v28 = vld [vmem:[%s12358_s8 + $0x300] sm:$0xff]  ;;  %v7454_v8 = vld [vmem:[%s12360_s10 + $0x18] sm:$0xff]  ;;  %v7453_v7 = vld [vmem:[%s12360_s10 + $0x10] sm:$0xff] }
 0x692   : > { %8372 = vmatprep.subr.mxu0 %v7093_v15  ;;  %8407 = vmatprep.subr.mxu1 %v7125_v34  ;;  %v7451_v15 = vld [vmem:[%s12360_s10] sm:$0xff] }
 0x693   : > { %8373 = vmatpush3.msra.mxu0 %v7077_v50  ;;  %8408 = vmatpush3.msra.mxu1 %v7109_v4 }
 0x694   : > { %8374 = vmatprep.subr.mxu0 %v7092_v38  ;;  %8409 = vmatprep.subr.mxu1 %v7124_v20  ;;  %v7128_v20 = vld [vmem:[%s12359_s9] sm:$0x1] }
 0x695   : > { %8375 = vmatpush3.msra.mxu0 %v7076_v21  ;;  %8410 = vmatpush3.msra.mxu1 %v7108_v16 }
 0x696   : > { %8376 = vmatprep.subr.mxu0 %v7091_v18  ;;  %8411 = vmatprep.subr.mxu1 %v7123_v17 }
 0x697   : > { %8377 = vmatpush3.msra.mxu0 %v7075_v5  ;;  %8412 = vmatpush3.msra.mxu1 %v7107_v19 }
 0x698   : > { %8378 = vmatprep.subr.mxu0 %v7090_v43  ;;  %8413 = vmatprep.subr.mxu1 %v7122_v48 }
 0x699   : > { %8379 = vmatpush3.msra.mxu0 %v7074_v60  ;;  %8414 = vmatpush3.msra.mxu1 %v7106_v62 }
 0x69a   : > { %8380 = vmatprep.subr.mxu0 %v7089_v3  ;;  %8415 = vmatprep.subr.mxu1 %v7121_v2 }
 0x69b   : > { %8381 = vmatpush3.msra.mxu0 %v7073_v55  ;;  %8416 = vmatpush3.msra.mxu1 %v7105_v59  ;;  %v7455_v55 = vld [vmem:[%s12361_s11] sm:$0x1] }
 0x69c   : > { %8382 = vmatprep.subr.mxu0 %v7088_v63  ;;  %8417 = vmatprep.subr.mxu1 %v7120_v30 }
 0x69d   : > { %8383 = vmatpush3.msra.mxu0 %v7072_v11  ;;  %8418 = vmatpush3.msra.mxu1 %v7104_v13 }
 0x69e   : > { %8384 = vmatprep.subr.mxu0 %v7087_v12  ;;  %8419 = vmatprep.subr.mxu1 %v7119_v45 }
 0x69f   : > { %8385 = vmatpush3.msra.mxu0 %v7071_v39  ;;  %8420 = vmatpush3.msra.mxu1 %v7103_v47 }
 0x6a0   : > { %8386 = vmatprep.subr.mxu0 %v7086_v56  ;;  %8421 = vmatprep.subr.mxu1 %v7118_v46 }
 0x6a1   : > { %8387 = vmatpush3.msra.mxu0 %v7070_v29  ;;  %8422 = vmatpush3.msra.mxu1 %v7102_v1 }
 0x6a2   : > { %8388 = vmatprep.subr.mxu0 %v7085_v61  ;;  %8423 = vmatprep.subr.mxu1 %v7117_v40 }
 0x6a3   : > { %8389 = vmatpush3.msra.mxu0 %v7069_v25  ;;  %8424 = vmatpush3.msra.mxu1 %v7101_v31 }
 0x6a4   : > { %8390 = vmatprep.subr.mxu0 %v7084_v26  ;;  %8425 = vmatprep.subr.mxu1 %v7116_v32 }
 0x6a5   : > { %8391 = vmatpush3.msra.mxu0 %v7068_v51  ;;  %8426 = vmatpush3.msra.mxu1 %v7100_v52 }
 0x6a6   : > { %8392 = vmatprep.subr.mxu0 %v7083_v14  ;;  %8427 = vmatprep.subr.mxu1 %v7115_v24 }
 0x6a7   : > { %8393 = vmatpush3.msra.mxu0 %v7067_v57  ;;  %8428 = vmatpush3.msra.mxu1 %v7099_v41 }
 0x6a8   : > { %8394 = vmatprep.subr.mxu0 %v7082_v58  ;;  %8429 = vmatprep.subr.mxu1 %v7114_v42 }
 0x6a9   : > { %8395 = vmatpush3.msra.mxu0 %v7066_v23  ;;  %8430 = vmatpush3.msra.mxu1 %v7098_v44 }
 0x6aa   : > { %8396 = vmatprep.subr.mxu0 %v7081_v54  ;;  %8431 = vmatprep.subr.mxu1 %v7113_v49 }
 0x6ab   : > { %8397 = vmatpush3.msra.mxu0 %v7065_v37  ;;  %8432 = vmatpush3.msra.mxu1 %v7097_v9 }
 0x6ac   : > { %8398 = vmatprep.subr.mxu0 %v7080_v22  ;;  %8433 = vmatprep.subr.mxu1 %v7112_v27 }
 0x6ad   : > { %8399 = vmatpush3.msra.mxu0 %v7064_v33  ;;  %8434 = vmatpush3.msra.mxu1 %v7096_v28 }
 0x6ae   : > { %7375 = vmatmul.mubr.f32.vlgmr.msra.gmra.mxu0 %v7149_v36  ;;  %7445 = vmatmul.mubr.f32.vlgmr.msra.gmra.mxu1 %v7157_v53 }
 0x6af   : > { %8443 = vmatprep.subr.mxu0 %v8480_v0  ;;  %8451 = vmatprep.mubr.msk.f32.mxu0 %vm8486_vm6, %v8480_v0 }
 0x6b0   : > { %8444 = vmatpush3.msra.mxu0 %v7454_v8 }
 0x6b1   : > { %8445 = vmatprep.subr.mxu0 %v8480_v0 }
 0x6b2   : > { %8446 = vmatpush3.msra.mxu0 %v7453_v7 }
 0x6b3   : > { %8447 = vmatprep.subr.mxu0 %v8480_v0 }
 0x6b4   : > { %8448 = vmatpush3.msra.mxu0 %v7452_v35 }
 0x6b5   : > { %8449 = vmatprep.subr.mxu0 %v8480_v0 }
 0x6b6   : > { %8450 = vmatpush3.msra.mxu0 %v7451_v15 }
 0x74d   : > { %v8330_v34 = vpop.f32.mrf.mxu0  ;;  %v8365_v4 = vpop.f32.mrf.mxu1 }
 0x74f   : > { %v8331_v50 = vpop.f32.mrf.mxu0  ;;  %v8366_v21 = vpop.f32.mrf.mxu1 }
 0x750   : > { %v8332_v38 = vadd.f32 %v8331_v50, %v8330_v34  ;;  %v8367_v5 = vadd.f32 %v8366_v21, %v8365_v4 }
 0x752   : > { %v7237_v16 = vadd.f32 %v8332_v38, %v7128_v20 }
 0x754   : > { %v7307_v48 = vadd.f32 %v8367_v5, %v7237_v16 }
 0x76e   : > { %v8400_v18 = vpop.f32.mrf.mxu0  ;;  %v8435_v17 = vpop.f32.mrf.mxu1 }
 0x770   : > { %v8401_v19 = vpop.f32.mrf.mxu0  ;;  %v8436_v43 = vpop.f32.mrf.mxu1 }
 0x771   : > { %v8402_v60 = vadd.f32 %v8401_v19, %v8400_v18  ;;  %v8437_v0 = vadd.f32 %v8436_v43, %v8435_v17 }
 0x773   : > { %v7377_v62 = vadd.f32 %v8402_v60, %v7307_v48 }
 0x775   : > { %v7447_v3 = vadd.f32 %v8437_v0, %v7377_v62 }
 0x777   : > { %v7450_v2 = vmax.f32 %v7447_v3, 0.0 }
 0x779   : > { %8452 = vmatmul.mubr.msk.f32.vlgmr.msra.gmra.mxu0 %vm7456_vm7, %v7450_v2 }
 0x839   : > { %v7526_v59 = vpop.f32.mrf.mxu0 }
 0x83a   : > { %v7527_v63 = vadd.f32 %v7526_v59, %v7455_v55 }
 0x83b   : > { %v8453_v30 = vpop.f32.mrf.mxu0 }
 0x83c   : > { %7531 = vst.msk [vmem:[%s409_s26] sm:$0x1] %vm7530_vm8, %v7527_v63 }
 0x83d PF: > { %s22_s21 = sadd.s32 1, %s8478_s21  }
 0x83e   : > { %p19_p4 = scmp.ge.s32.totalorder %s22_s21, 4  }
 0x840   :  { %21 = sbr.rel (!%p19_p4) target bundleno = 1 (0x1), region = 125 }

</bundles_post_ra>
